<compile_context>
chip_gen: v7x
topology: tpu7x:2x2x1
jax: 0.10.0
libtpu: 0.0.40
codegen_flags: <defaults>
</compile_context>

<pallas_src>
import jax
import jax.numpy as jnp
from jax.experimental import pallas as pl
from jax.experimental.pallas import tpu as pltpu

# ---------------------------------------------------------------------------
# Module hyper-parameters (small, consistent with the PyTorch __init__)
# ---------------------------------------------------------------------------
WORD_EMB_DIM = 32
NUM_FILTERS = 8
WINDOW_SIZE = 3
CATEGORY_EMB_DIM = 16
NUM_EMBEDDINGS = 100
NUM_CATEGORIES = 10

D_MODEL = NUM_FILTERS * 2 + CATEGORY_EMB_DIM          # 32
NHEAD = 2
HEAD_DIM = D_MODEL // NHEAD                           # 16
DIM_FF = 2048                                         # PyTorch TransformerDecoderLayer default
NUM_LAYERS = 6
EPS = 1e-5


# ---------------------------------------------------------------------------
# Fused kernel: conv features + 6 post-norm decoder layers, all in one call
# ---------------------------------------------------------------------------
def _news_decoder_kernel(title_ref, body_ref, cat_ref, mem_ref,
                         convw_ref, convb_ref,
                         attnw_ref, ffnw_ref, bias_ref, l1b_ref,
                         out_ref):
    # ---- Conv2d((W,E)) -> MaxPool2d((2,1)) -> ReLU -> mean (title & body) --
    def conv_feat(emb_ref):
        B, Lseq, _ = emb_ref.shape
        T = Lseq - WINDOW_SIZE + 1                    # conv output length
        T2 = T // 2                                   # pooled length (floor)
        rows = []
        for bi in range(B):                           # B == 2, unrolled
            emb = emb_ref[bi]                         # (L, E) f32
            acc = jnp.zeros((T, NUM_FILTERS), jnp.float32)
            for i in range(WINDOW_SIZE):
                acc = acc + jnp.dot(emb[i:i + T, :], convw_ref[i],
                                    preferred_element_type=jnp.float32)
            acc = acc + convb_ref[...]                # (T, NF) + (1, NF)
            # pool(2,1) -> relu -> mean via static non-overlapping row pairs.
            s = jnp.zeros((1, NUM_FILTERS), jnp.float32)
            for j in range(T2):
                s = s + jnp.maximum(
                    jnp.maximum(acc[2 * j:2 * j + 1, :],
                                acc[2 * j + 1:2 * j + 2, :]), 0.0)
            rows.append(s * (1.0 / float(T2)))
        return jnp.concatenate(rows, axis=0)          # (B, NF)

    tfeat = conv_feat(title_ref)
    bfeat = conv_feat(body_ref)
    # Decoder target: (B, 1, d_model) with batch_first=False => sequence len B.
    x = jnp.concatenate([tfeat, bfeat, cat_ref[...]], axis=1)   # (S=B, D) f32
    mem = mem_ref[...]                                          # (M, D) f32
    mem_bf = mem.astype(jnp.bfloat16)

    scale = 1.0 / (float(HEAD_DIM) ** 0.5)

    def layer_norm(v, w, b):
        mu = jnp.mean(v, axis=-1, keepdims=True)
        var = jnp.mean((v - mu) * (v - mu), axis=-1, keepdims=True)
        return (v - mu) * jax.lax.rsqrt(var + EPS) * w + b

    def bvec(bs, r, c):
        # bs: (4, 128) f32 packed small params; returns a (1, D_MODEL) slice.
        return bs[r:r + 1, c * D_MODEL:(c + 1) * D_MODEL]

    def attention(q_src, w, bq, bk, bv, bo, kv_proj=None):
        """w: (D, 4D) bf16 = [Wq|Wk|Wv|Wo] packed on lanes.
        kv_proj: precomputed (Skv, 4D) f32 projection of key/value source
        (None -> self-attention, reuse the query projection)."""
        proj_q = jnp.dot(q_src.astype(jnp.bfloat16), w,
                         preferred_element_type=jnp.float32)     # (Sq, 4D)
        proj_kv = proj_q if kv_proj is None else kv_proj
        q = proj_q[:, 0 * D_MODEL:1 * D_MODEL] + bq
        k = proj_kv[:, 1 * D_MODEL:2 * D_MODEL] + bk
        v = proj_kv[:, 2 * D_MODEL:3 * D_MODEL] + bv
        heads = []
        for h in range(NHEAD):                        # NHEAD == 2, unrolled
            lo = h * HEAD_DIM
            qh = q[:, lo:lo + HEAD_DIM] * scale
            kh = k[:, lo:lo + HEAD_DIM]
            vh = v[:, lo:lo + HEAD_DIM]
            # scores: contract the head dim of both (no explicit transpose)
            s = jax.lax.dot_general(qh, kh, (((1,), (1,)), ((), ())),
                                    preferred_element_type=jnp.float32)
            s = s - jnp.max(s, axis=-1, keepdims=True)
            e = jnp.exp(s)
            p = e / jnp.sum(e, axis=-1, keepdims=True)            # exact softmax
            heads.append(jnp.dot(p, vh, preferred_element_type=jnp.float32))
        cat = jnp.concatenate(heads, axis=1)          # (Sq, D)
        wo = w[:, 3 * D_MODEL:4 * D_MODEL]            # (D, D) bf16
        return jnp.dot(cat.astype(jnp.bfloat16), wo,
                       preferred_element_type=jnp.float32) + bo

    # ---- 6 post-norm TransformerDecoderLayer's, fully unrolled --------------
    for l in range(NUM_LAYERS):
        bs = bias_ref[l]                              # (4, 128) f32
        w_self = attnw_ref[l, 0]                      # (32, 128) bf16
        w_cross = attnw_ref[l, 1]                     # (32, 128) bf16
        w1 = ffnw_ref[l, 0]                           # (32, 2048) bf16
        w2t = ffnw_ref[l, 1]                          # (32, 2048) bf16 (= W2^T)
        l1b = l1b_ref[l]                              # (1, 2048) f32

        # self-attention + add & norm
        sa = attention(x, w_self,
                       bvec(bs, 0, 0), bvec(bs, 0, 1), bvec(bs, 0, 2), bvec(bs, 0, 3))
        x = layer_norm(x + sa, bvec(bs, 2, 0), bvec(bs, 2, 1))

        # cross-attention over memory + add & norm
        kv_proj = jnp.dot(mem_bf, w_cross, preferred_element_type=jnp.float32)
        ca = attention(x, w_cross,
                       bvec(bs, 1, 0), bvec(bs, 1, 1), bvec(bs, 1, 2), bvec(bs, 1, 3),
                       kv_proj=kv_proj)
        x = layer_norm(x + ca, bvec(bs, 2, 2), bvec(bs, 2, 3))

        # feed-forward (relu); linear2 is applied through its stored transpose
        h = jnp.maximum(
            jnp.dot(x.astype(jnp.bfloat16), w1,
                    preferred_element_type=jnp.float32) + l1b, 0.0)
        ff = jax.lax.dot_general(h.astype(jnp.bfloat16), w2t,
                                 (((1,), (1,)), ((), ())),
                                 preferred_element_type=jnp.float32) + bvec(bs, 3, 2)
        x = layer_norm(x + ff, bvec(bs, 3, 0), bvec(bs, 3, 1))

    out_ref[...] = x                                  # (B, D) f32


# ---------------------------------------------------------------------------
# Parameters (synthetic, deterministic); matmul weights packed + stored bf16
# ---------------------------------------------------------------------------
def init_params(key):
    keys = jax.random.split(key, 8)

    def nrm(k, shape, scale=0.05):
        return scale * jax.random.normal(k, shape, dtype=jnp.float32)

    word_emb = nrm(keys[0], (NUM_EMBEDDINGS, WORD_EMB_DIM), 0.1)
    word_emb = word_emb.at[0].set(0.0)                # padding_idx=0
    cat_emb = nrm(keys[1], (NUM_CATEGORIES, CATEGORY_EMB_DIM), 0.1)
    conv_w = nrm(keys[2], (WINDOW_SIZE, WORD_EMB_DIM, NUM_FILTERS), 0.1)
    conv_b = 0.01 * jax.random.normal(keys[3], (1, NUM_FILTERS), dtype=jnp.float32)

    L, d, f = NUM_LAYERS, D_MODEL, DIM_FF
    bf = jnp.bfloat16
    # Attention weights, applied as x @ W: [self, cross] x [Wq|Wk|Wv|Wo] on lanes.
    # (If real nn.MultiheadAttention weights are ever loaded they must be
    #  transposed from PyTorch's x @ W^T convention before packing.)
    attn_w = jnp.stack([nrm(keys[4], (L, d, 4 * d)),
                        nrm(keys[5], (L, d, 4 * d))], axis=1).astype(bf)   # (L,2,32,128)
    # FFN weights: slot 0 = W1 (d -> f); slot 1 = W2^T (linear2 stored transposed
    # so the (32, 2048) tile is lane-dense and the DMA streams contiguously).
    ffn_w = jnp.stack([nrm(keys[6], (L, d, f)),
                       nrm(keys[7], (L, d, f))], axis=1).astype(bf)        # (L,2,32,2048)
    # Packed f32 small params, one lane-dense (4, 128) slab per layer:
    #   row 0: self-attn  bq | bk | bv | bo
    #   row 1: cross-attn bq | bk | bv | bo
    #   row 2: ln1_w | ln1_b | ln2_w | ln2_b
    #   row 3: ln3_w | ln3_b | l2_b  | (pad)
    bias = jnp.zeros((L, 4, 128), jnp.float32)
    bias = bias.at[:, 2, 0 * d:1 * d].set(1.0)        # LayerNorm1 gamma
    bias = bias.at[:, 2, 2 * d:3 * d].set(1.0)        # LayerNorm2 gamma
    bias = bias.at[:, 3, 0 * d:1 * d].set(1.0)        # LayerNorm3 gamma
    l1b = jnp.zeros((L, 1, f), jnp.float32)           # linear1 bias

    return dict(word_emb=word_emb, cat_emb=cat_emb, conv_w=conv_w, conv_b=conv_b,
                attn_w=attn_w, ffn_w=ffn_w, bias=bias, l1b=l1b)


# ---------------------------------------------------------------------------
# Forward: embedding gathers in JAX glue, everything else in ONE pallas_call
# ---------------------------------------------------------------------------
def news_decoder_forward(params, title, body, category, memory):
    # TODO(synk): embedding lookups are data-dependent gathers; kept in plain JAX.
    title_emb = params['word_emb'][title]             # (B, Lt, E) f32
    body_emb = params['word_emb'][body]               # (B, Lb, E) f32
    cat_emb = params['cat_emb'][category]             # (B, C)     f32
    mem = memory[:, 0, :]                             # (M, D) (decoder batch==1)
    B = title.shape[0]

    vmem = pl.BlockSpec(memory_space=pltpu.MemorySpace.VMEM)   # full array, VMEM-resident
    return pl.pallas_call(
        _news_decoder_kernel,
        out_shape=jax.ShapeDtypeStruct((B, D_MODEL), jnp.float32),
        in_specs=[vmem] * 10,
        out_specs=vmem,
    )(title_emb, body_emb, cat_emb, mem,
      params['conv_w'], params['conv_b'],
      params['attn_w'], params['ffn_w'], params['bias'], params['l1b'])
    # == output.squeeze(1): (B, d_model)


if __name__ == "__main__":
    key = jax.random.PRNGKey(0)
    pkey, tkey, bkey, ckey, mkey = jax.random.split(key, 5)
    params = init_params(pkey)

    B, LT, LB, M = 2, 16, 16, 4
    title = jax.random.randint(tkey, (B, LT), 0, NUM_EMBEDDINGS, dtype=jnp.int32)
    body = jax.random.randint(bkey, (B, LB), 0, NUM_EMBEDDINGS, dtype=jnp.int32)
    category = jax.random.randint(ckey, (B,), 0, NUM_CATEGORIES, dtype=jnp.int32)
    memory = 0.1 * jax.random.normal(mkey, (M, 1, D_MODEL), dtype=jnp.float32)

    out = news_decoder_forward(params, title, body, category, memory)
    out = jax.block_until_ready(out)
    assert out.shape == (B, D_MODEL), out.shape
    assert bool(jnp.all(jnp.isfinite(out)))
    print("KERNEL_OK")
</pallas_src>

<mosaic_0001>
module attributes {stable_mosaic.version = 11 : i64} {
  func.func @_news_decoder_kernel(%arg0: memref<2x16x32xf32, #tpu.memory_space<vmem>>, %arg1: memref<2x16x32xf32, #tpu.memory_space<vmem>>, %arg2: memref<2x16xf32, #tpu.memory_space<vmem>>, %arg3: memref<4x32xf32, #tpu.memory_space<vmem>>, %arg4: memref<3x32x8xf32, #tpu.memory_space<vmem>>, %arg5: memref<1x8xf32, #tpu.memory_space<vmem>>, %arg6: memref<6x2x32x128xbf16, #tpu.memory_space<vmem>>, %arg7: memref<6x2x32x2048xbf16, #tpu.memory_space<vmem>>, %arg8: memref<6x4x128xf32, #tpu.memory_space<vmem>>, %arg9: memref<6x1x2048xf32, #tpu.memory_space<vmem>>, %arg10: memref<2x32xf32, #tpu.memory_space<vmem>>) attributes {dimension_semantics = [], scalar_prefetch = 0 : i64, scratch_operands = 0 : i64, tpu.core_type = #tpu.core_type<tc>} {
    %c0 = arith.constant 0 : index
    %c0_0 = arith.constant 0 : index
    %c0_1 = arith.constant 0 : index
    %0 = vector.load %arg0[%c0, %c0_0, %c0_1] : memref<2x16x32xf32, #tpu.memory_space<vmem>>, vector<1x16x32xf32>
    %1 = vector.shape_cast %0 : vector<1x16x32xf32> to vector<16x32xf32>
    %cst = arith.constant 0.000000e+00 : f32
    %2 = vector.broadcast %cst : f32 to vector<14x8xf32>
    %3 = vector.extract_strided_slice %1 {offsets = [0, 0], sizes = [14, 32], strides = [1, 1]} : vector<16x32xf32> to vector<14x32xf32>
    %c0_2 = arith.constant 0 : index
    %c0_3 = arith.constant 0 : index
    %c0_4 = arith.constant 0 : index
    %4 = vector.load %arg4[%c0_2, %c0_3, %c0_4] : memref<3x32x8xf32, #tpu.memory_space<vmem>>, vector<1x32x8xf32>
    %5 = vector.shape_cast %4 : vector<1x32x8xf32> to vector<32x8xf32>
    %cst_5 = arith.constant dense<0.000000e+00> : vector<14x8xf32>
    %6 = tpu.matmul %3, %5, %cst_5 {dimension_numbers = #tpu.dot_dimension_numbers<[1], [0], [0], [1], [0, 0, 1, 1], [], []>} : vector<14x32xf32>, vector<32x8xf32>, vector<14x8xf32> -> vector<14x8xf32>
    %7 = arith.addf %2, %6 : vector<14x8xf32>
    %8 = vector.extract_strided_slice %1 {offsets = [1, 0], sizes = [14, 32], strides = [1, 1]} : vector<16x32xf32> to vector<14x32xf32>
    %c1 = arith.constant 1 : index
    %c0_6 = arith.constant 0 : index
    %c0_7 = arith.constant 0 : index
    %9 = vector.load %arg4[%c1, %c0_6, %c0_7] : memref<3x32x8xf32, #tpu.memory_space<vmem>>, vector<1x32x8xf32>
    %10 = vector.shape_cast %9 : vector<1x32x8xf32> to vector<32x8xf32>
    %cst_8 = arith.constant dense<0.000000e+00> : vector<14x8xf32>
    %11 = tpu.matmul %8, %10, %cst_8 {dimension_numbers = #tpu.dot_dimension_numbers<[1], [0], [0], [1], [0, 0, 1, 1], [], []>} : vector<14x32xf32>, vector<32x8xf32>, vector<14x8xf32> -> vector<14x8xf32>
    %12 = arith.addf %7, %11 : vector<14x8xf32>
    %13 = vector.extract_strided_slice %1 {offsets = [2, 0], sizes = [14, 32], strides = [1, 1]} : vector<16x32xf32> to vector<14x32xf32>
    %c2 = arith.constant 2 : index
    %c0_9 = arith.constant 0 : index
    %c0_10 = arith.constant 0 : index
    %14 = vector.load %arg4[%c2, %c0_9, %c0_10] : memref<3x32x8xf32, #tpu.memory_space<vmem>>, vector<1x32x8xf32>
    %15 = vector.shape_cast %14 : vector<1x32x8xf32> to vector<32x8xf32>
    %cst_11 = arith.constant dense<0.000000e+00> : vector<14x8xf32>
    %16 = tpu.matmul %13, %15, %cst_11 {dimension_numbers = #tpu.dot_dimension_numbers<[1], [0], [0], [1], [0, 0, 1, 1], [], []>} : vector<14x32xf32>, vector<32x8xf32>, vector<14x8xf32> -> vector<14x8xf32>
    %17 = arith.addf %12, %16 : vector<14x8xf32>
    %c0_12 = arith.constant 0 : index
    %c0_13 = arith.constant 0 : index
    %18 = vector.load %arg5[%c0_12, %c0_13] : memref<1x8xf32, #tpu.memory_space<vmem>>, vector<1x8xf32>
    %19 = vector.broadcast %18 : vector<1x8xf32> to vector<14x8xf32>
    %20 = arith.addf %17, %19 : vector<14x8xf32>
    %cst_14 = arith.constant 0.000000e+00 : f32
    %21 = vector.broadcast %cst_14 : f32 to vector<1x8xf32>
    %22 = vector.extract_strided_slice %20 {offsets = [0, 0], sizes = [1, 8], strides = [1, 1]} : vector<14x8xf32> to vector<1x8xf32>
    %23 = vector.extract_strided_slice %20 {offsets = [1, 0], sizes = [1, 8], strides = [1, 1]} : vector<14x8xf32> to vector<1x8xf32>
    %24 = arith.maximumf %22, %23 : vector<1x8xf32>
    %cst_15 = arith.constant 0.000000e+00 : f32
    %25 = vector.broadcast %cst_15 : f32 to vector<1x8xf32>
    %26 = arith.maximumf %24, %25 : vector<1x8xf32>
    %27 = arith.addf %21, %26 : vector<1x8xf32>
    %28 = vector.extract_strided_slice %20 {offsets = [2, 0], sizes = [1, 8], strides = [1, 1]} : vector<14x8xf32> to vector<1x8xf32>
    %29 = vector.extract_strided_slice %20 {offsets = [3, 0], sizes = [1, 8], strides = [1, 1]} : vector<14x8xf32> to vector<1x8xf32>
    %30 = arith.maximumf %28, %29 : vector<1x8xf32>
    %cst_16 = arith.constant 0.000000e+00 : f32
    %31 = vector.broadcast %cst_16 : f32 to vector<1x8xf32>
    %32 = arith.maximumf %30, %31 : vector<1x8xf32>
    %33 = arith.addf %27, %32 : vector<1x8xf32>
    %34 = vector.extract_strided_slice %20 {offsets = [4, 0], sizes = [1, 8], strides = [1, 1]} : vector<14x8xf32> to vector<1x8xf32>
    %35 = vector.extract_strided_slice %20 {offsets = [5, 0], sizes = [1, 8], strides = [1, 1]} : vector<14x8xf32> to vector<1x8xf32>
    %36 = arith.maximumf %34, %35 : vector<1x8xf32>
    %cst_17 = arith.constant 0.000000e+00 : f32
    %37 = vector.broadcast %cst_17 : f32 to vector<1x8xf32>
    %38 = arith.maximumf %36, %37 : vector<1x8xf32>
    %39 = arith.addf %33, %38 : vector<1x8xf32>
    %40 = vector.extract_strided_slice %20 {offsets = [6, 0], sizes = [1, 8], strides = [1, 1]} : vector<14x8xf32> to vector<1x8xf32>
    %41 = vector.extract_strided_slice %20 {offsets = [7, 0], sizes = [1, 8], strides = [1, 1]} : vector<14x8xf32> to vector<1x8xf32>
    %42 = arith.maximumf %40, %41 : vector<1x8xf32>
    %cst_18 = arith.constant 0.000000e+00 : f32
    %43 = vector.broadcast %cst_18 : f32 to vector<1x8xf32>
    %44 = arith.maximumf %42, %43 : vector<1x8xf32>
    %45 = arith.addf %39, %44 : vector<1x8xf32>
    %46 = vector.extract_strided_slice %20 {offsets = [8, 0], sizes = [1, 8], strides = [1, 1]} : vector<14x8xf32> to vector<1x8xf32>
    %47 = vector.extract_strided_slice %20 {offsets = [9, 0], sizes = [1, 8], strides = [1, 1]} : vector<14x8xf32> to vector<1x8xf32>
    %48 = arith.maximumf %46, %47 : vector<1x8xf32>
    %cst_19 = arith.constant 0.000000e+00 : f32
    %49 = vector.broadcast %cst_19 : f32 to vector<1x8xf32>
    %50 = arith.maximumf %48, %49 : vector<1x8xf32>
    %51 = arith.addf %45, %50 : vector<1x8xf32>
    %52 = vector.extract_strided_slice %20 {offsets = [10, 0], sizes = [1, 8], strides = [1, 1]} : vector<14x8xf32> to vector<1x8xf32>
    %53 = vector.extract_strided_slice %20 {offsets = [11, 0], sizes = [1, 8], strides = [1, 1]} : vector<14x8xf32> to vector<1x8xf32>
    %54 = arith.maximumf %52, %53 : vector<1x8xf32>
    %cst_20 = arith.constant 0.000000e+00 : f32
    %55 = vector.broadcast %cst_20 : f32 to vector<1x8xf32>
    %56 = arith.maximumf %54, %55 : vector<1x8xf32>
    %57 = arith.addf %51, %56 : vector<1x8xf32>
    %58 = vector.extract_strided_slice %20 {offsets = [12, 0], sizes = [1, 8], strides = [1, 1]} : vector<14x8xf32> to vector<1x8xf32>
    %59 = vector.extract_strided_slice %20 {offsets = [13, 0], sizes = [1, 8], strides = [1, 1]} : vector<14x8xf32> to vector<1x8xf32>
    %60 = arith.maximumf %58, %59 : vector<1x8xf32>
    %cst_21 = arith.constant 0.000000e+00 : f32
    %61 = vector.broadcast %cst_21 : f32 to vector<1x8xf32>
    %62 = arith.maximumf %60, %61 : vector<1x8xf32>
    %63 = arith.addf %57, %62 : vector<1x8xf32>
    %cst_22 = arith.constant 0.142857149 : f32
    %64 = vector.broadcast %cst_22 : f32 to vector<1x8xf32>
    %65 = arith.mulf %63, %64 : vector<1x8xf32>
    %c1_23 = arith.constant 1 : index
    %c0_24 = arith.constant 0 : index
    %c0_25 = arith.constant 0 : index
    %66 = vector.load %arg0[%c1_23, %c0_24, %c0_25] : memref<2x16x32xf32, #tpu.memory_space<vmem>>, vector<1x16x32xf32>
    %67 = vector.shape_cast %66 : vector<1x16x32xf32> to vector<16x32xf32>
    %cst_26 = arith.constant 0.000000e+00 : f32
    %68 = vector.broadcast %cst_26 : f32 to vector<14x8xf32>
    %69 = vector.extract_strided_slice %67 {offsets = [0, 0], sizes = [14, 32], strides = [1, 1]} : vector<16x32xf32> to vector<14x32xf32>
    %c0_27 = arith.constant 0 : index
    %c0_28 = arith.constant 0 : index
    %c0_29 = arith.constant 0 : index
    %70 = vector.load %arg4[%c0_27, %c0_28, %c0_29] : memref<3x32x8xf32, #tpu.memory_space<vmem>>, vector<1x32x8xf32>
    %71 = vector.shape_cast %70 : vector<1x32x8xf32> to vector<32x8xf32>
    %cst_30 = arith.constant dense<0.000000e+00> : vector<14x8xf32>
    %72 = tpu.matmul %69, %71, %cst_30 {dimension_numbers = #tpu.dot_dimension_numbers<[1], [0], [0], [1], [0, 0, 1, 1], [], []>} : vector<14x32xf32>, vector<32x8xf32>, vector<14x8xf32> -> vector<14x8xf32>
    %73 = arith.addf %68, %72 : vector<14x8xf32>
    %74 = vector.extract_strided_slice %67 {offsets = [1, 0], sizes = [14, 32], strides = [1, 1]} : vector<16x32xf32> to vector<14x32xf32>
    %c1_31 = arith.constant 1 : index
    %c0_32 = arith.constant 0 : index
    %c0_33 = arith.constant 0 : index
    %75 = vector.load %arg4[%c1_31, %c0_32, %c0_33] : memref<3x32x8xf32, #tpu.memory_space<vmem>>, vector<1x32x8xf32>
    %76 = vector.shape_cast %75 : vector<1x32x8xf32> to vector<32x8xf32>
    %cst_34 = arith.constant dense<0.000000e+00> : vector<14x8xf32>
    %77 = tpu.matmul %74, %76, %cst_34 {dimension_numbers = #tpu.dot_dimension_numbers<[1], [0], [0], [1], [0, 0, 1, 1], [], []>} : vector<14x32xf32>, vector<32x8xf32>, vector<14x8xf32> -> vector<14x8xf32>
    %78 = arith.addf %73, %77 : vector<14x8xf32>
    %79 = vector.extract_strided_slice %67 {offsets = [2, 0], sizes = [14, 32], strides = [1, 1]} : vector<16x32xf32> to vector<14x32xf32>
    %c2_35 = arith.constant 2 : index
    %c0_36 = arith.constant 0 : index
    %c0_37 = arith.constant 0 : index
    %80 = vector.load %arg4[%c2_35, %c0_36, %c0_37] : memref<3x32x8xf32, #tpu.memory_space<vmem>>, vector<1x32x8xf32>
    %81 = vector.shape_cast %80 : vector<1x32x8xf32> to vector<32x8xf32>
    %cst_38 = arith.constant dense<0.000000e+00> : vector<14x8xf32>
    %82 = tpu.matmul %79, %81, %cst_38 {dimension_numbers = #tpu.dot_dimension_numbers<[1], [0], [0], [1], [0, 0, 1, 1], [], []>} : vector<14x32xf32>, vector<32x8xf32>, vector<14x8xf32> -> vector<14x8xf32>
    %83 = arith.addf %78, %82 : vector<14x8xf32>
    %c0_39 = arith.constant 0 : index
    %c0_40 = arith.constant 0 : index
    %84 = vector.load %arg5[%c0_39, %c0_40] : memref<1x8xf32, #tpu.memory_space<vmem>>, vector<1x8xf32>
    %85 = vector.broadcast %84 : vector<1x8xf32> to vector<14x8xf32>
    %86 = arith.addf %83, %85 : vector<14x8xf32>
    %cst_41 = arith.constant 0.000000e+00 : f32
    %87 = vector.broadcast %cst_41 : f32 to vector<1x8xf32>
    %88 = vector.extract_strided_slice %86 {offsets = [0, 0], sizes = [1, 8], strides = [1, 1]} : vector<14x8xf32> to vector<1x8xf32>
    %89 = vector.extract_strided_slice %86 {offsets = [1, 0], sizes = [1, 8], strides = [1, 1]} : vector<14x8xf32> to vector<1x8xf32>
    %90 = arith.maximumf %88, %89 : vector<1x8xf32>
    %cst_42 = arith.constant 0.000000e+00 : f32
    %91 = vector.broadcast %cst_42 : f32 to vector<1x8xf32>
    %92 = arith.maximumf %90, %91 : vector<1x8xf32>
    %93 = arith.addf %87, %92 : vector<1x8xf32>
    %94 = vector.extract_strided_slice %86 {offsets = [2, 0], sizes = [1, 8], strides = [1, 1]} : vector<14x8xf32> to vector<1x8xf32>
    %95 = vector.extract_strided_slice %86 {offsets = [3, 0], sizes = [1, 8], strides = [1, 1]} : vector<14x8xf32> to vector<1x8xf32>
    %96 = arith.maximumf %94, %95 : vector<1x8xf32>
    %cst_43 = arith.constant 0.000000e+00 : f32
    %97 = vector.broadcast %cst_43 : f32 to vector<1x8xf32>
    %98 = arith.maximumf %96, %97 : vector<1x8xf32>
    %99 = arith.addf %93, %98 : vector<1x8xf32>
    %100 = vector.extract_strided_slice %86 {offsets = [4, 0], sizes = [1, 8], strides = [1, 1]} : vector<14x8xf32> to vector<1x8xf32>
    %101 = vector.extract_strided_slice %86 {offsets = [5, 0], sizes = [1, 8], strides = [1, 1]} : vector<14x8xf32> to vector<1x8xf32>
    %102 = arith.maximumf %100, %101 : vector<1x8xf32>
    %cst_44 = arith.constant 0.000000e+00 : f32
    %103 = vector.broadcast %cst_44 : f32 to vector<1x8xf32>
    %104 = arith.maximumf %102, %103 : vector<1x8xf32>
    %105 = arith.addf %99, %104 : vector<1x8xf32>
    %106 = vector.extract_strided_slice %86 {offsets = [6, 0], sizes = [1, 8], strides = [1, 1]} : vector<14x8xf32> to vector<1x8xf32>
    %107 = vector.extract_strided_slice %86 {offsets = [7, 0], sizes = [1, 8], strides = [1, 1]} : vector<14x8xf32> to vector<1x8xf32>
    %108 = arith.maximumf %106, %107 : vector<1x8xf32>
    %cst_45 = arith.constant 0.000000e+00 : f32
    %109 = vector.broadcast %cst_45 : f32 to vector<1x8xf32>
    %110 = arith.maximumf %108, %109 : vector<1x8xf32>
    %111 = arith.addf %105, %110 : vector<1x8xf32>
    %112 = vector.extract_strided_slice %86 {offsets = [8, 0], sizes = [1, 8], strides = [1, 1]} : vector<14x8xf32> to vector<1x8xf32>
    %113 = vector.extract_strided_slice %86 {offsets = [9, 0], sizes = [1, 8], strides = [1, 1]} : vector<14x8xf32> to vector<1x8xf32>
    %114 = arith.maximumf %112, %113 : vector<1x8xf32>
    %cst_46 = arith.constant 0.000000e+00 : f32
    %115 = vector.broadcast %cst_46 : f32 to vector<1x8xf32>
    %116 = arith.maximumf %114, %115 : vector<1x8xf32>
    %117 = arith.addf %111, %116 : vector<1x8xf32>
    %118 = vector.extract_strided_slice %86 {offsets = [10, 0], sizes = [1, 8], strides = [1, 1]} : vector<14x8xf32> to vector<1x8xf32>
    %119 = vector.extract_strided_slice %86 {offsets = [11, 0], sizes = [1, 8], strides = [1, 1]} : vector<14x8xf32> to vector<1x8xf32>
    %120 = arith.maximumf %118, %119 : vector<1x8xf32>
    %cst_47 = arith.constant 0.000000e+00 : f32
    %121 = vector.broadcast %cst_47 : f32 to vector<1x8xf32>
    %122 = arith.maximumf %120, %121 : vector<1x8xf32>
    %123 = arith.addf %117, %122 : vector<1x8xf32>
    %124 = vector.extract_strided_slice %86 {offsets = [12, 0], sizes = [1, 8], strides = [1, 1]} : vector<14x8xf32> to vector<1x8xf32>
    %125 = vector.extract_strided_slice %86 {offsets = [13, 0], sizes = [1, 8], strides = [1, 1]} : vector<14x8xf32> to vector<1x8xf32>
    %126 = arith.maximumf %124, %125 : vector<1x8xf32>
    %cst_48 = arith.constant 0.000000e+00 : f32
    %127 = vector.broadcast %cst_48 : f32 to vector<1x8xf32>
    %128 = arith.maximumf %126, %127 : vector<1x8xf32>
    %129 = arith.addf %123, %128 : vector<1x8xf32>
    %cst_49 = arith.constant 0.142857149 : f32
    %130 = vector.broadcast %cst_49 : f32 to vector<1x8xf32>
    %131 = arith.mulf %129, %130 : vector<1x8xf32>
    %132 = tpu.concatenate %65, %131 in 0 : vector<1x8xf32>, vector<1x8xf32> -> vector<2x8xf32>
    %c0_50 = arith.constant 0 : index
    %c0_51 = arith.constant 0 : index
    %c0_52 = arith.constant 0 : index
    %133 = vector.load %arg1[%c0_50, %c0_51, %c0_52] : memref<2x16x32xf32, #tpu.memory_space<vmem>>, vector<1x16x32xf32>
    %134 = vector.shape_cast %133 : vector<1x16x32xf32> to vector<16x32xf32>
    %cst_53 = arith.constant 0.000000e+00 : f32
    %135 = vector.broadcast %cst_53 : f32 to vector<14x8xf32>
    %136 = vector.extract_strided_slice %134 {offsets = [0, 0], sizes = [14, 32], strides = [1, 1]} : vector<16x32xf32> to vector<14x32xf32>
    %c0_54 = arith.constant 0 : index
    %c0_55 = arith.constant 0 : index
    %c0_56 = arith.constant 0 : index
    %137 = vector.load %arg4[%c0_54, %c0_55, %c0_56] : memref<3x32x8xf32, #tpu.memory_space<vmem>>, vector<1x32x8xf32>
    %138 = vector.shape_cast %137 : vector<1x32x8xf32> to vector<32x8xf32>
    %cst_57 = arith.constant dense<0.000000e+00> : vector<14x8xf32>
    %139 = tpu.matmul %136, %138, %cst_57 {dimension_numbers = #tpu.dot_dimension_numbers<[1], [0], [0], [1], [0, 0, 1, 1], [], []>} : vector<14x32xf32>, vector<32x8xf32>, vector<14x8xf32> -> vector<14x8xf32>
    %140 = arith.addf %135, %139 : vector<14x8xf32>
    %141 = vector.extract_strided_slice %134 {offsets = [1, 0], sizes = [14, 32], strides = [1, 1]} : vector<16x32xf32> to vector<14x32xf32>
    %c1_58 = arith.constant 1 : index
    %c0_59 = arith.constant 0 : index
    %c0_60 = arith.constant 0 : index
    %142 = vector.load %arg4[%c1_58, %c0_59, %c0_60] : memref<3x32x8xf32, #tpu.memory_space<vmem>>, vector<1x32x8xf32>
    %143 = vector.shape_cast %142 : vector<1x32x8xf32> to vector<32x8xf32>
    %cst_61 = arith.constant dense<0.000000e+00> : vector<14x8xf32>
    %144 = tpu.matmul %141, %143, %cst_61 {dimension_numbers = #tpu.dot_dimension_numbers<[1], [0], [0], [1], [0, 0, 1, 1], [], []>} : vector<14x32xf32>, vector<32x8xf32>, vector<14x8xf32> -> vector<14x8xf32>
    %145 = arith.addf %140, %144 : vector<14x8xf32>
    %146 = vector.extract_strided_slice %134 {offsets = [2, 0], sizes = [14, 32], strides = [1, 1]} : vector<16x32xf32> to vector<14x32xf32>
    %c2_62 = arith.constant 2 : index
    %c0_63 = arith.constant 0 : index
    %c0_64 = arith.constant 0 : index
    %147 = vector.load %arg4[%c2_62, %c0_63, %c0_64] : memref<3x32x8xf32, #tpu.memory_space<vmem>>, vector<1x32x8xf32>
    %148 = vector.shape_cast %147 : vector<1x32x8xf32> to vector<32x8xf32>
    %cst_65 = arith.constant dense<0.000000e+00> : vector<14x8xf32>
    %149 = tpu.matmul %146, %148, %cst_65 {dimension_numbers = #tpu.dot_dimension_numbers<[1], [0], [0], [1], [0, 0, 1, 1], [], []>} : vector<14x32xf32>, vector<32x8xf32>, vector<14x8xf32> -> vector<14x8xf32>
    %150 = arith.addf %145, %149 : vector<14x8xf32>
    %c0_66 = arith.constant 0 : index
    %c0_67 = arith.constant 0 : index
    %151 = vector.load %arg5[%c0_66, %c0_67] : memref<1x8xf32, #tpu.memory_space<vmem>>, vector<1x8xf32>
    %152 = vector.broadcast %151 : vector<1x8xf32> to vector<14x8xf32>
    %153 = arith.addf %150, %152 : vector<14x8xf32>
    %cst_68 = arith.constant 0.000000e+00 : f32
    %154 = vector.broadcast %cst_68 : f32 to vector<1x8xf32>
    %155 = vector.extract_strided_slice %153 {offsets = [0, 0], sizes = [1, 8], strides = [1, 1]} : vector<14x8xf32> to vector<1x8xf32>
    %156 = vector.extract_strided_slice %153 {offsets = [1, 0], sizes = [1, 8], strides = [1, 1]} : vector<14x8xf32> to vector<1x8xf32>
    %157 = arith.maximumf %155, %156 : vector<1x8xf32>
    %cst_69 = arith.constant 0.000000e+00 : f32
    %158 = vector.broadcast %cst_69 : f32 to vector<1x8xf32>
    %159 = arith.maximumf %157, %158 : vector<1x8xf32>
    %160 = arith.addf %154, %159 : vector<1x8xf32>
    %161 = vector.extract_strided_slice %153 {offsets = [2, 0], sizes = [1, 8], strides = [1, 1]} : vector<14x8xf32> to vector<1x8xf32>
    %162 = vector.extract_strided_slice %153 {offsets = [3, 0], sizes = [1, 8], strides = [1, 1]} : vector<14x8xf32> to vector<1x8xf32>
    %163 = arith.maximumf %161, %162 : vector<1x8xf32>
    %cst_70 = arith.constant 0.000000e+00 : f32
    %164 = vector.broadcast %cst_70 : f32 to vector<1x8xf32>
    %165 = arith.maximumf %163, %164 : vector<1x8xf32>
    %166 = arith.addf %160, %165 : vector<1x8xf32>
    %167 = vector.extract_strided_slice %153 {offsets = [4, 0], sizes = [1, 8], strides = [1, 1]} : vector<14x8xf32> to vector<1x8xf32>
    %168 = vector.extract_strided_slice %153 {offsets = [5, 0], sizes = [1, 8], strides = [1, 1]} : vector<14x8xf32> to vector<1x8xf32>
    %169 = arith.maximumf %167, %168 : vector<1x8xf32>
    %cst_71 = arith.constant 0.000000e+00 : f32
    %170 = vector.broadcast %cst_71 : f32 to vector<1x8xf32>
    %171 = arith.maximumf %169, %170 : vector<1x8xf32>
    %172 = arith.addf %166, %171 : vector<1x8xf32>
    %173 = vector.extract_strided_slice %153 {offsets = [6, 0], sizes = [1, 8], strides = [1, 1]} : vector<14x8xf32> to vector<1x8xf32>
    %174 = vector.extract_strided_slice %153 {offsets = [7, 0], sizes = [1, 8], strides = [1, 1]} : vector<14x8xf32> to vector<1x8xf32>
    %175 = arith.maximumf %173, %174 : vector<1x8xf32>
    %cst_72 = arith.constant 0.000000e+00 : f32
    %176 = vector.broadcast %cst_72 : f32 to vector<1x8xf32>
    %177 = arith.maximumf %175, %176 : vector<1x8xf32>
    %178 = arith.addf %172, %177 : vector<1x8xf32>
    %179 = vector.extract_strided_slice %153 {offsets = [8, 0], sizes = [1, 8], strides = [1, 1]} : vector<14x8xf32> to vector<1x8xf32>
    %180 = vector.extract_strided_slice %153 {offsets = [9, 0], sizes = [1, 8], strides = [1, 1]} : vector<14x8xf32> to vector<1x8xf32>
    %181 = arith.maximumf %179, %180 : vector<1x8xf32>
    %cst_73 = arith.constant 0.000000e+00 : f32
    %182 = vector.broadcast %cst_73 : f32 to vector<1x8xf32>
    %183 = arith.maximumf %181, %182 : vector<1x8xf32>
    %184 = arith.addf %178, %183 : vector<1x8xf32>
    %185 = vector.extract_strided_slice %153 {offsets = [10, 0], sizes = [1, 8], strides = [1, 1]} : vector<14x8xf32> to vector<1x8xf32>
    %186 = vector.extract_strided_slice %153 {offsets = [11, 0], sizes = [1, 8], strides = [1, 1]} : vector<14x8xf32> to vector<1x8xf32>
    %187 = arith.maximumf %185, %186 : vector<1x8xf32>
    %cst_74 = arith.constant 0.000000e+00 : f32
    %188 = vector.broadcast %cst_74 : f32 to vector<1x8xf32>
    %189 = arith.maximumf %187, %188 : vector<1x8xf32>
    %190 = arith.addf %184, %189 : vector<1x8xf32>
    %191 = vector.extract_strided_slice %153 {offsets = [12, 0], sizes = [1, 8], strides = [1, 1]} : vector<14x8xf32> to vector<1x8xf32>
    %192 = vector.extract_strided_slice %153 {offsets = [13, 0], sizes = [1, 8], strides = [1, 1]} : vector<14x8xf32> to vector<1x8xf32>
    %193 = arith.maximumf %191, %192 : vector<1x8xf32>
    %cst_75 = arith.constant 0.000000e+00 : f32
    %194 = vector.broadcast %cst_75 : f32 to vector<1x8xf32>
    %195 = arith.maximumf %193, %194 : vector<1x8xf32>
    %196 = arith.addf %190, %195 : vector<1x8xf32>
    %cst_76 = arith.constant 0.142857149 : f32
    %197 = vector.broadcast %cst_76 : f32 to vector<1x8xf32>
    %198 = arith.mulf %196, %197 : vector<1x8xf32>
    %c1_77 = arith.constant 1 : index
    %c0_78 = arith.constant 0 : index
    %c0_79 = arith.constant 0 : index
    %199 = vector.load %arg1[%c1_77, %c0_78, %c0_79] : memref<2x16x32xf32, #tpu.memory_space<vmem>>, vector<1x16x32xf32>
    %200 = vector.shape_cast %199 : vector<1x16x32xf32> to vector<16x32xf32>
    %cst_80 = arith.constant 0.000000e+00 : f32
    %201 = vector.broadcast %cst_80 : f32 to vector<14x8xf32>
    %202 = vector.extract_strided_slice %200 {offsets = [0, 0], sizes = [14, 32], strides = [1, 1]} : vector<16x32xf32> to vector<14x32xf32>
    %c0_81 = arith.constant 0 : index
    %c0_82 = arith.constant 0 : index
    %c0_83 = arith.constant 0 : index
    %203 = vector.load %arg4[%c0_81, %c0_82, %c0_83] : memref<3x32x8xf32, #tpu.memory_space<vmem>>, vector<1x32x8xf32>
    %204 = vector.shape_cast %203 : vector<1x32x8xf32> to vector<32x8xf32>
    %cst_84 = arith.constant dense<0.000000e+00> : vector<14x8xf32>
    %205 = tpu.matmul %202, %204, %cst_84 {dimension_numbers = #tpu.dot_dimension_numbers<[1], [0], [0], [1], [0, 0, 1, 1], [], []>} : vector<14x32xf32>, vector<32x8xf32>, vector<14x8xf32> -> vector<14x8xf32>
    %206 = arith.addf %201, %205 : vector<14x8xf32>
    %207 = vector.extract_strided_slice %200 {offsets = [1, 0], sizes = [14, 32], strides = [1, 1]} : vector<16x32xf32> to vector<14x32xf32>
    %c1_85 = arith.constant 1 : index
    %c0_86 = arith.constant 0 : index
    %c0_87 = arith.constant 0 : index
    %208 = vector.load %arg4[%c1_85, %c0_86, %c0_87] : memref<3x32x8xf32, #tpu.memory_space<vmem>>, vector<1x32x8xf32>
    %209 = vector.shape_cast %208 : vector<1x32x8xf32> to vector<32x8xf32>
    %cst_88 = arith.constant dense<0.000000e+00> : vector<14x8xf32>
    %210 = tpu.matmul %207, %209, %cst_88 {dimension_numbers = #tpu.dot_dimension_numbers<[1], [0], [0], [1], [0, 0, 1, 1], [], []>} : vector<14x32xf32>, vector<32x8xf32>, vector<14x8xf32> -> vector<14x8xf32>
    %211 = arith.addf %206, %210 : vector<14x8xf32>
    %212 = vector.extract_strided_slice %200 {offsets = [2, 0], sizes = [14, 32], strides = [1, 1]} : vector<16x32xf32> to vector<14x32xf32>
    %c2_89 = arith.constant 2 : index
    %c0_90 = arith.constant 0 : index
    %c0_91 = arith.constant 0 : index
    %213 = vector.load %arg4[%c2_89, %c0_90, %c0_91] : memref<3x32x8xf32, #tpu.memory_space<vmem>>, vector<1x32x8xf32>
    %214 = vector.shape_cast %213 : vector<1x32x8xf32> to vector<32x8xf32>
    %cst_92 = arith.constant dense<0.000000e+00> : vector<14x8xf32>
    %215 = tpu.matmul %212, %214, %cst_92 {dimension_numbers = #tpu.dot_dimension_numbers<[1], [0], [0], [1], [0, 0, 1, 1], [], []>} : vector<14x32xf32>, vector<32x8xf32>, vector<14x8xf32> -> vector<14x8xf32>
    %216 = arith.addf %211, %215 : vector<14x8xf32>
    %c0_93 = arith.constant 0 : index
    %c0_94 = arith.constant 0 : index
    %217 = vector.load %arg5[%c0_93, %c0_94] : memref<1x8xf32, #tpu.memory_space<vmem>>, vector<1x8xf32>
    %218 = vector.broadcast %217 : vector<1x8xf32> to vector<14x8xf32>
    %219 = arith.addf %216, %218 : vector<14x8xf32>
    %cst_95 = arith.constant 0.000000e+00 : f32
    %220 = vector.broadcast %cst_95 : f32 to vector<1x8xf32>
    %221 = vector.extract_strided_slice %219 {offsets = [0, 0], sizes = [1, 8], strides = [1, 1]} : vector<14x8xf32> to vector<1x8xf32>
    %222 = vector.extract_strided_slice %219 {offsets = [1, 0], sizes = [1, 8], strides = [1, 1]} : vector<14x8xf32> to vector<1x8xf32>
    %223 = arith.maximumf %221, %222 : vector<1x8xf32>
    %cst_96 = arith.constant 0.000000e+00 : f32
    %224 = vector.broadcast %cst_96 : f32 to vector<1x8xf32>
    %225 = arith.maximumf %223, %224 : vector<1x8xf32>
    %226 = arith.addf %220, %225 : vector<1x8xf32>
    %227 = vector.extract_strided_slice %219 {offsets = [2, 0], sizes = [1, 8], strides = [1, 1]} : vector<14x8xf32> to vector<1x8xf32>
    %228 = vector.extract_strided_slice %219 {offsets = [3, 0], sizes = [1, 8], strides = [1, 1]} : vector<14x8xf32> to vector<1x8xf32>
    %229 = arith.maximumf %227, %228 : vector<1x8xf32>
    %cst_97 = arith.constant 0.000000e+00 : f32
    %230 = vector.broadcast %cst_97 : f32 to vector<1x8xf32>
    %231 = arith.maximumf %229, %230 : vector<1x8xf32>
    %232 = arith.addf %226, %231 : vector<1x8xf32>
    %233 = vector.extract_strided_slice %219 {offsets = [4, 0], sizes = [1, 8], strides = [1, 1]} : vector<14x8xf32> to vector<1x8xf32>
    %234 = vector.extract_strided_slice %219 {offsets = [5, 0], sizes = [1, 8], strides = [1, 1]} : vector<14x8xf32> to vector<1x8xf32>
    %235 = arith.maximumf %233, %234 : vector<1x8xf32>
    %cst_98 = arith.constant 0.000000e+00 : f32
    %236 = vector.broadcast %cst_98 : f32 to vector<1x8xf32>
    %237 = arith.maximumf %235, %236 : vector<1x8xf32>
    %238 = arith.addf %232, %237 : vector<1x8xf32>
    %239 = vector.extract_strided_slice %219 {offsets = [6, 0], sizes = [1, 8], strides = [1, 1]} : vector<14x8xf32> to vector<1x8xf32>
    %240 = vector.extract_strided_slice %219 {offsets = [7, 0], sizes = [1, 8], strides = [1, 1]} : vector<14x8xf32> to vector<1x8xf32>
    %241 = arith.maximumf %239, %240 : vector<1x8xf32>
    %cst_99 = arith.constant 0.000000e+00 : f32
    %242 = vector.broadcast %cst_99 : f32 to vector<1x8xf32>
    %243 = arith.maximumf %241, %242 : vector<1x8xf32>
    %244 = arith.addf %238, %243 : vector<1x8xf32>
    %245 = vector.extract_strided_slice %219 {offsets = [8, 0], sizes = [1, 8], strides = [1, 1]} : vector<14x8xf32> to vector<1x8xf32>
    %246 = vector.extract_strided_slice %219 {offsets = [9, 0], sizes = [1, 8], strides = [1, 1]} : vector<14x8xf32> to vector<1x8xf32>
    %247 = arith.maximumf %245, %246 : vector<1x8xf32>
    %cst_100 = arith.constant 0.000000e+00 : f32
    %248 = vector.broadcast %cst_100 : f32 to vector<1x8xf32>
    %249 = arith.maximumf %247, %248 : vector<1x8xf32>
    %250 = arith.addf %244, %249 : vector<1x8xf32>
    %251 = vector.extract_strided_slice %219 {offsets = [10, 0], sizes = [1, 8], strides = [1, 1]} : vector<14x8xf32> to vector<1x8xf32>
    %252 = vector.extract_strided_slice %219 {offsets = [11, 0], sizes = [1, 8], strides = [1, 1]} : vector<14x8xf32> to vector<1x8xf32>
    %253 = arith.maximumf %251, %252 : vector<1x8xf32>
    %cst_101 = arith.constant 0.000000e+00 : f32
    %254 = vector.broadcast %cst_101 : f32 to vector<1x8xf32>
    %255 = arith.maximumf %253, %254 : vector<1x8xf32>
    %256 = arith.addf %250, %255 : vector<1x8xf32>
    %257 = vector.extract_strided_slice %219 {offsets = [12, 0], sizes = [1, 8], strides = [1, 1]} : vector<14x8xf32> to vector<1x8xf32>
    %258 = vector.extract_strided_slice %219 {offsets = [13, 0], sizes = [1, 8], strides = [1, 1]} : vector<14x8xf32> to vector<1x8xf32>
    %259 = arith.maximumf %257, %258 : vector<1x8xf32>
    %cst_102 = arith.constant 0.000000e+00 : f32
    %260 = vector.broadcast %cst_102 : f32 to vector<1x8xf32>
    %261 = arith.maximumf %259, %260 : vector<1x8xf32>
    %262 = arith.addf %256, %261 : vector<1x8xf32>
    %cst_103 = arith.constant 0.142857149 : f32
    %263 = vector.broadcast %cst_103 : f32 to vector<1x8xf32>
    %264 = arith.mulf %262, %263 : vector<1x8xf32>
    %265 = tpu.concatenate %198, %264 in 0 : vector<1x8xf32>, vector<1x8xf32> -> vector<2x8xf32>
    %c0_104 = arith.constant 0 : index
    %c0_105 = arith.constant 0 : index
    %266 = vector.load %arg2[%c0_104, %c0_105] : memref<2x16xf32, #tpu.memory_space<vmem>>, vector<2x16xf32>
    %267 = tpu.concatenate %132, %265, %266 in 1 : vector<2x8xf32>, vector<2x8xf32>, vector<2x16xf32> -> vector<2x32xf32>
    %c0_106 = arith.constant 0 : index
    %c0_107 = arith.constant 0 : index
    %268 = vector.load %arg3[%c0_106, %c0_107] : memref<4x32xf32, #tpu.memory_space<vmem>>, vector<4x32xf32>
    %269 = arith.truncf %268 : vector<4x32xf32> to vector<4x32xbf16>
    %c0_108 = arith.constant 0 : index
    %c0_109 = arith.constant 0 : index
    %c0_110 = arith.constant 0 : index
    %270 = vector.load %arg8[%c0_108, %c0_109, %c0_110] : memref<6x4x128xf32, #tpu.memory_space<vmem>>, vector<1x4x128xf32>
    %271 = vector.shape_cast %270 : vector<1x4x128xf32> to vector<4x128xf32>
    %c0_111 = arith.constant 0 : index
    %c0_112 = arith.constant 0 : index
    %c0_113 = arith.constant 0 : index
    %c0_114 = arith.constant 0 : index
    %272 = vector.load %arg6[%c0_111, %c0_112, %c0_113, %c0_114] : memref<6x2x32x128xbf16, #tpu.memory_space<vmem>>, vector<1x1x32x128xbf16>
    %273 = vector.shape_cast %272 : vector<1x1x32x128xbf16> to vector<32x128xbf16>
    %c0_115 = arith.constant 0 : index
    %c1_116 = arith.constant 1 : index
    %c0_117 = arith.constant 0 : index
    %c0_118 = arith.constant 0 : index
    %274 = vector.load %arg6[%c0_115, %c1_116, %c0_117, %c0_118] : memref<6x2x32x128xbf16, #tpu.memory_space<vmem>>, vector<1x1x32x128xbf16>
    %275 = vector.shape_cast %274 : vector<1x1x32x128xbf16> to vector<32x128xbf16>
    %c0_119 = arith.constant 0 : index
    %c0_120 = arith.constant 0 : index
    %c0_121 = arith.constant 0 : index
    %c0_122 = arith.constant 0 : index
    %276 = vector.load %arg7[%c0_119, %c0_120, %c0_121, %c0_122] : memref<6x2x32x2048xbf16, #tpu.memory_space<vmem>>, vector<1x1x32x2048xbf16>
    %277 = vector.shape_cast %276 : vector<1x1x32x2048xbf16> to vector<32x2048xbf16>
    %c0_123 = arith.constant 0 : index
    %c1_124 = arith.constant 1 : index
    %c0_125 = arith.constant 0 : index
    %c0_126 = arith.constant 0 : index
    %278 = vector.load %arg7[%c0_123, %c1_124, %c0_125, %c0_126] : memref<6x2x32x2048xbf16, #tpu.memory_space<vmem>>, vector<1x1x32x2048xbf16>
    %279 = vector.shape_cast %278 : vector<1x1x32x2048xbf16> to vector<32x2048xbf16>
    %c0_127 = arith.constant 0 : index
    %c0_128 = arith.constant 0 : index
    %c0_129 = arith.constant 0 : index
    %280 = vector.load %arg9[%c0_127, %c0_128, %c0_129] : memref<6x1x2048xf32, #tpu.memory_space<vmem>>, vector<1x1x2048xf32>
    %281 = vector.shape_cast %280 : vector<1x1x2048xf32> to vector<1x2048xf32>
    %282 = vector.extract_strided_slice %271 {offsets = [0, 0], sizes = [1, 32], strides = [1, 1]} : vector<4x128xf32> to vector<1x32xf32>
    %283 = vector.extract_strided_slice %271 {offsets = [0, 32], sizes = [1, 32], strides = [1, 1]} : vector<4x128xf32> to vector<1x32xf32>
    %284 = vector.extract_strided_slice %271 {offsets = [0, 64], sizes = [1, 32], strides = [1, 1]} : vector<4x128xf32> to vector<1x32xf32>
    %285 = vector.extract_strided_slice %271 {offsets = [0, 96], sizes = [1, 32], strides = [1, 1]} : vector<4x128xf32> to vector<1x32xf32>
    %286 = arith.truncf %267 : vector<2x32xf32> to vector<2x32xbf16>
    %cst_130 = arith.constant dense<0.000000e+00> : vector<2x128xf32>
    %287 = tpu.matmul %286, %273, %cst_130 {dimension_numbers = #tpu.dot_dimension_numbers<[1], [0], [0], [1], [0, 0, 1, 1], [], []>} : vector<2x32xbf16>, vector<32x128xbf16>, vector<2x128xf32> -> vector<2x128xf32>
    %288 = vector.extract_strided_slice %287 {offsets = [0, 0], sizes = [2, 32], strides = [1, 1]} : vector<2x128xf32> to vector<2x32xf32>
    %289 = vector.broadcast %282 : vector<1x32xf32> to vector<2x32xf32>
    %290 = arith.addf %288, %289 : vector<2x32xf32>
    %291 = vector.extract_strided_slice %287 {offsets = [0, 32], sizes = [2, 32], strides = [1, 1]} : vector<2x128xf32> to vector<2x32xf32>
    %292 = vector.broadcast %283 : vector<1x32xf32> to vector<2x32xf32>
    %293 = arith.addf %291, %292 : vector<2x32xf32>
    %294 = vector.extract_strided_slice %287 {offsets = [0, 64], sizes = [2, 32], strides = [1, 1]} : vector<2x128xf32> to vector<2x32xf32>
    %295 = vector.broadcast %284 : vector<1x32xf32> to vector<2x32xf32>
    %296 = arith.addf %294, %295 : vector<2x32xf32>
    %297 = vector.extract_strided_slice %290 {offsets = [0, 0], sizes = [2, 16], strides = [1, 1]} : vector<2x32xf32> to vector<2x16xf32>
    %cst_131 = arith.constant 2.500000e-01 : f32
    %298 = vector.broadcast %cst_131 : f32 to vector<2x16xf32>
    %299 = arith.mulf %297, %298 : vector<2x16xf32>
    %300 = vector.extract_strided_slice %293 {offsets = [0, 0], sizes = [2, 16], strides = [1, 1]} : vector<2x32xf32> to vector<2x16xf32>
    %301 = vector.extract_strided_slice %296 {offsets = [0, 0], sizes = [2, 16], strides = [1, 1]} : vector<2x32xf32> to vector<2x16xf32>
    %cst_132 = arith.constant dense<0.000000e+00> : vector<2x2xf32>
    %302 = tpu.matmul %299, %300, %cst_132 {dimension_numbers = #tpu.dot_dimension_numbers<[1], [1], [0], [0], [0, 0, 1, 0], [], []>} : vector<2x16xf32>, vector<2x16xf32>, vector<2x2xf32> -> vector<2x2xf32>
    %cst_133 = arith.constant dense<0xFF800000> : vector<2xf32>
    %303 = vector.multi_reduction <maximumf>, %302, %cst_133 [1] : vector<2x2xf32> to vector<2xf32>
    %304 = vector.shape_cast %303 : vector<2xf32> to vector<2x1xf32>
    %305 = vector.broadcast %304 : vector<2x1xf32> to vector<2x2xf32>
    %306 = arith.subf %302, %305 : vector<2x2xf32>
    %307 = math.exp %306 : vector<2x2xf32>
    %cst_134 = arith.constant dense<0.000000e+00> : vector<2xf32>
    %308 = vector.multi_reduction <add>, %307, %cst_134 [1] : vector<2x2xf32> to vector<2xf32>
    %309 = vector.shape_cast %308 : vector<2xf32> to vector<2x1xf32>
    %310 = vector.broadcast %309 : vector<2x1xf32> to vector<2x2xf32>
    %311 = arith.divf %307, %310 : vector<2x2xf32>
    %cst_135 = arith.constant dense<0.000000e+00> : vector<2x16xf32>
    %312 = tpu.matmul %311, %301, %cst_135 {dimension_numbers = #tpu.dot_dimension_numbers<[1], [0], [0], [1], [0, 0, 1, 1], [], []>} : vector<2x2xf32>, vector<2x16xf32>, vector<2x16xf32> -> vector<2x16xf32>
    %313 = vector.extract_strided_slice %290 {offsets = [0, 16], sizes = [2, 16], strides = [1, 1]} : vector<2x32xf32> to vector<2x16xf32>
    %cst_136 = arith.constant 2.500000e-01 : f32
    %314 = vector.broadcast %cst_136 : f32 to vector<2x16xf32>
    %315 = arith.mulf %313, %314 : vector<2x16xf32>
    %316 = vector.extract_strided_slice %293 {offsets = [0, 16], sizes = [2, 16], strides = [1, 1]} : vector<2x32xf32> to vector<2x16xf32>
    %317 = vector.extract_strided_slice %296 {offsets = [0, 16], sizes = [2, 16], strides = [1, 1]} : vector<2x32xf32> to vector<2x16xf32>
    %cst_137 = arith.constant dense<0.000000e+00> : vector<2x2xf32>
    %318 = tpu.matmul %315, %316, %cst_137 {dimension_numbers = #tpu.dot_dimension_numbers<[1], [1], [0], [0], [0, 0, 1, 0], [], []>} : vector<2x16xf32>, vector<2x16xf32>, vector<2x2xf32> -> vector<2x2xf32>
    %cst_138 = arith.constant dense<0xFF800000> : vector<2xf32>
    %319 = vector.multi_reduction <maximumf>, %318, %cst_138 [1] : vector<2x2xf32> to vector<2xf32>
    %320 = vector.shape_cast %319 : vector<2xf32> to vector<2x1xf32>
    %321 = vector.broadcast %320 : vector<2x1xf32> to vector<2x2xf32>
    %322 = arith.subf %318, %321 : vector<2x2xf32>
    %323 = math.exp %322 : vector<2x2xf32>
    %cst_139 = arith.constant dense<0.000000e+00> : vector<2xf32>
    %324 = vector.multi_reduction <add>, %323, %cst_139 [1] : vector<2x2xf32> to vector<2xf32>
    %325 = vector.shape_cast %324 : vector<2xf32> to vector<2x1xf32>
    %326 = vector.broadcast %325 : vector<2x1xf32> to vector<2x2xf32>
    %327 = arith.divf %323, %326 : vector<2x2xf32>
    %cst_140 = arith.constant dense<0.000000e+00> : vector<2x16xf32>
    %328 = tpu.matmul %327, %317, %cst_140 {dimension_numbers = #tpu.dot_dimension_numbers<[1], [0], [0], [1], [0, 0, 1, 1], [], []>} : vector<2x2xf32>, vector<2x16xf32>, vector<2x16xf32> -> vector<2x16xf32>
    %329 = tpu.concatenate %312, %328 in 1 : vector<2x16xf32>, vector<2x16xf32> -> vector<2x32xf32>
    %330 = vector.extract_strided_slice %273 {offsets = [0, 96], sizes = [32, 32], strides = [1, 1]} : vector<32x128xbf16> to vector<32x32xbf16>
    %331 = arith.truncf %329 : vector<2x32xf32> to vector<2x32xbf16>
    %cst_141 = arith.constant dense<0.000000e+00> : vector<2x32xf32>
    %332 = tpu.matmul %331, %330, %cst_141 {dimension_numbers = #tpu.dot_dimension_numbers<[1], [0], [0], [1], [0, 0, 1, 1], [], []>} : vector<2x32xbf16>, vector<32x32xbf16>, vector<2x32xf32> -> vector<2x32xf32>
    %333 = vector.broadcast %285 : vector<1x32xf32> to vector<2x32xf32>
    %334 = arith.addf %332, %333 : vector<2x32xf32>
    %335 = arith.addf %267, %334 : vector<2x32xf32>
    %336 = vector.extract_strided_slice %271 {offsets = [2, 0], sizes = [1, 32], strides = [1, 1]} : vector<4x128xf32> to vector<1x32xf32>
    %337 = vector.extract_strided_slice %271 {offsets = [2, 32], sizes = [1, 32], strides = [1, 1]} : vector<4x128xf32> to vector<1x32xf32>
    %cst_142 = arith.constant dense<0.000000e+00> : vector<2xf32>
    %338 = vector.multi_reduction <add>, %335, %cst_142 [1] : vector<2x32xf32> to vector<2xf32>
    %339 = vector.shape_cast %338 : vector<2xf32> to vector<2x1xf32>
    %cst_143 = arith.constant 3.200000e+01 : f32
    %340 = vector.broadcast %cst_143 : f32 to vector<2x1xf32>
    %341 = arith.divf %339, %340 : vector<2x1xf32>
    %342 = vector.broadcast %341 : vector<2x1xf32> to vector<2x32xf32>
    %343 = arith.subf %335, %342 : vector<2x32xf32>
    %344 = vector.broadcast %341 : vector<2x1xf32> to vector<2x32xf32>
    %345 = arith.subf %335, %344 : vector<2x32xf32>
    %346 = arith.mulf %343, %345 : vector<2x32xf32>
    %cst_144 = arith.constant dense<0.000000e+00> : vector<2xf32>
    %347 = vector.multi_reduction <add>, %346, %cst_144 [1] : vector<2x32xf32> to vector<2xf32>
    %348 = vector.shape_cast %347 : vector<2xf32> to vector<2x1xf32>
    %cst_145 = arith.constant 3.200000e+01 : f32
    %349 = vector.broadcast %cst_145 : f32 to vector<2x1xf32>
    %350 = arith.divf %348, %349 : vector<2x1xf32>
    %351 = vector.broadcast %341 : vector<2x1xf32> to vector<2x32xf32>
    %352 = arith.subf %335, %351 : vector<2x32xf32>
    %cst_146 = arith.constant 9.99999974E-6 : f32
    %353 = vector.broadcast %cst_146 : f32 to vector<2x1xf32>
    %354 = arith.addf %350, %353 : vector<2x1xf32>
    %355 = math.rsqrt %354 : vector<2x1xf32>
    %356 = vector.broadcast %355 : vector<2x1xf32> to vector<2x32xf32>
    %357 = arith.mulf %352, %356 : vector<2x32xf32>
    %358 = vector.broadcast %336 : vector<1x32xf32> to vector<2x32xf32>
    %359 = arith.mulf %357, %358 : vector<2x32xf32>
    %360 = vector.broadcast %337 : vector<1x32xf32> to vector<2x32xf32>
    %361 = arith.addf %359, %360 : vector<2x32xf32>
    %cst_147 = arith.constant dense<0.000000e+00> : vector<4x128xf32>
    %362 = tpu.matmul %269, %275, %cst_147 {dimension_numbers = #tpu.dot_dimension_numbers<[1], [0], [0], [1], [0, 0, 1, 1], [], []>} : vector<4x32xbf16>, vector<32x128xbf16>, vector<4x128xf32> -> vector<4x128xf32>
    %363 = vector.extract_strided_slice %271 {offsets = [1, 0], sizes = [1, 32], strides = [1, 1]} : vector<4x128xf32> to vector<1x32xf32>
    %364 = vector.extract_strided_slice %271 {offsets = [1, 32], sizes = [1, 32], strides = [1, 1]} : vector<4x128xf32> to vector<1x32xf32>
    %365 = vector.extract_strided_slice %271 {offsets = [1, 64], sizes = [1, 32], strides = [1, 1]} : vector<4x128xf32> to vector<1x32xf32>
    %366 = vector.extract_strided_slice %271 {offsets = [1, 96], sizes = [1, 32], strides = [1, 1]} : vector<4x128xf32> to vector<1x32xf32>
    %367 = arith.truncf %361 : vector<2x32xf32> to vector<2x32xbf16>
    %cst_148 = arith.constant dense<0.000000e+00> : vector<2x128xf32>
    %368 = tpu.matmul %367, %275, %cst_148 {dimension_numbers = #tpu.dot_dimension_numbers<[1], [0], [0], [1], [0, 0, 1, 1], [], []>} : vector<2x32xbf16>, vector<32x128xbf16>, vector<2x128xf32> -> vector<2x128xf32>
    %369 = vector.extract_strided_slice %368 {offsets = [0, 0], sizes = [2, 32], strides = [1, 1]} : vector<2x128xf32> to vector<2x32xf32>
    %370 = vector.broadcast %363 : vector<1x32xf32> to vector<2x32xf32>
    %371 = arith.addf %369, %370 : vector<2x32xf32>
    %372 = vector.extract_strided_slice %362 {offsets = [0, 32], sizes = [4, 32], strides = [1, 1]} : vector<4x128xf32> to vector<4x32xf32>
    %373 = vector.broadcast %364 : vector<1x32xf32> to vector<4x32xf32>
    %374 = arith.addf %372, %373 : vector<4x32xf32>
    %375 = vector.extract_strided_slice %362 {offsets = [0, 64], sizes = [4, 32], strides = [1, 1]} : vector<4x128xf32> to vector<4x32xf32>
    %376 = vector.broadcast %365 : vector<1x32xf32> to vector<4x32xf32>
    %377 = arith.addf %375, %376 : vector<4x32xf32>
    %378 = vector.extract_strided_slice %371 {offsets = [0, 0], sizes = [2, 16], strides = [1, 1]} : vector<2x32xf32> to vector<2x16xf32>
    %cst_149 = arith.constant 2.500000e-01 : f32
    %379 = vector.broadcast %cst_149 : f32 to vector<2x16xf32>
    %380 = arith.mulf %378, %379 : vector<2x16xf32>
    %381 = vector.extract_strided_slice %374 {offsets = [0, 0], sizes = [4, 16], strides = [1, 1]} : vector<4x32xf32> to vector<4x16xf32>
    %382 = vector.extract_strided_slice %377 {offsets = [0, 0], sizes = [4, 16], strides = [1, 1]} : vector<4x32xf32> to vector<4x16xf32>
    %cst_150 = arith.constant dense<0.000000e+00> : vector<2x4xf32>
    %383 = tpu.matmul %380, %381, %cst_150 {dimension_numbers = #tpu.dot_dimension_numbers<[1], [1], [0], [0], [0, 0, 1, 0], [], []>} : vector<2x16xf32>, vector<4x16xf32>, vector<2x4xf32> -> vector<2x4xf32>
    %cst_151 = arith.constant dense<0xFF800000> : vector<2xf32>
    %384 = vector.multi_reduction <maximumf>, %383, %cst_151 [1] : vector<2x4xf32> to vector<2xf32>
    %385 = vector.shape_cast %384 : vector<2xf32> to vector<2x1xf32>
    %386 = vector.broadcast %385 : vector<2x1xf32> to vector<2x4xf32>
    %387 = arith.subf %383, %386 : vector<2x4xf32>
    %388 = math.exp %387 : vector<2x4xf32>
    %cst_152 = arith.constant dense<0.000000e+00> : vector<2xf32>
    %389 = vector.multi_reduction <add>, %388, %cst_152 [1] : vector<2x4xf32> to vector<2xf32>
    %390 = vector.shape_cast %389 : vector<2xf32> to vector<2x1xf32>
    %391 = vector.broadcast %390 : vector<2x1xf32> to vector<2x4xf32>
    %392 = arith.divf %388, %391 : vector<2x4xf32>
    %cst_153 = arith.constant dense<0.000000e+00> : vector<2x16xf32>
    %393 = tpu.matmul %392, %382, %cst_153 {dimension_numbers = #tpu.dot_dimension_numbers<[1], [0], [0], [1], [0, 0, 1, 1], [], []>} : vector<2x4xf32>, vector<4x16xf32>, vector<2x16xf32> -> vector<2x16xf32>
    %394 = vector.extract_strided_slice %371 {offsets = [0, 16], sizes = [2, 16], strides = [1, 1]} : vector<2x32xf32> to vector<2x16xf32>
    %cst_154 = arith.constant 2.500000e-01 : f32
    %395 = vector.broadcast %cst_154 : f32 to vector<2x16xf32>
    %396 = arith.mulf %394, %395 : vector<2x16xf32>
    %397 = vector.extract_strided_slice %374 {offsets = [0, 16], sizes = [4, 16], strides = [1, 1]} : vector<4x32xf32> to vector<4x16xf32>
    %398 = vector.extract_strided_slice %377 {offsets = [0, 16], sizes = [4, 16], strides = [1, 1]} : vector<4x32xf32> to vector<4x16xf32>
    %cst_155 = arith.constant dense<0.000000e+00> : vector<2x4xf32>
    %399 = tpu.matmul %396, %397, %cst_155 {dimension_numbers = #tpu.dot_dimension_numbers<[1], [1], [0], [0], [0, 0, 1, 0], [], []>} : vector<2x16xf32>, vector<4x16xf32>, vector<2x4xf32> -> vector<2x4xf32>
    %cst_156 = arith.constant dense<0xFF800000> : vector<2xf32>
    %400 = vector.multi_reduction <maximumf>, %399, %cst_156 [1] : vector<2x4xf32> to vector<2xf32>
    %401 = vector.shape_cast %400 : vector<2xf32> to vector<2x1xf32>
    %402 = vector.broadcast %401 : vector<2x1xf32> to vector<2x4xf32>
    %403 = arith.subf %399, %402 : vector<2x4xf32>
    %404 = math.exp %403 : vector<2x4xf32>
    %cst_157 = arith.constant dense<0.000000e+00> : vector<2xf32>
    %405 = vector.multi_reduction <add>, %404, %cst_157 [1] : vector<2x4xf32> to vector<2xf32>
    %406 = vector.shape_cast %405 : vector<2xf32> to vector<2x1xf32>
    %407 = vector.broadcast %406 : vector<2x1xf32> to vector<2x4xf32>
    %408 = arith.divf %404, %407 : vector<2x4xf32>
    %cst_158 = arith.constant dense<0.000000e+00> : vector<2x16xf32>
    %409 = tpu.matmul %408, %398, %cst_158 {dimension_numbers = #tpu.dot_dimension_numbers<[1], [0], [0], [1], [0, 0, 1, 1], [], []>} : vector<2x4xf32>, vector<4x16xf32>, vector<2x16xf32> -> vector<2x16xf32>
    %410 = tpu.concatenate %393, %409 in 1 : vector<2x16xf32>, vector<2x16xf32> -> vector<2x32xf32>
    %411 = vector.extract_strided_slice %275 {offsets = [0, 96], sizes = [32, 32], strides = [1, 1]} : vector<32x128xbf16> to vector<32x32xbf16>
    %412 = arith.truncf %410 : vector<2x32xf32> to vector<2x32xbf16>
    %cst_159 = arith.constant dense<0.000000e+00> : vector<2x32xf32>
    %413 = tpu.matmul %412, %411, %cst_159 {dimension_numbers = #tpu.dot_dimension_numbers<[1], [0], [0], [1], [0, 0, 1, 1], [], []>} : vector<2x32xbf16>, vector<32x32xbf16>, vector<2x32xf32> -> vector<2x32xf32>
    %414 = vector.broadcast %366 : vector<1x32xf32> to vector<2x32xf32>
    %415 = arith.addf %413, %414 : vector<2x32xf32>
    %416 = arith.addf %361, %415 : vector<2x32xf32>
    %417 = vector.extract_strided_slice %271 {offsets = [2, 64], sizes = [1, 32], strides = [1, 1]} : vector<4x128xf32> to vector<1x32xf32>
    %418 = vector.extract_strided_slice %271 {offsets = [2, 96], sizes = [1, 32], strides = [1, 1]} : vector<4x128xf32> to vector<1x32xf32>
    %cst_160 = arith.constant dense<0.000000e+00> : vector<2xf32>
    %419 = vector.multi_reduction <add>, %416, %cst_160 [1] : vector<2x32xf32> to vector<2xf32>
    %420 = vector.shape_cast %419 : vector<2xf32> to vector<2x1xf32>
    %cst_161 = arith.constant 3.200000e+01 : f32
    %421 = vector.broadcast %cst_161 : f32 to vector<2x1xf32>
    %422 = arith.divf %420, %421 : vector<2x1xf32>
    %423 = vector.broadcast %422 : vector<2x1xf32> to vector<2x32xf32>
    %424 = arith.subf %416, %423 : vector<2x32xf32>
    %425 = vector.broadcast %422 : vector<2x1xf32> to vector<2x32xf32>
    %426 = arith.subf %416, %425 : vector<2x32xf32>
    %427 = arith.mulf %424, %426 : vector<2x32xf32>
    %cst_162 = arith.constant dense<0.000000e+00> : vector<2xf32>
    %428 = vector.multi_reduction <add>, %427, %cst_162 [1] : vector<2x32xf32> to vector<2xf32>
    %429 = vector.shape_cast %428 : vector<2xf32> to vector<2x1xf32>
    %cst_163 = arith.constant 3.200000e+01 : f32
    %430 = vector.broadcast %cst_163 : f32 to vector<2x1xf32>
    %431 = arith.divf %429, %430 : vector<2x1xf32>
    %432 = vector.broadcast %422 : vector<2x1xf32> to vector<2x32xf32>
    %433 = arith.subf %416, %432 : vector<2x32xf32>
    %cst_164 = arith.constant 9.99999974E-6 : f32
    %434 = vector.broadcast %cst_164 : f32 to vector<2x1xf32>
    %435 = arith.addf %431, %434 : vector<2x1xf32>
    %436 = math.rsqrt %435 : vector<2x1xf32>
    %437 = vector.broadcast %436 : vector<2x1xf32> to vector<2x32xf32>
    %438 = arith.mulf %433, %437 : vector<2x32xf32>
    %439 = vector.broadcast %417 : vector<1x32xf32> to vector<2x32xf32>
    %440 = arith.mulf %438, %439 : vector<2x32xf32>
    %441 = vector.broadcast %418 : vector<1x32xf32> to vector<2x32xf32>
    %442 = arith.addf %440, %441 : vector<2x32xf32>
    %443 = arith.truncf %442 : vector<2x32xf32> to vector<2x32xbf16>
    %cst_165 = arith.constant dense<0.000000e+00> : vector<2x2048xf32>
    %444 = tpu.matmul %443, %277, %cst_165 {dimension_numbers = #tpu.dot_dimension_numbers<[1], [0], [0], [1], [0, 0, 1, 1], [], []>} : vector<2x32xbf16>, vector<32x2048xbf16>, vector<2x2048xf32> -> vector<2x2048xf32>
    %445 = vector.broadcast %281 : vector<1x2048xf32> to vector<2x2048xf32>
    %446 = arith.addf %444, %445 : vector<2x2048xf32>
    %cst_166 = arith.constant 0.000000e+00 : f32
    %447 = vector.broadcast %cst_166 : f32 to vector<2x2048xf32>
    %448 = arith.maximumf %446, %447 : vector<2x2048xf32>
    %449 = arith.truncf %448 : vector<2x2048xf32> to vector<2x2048xbf16>
    %cst_167 = arith.constant dense<0.000000e+00> : vector<2x32xf32>
    %450 = tpu.matmul %449, %279, %cst_167 {dimension_numbers = #tpu.dot_dimension_numbers<[1], [1], [0], [0], [0, 0, 1, 0], [], []>} : vector<2x2048xbf16>, vector<32x2048xbf16>, vector<2x32xf32> -> vector<2x32xf32>
    %451 = vector.extract_strided_slice %271 {offsets = [3, 64], sizes = [1, 32], strides = [1, 1]} : vector<4x128xf32> to vector<1x32xf32>
    %452 = vector.broadcast %451 : vector<1x32xf32> to vector<2x32xf32>
    %453 = arith.addf %450, %452 : vector<2x32xf32>
    %454 = arith.addf %442, %453 : vector<2x32xf32>
    %455 = vector.extract_strided_slice %271 {offsets = [3, 0], sizes = [1, 32], strides = [1, 1]} : vector<4x128xf32> to vector<1x32xf32>
    %456 = vector.extract_strided_slice %271 {offsets = [3, 32], sizes = [1, 32], strides = [1, 1]} : vector<4x128xf32> to vector<1x32xf32>
    %cst_168 = arith.constant dense<0.000000e+00> : vector<2xf32>
    %457 = vector.multi_reduction <add>, %454, %cst_168 [1] : vector<2x32xf32> to vector<2xf32>
    %458 = vector.shape_cast %457 : vector<2xf32> to vector<2x1xf32>
    %cst_169 = arith.constant 3.200000e+01 : f32
    %459 = vector.broadcast %cst_169 : f32 to vector<2x1xf32>
    %460 = arith.divf %458, %459 : vector<2x1xf32>
    %461 = vector.broadcast %460 : vector<2x1xf32> to vector<2x32xf32>
    %462 = arith.subf %454, %461 : vector<2x32xf32>
    %463 = vector.broadcast %460 : vector<2x1xf32> to vector<2x32xf32>
    %464 = arith.subf %454, %463 : vector<2x32xf32>
    %465 = arith.mulf %462, %464 : vector<2x32xf32>
    %cst_170 = arith.constant dense<0.000000e+00> : vector<2xf32>
    %466 = vector.multi_reduction <add>, %465, %cst_170 [1] : vector<2x32xf32> to vector<2xf32>
    %467 = vector.shape_cast %466 : vector<2xf32> to vector<2x1xf32>
    %cst_171 = arith.constant 3.200000e+01 : f32
    %468 = vector.broadcast %cst_171 : f32 to vector<2x1xf32>
    %469 = arith.divf %467, %468 : vector<2x1xf32>
    %470 = vector.broadcast %460 : vector<2x1xf32> to vector<2x32xf32>
    %471 = arith.subf %454, %470 : vector<2x32xf32>
    %cst_172 = arith.constant 9.99999974E-6 : f32
    %472 = vector.broadcast %cst_172 : f32 to vector<2x1xf32>
    %473 = arith.addf %469, %472 : vector<2x1xf32>
    %474 = math.rsqrt %473 : vector<2x1xf32>
    %475 = vector.broadcast %474 : vector<2x1xf32> to vector<2x32xf32>
    %476 = arith.mulf %471, %475 : vector<2x32xf32>
    %477 = vector.broadcast %455 : vector<1x32xf32> to vector<2x32xf32>
    %478 = arith.mulf %476, %477 : vector<2x32xf32>
    %479 = vector.broadcast %456 : vector<1x32xf32> to vector<2x32xf32>
    %480 = arith.addf %478, %479 : vector<2x32xf32>
    %c1_173 = arith.constant 1 : index
    %c0_174 = arith.constant 0 : index
    %c0_175 = arith.constant 0 : index
    %481 = vector.load %arg8[%c1_173, %c0_174, %c0_175] : memref<6x4x128xf32, #tpu.memory_space<vmem>>, vector<1x4x128xf32>
    %482 = vector.shape_cast %481 : vector<1x4x128xf32> to vector<4x128xf32>
    %c1_176 = arith.constant 1 : index
    %c0_177 = arith.constant 0 : index
    %c0_178 = arith.constant 0 : index
    %c0_179 = arith.constant 0 : index
    %483 = vector.load %arg6[%c1_176, %c0_177, %c0_178, %c0_179] : memref<6x2x32x128xbf16, #tpu.memory_space<vmem>>, vector<1x1x32x128xbf16>
    %484 = vector.shape_cast %483 : vector<1x1x32x128xbf16> to vector<32x128xbf16>
    %c1_180 = arith.constant 1 : index
    %c1_181 = arith.constant 1 : index
    %c0_182 = arith.constant 0 : index
    %c0_183 = arith.constant 0 : index
    %485 = vector.load %arg6[%c1_180, %c1_181, %c0_182, %c0_183] : memref<6x2x32x128xbf16, #tpu.memory_space<vmem>>, vector<1x1x32x128xbf16>
    %486 = vector.shape_cast %485 : vector<1x1x32x128xbf16> to vector<32x128xbf16>
    %c1_184 = arith.constant 1 : index
    %c0_185 = arith.constant 0 : index
    %c0_186 = arith.constant 0 : index
    %c0_187 = arith.constant 0 : index
    %487 = vector.load %arg7[%c1_184, %c0_185, %c0_186, %c0_187] : memref<6x2x32x2048xbf16, #tpu.memory_space<vmem>>, vector<1x1x32x2048xbf16>
    %488 = vector.shape_cast %487 : vector<1x1x32x2048xbf16> to vector<32x2048xbf16>
    %c1_188 = arith.constant 1 : index
    %c1_189 = arith.constant 1 : index
    %c0_190 = arith.constant 0 : index
    %c0_191 = arith.constant 0 : index
    %489 = vector.load %arg7[%c1_188, %c1_189, %c0_190, %c0_191] : memref<6x2x32x2048xbf16, #tpu.memory_space<vmem>>, vector<1x1x32x2048xbf16>
    %490 = vector.shape_cast %489 : vector<1x1x32x2048xbf16> to vector<32x2048xbf16>
    %c1_192 = arith.constant 1 : index
    %c0_193 = arith.constant 0 : index
    %c0_194 = arith.constant 0 : index
    %491 = vector.load %arg9[%c1_192, %c0_193, %c0_194] : memref<6x1x2048xf32, #tpu.memory_space<vmem>>, vector<1x1x2048xf32>
    %492 = vector.shape_cast %491 : vector<1x1x2048xf32> to vector<1x2048xf32>
    %493 = vector.extract_strided_slice %482 {offsets = [0, 0], sizes = [1, 32], strides = [1, 1]} : vector<4x128xf32> to vector<1x32xf32>
    %494 = vector.extract_strided_slice %482 {offsets = [0, 32], sizes = [1, 32], strides = [1, 1]} : vector<4x128xf32> to vector<1x32xf32>
    %495 = vector.extract_strided_slice %482 {offsets = [0, 64], sizes = [1, 32], strides = [1, 1]} : vector<4x128xf32> to vector<1x32xf32>
    %496 = vector.extract_strided_slice %482 {offsets = [0, 96], sizes = [1, 32], strides = [1, 1]} : vector<4x128xf32> to vector<1x32xf32>
    %497 = arith.truncf %480 : vector<2x32xf32> to vector<2x32xbf16>
    %cst_195 = arith.constant dense<0.000000e+00> : vector<2x128xf32>
    %498 = tpu.matmul %497, %484, %cst_195 {dimension_numbers = #tpu.dot_dimension_numbers<[1], [0], [0], [1], [0, 0, 1, 1], [], []>} : vector<2x32xbf16>, vector<32x128xbf16>, vector<2x128xf32> -> vector<2x128xf32>
    %499 = vector.extract_strided_slice %498 {offsets = [0, 0], sizes = [2, 32], strides = [1, 1]} : vector<2x128xf32> to vector<2x32xf32>
    %500 = vector.broadcast %493 : vector<1x32xf32> to vector<2x32xf32>
    %501 = arith.addf %499, %500 : vector<2x32xf32>
    %502 = vector.extract_strided_slice %498 {offsets = [0, 32], sizes = [2, 32], strides = [1, 1]} : vector<2x128xf32> to vector<2x32xf32>
    %503 = vector.broadcast %494 : vector<1x32xf32> to vector<2x32xf32>
    %504 = arith.addf %502, %503 : vector<2x32xf32>
    %505 = vector.extract_strided_slice %498 {offsets = [0, 64], sizes = [2, 32], strides = [1, 1]} : vector<2x128xf32> to vector<2x32xf32>
    %506 = vector.broadcast %495 : vector<1x32xf32> to vector<2x32xf32>
    %507 = arith.addf %505, %506 : vector<2x32xf32>
    %508 = vector.extract_strided_slice %501 {offsets = [0, 0], sizes = [2, 16], strides = [1, 1]} : vector<2x32xf32> to vector<2x16xf32>
    %cst_196 = arith.constant 2.500000e-01 : f32
    %509 = vector.broadcast %cst_196 : f32 to vector<2x16xf32>
    %510 = arith.mulf %508, %509 : vector<2x16xf32>
    %511 = vector.extract_strided_slice %504 {offsets = [0, 0], sizes = [2, 16], strides = [1, 1]} : vector<2x32xf32> to vector<2x16xf32>
    %512 = vector.extract_strided_slice %507 {offsets = [0, 0], sizes = [2, 16], strides = [1, 1]} : vector<2x32xf32> to vector<2x16xf32>
    %cst_197 = arith.constant dense<0.000000e+00> : vector<2x2xf32>
    %513 = tpu.matmul %510, %511, %cst_197 {dimension_numbers = #tpu.dot_dimension_numbers<[1], [1], [0], [0], [0, 0, 1, 0], [], []>} : vector<2x16xf32>, vector<2x16xf32>, vector<2x2xf32> -> vector<2x2xf32>
    %cst_198 = arith.constant dense<0xFF800000> : vector<2xf32>
    %514 = vector.multi_reduction <maximumf>, %513, %cst_198 [1] : vector<2x2xf32> to vector<2xf32>
    %515 = vector.shape_cast %514 : vector<2xf32> to vector<2x1xf32>
    %516 = vector.broadcast %515 : vector<2x1xf32> to vector<2x2xf32>
    %517 = arith.subf %513, %516 : vector<2x2xf32>
    %518 = math.exp %517 : vector<2x2xf32>
    %cst_199 = arith.constant dense<0.000000e+00> : vector<2xf32>
    %519 = vector.multi_reduction <add>, %518, %cst_199 [1] : vector<2x2xf32> to vector<2xf32>
    %520 = vector.shape_cast %519 : vector<2xf32> to vector<2x1xf32>
    %521 = vector.broadcast %520 : vector<2x1xf32> to vector<2x2xf32>
    %522 = arith.divf %518, %521 : vector<2x2xf32>
    %cst_200 = arith.constant dense<0.000000e+00> : vector<2x16xf32>
    %523 = tpu.matmul %522, %512, %cst_200 {dimension_numbers = #tpu.dot_dimension_numbers<[1], [0], [0], [1], [0, 0, 1, 1], [], []>} : vector<2x2xf32>, vector<2x16xf32>, vector<2x16xf32> -> vector<2x16xf32>
    %524 = vector.extract_strided_slice %501 {offsets = [0, 16], sizes = [2, 16], strides = [1, 1]} : vector<2x32xf32> to vector<2x16xf32>
    %cst_201 = arith.constant 2.500000e-01 : f32
    %525 = vector.broadcast %cst_201 : f32 to vector<2x16xf32>
    %526 = arith.mulf %524, %525 : vector<2x16xf32>
    %527 = vector.extract_strided_slice %504 {offsets = [0, 16], sizes = [2, 16], strides = [1, 1]} : vector<2x32xf32> to vector<2x16xf32>
    %528 = vector.extract_strided_slice %507 {offsets = [0, 16], sizes = [2, 16], strides = [1, 1]} : vector<2x32xf32> to vector<2x16xf32>
    %cst_202 = arith.constant dense<0.000000e+00> : vector<2x2xf32>
    %529 = tpu.matmul %526, %527, %cst_202 {dimension_numbers = #tpu.dot_dimension_numbers<[1], [1], [0], [0], [0, 0, 1, 0], [], []>} : vector<2x16xf32>, vector<2x16xf32>, vector<2x2xf32> -> vector<2x2xf32>
    %cst_203 = arith.constant dense<0xFF800000> : vector<2xf32>
    %530 = vector.multi_reduction <maximumf>, %529, %cst_203 [1] : vector<2x2xf32> to vector<2xf32>
    %531 = vector.shape_cast %530 : vector<2xf32> to vector<2x1xf32>
    %532 = vector.broadcast %531 : vector<2x1xf32> to vector<2x2xf32>
    %533 = arith.subf %529, %532 : vector<2x2xf32>
    %534 = math.exp %533 : vector<2x2xf32>
    %cst_204 = arith.constant dense<0.000000e+00> : vector<2xf32>
    %535 = vector.multi_reduction <add>, %534, %cst_204 [1] : vector<2x2xf32> to vector<2xf32>
    %536 = vector.shape_cast %535 : vector<2xf32> to vector<2x1xf32>
    %537 = vector.broadcast %536 : vector<2x1xf32> to vector<2x2xf32>
    %538 = arith.divf %534, %537 : vector<2x2xf32>
    %cst_205 = arith.constant dense<0.000000e+00> : vector<2x16xf32>
    %539 = tpu.matmul %538, %528, %cst_205 {dimension_numbers = #tpu.dot_dimension_numbers<[1], [0], [0], [1], [0, 0, 1, 1], [], []>} : vector<2x2xf32>, vector<2x16xf32>, vector<2x16xf32> -> vector<2x16xf32>
    %540 = tpu.concatenate %523, %539 in 1 : vector<2x16xf32>, vector<2x16xf32> -> vector<2x32xf32>
    %541 = vector.extract_strided_slice %484 {offsets = [0, 96], sizes = [32, 32], strides = [1, 1]} : vector<32x128xbf16> to vector<32x32xbf16>
    %542 = arith.truncf %540 : vector<2x32xf32> to vector<2x32xbf16>
    %cst_206 = arith.constant dense<0.000000e+00> : vector<2x32xf32>
    %543 = tpu.matmul %542, %541, %cst_206 {dimension_numbers = #tpu.dot_dimension_numbers<[1], [0], [0], [1], [0, 0, 1, 1], [], []>} : vector<2x32xbf16>, vector<32x32xbf16>, vector<2x32xf32> -> vector<2x32xf32>
    %544 = vector.broadcast %496 : vector<1x32xf32> to vector<2x32xf32>
    %545 = arith.addf %543, %544 : vector<2x32xf32>
    %546 = arith.addf %480, %545 : vector<2x32xf32>
    %547 = vector.extract_strided_slice %482 {offsets = [2, 0], sizes = [1, 32], strides = [1, 1]} : vector<4x128xf32> to vector<1x32xf32>
    %548 = vector.extract_strided_slice %482 {offsets = [2, 32], sizes = [1, 32], strides = [1, 1]} : vector<4x128xf32> to vector<1x32xf32>
    %cst_207 = arith.constant dense<0.000000e+00> : vector<2xf32>
    %549 = vector.multi_reduction <add>, %546, %cst_207 [1] : vector<2x32xf32> to vector<2xf32>
    %550 = vector.shape_cast %549 : vector<2xf32> to vector<2x1xf32>
    %cst_208 = arith.constant 3.200000e+01 : f32
    %551 = vector.broadcast %cst_208 : f32 to vector<2x1xf32>
    %552 = arith.divf %550, %551 : vector<2x1xf32>
    %553 = vector.broadcast %552 : vector<2x1xf32> to vector<2x32xf32>
    %554 = arith.subf %546, %553 : vector<2x32xf32>
    %555 = vector.broadcast %552 : vector<2x1xf32> to vector<2x32xf32>
    %556 = arith.subf %546, %555 : vector<2x32xf32>
    %557 = arith.mulf %554, %556 : vector<2x32xf32>
    %cst_209 = arith.constant dense<0.000000e+00> : vector<2xf32>
    %558 = vector.multi_reduction <add>, %557, %cst_209 [1] : vector<2x32xf32> to vector<2xf32>
    %559 = vector.shape_cast %558 : vector<2xf32> to vector<2x1xf32>
    %cst_210 = arith.constant 3.200000e+01 : f32
    %560 = vector.broadcast %cst_210 : f32 to vector<2x1xf32>
    %561 = arith.divf %559, %560 : vector<2x1xf32>
    %562 = vector.broadcast %552 : vector<2x1xf32> to vector<2x32xf32>
    %563 = arith.subf %546, %562 : vector<2x32xf32>
    %cst_211 = arith.constant 9.99999974E-6 : f32
    %564 = vector.broadcast %cst_211 : f32 to vector<2x1xf32>
    %565 = arith.addf %561, %564 : vector<2x1xf32>
    %566 = math.rsqrt %565 : vector<2x1xf32>
    %567 = vector.broadcast %566 : vector<2x1xf32> to vector<2x32xf32>
    %568 = arith.mulf %563, %567 : vector<2x32xf32>
    %569 = vector.broadcast %547 : vector<1x32xf32> to vector<2x32xf32>
    %570 = arith.mulf %568, %569 : vector<2x32xf32>
    %571 = vector.broadcast %548 : vector<1x32xf32> to vector<2x32xf32>
    %572 = arith.addf %570, %571 : vector<2x32xf32>
    %cst_212 = arith.constant dense<0.000000e+00> : vector<4x128xf32>
    %573 = tpu.matmul %269, %486, %cst_212 {dimension_numbers = #tpu.dot_dimension_numbers<[1], [0], [0], [1], [0, 0, 1, 1], [], []>} : vector<4x32xbf16>, vector<32x128xbf16>, vector<4x128xf32> -> vector<4x128xf32>
    %574 = vector.extract_strided_slice %482 {offsets = [1, 0], sizes = [1, 32], strides = [1, 1]} : vector<4x128xf32> to vector<1x32xf32>
    %575 = vector.extract_strided_slice %482 {offsets = [1, 32], sizes = [1, 32], strides = [1, 1]} : vector<4x128xf32> to vector<1x32xf32>
    %576 = vector.extract_strided_slice %482 {offsets = [1, 64], sizes = [1, 32], strides = [1, 1]} : vector<4x128xf32> to vector<1x32xf32>
    %577 = vector.extract_strided_slice %482 {offsets = [1, 96], sizes = [1, 32], strides = [1, 1]} : vector<4x128xf32> to vector<1x32xf32>
    %578 = arith.truncf %572 : vector<2x32xf32> to vector<2x32xbf16>
    %cst_213 = arith.constant dense<0.000000e+00> : vector<2x128xf32>
    %579 = tpu.matmul %578, %486, %cst_213 {dimension_numbers = #tpu.dot_dimension_numbers<[1], [0], [0], [1], [0, 0, 1, 1], [], []>} : vector<2x32xbf16>, vector<32x128xbf16>, vector<2x128xf32> -> vector<2x128xf32>
    %580 = vector.extract_strided_slice %579 {offsets = [0, 0], sizes = [2, 32], strides = [1, 1]} : vector<2x128xf32> to vector<2x32xf32>
    %581 = vector.broadcast %574 : vector<1x32xf32> to vector<2x32xf32>
    %582 = arith.addf %580, %581 : vector<2x32xf32>
    %583 = vector.extract_strided_slice %573 {offsets = [0, 32], sizes = [4, 32], strides = [1, 1]} : vector<4x128xf32> to vector<4x32xf32>
    %584 = vector.broadcast %575 : vector<1x32xf32> to vector<4x32xf32>
    %585 = arith.addf %583, %584 : vector<4x32xf32>
    %586 = vector.extract_strided_slice %573 {offsets = [0, 64], sizes = [4, 32], strides = [1, 1]} : vector<4x128xf32> to vector<4x32xf32>
    %587 = vector.broadcast %576 : vector<1x32xf32> to vector<4x32xf32>
    %588 = arith.addf %586, %587 : vector<4x32xf32>
    %589 = vector.extract_strided_slice %582 {offsets = [0, 0], sizes = [2, 16], strides = [1, 1]} : vector<2x32xf32> to vector<2x16xf32>
    %cst_214 = arith.constant 2.500000e-01 : f32
    %590 = vector.broadcast %cst_214 : f32 to vector<2x16xf32>
    %591 = arith.mulf %589, %590 : vector<2x16xf32>
    %592 = vector.extract_strided_slice %585 {offsets = [0, 0], sizes = [4, 16], strides = [1, 1]} : vector<4x32xf32> to vector<4x16xf32>
    %593 = vector.extract_strided_slice %588 {offsets = [0, 0], sizes = [4, 16], strides = [1, 1]} : vector<4x32xf32> to vector<4x16xf32>
    %cst_215 = arith.constant dense<0.000000e+00> : vector<2x4xf32>
    %594 = tpu.matmul %591, %592, %cst_215 {dimension_numbers = #tpu.dot_dimension_numbers<[1], [1], [0], [0], [0, 0, 1, 0], [], []>} : vector<2x16xf32>, vector<4x16xf32>, vector<2x4xf32> -> vector<2x4xf32>
    %cst_216 = arith.constant dense<0xFF800000> : vector<2xf32>
    %595 = vector.multi_reduction <maximumf>, %594, %cst_216 [1] : vector<2x4xf32> to vector<2xf32>
    %596 = vector.shape_cast %595 : vector<2xf32> to vector<2x1xf32>
    %597 = vector.broadcast %596 : vector<2x1xf32> to vector<2x4xf32>
    %598 = arith.subf %594, %597 : vector<2x4xf32>
    %599 = math.exp %598 : vector<2x4xf32>
    %cst_217 = arith.constant dense<0.000000e+00> : vector<2xf32>
    %600 = vector.multi_reduction <add>, %599, %cst_217 [1] : vector<2x4xf32> to vector<2xf32>
    %601 = vector.shape_cast %600 : vector<2xf32> to vector<2x1xf32>
    %602 = vector.broadcast %601 : vector<2x1xf32> to vector<2x4xf32>
    %603 = arith.divf %599, %602 : vector<2x4xf32>
    %cst_218 = arith.constant dense<0.000000e+00> : vector<2x16xf32>
    %604 = tpu.matmul %603, %593, %cst_218 {dimension_numbers = #tpu.dot_dimension_numbers<[1], [0], [0], [1], [0, 0, 1, 1], [], []>} : vector<2x4xf32>, vector<4x16xf32>, vector<2x16xf32> -> vector<2x16xf32>
    %605 = vector.extract_strided_slice %582 {offsets = [0, 16], sizes = [2, 16], strides = [1, 1]} : vector<2x32xf32> to vector<2x16xf32>
    %cst_219 = arith.constant 2.500000e-01 : f32
    %606 = vector.broadcast %cst_219 : f32 to vector<2x16xf32>
    %607 = arith.mulf %605, %606 : vector<2x16xf32>
    %608 = vector.extract_strided_slice %585 {offsets = [0, 16], sizes = [4, 16], strides = [1, 1]} : vector<4x32xf32> to vector<4x16xf32>
    %609 = vector.extract_strided_slice %588 {offsets = [0, 16], sizes = [4, 16], strides = [1, 1]} : vector<4x32xf32> to vector<4x16xf32>
    %cst_220 = arith.constant dense<0.000000e+00> : vector<2x4xf32>
    %610 = tpu.matmul %607, %608, %cst_220 {dimension_numbers = #tpu.dot_dimension_numbers<[1], [1], [0], [0], [0, 0, 1, 0], [], []>} : vector<2x16xf32>, vector<4x16xf32>, vector<2x4xf32> -> vector<2x4xf32>
    %cst_221 = arith.constant dense<0xFF800000> : vector<2xf32>
    %611 = vector.multi_reduction <maximumf>, %610, %cst_221 [1] : vector<2x4xf32> to vector<2xf32>
    %612 = vector.shape_cast %611 : vector<2xf32> to vector<2x1xf32>
    %613 = vector.broadcast %612 : vector<2x1xf32> to vector<2x4xf32>
    %614 = arith.subf %610, %613 : vector<2x4xf32>
    %615 = math.exp %614 : vector<2x4xf32>
    %cst_222 = arith.constant dense<0.000000e+00> : vector<2xf32>
    %616 = vector.multi_reduction <add>, %615, %cst_222 [1] : vector<2x4xf32> to vector<2xf32>
    %617 = vector.shape_cast %616 : vector<2xf32> to vector<2x1xf32>
    %618 = vector.broadcast %617 : vector<2x1xf32> to vector<2x4xf32>
    %619 = arith.divf %615, %618 : vector<2x4xf32>
    %cst_223 = arith.constant dense<0.000000e+00> : vector<2x16xf32>
    %620 = tpu.matmul %619, %609, %cst_223 {dimension_numbers = #tpu.dot_dimension_numbers<[1], [0], [0], [1], [0, 0, 1, 1], [], []>} : vector<2x4xf32>, vector<4x16xf32>, vector<2x16xf32> -> vector<2x16xf32>
    %621 = tpu.concatenate %604, %620 in 1 : vector<2x16xf32>, vector<2x16xf32> -> vector<2x32xf32>
    %622 = vector.extract_strided_slice %486 {offsets = [0, 96], sizes = [32, 32], strides = [1, 1]} : vector<32x128xbf16> to vector<32x32xbf16>
    %623 = arith.truncf %621 : vector<2x32xf32> to vector<2x32xbf16>
    %cst_224 = arith.constant dense<0.000000e+00> : vector<2x32xf32>
    %624 = tpu.matmul %623, %622, %cst_224 {dimension_numbers = #tpu.dot_dimension_numbers<[1], [0], [0], [1], [0, 0, 1, 1], [], []>} : vector<2x32xbf16>, vector<32x32xbf16>, vector<2x32xf32> -> vector<2x32xf32>
    %625 = vector.broadcast %577 : vector<1x32xf32> to vector<2x32xf32>
    %626 = arith.addf %624, %625 : vector<2x32xf32>
    %627 = arith.addf %572, %626 : vector<2x32xf32>
    %628 = vector.extract_strided_slice %482 {offsets = [2, 64], sizes = [1, 32], strides = [1, 1]} : vector<4x128xf32> to vector<1x32xf32>
    %629 = vector.extract_strided_slice %482 {offsets = [2, 96], sizes = [1, 32], strides = [1, 1]} : vector<4x128xf32> to vector<1x32xf32>
    %cst_225 = arith.constant dense<0.000000e+00> : vector<2xf32>
    %630 = vector.multi_reduction <add>, %627, %cst_225 [1] : vector<2x32xf32> to vector<2xf32>
    %631 = vector.shape_cast %630 : vector<2xf32> to vector<2x1xf32>
    %cst_226 = arith.constant 3.200000e+01 : f32
    %632 = vector.broadcast %cst_226 : f32 to vector<2x1xf32>
    %633 = arith.divf %631, %632 : vector<2x1xf32>
    %634 = vector.broadcast %633 : vector<2x1xf32> to vector<2x32xf32>
    %635 = arith.subf %627, %634 : vector<2x32xf32>
    %636 = vector.broadcast %633 : vector<2x1xf32> to vector<2x32xf32>
    %637 = arith.subf %627, %636 : vector<2x32xf32>
    %638 = arith.mulf %635, %637 : vector<2x32xf32>
    %cst_227 = arith.constant dense<0.000000e+00> : vector<2xf32>
    %639 = vector.multi_reduction <add>, %638, %cst_227 [1] : vector<2x32xf32> to vector<2xf32>
    %640 = vector.shape_cast %639 : vector<2xf32> to vector<2x1xf32>
    %cst_228 = arith.constant 3.200000e+01 : f32
    %641 = vector.broadcast %cst_228 : f32 to vector<2x1xf32>
    %642 = arith.divf %640, %641 : vector<2x1xf32>
    %643 = vector.broadcast %633 : vector<2x1xf32> to vector<2x32xf32>
    %644 = arith.subf %627, %643 : vector<2x32xf32>
    %cst_229 = arith.constant 9.99999974E-6 : f32
    %645 = vector.broadcast %cst_229 : f32 to vector<2x1xf32>
    %646 = arith.addf %642, %645 : vector<2x1xf32>
    %647 = math.rsqrt %646 : vector<2x1xf32>
    %648 = vector.broadcast %647 : vector<2x1xf32> to vector<2x32xf32>
    %649 = arith.mulf %644, %648 : vector<2x32xf32>
    %650 = vector.broadcast %628 : vector<1x32xf32> to vector<2x32xf32>
    %651 = arith.mulf %649, %650 : vector<2x32xf32>
    %652 = vector.broadcast %629 : vector<1x32xf32> to vector<2x32xf32>
    %653 = arith.addf %651, %652 : vector<2x32xf32>
    %654 = arith.truncf %653 : vector<2x32xf32> to vector<2x32xbf16>
    %cst_230 = arith.constant dense<0.000000e+00> : vector<2x2048xf32>
    %655 = tpu.matmul %654, %488, %cst_230 {dimension_numbers = #tpu.dot_dimension_numbers<[1], [0], [0], [1], [0, 0, 1, 1], [], []>} : vector<2x32xbf16>, vector<32x2048xbf16>, vector<2x2048xf32> -> vector<2x2048xf32>
    %656 = vector.broadcast %492 : vector<1x2048xf32> to vector<2x2048xf32>
    %657 = arith.addf %655, %656 : vector<2x2048xf32>
    %cst_231 = arith.constant 0.000000e+00 : f32
    %658 = vector.broadcast %cst_231 : f32 to vector<2x2048xf32>
    %659 = arith.maximumf %657, %658 : vector<2x2048xf32>
    %660 = arith.truncf %659 : vector<2x2048xf32> to vector<2x2048xbf16>
    %cst_232 = arith.constant dense<0.000000e+00> : vector<2x32xf32>
    %661 = tpu.matmul %660, %490, %cst_232 {dimension_numbers = #tpu.dot_dimension_numbers<[1], [1], [0], [0], [0, 0, 1, 0], [], []>} : vector<2x2048xbf16>, vector<32x2048xbf16>, vector<2x32xf32> -> vector<2x32xf32>
    %662 = vector.extract_strided_slice %482 {offsets = [3, 64], sizes = [1, 32], strides = [1, 1]} : vector<4x128xf32> to vector<1x32xf32>
    %663 = vector.broadcast %662 : vector<1x32xf32> to vector<2x32xf32>
    %664 = arith.addf %661, %663 : vector<2x32xf32>
    %665 = arith.addf %653, %664 : vector<2x32xf32>
    %666 = vector.extract_strided_slice %482 {offsets = [3, 0], sizes = [1, 32], strides = [1, 1]} : vector<4x128xf32> to vector<1x32xf32>
    %667 = vector.extract_strided_slice %482 {offsets = [3, 32], sizes = [1, 32], strides = [1, 1]} : vector<4x128xf32> to vector<1x32xf32>
    %cst_233 = arith.constant dense<0.000000e+00> : vector<2xf32>
    %668 = vector.multi_reduction <add>, %665, %cst_233 [1] : vector<2x32xf32> to vector<2xf32>
    %669 = vector.shape_cast %668 : vector<2xf32> to vector<2x1xf32>
    %cst_234 = arith.constant 3.200000e+01 : f32
    %670 = vector.broadcast %cst_234 : f32 to vector<2x1xf32>
    %671 = arith.divf %669, %670 : vector<2x1xf32>
    %672 = vector.broadcast %671 : vector<2x1xf32> to vector<2x32xf32>
    %673 = arith.subf %665, %672 : vector<2x32xf32>
    %674 = vector.broadcast %671 : vector<2x1xf32> to vector<2x32xf32>
    %675 = arith.subf %665, %674 : vector<2x32xf32>
    %676 = arith.mulf %673, %675 : vector<2x32xf32>
    %cst_235 = arith.constant dense<0.000000e+00> : vector<2xf32>
    %677 = vector.multi_reduction <add>, %676, %cst_235 [1] : vector<2x32xf32> to vector<2xf32>
    %678 = vector.shape_cast %677 : vector<2xf32> to vector<2x1xf32>
    %cst_236 = arith.constant 3.200000e+01 : f32
    %679 = vector.broadcast %cst_236 : f32 to vector<2x1xf32>
    %680 = arith.divf %678, %679 : vector<2x1xf32>
    %681 = vector.broadcast %671 : vector<2x1xf32> to vector<2x32xf32>
    %682 = arith.subf %665, %681 : vector<2x32xf32>
    %cst_237 = arith.constant 9.99999974E-6 : f32
    %683 = vector.broadcast %cst_237 : f32 to vector<2x1xf32>
    %684 = arith.addf %680, %683 : vector<2x1xf32>
    %685 = math.rsqrt %684 : vector<2x1xf32>
    %686 = vector.broadcast %685 : vector<2x1xf32> to vector<2x32xf32>
    %687 = arith.mulf %682, %686 : vector<2x32xf32>
    %688 = vector.broadcast %666 : vector<1x32xf32> to vector<2x32xf32>
    %689 = arith.mulf %687, %688 : vector<2x32xf32>
    %690 = vector.broadcast %667 : vector<1x32xf32> to vector<2x32xf32>
    %691 = arith.addf %689, %690 : vector<2x32xf32>
    %c2_238 = arith.constant 2 : index
    %c0_239 = arith.constant 0 : index
    %c0_240 = arith.constant 0 : index
    %692 = vector.load %arg8[%c2_238, %c0_239, %c0_240] : memref<6x4x128xf32, #tpu.memory_space<vmem>>, vector<1x4x128xf32>
    %693 = vector.shape_cast %692 : vector<1x4x128xf32> to vector<4x128xf32>
    %c2_241 = arith.constant 2 : index
    %c0_242 = arith.constant 0 : index
    %c0_243 = arith.constant 0 : index
    %c0_244 = arith.constant 0 : index
    %694 = vector.load %arg6[%c2_241, %c0_242, %c0_243, %c0_244] : memref<6x2x32x128xbf16, #tpu.memory_space<vmem>>, vector<1x1x32x128xbf16>
    %695 = vector.shape_cast %694 : vector<1x1x32x128xbf16> to vector<32x128xbf16>
    %c2_245 = arith.constant 2 : index
    %c1_246 = arith.constant 1 : index
    %c0_247 = arith.constant 0 : index
    %c0_248 = arith.constant 0 : index
    %696 = vector.load %arg6[%c2_245, %c1_246, %c0_247, %c0_248] : memref<6x2x32x128xbf16, #tpu.memory_space<vmem>>, vector<1x1x32x128xbf16>
    %697 = vector.shape_cast %696 : vector<1x1x32x128xbf16> to vector<32x128xbf16>
    %c2_249 = arith.constant 2 : index
    %c0_250 = arith.constant 0 : index
    %c0_251 = arith.constant 0 : index
    %c0_252 = arith.constant 0 : index
    %698 = vector.load %arg7[%c2_249, %c0_250, %c0_251, %c0_252] : memref<6x2x32x2048xbf16, #tpu.memory_space<vmem>>, vector<1x1x32x2048xbf16>
    %699 = vector.shape_cast %698 : vector<1x1x32x2048xbf16> to vector<32x2048xbf16>
    %c2_253 = arith.constant 2 : index
    %c1_254 = arith.constant 1 : index
    %c0_255 = arith.constant 0 : index
    %c0_256 = arith.constant 0 : index
    %700 = vector.load %arg7[%c2_253, %c1_254, %c0_255, %c0_256] : memref<6x2x32x2048xbf16, #tpu.memory_space<vmem>>, vector<1x1x32x2048xbf16>
    %701 = vector.shape_cast %700 : vector<1x1x32x2048xbf16> to vector<32x2048xbf16>
    %c2_257 = arith.constant 2 : index
    %c0_258 = arith.constant 0 : index
    %c0_259 = arith.constant 0 : index
    %702 = vector.load %arg9[%c2_257, %c0_258, %c0_259] : memref<6x1x2048xf32, #tpu.memory_space<vmem>>, vector<1x1x2048xf32>
    %703 = vector.shape_cast %702 : vector<1x1x2048xf32> to vector<1x2048xf32>
    %704 = vector.extract_strided_slice %693 {offsets = [0, 0], sizes = [1, 32], strides = [1, 1]} : vector<4x128xf32> to vector<1x32xf32>
    %705 = vector.extract_strided_slice %693 {offsets = [0, 32], sizes = [1, 32], strides = [1, 1]} : vector<4x128xf32> to vector<1x32xf32>
    %706 = vector.extract_strided_slice %693 {offsets = [0, 64], sizes = [1, 32], strides = [1, 1]} : vector<4x128xf32> to vector<1x32xf32>
    %707 = vector.extract_strided_slice %693 {offsets = [0, 96], sizes = [1, 32], strides = [1, 1]} : vector<4x128xf32> to vector<1x32xf32>
    %708 = arith.truncf %691 : vector<2x32xf32> to vector<2x32xbf16>
    %cst_260 = arith.constant dense<0.000000e+00> : vector<2x128xf32>
    %709 = tpu.matmul %708, %695, %cst_260 {dimension_numbers = #tpu.dot_dimension_numbers<[1], [0], [0], [1], [0, 0, 1, 1], [], []>} : vector<2x32xbf16>, vector<32x128xbf16>, vector<2x128xf32> -> vector<2x128xf32>
    %710 = vector.extract_strided_slice %709 {offsets = [0, 0], sizes = [2, 32], strides = [1, 1]} : vector<2x128xf32> to vector<2x32xf32>
    %711 = vector.broadcast %704 : vector<1x32xf32> to vector<2x32xf32>
    %712 = arith.addf %710, %711 : vector<2x32xf32>
    %713 = vector.extract_strided_slice %709 {offsets = [0, 32], sizes = [2, 32], strides = [1, 1]} : vector<2x128xf32> to vector<2x32xf32>
    %714 = vector.broadcast %705 : vector<1x32xf32> to vector<2x32xf32>
    %715 = arith.addf %713, %714 : vector<2x32xf32>
    %716 = vector.extract_strided_slice %709 {offsets = [0, 64], sizes = [2, 32], strides = [1, 1]} : vector<2x128xf32> to vector<2x32xf32>
    %717 = vector.broadcast %706 : vector<1x32xf32> to vector<2x32xf32>
    %718 = arith.addf %716, %717 : vector<2x32xf32>
    %719 = vector.extract_strided_slice %712 {offsets = [0, 0], sizes = [2, 16], strides = [1, 1]} : vector<2x32xf32> to vector<2x16xf32>
    %cst_261 = arith.constant 2.500000e-01 : f32
    %720 = vector.broadcast %cst_261 : f32 to vector<2x16xf32>
    %721 = arith.mulf %719, %720 : vector<2x16xf32>
    %722 = vector.extract_strided_slice %715 {offsets = [0, 0], sizes = [2, 16], strides = [1, 1]} : vector<2x32xf32> to vector<2x16xf32>
    %723 = vector.extract_strided_slice %718 {offsets = [0, 0], sizes = [2, 16], strides = [1, 1]} : vector<2x32xf32> to vector<2x16xf32>
    %cst_262 = arith.constant dense<0.000000e+00> : vector<2x2xf32>
    %724 = tpu.matmul %721, %722, %cst_262 {dimension_numbers = #tpu.dot_dimension_numbers<[1], [1], [0], [0], [0, 0, 1, 0], [], []>} : vector<2x16xf32>, vector<2x16xf32>, vector<2x2xf32> -> vector<2x2xf32>
    %cst_263 = arith.constant dense<0xFF800000> : vector<2xf32>
    %725 = vector.multi_reduction <maximumf>, %724, %cst_263 [1] : vector<2x2xf32> to vector<2xf32>
    %726 = vector.shape_cast %725 : vector<2xf32> to vector<2x1xf32>
    %727 = vector.broadcast %726 : vector<2x1xf32> to vector<2x2xf32>
    %728 = arith.subf %724, %727 : vector<2x2xf32>
    %729 = math.exp %728 : vector<2x2xf32>
    %cst_264 = arith.constant dense<0.000000e+00> : vector<2xf32>
    %730 = vector.multi_reduction <add>, %729, %cst_264 [1] : vector<2x2xf32> to vector<2xf32>
    %731 = vector.shape_cast %730 : vector<2xf32> to vector<2x1xf32>
    %732 = vector.broadcast %731 : vector<2x1xf32> to vector<2x2xf32>
    %733 = arith.divf %729, %732 : vector<2x2xf32>
    %cst_265 = arith.constant dense<0.000000e+00> : vector<2x16xf32>
    %734 = tpu.matmul %733, %723, %cst_265 {dimension_numbers = #tpu.dot_dimension_numbers<[1], [0], [0], [1], [0, 0, 1, 1], [], []>} : vector<2x2xf32>, vector<2x16xf32>, vector<2x16xf32> -> vector<2x16xf32>
    %735 = vector.extract_strided_slice %712 {offsets = [0, 16], sizes = [2, 16], strides = [1, 1]} : vector<2x32xf32> to vector<2x16xf32>
    %cst_266 = arith.constant 2.500000e-01 : f32
    %736 = vector.broadcast %cst_266 : f32 to vector<2x16xf32>
    %737 = arith.mulf %735, %736 : vector<2x16xf32>
    %738 = vector.extract_strided_slice %715 {offsets = [0, 16], sizes = [2, 16], strides = [1, 1]} : vector<2x32xf32> to vector<2x16xf32>
    %739 = vector.extract_strided_slice %718 {offsets = [0, 16], sizes = [2, 16], strides = [1, 1]} : vector<2x32xf32> to vector<2x16xf32>
    %cst_267 = arith.constant dense<0.000000e+00> : vector<2x2xf32>
    %740 = tpu.matmul %737, %738, %cst_267 {dimension_numbers = #tpu.dot_dimension_numbers<[1], [1], [0], [0], [0, 0, 1, 0], [], []>} : vector<2x16xf32>, vector<2x16xf32>, vector<2x2xf32> -> vector<2x2xf32>
    %cst_268 = arith.constant dense<0xFF800000> : vector<2xf32>
    %741 = vector.multi_reduction <maximumf>, %740, %cst_268 [1] : vector<2x2xf32> to vector<2xf32>
    %742 = vector.shape_cast %741 : vector<2xf32> to vector<2x1xf32>
    %743 = vector.broadcast %742 : vector<2x1xf32> to vector<2x2xf32>
    %744 = arith.subf %740, %743 : vector<2x2xf32>
    %745 = math.exp %744 : vector<2x2xf32>
    %cst_269 = arith.constant dense<0.000000e+00> : vector<2xf32>
    %746 = vector.multi_reduction <add>, %745, %cst_269 [1] : vector<2x2xf32> to vector<2xf32>
    %747 = vector.shape_cast %746 : vector<2xf32> to vector<2x1xf32>
    %748 = vector.broadcast %747 : vector<2x1xf32> to vector<2x2xf32>
    %749 = arith.divf %745, %748 : vector<2x2xf32>
    %cst_270 = arith.constant dense<0.000000e+00> : vector<2x16xf32>
    %750 = tpu.matmul %749, %739, %cst_270 {dimension_numbers = #tpu.dot_dimension_numbers<[1], [0], [0], [1], [0, 0, 1, 1], [], []>} : vector<2x2xf32>, vector<2x16xf32>, vector<2x16xf32> -> vector<2x16xf32>
    %751 = tpu.concatenate %734, %750 in 1 : vector<2x16xf32>, vector<2x16xf32> -> vector<2x32xf32>
    %752 = vector.extract_strided_slice %695 {offsets = [0, 96], sizes = [32, 32], strides = [1, 1]} : vector<32x128xbf16> to vector<32x32xbf16>
    %753 = arith.truncf %751 : vector<2x32xf32> to vector<2x32xbf16>
    %cst_271 = arith.constant dense<0.000000e+00> : vector<2x32xf32>
    %754 = tpu.matmul %753, %752, %cst_271 {dimension_numbers = #tpu.dot_dimension_numbers<[1], [0], [0], [1], [0, 0, 1, 1], [], []>} : vector<2x32xbf16>, vector<32x32xbf16>, vector<2x32xf32> -> vector<2x32xf32>
    %755 = vector.broadcast %707 : vector<1x32xf32> to vector<2x32xf32>
    %756 = arith.addf %754, %755 : vector<2x32xf32>
    %757 = arith.addf %691, %756 : vector<2x32xf32>
    %758 = vector.extract_strided_slice %693 {offsets = [2, 0], sizes = [1, 32], strides = [1, 1]} : vector<4x128xf32> to vector<1x32xf32>
    %759 = vector.extract_strided_slice %693 {offsets = [2, 32], sizes = [1, 32], strides = [1, 1]} : vector<4x128xf32> to vector<1x32xf32>
    %cst_272 = arith.constant dense<0.000000e+00> : vector<2xf32>
    %760 = vector.multi_reduction <add>, %757, %cst_272 [1] : vector<2x32xf32> to vector<2xf32>
    %761 = vector.shape_cast %760 : vector<2xf32> to vector<2x1xf32>
    %cst_273 = arith.constant 3.200000e+01 : f32
    %762 = vector.broadcast %cst_273 : f32 to vector<2x1xf32>
    %763 = arith.divf %761, %762 : vector<2x1xf32>
    %764 = vector.broadcast %763 : vector<2x1xf32> to vector<2x32xf32>
    %765 = arith.subf %757, %764 : vector<2x32xf32>
    %766 = vector.broadcast %763 : vector<2x1xf32> to vector<2x32xf32>
    %767 = arith.subf %757, %766 : vector<2x32xf32>
    %768 = arith.mulf %765, %767 : vector<2x32xf32>
    %cst_274 = arith.constant dense<0.000000e+00> : vector<2xf32>
    %769 = vector.multi_reduction <add>, %768, %cst_274 [1] : vector<2x32xf32> to vector<2xf32>
    %770 = vector.shape_cast %769 : vector<2xf32> to vector<2x1xf32>
    %cst_275 = arith.constant 3.200000e+01 : f32
    %771 = vector.broadcast %cst_275 : f32 to vector<2x1xf32>
    %772 = arith.divf %770, %771 : vector<2x1xf32>
    %773 = vector.broadcast %763 : vector<2x1xf32> to vector<2x32xf32>
    %774 = arith.subf %757, %773 : vector<2x32xf32>
    %cst_276 = arith.constant 9.99999974E-6 : f32
    %775 = vector.broadcast %cst_276 : f32 to vector<2x1xf32>
    %776 = arith.addf %772, %775 : vector<2x1xf32>
    %777 = math.rsqrt %776 : vector<2x1xf32>
    %778 = vector.broadcast %777 : vector<2x1xf32> to vector<2x32xf32>
    %779 = arith.mulf %774, %778 : vector<2x32xf32>
    %780 = vector.broadcast %758 : vector<1x32xf32> to vector<2x32xf32>
    %781 = arith.mulf %779, %780 : vector<2x32xf32>
    %782 = vector.broadcast %759 : vector<1x32xf32> to vector<2x32xf32>
    %783 = arith.addf %781, %782 : vector<2x32xf32>
    %cst_277 = arith.constant dense<0.000000e+00> : vector<4x128xf32>
    %784 = tpu.matmul %269, %697, %cst_277 {dimension_numbers = #tpu.dot_dimension_numbers<[1], [0], [0], [1], [0, 0, 1, 1], [], []>} : vector<4x32xbf16>, vector<32x128xbf16>, vector<4x128xf32> -> vector<4x128xf32>
    %785 = vector.extract_strided_slice %693 {offsets = [1, 0], sizes = [1, 32], strides = [1, 1]} : vector<4x128xf32> to vector<1x32xf32>
    %786 = vector.extract_strided_slice %693 {offsets = [1, 32], sizes = [1, 32], strides = [1, 1]} : vector<4x128xf32> to vector<1x32xf32>
    %787 = vector.extract_strided_slice %693 {offsets = [1, 64], sizes = [1, 32], strides = [1, 1]} : vector<4x128xf32> to vector<1x32xf32>
    %788 = vector.extract_strided_slice %693 {offsets = [1, 96], sizes = [1, 32], strides = [1, 1]} : vector<4x128xf32> to vector<1x32xf32>
    %789 = arith.truncf %783 : vector<2x32xf32> to vector<2x32xbf16>
    %cst_278 = arith.constant dense<0.000000e+00> : vector<2x128xf32>
    %790 = tpu.matmul %789, %697, %cst_278 {dimension_numbers = #tpu.dot_dimension_numbers<[1], [0], [0], [1], [0, 0, 1, 1], [], []>} : vector<2x32xbf16>, vector<32x128xbf16>, vector<2x128xf32> -> vector<2x128xf32>
    %791 = vector.extract_strided_slice %790 {offsets = [0, 0], sizes = [2, 32], strides = [1, 1]} : vector<2x128xf32> to vector<2x32xf32>
    %792 = vector.broadcast %785 : vector<1x32xf32> to vector<2x32xf32>
    %793 = arith.addf %791, %792 : vector<2x32xf32>
    %794 = vector.extract_strided_slice %784 {offsets = [0, 32], sizes = [4, 32], strides = [1, 1]} : vector<4x128xf32> to vector<4x32xf32>
    %795 = vector.broadcast %786 : vector<1x32xf32> to vector<4x32xf32>
    %796 = arith.addf %794, %795 : vector<4x32xf32>
    %797 = vector.extract_strided_slice %784 {offsets = [0, 64], sizes = [4, 32], strides = [1, 1]} : vector<4x128xf32> to vector<4x32xf32>
    %798 = vector.broadcast %787 : vector<1x32xf32> to vector<4x32xf32>
    %799 = arith.addf %797, %798 : vector<4x32xf32>
    %800 = vector.extract_strided_slice %793 {offsets = [0, 0], sizes = [2, 16], strides = [1, 1]} : vector<2x32xf32> to vector<2x16xf32>
    %cst_279 = arith.constant 2.500000e-01 : f32
    %801 = vector.broadcast %cst_279 : f32 to vector<2x16xf32>
    %802 = arith.mulf %800, %801 : vector<2x16xf32>
    %803 = vector.extract_strided_slice %796 {offsets = [0, 0], sizes = [4, 16], strides = [1, 1]} : vector<4x32xf32> to vector<4x16xf32>
    %804 = vector.extract_strided_slice %799 {offsets = [0, 0], sizes = [4, 16], strides = [1, 1]} : vector<4x32xf32> to vector<4x16xf32>
    %cst_280 = arith.constant dense<0.000000e+00> : vector<2x4xf32>
    %805 = tpu.matmul %802, %803, %cst_280 {dimension_numbers = #tpu.dot_dimension_numbers<[1], [1], [0], [0], [0, 0, 1, 0], [], []>} : vector<2x16xf32>, vector<4x16xf32>, vector<2x4xf32> -> vector<2x4xf32>
    %cst_281 = arith.constant dense<0xFF800000> : vector<2xf32>
    %806 = vector.multi_reduction <maximumf>, %805, %cst_281 [1] : vector<2x4xf32> to vector<2xf32>
    %807 = vector.shape_cast %806 : vector<2xf32> to vector<2x1xf32>
    %808 = vector.broadcast %807 : vector<2x1xf32> to vector<2x4xf32>
    %809 = arith.subf %805, %808 : vector<2x4xf32>
    %810 = math.exp %809 : vector<2x4xf32>
    %cst_282 = arith.constant dense<0.000000e+00> : vector<2xf32>
    %811 = vector.multi_reduction <add>, %810, %cst_282 [1] : vector<2x4xf32> to vector<2xf32>
    %812 = vector.shape_cast %811 : vector<2xf32> to vector<2x1xf32>
    %813 = vector.broadcast %812 : vector<2x1xf32> to vector<2x4xf32>
    %814 = arith.divf %810, %813 : vector<2x4xf32>
    %cst_283 = arith.constant dense<0.000000e+00> : vector<2x16xf32>
    %815 = tpu.matmul %814, %804, %cst_283 {dimension_numbers = #tpu.dot_dimension_numbers<[1], [0], [0], [1], [0, 0, 1, 1], [], []>} : vector<2x4xf32>, vector<4x16xf32>, vector<2x16xf32> -> vector<2x16xf32>
    %816 = vector.extract_strided_slice %793 {offsets = [0, 16], sizes = [2, 16], strides = [1, 1]} : vector<2x32xf32> to vector<2x16xf32>
    %cst_284 = arith.constant 2.500000e-01 : f32
    %817 = vector.broadcast %cst_284 : f32 to vector<2x16xf32>
    %818 = arith.mulf %816, %817 : vector<2x16xf32>
    %819 = vector.extract_strided_slice %796 {offsets = [0, 16], sizes = [4, 16], strides = [1, 1]} : vector<4x32xf32> to vector<4x16xf32>
    %820 = vector.extract_strided_slice %799 {offsets = [0, 16], sizes = [4, 16], strides = [1, 1]} : vector<4x32xf32> to vector<4x16xf32>
    %cst_285 = arith.constant dense<0.000000e+00> : vector<2x4xf32>
    %821 = tpu.matmul %818, %819, %cst_285 {dimension_numbers = #tpu.dot_dimension_numbers<[1], [1], [0], [0], [0, 0, 1, 0], [], []>} : vector<2x16xf32>, vector<4x16xf32>, vector<2x4xf32> -> vector<2x4xf32>
    %cst_286 = arith.constant dense<0xFF800000> : vector<2xf32>
    %822 = vector.multi_reduction <maximumf>, %821, %cst_286 [1] : vector<2x4xf32> to vector<2xf32>
    %823 = vector.shape_cast %822 : vector<2xf32> to vector<2x1xf32>
    %824 = vector.broadcast %823 : vector<2x1xf32> to vector<2x4xf32>
    %825 = arith.subf %821, %824 : vector<2x4xf32>
    %826 = math.exp %825 : vector<2x4xf32>
    %cst_287 = arith.constant dense<0.000000e+00> : vector<2xf32>
    %827 = vector.multi_reduction <add>, %826, %cst_287 [1] : vector<2x4xf32> to vector<2xf32>
    %828 = vector.shape_cast %827 : vector<2xf32> to vector<2x1xf32>
    %829 = vector.broadcast %828 : vector<2x1xf32> to vector<2x4xf32>
    %830 = arith.divf %826, %829 : vector<2x4xf32>
    %cst_288 = arith.constant dense<0.000000e+00> : vector<2x16xf32>
    %831 = tpu.matmul %830, %820, %cst_288 {dimension_numbers = #tpu.dot_dimension_numbers<[1], [0], [0], [1], [0, 0, 1, 1], [], []>} : vector<2x4xf32>, vector<4x16xf32>, vector<2x16xf32> -> vector<2x16xf32>
    %832 = tpu.concatenate %815, %831 in 1 : vector<2x16xf32>, vector<2x16xf32> -> vector<2x32xf32>
    %833 = vector.extract_strided_slice %697 {offsets = [0, 96], sizes = [32, 32], strides = [1, 1]} : vector<32x128xbf16> to vector<32x32xbf16>
    %834 = arith.truncf %832 : vector<2x32xf32> to vector<2x32xbf16>
    %cst_289 = arith.constant dense<0.000000e+00> : vector<2x32xf32>
    %835 = tpu.matmul %834, %833, %cst_289 {dimension_numbers = #tpu.dot_dimension_numbers<[1], [0], [0], [1], [0, 0, 1, 1], [], []>} : vector<2x32xbf16>, vector<32x32xbf16>, vector<2x32xf32> -> vector<2x32xf32>
    %836 = vector.broadcast %788 : vector<1x32xf32> to vector<2x32xf32>
    %837 = arith.addf %835, %836 : vector<2x32xf32>
    %838 = arith.addf %783, %837 : vector<2x32xf32>
    %839 = vector.extract_strided_slice %693 {offsets = [2, 64], sizes = [1, 32], strides = [1, 1]} : vector<4x128xf32> to vector<1x32xf32>
    %840 = vector.extract_strided_slice %693 {offsets = [2, 96], sizes = [1, 32], strides = [1, 1]} : vector<4x128xf32> to vector<1x32xf32>
    %cst_290 = arith.constant dense<0.000000e+00> : vector<2xf32>
    %841 = vector.multi_reduction <add>, %838, %cst_290 [1] : vector<2x32xf32> to vector<2xf32>
    %842 = vector.shape_cast %841 : vector<2xf32> to vector<2x1xf32>
    %cst_291 = arith.constant 3.200000e+01 : f32
    %843 = vector.broadcast %cst_291 : f32 to vector<2x1xf32>
    %844 = arith.divf %842, %843 : vector<2x1xf32>
    %845 = vector.broadcast %844 : vector<2x1xf32> to vector<2x32xf32>
    %846 = arith.subf %838, %845 : vector<2x32xf32>
    %847 = vector.broadcast %844 : vector<2x1xf32> to vector<2x32xf32>
    %848 = arith.subf %838, %847 : vector<2x32xf32>
    %849 = arith.mulf %846, %848 : vector<2x32xf32>
    %cst_292 = arith.constant dense<0.000000e+00> : vector<2xf32>
    %850 = vector.multi_reduction <add>, %849, %cst_292 [1] : vector<2x32xf32> to vector<2xf32>
    %851 = vector.shape_cast %850 : vector<2xf32> to vector<2x1xf32>
    %cst_293 = arith.constant 3.200000e+01 : f32
    %852 = vector.broadcast %cst_293 : f32 to vector<2x1xf32>
    %853 = arith.divf %851, %852 : vector<2x1xf32>
    %854 = vector.broadcast %844 : vector<2x1xf32> to vector<2x32xf32>
    %855 = arith.subf %838, %854 : vector<2x32xf32>
    %cst_294 = arith.constant 9.99999974E-6 : f32
    %856 = vector.broadcast %cst_294 : f32 to vector<2x1xf32>
    %857 = arith.addf %853, %856 : vector<2x1xf32>
    %858 = math.rsqrt %857 : vector<2x1xf32>
    %859 = vector.broadcast %858 : vector<2x1xf32> to vector<2x32xf32>
    %860 = arith.mulf %855, %859 : vector<2x32xf32>
    %861 = vector.broadcast %839 : vector<1x32xf32> to vector<2x32xf32>
    %862 = arith.mulf %860, %861 : vector<2x32xf32>
    %863 = vector.broadcast %840 : vector<1x32xf32> to vector<2x32xf32>
    %864 = arith.addf %862, %863 : vector<2x32xf32>
    %865 = arith.truncf %864 : vector<2x32xf32> to vector<2x32xbf16>
    %cst_295 = arith.constant dense<0.000000e+00> : vector<2x2048xf32>
    %866 = tpu.matmul %865, %699, %cst_295 {dimension_numbers = #tpu.dot_dimension_numbers<[1], [0], [0], [1], [0, 0, 1, 1], [], []>} : vector<2x32xbf16>, vector<32x2048xbf16>, vector<2x2048xf32> -> vector<2x2048xf32>
    %867 = vector.broadcast %703 : vector<1x2048xf32> to vector<2x2048xf32>
    %868 = arith.addf %866, %867 : vector<2x2048xf32>
    %cst_296 = arith.constant 0.000000e+00 : f32
    %869 = vector.broadcast %cst_296 : f32 to vector<2x2048xf32>
    %870 = arith.maximumf %868, %869 : vector<2x2048xf32>
    %871 = arith.truncf %870 : vector<2x2048xf32> to vector<2x2048xbf16>
    %cst_297 = arith.constant dense<0.000000e+00> : vector<2x32xf32>
    %872 = tpu.matmul %871, %701, %cst_297 {dimension_numbers = #tpu.dot_dimension_numbers<[1], [1], [0], [0], [0, 0, 1, 0], [], []>} : vector<2x2048xbf16>, vector<32x2048xbf16>, vector<2x32xf32> -> vector<2x32xf32>
    %873 = vector.extract_strided_slice %693 {offsets = [3, 64], sizes = [1, 32], strides = [1, 1]} : vector<4x128xf32> to vector<1x32xf32>
    %874 = vector.broadcast %873 : vector<1x32xf32> to vector<2x32xf32>
    %875 = arith.addf %872, %874 : vector<2x32xf32>
    %876 = arith.addf %864, %875 : vector<2x32xf32>
    %877 = vector.extract_strided_slice %693 {offsets = [3, 0], sizes = [1, 32], strides = [1, 1]} : vector<4x128xf32> to vector<1x32xf32>
    %878 = vector.extract_strided_slice %693 {offsets = [3, 32], sizes = [1, 32], strides = [1, 1]} : vector<4x128xf32> to vector<1x32xf32>
    %cst_298 = arith.constant dense<0.000000e+00> : vector<2xf32>
    %879 = vector.multi_reduction <add>, %876, %cst_298 [1] : vector<2x32xf32> to vector<2xf32>
    %880 = vector.shape_cast %879 : vector<2xf32> to vector<2x1xf32>
    %cst_299 = arith.constant 3.200000e+01 : f32
    %881 = vector.broadcast %cst_299 : f32 to vector<2x1xf32>
    %882 = arith.divf %880, %881 : vector<2x1xf32>
    %883 = vector.broadcast %882 : vector<2x1xf32> to vector<2x32xf32>
    %884 = arith.subf %876, %883 : vector<2x32xf32>
    %885 = vector.broadcast %882 : vector<2x1xf32> to vector<2x32xf32>
    %886 = arith.subf %876, %885 : vector<2x32xf32>
    %887 = arith.mulf %884, %886 : vector<2x32xf32>
    %cst_300 = arith.constant dense<0.000000e+00> : vector<2xf32>
    %888 = vector.multi_reduction <add>, %887, %cst_300 [1] : vector<2x32xf32> to vector<2xf32>
    %889 = vector.shape_cast %888 : vector<2xf32> to vector<2x1xf32>
    %cst_301 = arith.constant 3.200000e+01 : f32
    %890 = vector.broadcast %cst_301 : f32 to vector<2x1xf32>
    %891 = arith.divf %889, %890 : vector<2x1xf32>
    %892 = vector.broadcast %882 : vector<2x1xf32> to vector<2x32xf32>
    %893 = arith.subf %876, %892 : vector<2x32xf32>
    %cst_302 = arith.constant 9.99999974E-6 : f32
    %894 = vector.broadcast %cst_302 : f32 to vector<2x1xf32>
    %895 = arith.addf %891, %894 : vector<2x1xf32>
    %896 = math.rsqrt %895 : vector<2x1xf32>
    %897 = vector.broadcast %896 : vector<2x1xf32> to vector<2x32xf32>
    %898 = arith.mulf %893, %897 : vector<2x32xf32>
    %899 = vector.broadcast %877 : vector<1x32xf32> to vector<2x32xf32>
    %900 = arith.mulf %898, %899 : vector<2x32xf32>
    %901 = vector.broadcast %878 : vector<1x32xf32> to vector<2x32xf32>
    %902 = arith.addf %900, %901 : vector<2x32xf32>
    %c3 = arith.constant 3 : index
    %c0_303 = arith.constant 0 : index
    %c0_304 = arith.constant 0 : index
    %903 = vector.load %arg8[%c3, %c0_303, %c0_304] : memref<6x4x128xf32, #tpu.memory_space<vmem>>, vector<1x4x128xf32>
    %904 = vector.shape_cast %903 : vector<1x4x128xf32> to vector<4x128xf32>
    %c3_305 = arith.constant 3 : index
    %c0_306 = arith.constant 0 : index
    %c0_307 = arith.constant 0 : index
    %c0_308 = arith.constant 0 : index
    %905 = vector.load %arg6[%c3_305, %c0_306, %c0_307, %c0_308] : memref<6x2x32x128xbf16, #tpu.memory_space<vmem>>, vector<1x1x32x128xbf16>
    %906 = vector.shape_cast %905 : vector<1x1x32x128xbf16> to vector<32x128xbf16>
    %c3_309 = arith.constant 3 : index
    %c1_310 = arith.constant 1 : index
    %c0_311 = arith.constant 0 : index
    %c0_312 = arith.constant 0 : index
    %907 = vector.load %arg6[%c3_309, %c1_310, %c0_311, %c0_312] : memref<6x2x32x128xbf16, #tpu.memory_space<vmem>>, vector<1x1x32x128xbf16>
    %908 = vector.shape_cast %907 : vector<1x1x32x128xbf16> to vector<32x128xbf16>
    %c3_313 = arith.constant 3 : index
    %c0_314 = arith.constant 0 : index
    %c0_315 = arith.constant 0 : index
    %c0_316 = arith.constant 0 : index
    %909 = vector.load %arg7[%c3_313, %c0_314, %c0_315, %c0_316] : memref<6x2x32x2048xbf16, #tpu.memory_space<vmem>>, vector<1x1x32x2048xbf16>
    %910 = vector.shape_cast %909 : vector<1x1x32x2048xbf16> to vector<32x2048xbf16>
    %c3_317 = arith.constant 3 : index
    %c1_318 = arith.constant 1 : index
    %c0_319 = arith.constant 0 : index
    %c0_320 = arith.constant 0 : index
    %911 = vector.load %arg7[%c3_317, %c1_318, %c0_319, %c0_320] : memref<6x2x32x2048xbf16, #tpu.memory_space<vmem>>, vector<1x1x32x2048xbf16>
    %912 = vector.shape_cast %911 : vector<1x1x32x2048xbf16> to vector<32x2048xbf16>
    %c3_321 = arith.constant 3 : index
    %c0_322 = arith.constant 0 : index
    %c0_323 = arith.constant 0 : index
    %913 = vector.load %arg9[%c3_321, %c0_322, %c0_323] : memref<6x1x2048xf32, #tpu.memory_space<vmem>>, vector<1x1x2048xf32>
    %914 = vector.shape_cast %913 : vector<1x1x2048xf32> to vector<1x2048xf32>
    %915 = vector.extract_strided_slice %904 {offsets = [0, 0], sizes = [1, 32], strides = [1, 1]} : vector<4x128xf32> to vector<1x32xf32>
    %916 = vector.extract_strided_slice %904 {offsets = [0, 32], sizes = [1, 32], strides = [1, 1]} : vector<4x128xf32> to vector<1x32xf32>
    %917 = vector.extract_strided_slice %904 {offsets = [0, 64], sizes = [1, 32], strides = [1, 1]} : vector<4x128xf32> to vector<1x32xf32>
    %918 = vector.extract_strided_slice %904 {offsets = [0, 96], sizes = [1, 32], strides = [1, 1]} : vector<4x128xf32> to vector<1x32xf32>
    %919 = arith.truncf %902 : vector<2x32xf32> to vector<2x32xbf16>
    %cst_324 = arith.constant dense<0.000000e+00> : vector<2x128xf32>
    %920 = tpu.matmul %919, %906, %cst_324 {dimension_numbers = #tpu.dot_dimension_numbers<[1], [0], [0], [1], [0, 0, 1, 1], [], []>} : vector<2x32xbf16>, vector<32x128xbf16>, vector<2x128xf32> -> vector<2x128xf32>
    %921 = vector.extract_strided_slice %920 {offsets = [0, 0], sizes = [2, 32], strides = [1, 1]} : vector<2x128xf32> to vector<2x32xf32>
    %922 = vector.broadcast %915 : vector<1x32xf32> to vector<2x32xf32>
    %923 = arith.addf %921, %922 : vector<2x32xf32>
    %924 = vector.extract_strided_slice %920 {offsets = [0, 32], sizes = [2, 32], strides = [1, 1]} : vector<2x128xf32> to vector<2x32xf32>
    %925 = vector.broadcast %916 : vector<1x32xf32> to vector<2x32xf32>
    %926 = arith.addf %924, %925 : vector<2x32xf32>
    %927 = vector.extract_strided_slice %920 {offsets = [0, 64], sizes = [2, 32], strides = [1, 1]} : vector<2x128xf32> to vector<2x32xf32>
    %928 = vector.broadcast %917 : vector<1x32xf32> to vector<2x32xf32>
    %929 = arith.addf %927, %928 : vector<2x32xf32>
    %930 = vector.extract_strided_slice %923 {offsets = [0, 0], sizes = [2, 16], strides = [1, 1]} : vector<2x32xf32> to vector<2x16xf32>
    %cst_325 = arith.constant 2.500000e-01 : f32
    %931 = vector.broadcast %cst_325 : f32 to vector<2x16xf32>
    %932 = arith.mulf %930, %931 : vector<2x16xf32>
    %933 = vector.extract_strided_slice %926 {offsets = [0, 0], sizes = [2, 16], strides = [1, 1]} : vector<2x32xf32> to vector<2x16xf32>
    %934 = vector.extract_strided_slice %929 {offsets = [0, 0], sizes = [2, 16], strides = [1, 1]} : vector<2x32xf32> to vector<2x16xf32>
    %cst_326 = arith.constant dense<0.000000e+00> : vector<2x2xf32>
    %935 = tpu.matmul %932, %933, %cst_326 {dimension_numbers = #tpu.dot_dimension_numbers<[1], [1], [0], [0], [0, 0, 1, 0], [], []>} : vector<2x16xf32>, vector<2x16xf32>, vector<2x2xf32> -> vector<2x2xf32>
    %cst_327 = arith.constant dense<0xFF800000> : vector<2xf32>
    %936 = vector.multi_reduction <maximumf>, %935, %cst_327 [1] : vector<2x2xf32> to vector<2xf32>
    %937 = vector.shape_cast %936 : vector<2xf32> to vector<2x1xf32>
    %938 = vector.broadcast %937 : vector<2x1xf32> to vector<2x2xf32>
    %939 = arith.subf %935, %938 : vector<2x2xf32>
    %940 = math.exp %939 : vector<2x2xf32>
    %cst_328 = arith.constant dense<0.000000e+00> : vector<2xf32>
    %941 = vector.multi_reduction <add>, %940, %cst_328 [1] : vector<2x2xf32> to vector<2xf32>
    %942 = vector.shape_cast %941 : vector<2xf32> to vector<2x1xf32>
    %943 = vector.broadcast %942 : vector<2x1xf32> to vector<2x2xf32>
    %944 = arith.divf %940, %943 : vector<2x2xf32>
    %cst_329 = arith.constant dense<0.000000e+00> : vector<2x16xf32>
    %945 = tpu.matmul %944, %934, %cst_329 {dimension_numbers = #tpu.dot_dimension_numbers<[1], [0], [0], [1], [0, 0, 1, 1], [], []>} : vector<2x2xf32>, vector<2x16xf32>, vector<2x16xf32> -> vector<2x16xf32>
    %946 = vector.extract_strided_slice %923 {offsets = [0, 16], sizes = [2, 16], strides = [1, 1]} : vector<2x32xf32> to vector<2x16xf32>
    %cst_330 = arith.constant 2.500000e-01 : f32
    %947 = vector.broadcast %cst_330 : f32 to vector<2x16xf32>
    %948 = arith.mulf %946, %947 : vector<2x16xf32>
    %949 = vector.extract_strided_slice %926 {offsets = [0, 16], sizes = [2, 16], strides = [1, 1]} : vector<2x32xf32> to vector<2x16xf32>
    %950 = vector.extract_strided_slice %929 {offsets = [0, 16], sizes = [2, 16], strides = [1, 1]} : vector<2x32xf32> to vector<2x16xf32>
    %cst_331 = arith.constant dense<0.000000e+00> : vector<2x2xf32>
    %951 = tpu.matmul %948, %949, %cst_331 {dimension_numbers = #tpu.dot_dimension_numbers<[1], [1], [0], [0], [0, 0, 1, 0], [], []>} : vector<2x16xf32>, vector<2x16xf32>, vector<2x2xf32> -> vector<2x2xf32>
    %cst_332 = arith.constant dense<0xFF800000> : vector<2xf32>
    %952 = vector.multi_reduction <maximumf>, %951, %cst_332 [1] : vector<2x2xf32> to vector<2xf32>
    %953 = vector.shape_cast %952 : vector<2xf32> to vector<2x1xf32>
    %954 = vector.broadcast %953 : vector<2x1xf32> to vector<2x2xf32>
    %955 = arith.subf %951, %954 : vector<2x2xf32>
    %956 = math.exp %955 : vector<2x2xf32>
    %cst_333 = arith.constant dense<0.000000e+00> : vector<2xf32>
    %957 = vector.multi_reduction <add>, %956, %cst_333 [1] : vector<2x2xf32> to vector<2xf32>
    %958 = vector.shape_cast %957 : vector<2xf32> to vector<2x1xf32>
    %959 = vector.broadcast %958 : vector<2x1xf32> to vector<2x2xf32>
    %960 = arith.divf %956, %959 : vector<2x2xf32>
    %cst_334 = arith.constant dense<0.000000e+00> : vector<2x16xf32>
    %961 = tpu.matmul %960, %950, %cst_334 {dimension_numbers = #tpu.dot_dimension_numbers<[1], [0], [0], [1], [0, 0, 1, 1], [], []>} : vector<2x2xf32>, vector<2x16xf32>, vector<2x16xf32> -> vector<2x16xf32>
    %962 = tpu.concatenate %945, %961 in 1 : vector<2x16xf32>, vector<2x16xf32> -> vector<2x32xf32>
    %963 = vector.extract_strided_slice %906 {offsets = [0, 96], sizes = [32, 32], strides = [1, 1]} : vector<32x128xbf16> to vector<32x32xbf16>
    %964 = arith.truncf %962 : vector<2x32xf32> to vector<2x32xbf16>
    %cst_335 = arith.constant dense<0.000000e+00> : vector<2x32xf32>
    %965 = tpu.matmul %964, %963, %cst_335 {dimension_numbers = #tpu.dot_dimension_numbers<[1], [0], [0], [1], [0, 0, 1, 1], [], []>} : vector<2x32xbf16>, vector<32x32xbf16>, vector<2x32xf32> -> vector<2x32xf32>
    %966 = vector.broadcast %918 : vector<1x32xf32> to vector<2x32xf32>
    %967 = arith.addf %965, %966 : vector<2x32xf32>
    %968 = arith.addf %902, %967 : vector<2x32xf32>
    %969 = vector.extract_strided_slice %904 {offsets = [2, 0], sizes = [1, 32], strides = [1, 1]} : vector<4x128xf32> to vector<1x32xf32>
    %970 = vector.extract_strided_slice %904 {offsets = [2, 32], sizes = [1, 32], strides = [1, 1]} : vector<4x128xf32> to vector<1x32xf32>
    %cst_336 = arith.constant dense<0.000000e+00> : vector<2xf32>
    %971 = vector.multi_reduction <add>, %968, %cst_336 [1] : vector<2x32xf32> to vector<2xf32>
    %972 = vector.shape_cast %971 : vector<2xf32> to vector<2x1xf32>
    %cst_337 = arith.constant 3.200000e+01 : f32
    %973 = vector.broadcast %cst_337 : f32 to vector<2x1xf32>
    %974 = arith.divf %972, %973 : vector<2x1xf32>
    %975 = vector.broadcast %974 : vector<2x1xf32> to vector<2x32xf32>
    %976 = arith.subf %968, %975 : vector<2x32xf32>
    %977 = vector.broadcast %974 : vector<2x1xf32> to vector<2x32xf32>
    %978 = arith.subf %968, %977 : vector<2x32xf32>
    %979 = arith.mulf %976, %978 : vector<2x32xf32>
    %cst_338 = arith.constant dense<0.000000e+00> : vector<2xf32>
    %980 = vector.multi_reduction <add>, %979, %cst_338 [1] : vector<2x32xf32> to vector<2xf32>
    %981 = vector.shape_cast %980 : vector<2xf32> to vector<2x1xf32>
    %cst_339 = arith.constant 3.200000e+01 : f32
    %982 = vector.broadcast %cst_339 : f32 to vector<2x1xf32>
    %983 = arith.divf %981, %982 : vector<2x1xf32>
    %984 = vector.broadcast %974 : vector<2x1xf32> to vector<2x32xf32>
    %985 = arith.subf %968, %984 : vector<2x32xf32>
    %cst_340 = arith.constant 9.99999974E-6 : f32
    %986 = vector.broadcast %cst_340 : f32 to vector<2x1xf32>
    %987 = arith.addf %983, %986 : vector<2x1xf32>
    %988 = math.rsqrt %987 : vector<2x1xf32>
    %989 = vector.broadcast %988 : vector<2x1xf32> to vector<2x32xf32>
    %990 = arith.mulf %985, %989 : vector<2x32xf32>
    %991 = vector.broadcast %969 : vector<1x32xf32> to vector<2x32xf32>
    %992 = arith.mulf %990, %991 : vector<2x32xf32>
    %993 = vector.broadcast %970 : vector<1x32xf32> to vector<2x32xf32>
    %994 = arith.addf %992, %993 : vector<2x32xf32>
    %cst_341 = arith.constant dense<0.000000e+00> : vector<4x128xf32>
    %995 = tpu.matmul %269, %908, %cst_341 {dimension_numbers = #tpu.dot_dimension_numbers<[1], [0], [0], [1], [0, 0, 1, 1], [], []>} : vector<4x32xbf16>, vector<32x128xbf16>, vector<4x128xf32> -> vector<4x128xf32>
    %996 = vector.extract_strided_slice %904 {offsets = [1, 0], sizes = [1, 32], strides = [1, 1]} : vector<4x128xf32> to vector<1x32xf32>
    %997 = vector.extract_strided_slice %904 {offsets = [1, 32], sizes = [1, 32], strides = [1, 1]} : vector<4x128xf32> to vector<1x32xf32>
    %998 = vector.extract_strided_slice %904 {offsets = [1, 64], sizes = [1, 32], strides = [1, 1]} : vector<4x128xf32> to vector<1x32xf32>
    %999 = vector.extract_strided_slice %904 {offsets = [1, 96], sizes = [1, 32], strides = [1, 1]} : vector<4x128xf32> to vector<1x32xf32>
    %1000 = arith.truncf %994 : vector<2x32xf32> to vector<2x32xbf16>
    %cst_342 = arith.constant dense<0.000000e+00> : vector<2x128xf32>
    %1001 = tpu.matmul %1000, %908, %cst_342 {dimension_numbers = #tpu.dot_dimension_numbers<[1], [0], [0], [1], [0, 0, 1, 1], [], []>} : vector<2x32xbf16>, vector<32x128xbf16>, vector<2x128xf32> -> vector<2x128xf32>
    %1002 = vector.extract_strided_slice %1001 {offsets = [0, 0], sizes = [2, 32], strides = [1, 1]} : vector<2x128xf32> to vector<2x32xf32>
    %1003 = vector.broadcast %996 : vector<1x32xf32> to vector<2x32xf32>
    %1004 = arith.addf %1002, %1003 : vector<2x32xf32>
    %1005 = vector.extract_strided_slice %995 {offsets = [0, 32], sizes = [4, 32], strides = [1, 1]} : vector<4x128xf32> to vector<4x32xf32>
    %1006 = vector.broadcast %997 : vector<1x32xf32> to vector<4x32xf32>
    %1007 = arith.addf %1005, %1006 : vector<4x32xf32>
    %1008 = vector.extract_strided_slice %995 {offsets = [0, 64], sizes = [4, 32], strides = [1, 1]} : vector<4x128xf32> to vector<4x32xf32>
    %1009 = vector.broadcast %998 : vector<1x32xf32> to vector<4x32xf32>
    %1010 = arith.addf %1008, %1009 : vector<4x32xf32>
    %1011 = vector.extract_strided_slice %1004 {offsets = [0, 0], sizes = [2, 16], strides = [1, 1]} : vector<2x32xf32> to vector<2x16xf32>
    %cst_343 = arith.constant 2.500000e-01 : f32
    %1012 = vector.broadcast %cst_343 : f32 to vector<2x16xf32>
    %1013 = arith.mulf %1011, %1012 : vector<2x16xf32>
    %1014 = vector.extract_strided_slice %1007 {offsets = [0, 0], sizes = [4, 16], strides = [1, 1]} : vector<4x32xf32> to vector<4x16xf32>
    %1015 = vector.extract_strided_slice %1010 {offsets = [0, 0], sizes = [4, 16], strides = [1, 1]} : vector<4x32xf32> to vector<4x16xf32>
    %cst_344 = arith.constant dense<0.000000e+00> : vector<2x4xf32>
    %1016 = tpu.matmul %1013, %1014, %cst_344 {dimension_numbers = #tpu.dot_dimension_numbers<[1], [1], [0], [0], [0, 0, 1, 0], [], []>} : vector<2x16xf32>, vector<4x16xf32>, vector<2x4xf32> -> vector<2x4xf32>
    %cst_345 = arith.constant dense<0xFF800000> : vector<2xf32>
    %1017 = vector.multi_reduction <maximumf>, %1016, %cst_345 [1] : vector<2x4xf32> to vector<2xf32>
    %1018 = vector.shape_cast %1017 : vector<2xf32> to vector<2x1xf32>
    %1019 = vector.broadcast %1018 : vector<2x1xf32> to vector<2x4xf32>
    %1020 = arith.subf %1016, %1019 : vector<2x4xf32>
    %1021 = math.exp %1020 : vector<2x4xf32>
    %cst_346 = arith.constant dense<0.000000e+00> : vector<2xf32>
    %1022 = vector.multi_reduction <add>, %1021, %cst_346 [1] : vector<2x4xf32> to vector<2xf32>
    %1023 = vector.shape_cast %1022 : vector<2xf32> to vector<2x1xf32>
    %1024 = vector.broadcast %1023 : vector<2x1xf32> to vector<2x4xf32>
    %1025 = arith.divf %1021, %1024 : vector<2x4xf32>
    %cst_347 = arith.constant dense<0.000000e+00> : vector<2x16xf32>
    %1026 = tpu.matmul %1025, %1015, %cst_347 {dimension_numbers = #tpu.dot_dimension_numbers<[1], [0], [0], [1], [0, 0, 1, 1], [], []>} : vector<2x4xf32>, vector<4x16xf32>, vector<2x16xf32> -> vector<2x16xf32>
    %1027 = vector.extract_strided_slice %1004 {offsets = [0, 16], sizes = [2, 16], strides = [1, 1]} : vector<2x32xf32> to vector<2x16xf32>
    %cst_348 = arith.constant 2.500000e-01 : f32
    %1028 = vector.broadcast %cst_348 : f32 to vector<2x16xf32>
    %1029 = arith.mulf %1027, %1028 : vector<2x16xf32>
    %1030 = vector.extract_strided_slice %1007 {offsets = [0, 16], sizes = [4, 16], strides = [1, 1]} : vector<4x32xf32> to vector<4x16xf32>
    %1031 = vector.extract_strided_slice %1010 {offsets = [0, 16], sizes = [4, 16], strides = [1, 1]} : vector<4x32xf32> to vector<4x16xf32>
    %cst_349 = arith.constant dense<0.000000e+00> : vector<2x4xf32>
    %1032 = tpu.matmul %1029, %1030, %cst_349 {dimension_numbers = #tpu.dot_dimension_numbers<[1], [1], [0], [0], [0, 0, 1, 0], [], []>} : vector<2x16xf32>, vector<4x16xf32>, vector<2x4xf32> -> vector<2x4xf32>
    %cst_350 = arith.constant dense<0xFF800000> : vector<2xf32>
    %1033 = vector.multi_reduction <maximumf>, %1032, %cst_350 [1] : vector<2x4xf32> to vector<2xf32>
    %1034 = vector.shape_cast %1033 : vector<2xf32> to vector<2x1xf32>
    %1035 = vector.broadcast %1034 : vector<2x1xf32> to vector<2x4xf32>
    %1036 = arith.subf %1032, %1035 : vector<2x4xf32>
    %1037 = math.exp %1036 : vector<2x4xf32>
    %cst_351 = arith.constant dense<0.000000e+00> : vector<2xf32>
    %1038 = vector.multi_reduction <add>, %1037, %cst_351 [1] : vector<2x4xf32> to vector<2xf32>
    %1039 = vector.shape_cast %1038 : vector<2xf32> to vector<2x1xf32>
    %1040 = vector.broadcast %1039 : vector<2x1xf32> to vector<2x4xf32>
    %1041 = arith.divf %1037, %1040 : vector<2x4xf32>
    %cst_352 = arith.constant dense<0.000000e+00> : vector<2x16xf32>
    %1042 = tpu.matmul %1041, %1031, %cst_352 {dimension_numbers = #tpu.dot_dimension_numbers<[1], [0], [0], [1], [0, 0, 1, 1], [], []>} : vector<2x4xf32>, vector<4x16xf32>, vector<2x16xf32> -> vector<2x16xf32>
    %1043 = tpu.concatenate %1026, %1042 in 1 : vector<2x16xf32>, vector<2x16xf32> -> vector<2x32xf32>
    %1044 = vector.extract_strided_slice %908 {offsets = [0, 96], sizes = [32, 32], strides = [1, 1]} : vector<32x128xbf16> to vector<32x32xbf16>
    %1045 = arith.truncf %1043 : vector<2x32xf32> to vector<2x32xbf16>
    %cst_353 = arith.constant dense<0.000000e+00> : vector<2x32xf32>
    %1046 = tpu.matmul %1045, %1044, %cst_353 {dimension_numbers = #tpu.dot_dimension_numbers<[1], [0], [0], [1], [0, 0, 1, 1], [], []>} : vector<2x32xbf16>, vector<32x32xbf16>, vector<2x32xf32> -> vector<2x32xf32>
    %1047 = vector.broadcast %999 : vector<1x32xf32> to vector<2x32xf32>
    %1048 = arith.addf %1046, %1047 : vector<2x32xf32>
    %1049 = arith.addf %994, %1048 : vector<2x32xf32>
    %1050 = vector.extract_strided_slice %904 {offsets = [2, 64], sizes = [1, 32], strides = [1, 1]} : vector<4x128xf32> to vector<1x32xf32>
    %1051 = vector.extract_strided_slice %904 {offsets = [2, 96], sizes = [1, 32], strides = [1, 1]} : vector<4x128xf32> to vector<1x32xf32>
    %cst_354 = arith.constant dense<0.000000e+00> : vector<2xf32>
    %1052 = vector.multi_reduction <add>, %1049, %cst_354 [1] : vector<2x32xf32> to vector<2xf32>
    %1053 = vector.shape_cast %1052 : vector<2xf32> to vector<2x1xf32>
    %cst_355 = arith.constant 3.200000e+01 : f32
    %1054 = vector.broadcast %cst_355 : f32 to vector<2x1xf32>
    %1055 = arith.divf %1053, %1054 : vector<2x1xf32>
    %1056 = vector.broadcast %1055 : vector<2x1xf32> to vector<2x32xf32>
    %1057 = arith.subf %1049, %1056 : vector<2x32xf32>
    %1058 = vector.broadcast %1055 : vector<2x1xf32> to vector<2x32xf32>
    %1059 = arith.subf %1049, %1058 : vector<2x32xf32>
    %1060 = arith.mulf %1057, %1059 : vector<2x32xf32>
    %cst_356 = arith.constant dense<0.000000e+00> : vector<2xf32>
    %1061 = vector.multi_reduction <add>, %1060, %cst_356 [1] : vector<2x32xf32> to vector<2xf32>
    %1062 = vector.shape_cast %1061 : vector<2xf32> to vector<2x1xf32>
    %cst_357 = arith.constant 3.200000e+01 : f32
    %1063 = vector.broadcast %cst_357 : f32 to vector<2x1xf32>
    %1064 = arith.divf %1062, %1063 : vector<2x1xf32>
    %1065 = vector.broadcast %1055 : vector<2x1xf32> to vector<2x32xf32>
    %1066 = arith.subf %1049, %1065 : vector<2x32xf32>
    %cst_358 = arith.constant 9.99999974E-6 : f32
    %1067 = vector.broadcast %cst_358 : f32 to vector<2x1xf32>
    %1068 = arith.addf %1064, %1067 : vector<2x1xf32>
    %1069 = math.rsqrt %1068 : vector<2x1xf32>
    %1070 = vector.broadcast %1069 : vector<2x1xf32> to vector<2x32xf32>
    %1071 = arith.mulf %1066, %1070 : vector<2x32xf32>
    %1072 = vector.broadcast %1050 : vector<1x32xf32> to vector<2x32xf32>
    %1073 = arith.mulf %1071, %1072 : vector<2x32xf32>
    %1074 = vector.broadcast %1051 : vector<1x32xf32> to vector<2x32xf32>
    %1075 = arith.addf %1073, %1074 : vector<2x32xf32>
    %1076 = arith.truncf %1075 : vector<2x32xf32> to vector<2x32xbf16>
    %cst_359 = arith.constant dense<0.000000e+00> : vector<2x2048xf32>
    %1077 = tpu.matmul %1076, %910, %cst_359 {dimension_numbers = #tpu.dot_dimension_numbers<[1], [0], [0], [1], [0, 0, 1, 1], [], []>} : vector<2x32xbf16>, vector<32x2048xbf16>, vector<2x2048xf32> -> vector<2x2048xf32>
    %1078 = vector.broadcast %914 : vector<1x2048xf32> to vector<2x2048xf32>
    %1079 = arith.addf %1077, %1078 : vector<2x2048xf32>
    %cst_360 = arith.constant 0.000000e+00 : f32
    %1080 = vector.broadcast %cst_360 : f32 to vector<2x2048xf32>
    %1081 = arith.maximumf %1079, %1080 : vector<2x2048xf32>
    %1082 = arith.truncf %1081 : vector<2x2048xf32> to vector<2x2048xbf16>
    %cst_361 = arith.constant dense<0.000000e+00> : vector<2x32xf32>
    %1083 = tpu.matmul %1082, %912, %cst_361 {dimension_numbers = #tpu.dot_dimension_numbers<[1], [1], [0], [0], [0, 0, 1, 0], [], []>} : vector<2x2048xbf16>, vector<32x2048xbf16>, vector<2x32xf32> -> vector<2x32xf32>
    %1084 = vector.extract_strided_slice %904 {offsets = [3, 64], sizes = [1, 32], strides = [1, 1]} : vector<4x128xf32> to vector<1x32xf32>
    %1085 = vector.broadcast %1084 : vector<1x32xf32> to vector<2x32xf32>
    %1086 = arith.addf %1083, %1085 : vector<2x32xf32>
    %1087 = arith.addf %1075, %1086 : vector<2x32xf32>
    %1088 = vector.extract_strided_slice %904 {offsets = [3, 0], sizes = [1, 32], strides = [1, 1]} : vector<4x128xf32> to vector<1x32xf32>
    %1089 = vector.extract_strided_slice %904 {offsets = [3, 32], sizes = [1, 32], strides = [1, 1]} : vector<4x128xf32> to vector<1x32xf32>
    %cst_362 = arith.constant dense<0.000000e+00> : vector<2xf32>
    %1090 = vector.multi_reduction <add>, %1087, %cst_362 [1] : vector<2x32xf32> to vector<2xf32>
    %1091 = vector.shape_cast %1090 : vector<2xf32> to vector<2x1xf32>
    %cst_363 = arith.constant 3.200000e+01 : f32
    %1092 = vector.broadcast %cst_363 : f32 to vector<2x1xf32>
    %1093 = arith.divf %1091, %1092 : vector<2x1xf32>
    %1094 = vector.broadcast %1093 : vector<2x1xf32> to vector<2x32xf32>
    %1095 = arith.subf %1087, %1094 : vector<2x32xf32>
    %1096 = vector.broadcast %1093 : vector<2x1xf32> to vector<2x32xf32>
    %1097 = arith.subf %1087, %1096 : vector<2x32xf32>
    %1098 = arith.mulf %1095, %1097 : vector<2x32xf32>
    %cst_364 = arith.constant dense<0.000000e+00> : vector<2xf32>
    %1099 = vector.multi_reduction <add>, %1098, %cst_364 [1] : vector<2x32xf32> to vector<2xf32>
    %1100 = vector.shape_cast %1099 : vector<2xf32> to vector<2x1xf32>
    %cst_365 = arith.constant 3.200000e+01 : f32
    %1101 = vector.broadcast %cst_365 : f32 to vector<2x1xf32>
    %1102 = arith.divf %1100, %1101 : vector<2x1xf32>
    %1103 = vector.broadcast %1093 : vector<2x1xf32> to vector<2x32xf32>
    %1104 = arith.subf %1087, %1103 : vector<2x32xf32>
    %cst_366 = arith.constant 9.99999974E-6 : f32
    %1105 = vector.broadcast %cst_366 : f32 to vector<2x1xf32>
    %1106 = arith.addf %1102, %1105 : vector<2x1xf32>
    %1107 = math.rsqrt %1106 : vector<2x1xf32>
    %1108 = vector.broadcast %1107 : vector<2x1xf32> to vector<2x32xf32>
    %1109 = arith.mulf %1104, %1108 : vector<2x32xf32>
    %1110 = vector.broadcast %1088 : vector<1x32xf32> to vector<2x32xf32>
    %1111 = arith.mulf %1109, %1110 : vector<2x32xf32>
    %1112 = vector.broadcast %1089 : vector<1x32xf32> to vector<2x32xf32>
    %1113 = arith.addf %1111, %1112 : vector<2x32xf32>
    %c4 = arith.constant 4 : index
    %c0_367 = arith.constant 0 : index
    %c0_368 = arith.constant 0 : index
    %1114 = vector.load %arg8[%c4, %c0_367, %c0_368] : memref<6x4x128xf32, #tpu.memory_space<vmem>>, vector<1x4x128xf32>
    %1115 = vector.shape_cast %1114 : vector<1x4x128xf32> to vector<4x128xf32>
    %c4_369 = arith.constant 4 : index
    %c0_370 = arith.constant 0 : index
    %c0_371 = arith.constant 0 : index
    %c0_372 = arith.constant 0 : index
    %1116 = vector.load %arg6[%c4_369, %c0_370, %c0_371, %c0_372] : memref<6x2x32x128xbf16, #tpu.memory_space<vmem>>, vector<1x1x32x128xbf16>
    %1117 = vector.shape_cast %1116 : vector<1x1x32x128xbf16> to vector<32x128xbf16>
    %c4_373 = arith.constant 4 : index
    %c1_374 = arith.constant 1 : index
    %c0_375 = arith.constant 0 : index
    %c0_376 = arith.constant 0 : index
    %1118 = vector.load %arg6[%c4_373, %c1_374, %c0_375, %c0_376] : memref<6x2x32x128xbf16, #tpu.memory_space<vmem>>, vector<1x1x32x128xbf16>
    %1119 = vector.shape_cast %1118 : vector<1x1x32x128xbf16> to vector<32x128xbf16>
    %c4_377 = arith.constant 4 : index
    %c0_378 = arith.constant 0 : index
    %c0_379 = arith.constant 0 : index
    %c0_380 = arith.constant 0 : index
    %1120 = vector.load %arg7[%c4_377, %c0_378, %c0_379, %c0_380] : memref<6x2x32x2048xbf16, #tpu.memory_space<vmem>>, vector<1x1x32x2048xbf16>
    %1121 = vector.shape_cast %1120 : vector<1x1x32x2048xbf16> to vector<32x2048xbf16>
    %c4_381 = arith.constant 4 : index
    %c1_382 = arith.constant 1 : index
    %c0_383 = arith.constant 0 : index
    %c0_384 = arith.constant 0 : index
    %1122 = vector.load %arg7[%c4_381, %c1_382, %c0_383, %c0_384] : memref<6x2x32x2048xbf16, #tpu.memory_space<vmem>>, vector<1x1x32x2048xbf16>
    %1123 = vector.shape_cast %1122 : vector<1x1x32x2048xbf16> to vector<32x2048xbf16>
    %c4_385 = arith.constant 4 : index
    %c0_386 = arith.constant 0 : index
    %c0_387 = arith.constant 0 : index
    %1124 = vector.load %arg9[%c4_385, %c0_386, %c0_387] : memref<6x1x2048xf32, #tpu.memory_space<vmem>>, vector<1x1x2048xf32>
    %1125 = vector.shape_cast %1124 : vector<1x1x2048xf32> to vector<1x2048xf32>
    %1126 = vector.extract_strided_slice %1115 {offsets = [0, 0], sizes = [1, 32], strides = [1, 1]} : vector<4x128xf32> to vector<1x32xf32>
    %1127 = vector.extract_strided_slice %1115 {offsets = [0, 32], sizes = [1, 32], strides = [1, 1]} : vector<4x128xf32> to vector<1x32xf32>
    %1128 = vector.extract_strided_slice %1115 {offsets = [0, 64], sizes = [1, 32], strides = [1, 1]} : vector<4x128xf32> to vector<1x32xf32>
    %1129 = vector.extract_strided_slice %1115 {offsets = [0, 96], sizes = [1, 32], strides = [1, 1]} : vector<4x128xf32> to vector<1x32xf32>
    %1130 = arith.truncf %1113 : vector<2x32xf32> to vector<2x32xbf16>
    %cst_388 = arith.constant dense<0.000000e+00> : vector<2x128xf32>
    %1131 = tpu.matmul %1130, %1117, %cst_388 {dimension_numbers = #tpu.dot_dimension_numbers<[1], [0], [0], [1], [0, 0, 1, 1], [], []>} : vector<2x32xbf16>, vector<32x128xbf16>, vector<2x128xf32> -> vector<2x128xf32>
    %1132 = vector.extract_strided_slice %1131 {offsets = [0, 0], sizes = [2, 32], strides = [1, 1]} : vector<2x128xf32> to vector<2x32xf32>
    %1133 = vector.broadcast %1126 : vector<1x32xf32> to vector<2x32xf32>
    %1134 = arith.addf %1132, %1133 : vector<2x32xf32>
    %1135 = vector.extract_strided_slice %1131 {offsets = [0, 32], sizes = [2, 32], strides = [1, 1]} : vector<2x128xf32> to vector<2x32xf32>
    %1136 = vector.broadcast %1127 : vector<1x32xf32> to vector<2x32xf32>
    %1137 = arith.addf %1135, %1136 : vector<2x32xf32>
    %1138 = vector.extract_strided_slice %1131 {offsets = [0, 64], sizes = [2, 32], strides = [1, 1]} : vector<2x128xf32> to vector<2x32xf32>
    %1139 = vector.broadcast %1128 : vector<1x32xf32> to vector<2x32xf32>
    %1140 = arith.addf %1138, %1139 : vector<2x32xf32>
    %1141 = vector.extract_strided_slice %1134 {offsets = [0, 0], sizes = [2, 16], strides = [1, 1]} : vector<2x32xf32> to vector<2x16xf32>
    %cst_389 = arith.constant 2.500000e-01 : f32
    %1142 = vector.broadcast %cst_389 : f32 to vector<2x16xf32>
    %1143 = arith.mulf %1141, %1142 : vector<2x16xf32>
    %1144 = vector.extract_strided_slice %1137 {offsets = [0, 0], sizes = [2, 16], strides = [1, 1]} : vector<2x32xf32> to vector<2x16xf32>
    %1145 = vector.extract_strided_slice %1140 {offsets = [0, 0], sizes = [2, 16], strides = [1, 1]} : vector<2x32xf32> to vector<2x16xf32>
    %cst_390 = arith.constant dense<0.000000e+00> : vector<2x2xf32>
    %1146 = tpu.matmul %1143, %1144, %cst_390 {dimension_numbers = #tpu.dot_dimension_numbers<[1], [1], [0], [0], [0, 0, 1, 0], [], []>} : vector<2x16xf32>, vector<2x16xf32>, vector<2x2xf32> -> vector<2x2xf32>
    %cst_391 = arith.constant dense<0xFF800000> : vector<2xf32>
    %1147 = vector.multi_reduction <maximumf>, %1146, %cst_391 [1] : vector<2x2xf32> to vector<2xf32>
    %1148 = vector.shape_cast %1147 : vector<2xf32> to vector<2x1xf32>
    %1149 = vector.broadcast %1148 : vector<2x1xf32> to vector<2x2xf32>
    %1150 = arith.subf %1146, %1149 : vector<2x2xf32>
    %1151 = math.exp %1150 : vector<2x2xf32>
    %cst_392 = arith.constant dense<0.000000e+00> : vector<2xf32>
    %1152 = vector.multi_reduction <add>, %1151, %cst_392 [1] : vector<2x2xf32> to vector<2xf32>
    %1153 = vector.shape_cast %1152 : vector<2xf32> to vector<2x1xf32>
    %1154 = vector.broadcast %1153 : vector<2x1xf32> to vector<2x2xf32>
    %1155 = arith.divf %1151, %1154 : vector<2x2xf32>
    %cst_393 = arith.constant dense<0.000000e+00> : vector<2x16xf32>
    %1156 = tpu.matmul %1155, %1145, %cst_393 {dimension_numbers = #tpu.dot_dimension_numbers<[1], [0], [0], [1], [0, 0, 1, 1], [], []>} : vector<2x2xf32>, vector<2x16xf32>, vector<2x16xf32> -> vector<2x16xf32>
    %1157 = vector.extract_strided_slice %1134 {offsets = [0, 16], sizes = [2, 16], strides = [1, 1]} : vector<2x32xf32> to vector<2x16xf32>
    %cst_394 = arith.constant 2.500000e-01 : f32
    %1158 = vector.broadcast %cst_394 : f32 to vector<2x16xf32>
    %1159 = arith.mulf %1157, %1158 : vector<2x16xf32>
    %1160 = vector.extract_strided_slice %1137 {offsets = [0, 16], sizes = [2, 16], strides = [1, 1]} : vector<2x32xf32> to vector<2x16xf32>
    %1161 = vector.extract_strided_slice %1140 {offsets = [0, 16], sizes = [2, 16], strides = [1, 1]} : vector<2x32xf32> to vector<2x16xf32>
    %cst_395 = arith.constant dense<0.000000e+00> : vector<2x2xf32>
    %1162 = tpu.matmul %1159, %1160, %cst_395 {dimension_numbers = #tpu.dot_dimension_numbers<[1], [1], [0], [0], [0, 0, 1, 0], [], []>} : vector<2x16xf32>, vector<2x16xf32>, vector<2x2xf32> -> vector<2x2xf32>
    %cst_396 = arith.constant dense<0xFF800000> : vector<2xf32>
    %1163 = vector.multi_reduction <maximumf>, %1162, %cst_396 [1] : vector<2x2xf32> to vector<2xf32>
    %1164 = vector.shape_cast %1163 : vector<2xf32> to vector<2x1xf32>
    %1165 = vector.broadcast %1164 : vector<2x1xf32> to vector<2x2xf32>
    %1166 = arith.subf %1162, %1165 : vector<2x2xf32>
    %1167 = math.exp %1166 : vector<2x2xf32>
    %cst_397 = arith.constant dense<0.000000e+00> : vector<2xf32>
    %1168 = vector.multi_reduction <add>, %1167, %cst_397 [1] : vector<2x2xf32> to vector<2xf32>
    %1169 = vector.shape_cast %1168 : vector<2xf32> to vector<2x1xf32>
    %1170 = vector.broadcast %1169 : vector<2x1xf32> to vector<2x2xf32>
    %1171 = arith.divf %1167, %1170 : vector<2x2xf32>
    %cst_398 = arith.constant dense<0.000000e+00> : vector<2x16xf32>
    %1172 = tpu.matmul %1171, %1161, %cst_398 {dimension_numbers = #tpu.dot_dimension_numbers<[1], [0], [0], [1], [0, 0, 1, 1], [], []>} : vector<2x2xf32>, vector<2x16xf32>, vector<2x16xf32> -> vector<2x16xf32>
    %1173 = tpu.concatenate %1156, %1172 in 1 : vector<2x16xf32>, vector<2x16xf32> -> vector<2x32xf32>
    %1174 = vector.extract_strided_slice %1117 {offsets = [0, 96], sizes = [32, 32], strides = [1, 1]} : vector<32x128xbf16> to vector<32x32xbf16>
    %1175 = arith.truncf %1173 : vector<2x32xf32> to vector<2x32xbf16>
    %cst_399 = arith.constant dense<0.000000e+00> : vector<2x32xf32>
    %1176 = tpu.matmul %1175, %1174, %cst_399 {dimension_numbers = #tpu.dot_dimension_numbers<[1], [0], [0], [1], [0, 0, 1, 1], [], []>} : vector<2x32xbf16>, vector<32x32xbf16>, vector<2x32xf32> -> vector<2x32xf32>
    %1177 = vector.broadcast %1129 : vector<1x32xf32> to vector<2x32xf32>
    %1178 = arith.addf %1176, %1177 : vector<2x32xf32>
    %1179 = arith.addf %1113, %1178 : vector<2x32xf32>
    %1180 = vector.extract_strided_slice %1115 {offsets = [2, 0], sizes = [1, 32], strides = [1, 1]} : vector<4x128xf32> to vector<1x32xf32>
    %1181 = vector.extract_strided_slice %1115 {offsets = [2, 32], sizes = [1, 32], strides = [1, 1]} : vector<4x128xf32> to vector<1x32xf32>
    %cst_400 = arith.constant dense<0.000000e+00> : vector<2xf32>
    %1182 = vector.multi_reduction <add>, %1179, %cst_400 [1] : vector<2x32xf32> to vector<2xf32>
    %1183 = vector.shape_cast %1182 : vector<2xf32> to vector<2x1xf32>
    %cst_401 = arith.constant 3.200000e+01 : f32
    %1184 = vector.broadcast %cst_401 : f32 to vector<2x1xf32>
    %1185 = arith.divf %1183, %1184 : vector<2x1xf32>
    %1186 = vector.broadcast %1185 : vector<2x1xf32> to vector<2x32xf32>
    %1187 = arith.subf %1179, %1186 : vector<2x32xf32>
    %1188 = vector.broadcast %1185 : vector<2x1xf32> to vector<2x32xf32>
    %1189 = arith.subf %1179, %1188 : vector<2x32xf32>
    %1190 = arith.mulf %1187, %1189 : vector<2x32xf32>
    %cst_402 = arith.constant dense<0.000000e+00> : vector<2xf32>
    %1191 = vector.multi_reduction <add>, %1190, %cst_402 [1] : vector<2x32xf32> to vector<2xf32>
    %1192 = vector.shape_cast %1191 : vector<2xf32> to vector<2x1xf32>
    %cst_403 = arith.constant 3.200000e+01 : f32
    %1193 = vector.broadcast %cst_403 : f32 to vector<2x1xf32>
    %1194 = arith.divf %1192, %1193 : vector<2x1xf32>
    %1195 = vector.broadcast %1185 : vector<2x1xf32> to vector<2x32xf32>
    %1196 = arith.subf %1179, %1195 : vector<2x32xf32>
    %cst_404 = arith.constant 9.99999974E-6 : f32
    %1197 = vector.broadcast %cst_404 : f32 to vector<2x1xf32>
    %1198 = arith.addf %1194, %1197 : vector<2x1xf32>
    %1199 = math.rsqrt %1198 : vector<2x1xf32>
    %1200 = vector.broadcast %1199 : vector<2x1xf32> to vector<2x32xf32>
    %1201 = arith.mulf %1196, %1200 : vector<2x32xf32>
    %1202 = vector.broadcast %1180 : vector<1x32xf32> to vector<2x32xf32>
    %1203 = arith.mulf %1201, %1202 : vector<2x32xf32>
    %1204 = vector.broadcast %1181 : vector<1x32xf32> to vector<2x32xf32>
    %1205 = arith.addf %1203, %1204 : vector<2x32xf32>
    %cst_405 = arith.constant dense<0.000000e+00> : vector<4x128xf32>
    %1206 = tpu.matmul %269, %1119, %cst_405 {dimension_numbers = #tpu.dot_dimension_numbers<[1], [0], [0], [1], [0, 0, 1, 1], [], []>} : vector<4x32xbf16>, vector<32x128xbf16>, vector<4x128xf32> -> vector<4x128xf32>
    %1207 = vector.extract_strided_slice %1115 {offsets = [1, 0], sizes = [1, 32], strides = [1, 1]} : vector<4x128xf32> to vector<1x32xf32>
    %1208 = vector.extract_strided_slice %1115 {offsets = [1, 32], sizes = [1, 32], strides = [1, 1]} : vector<4x128xf32> to vector<1x32xf32>
    %1209 = vector.extract_strided_slice %1115 {offsets = [1, 64], sizes = [1, 32], strides = [1, 1]} : vector<4x128xf32> to vector<1x32xf32>
    %1210 = vector.extract_strided_slice %1115 {offsets = [1, 96], sizes = [1, 32], strides = [1, 1]} : vector<4x128xf32> to vector<1x32xf32>
    %1211 = arith.truncf %1205 : vector<2x32xf32> to vector<2x32xbf16>
    %cst_406 = arith.constant dense<0.000000e+00> : vector<2x128xf32>
    %1212 = tpu.matmul %1211, %1119, %cst_406 {dimension_numbers = #tpu.dot_dimension_numbers<[1], [0], [0], [1], [0, 0, 1, 1], [], []>} : vector<2x32xbf16>, vector<32x128xbf16>, vector<2x128xf32> -> vector<2x128xf32>
    %1213 = vector.extract_strided_slice %1212 {offsets = [0, 0], sizes = [2, 32], strides = [1, 1]} : vector<2x128xf32> to vector<2x32xf32>
    %1214 = vector.broadcast %1207 : vector<1x32xf32> to vector<2x32xf32>
    %1215 = arith.addf %1213, %1214 : vector<2x32xf32>
    %1216 = vector.extract_strided_slice %1206 {offsets = [0, 32], sizes = [4, 32], strides = [1, 1]} : vector<4x128xf32> to vector<4x32xf32>
    %1217 = vector.broadcast %1208 : vector<1x32xf32> to vector<4x32xf32>
    %1218 = arith.addf %1216, %1217 : vector<4x32xf32>
    %1219 = vector.extract_strided_slice %1206 {offsets = [0, 64], sizes = [4, 32], strides = [1, 1]} : vector<4x128xf32> to vector<4x32xf32>
    %1220 = vector.broadcast %1209 : vector<1x32xf32> to vector<4x32xf32>
    %1221 = arith.addf %1219, %1220 : vector<4x32xf32>
    %1222 = vector.extract_strided_slice %1215 {offsets = [0, 0], sizes = [2, 16], strides = [1, 1]} : vector<2x32xf32> to vector<2x16xf32>
    %cst_407 = arith.constant 2.500000e-01 : f32
    %1223 = vector.broadcast %cst_407 : f32 to vector<2x16xf32>
    %1224 = arith.mulf %1222, %1223 : vector<2x16xf32>
    %1225 = vector.extract_strided_slice %1218 {offsets = [0, 0], sizes = [4, 16], strides = [1, 1]} : vector<4x32xf32> to vector<4x16xf32>
    %1226 = vector.extract_strided_slice %1221 {offsets = [0, 0], sizes = [4, 16], strides = [1, 1]} : vector<4x32xf32> to vector<4x16xf32>
    %cst_408 = arith.constant dense<0.000000e+00> : vector<2x4xf32>
    %1227 = tpu.matmul %1224, %1225, %cst_408 {dimension_numbers = #tpu.dot_dimension_numbers<[1], [1], [0], [0], [0, 0, 1, 0], [], []>} : vector<2x16xf32>, vector<4x16xf32>, vector<2x4xf32> -> vector<2x4xf32>
    %cst_409 = arith.constant dense<0xFF800000> : vector<2xf32>
    %1228 = vector.multi_reduction <maximumf>, %1227, %cst_409 [1] : vector<2x4xf32> to vector<2xf32>
    %1229 = vector.shape_cast %1228 : vector<2xf32> to vector<2x1xf32>
    %1230 = vector.broadcast %1229 : vector<2x1xf32> to vector<2x4xf32>
    %1231 = arith.subf %1227, %1230 : vector<2x4xf32>
    %1232 = math.exp %1231 : vector<2x4xf32>
    %cst_410 = arith.constant dense<0.000000e+00> : vector<2xf32>
    %1233 = vector.multi_reduction <add>, %1232, %cst_410 [1] : vector<2x4xf32> to vector<2xf32>
    %1234 = vector.shape_cast %1233 : vector<2xf32> to vector<2x1xf32>
    %1235 = vector.broadcast %1234 : vector<2x1xf32> to vector<2x4xf32>
    %1236 = arith.divf %1232, %1235 : vector<2x4xf32>
    %cst_411 = arith.constant dense<0.000000e+00> : vector<2x16xf32>
    %1237 = tpu.matmul %1236, %1226, %cst_411 {dimension_numbers = #tpu.dot_dimension_numbers<[1], [0], [0], [1], [0, 0, 1, 1], [], []>} : vector<2x4xf32>, vector<4x16xf32>, vector<2x16xf32> -> vector<2x16xf32>
    %1238 = vector.extract_strided_slice %1215 {offsets = [0, 16], sizes = [2, 16], strides = [1, 1]} : vector<2x32xf32> to vector<2x16xf32>
    %cst_412 = arith.constant 2.500000e-01 : f32
    %1239 = vector.broadcast %cst_412 : f32 to vector<2x16xf32>
    %1240 = arith.mulf %1238, %1239 : vector<2x16xf32>
    %1241 = vector.extract_strided_slice %1218 {offsets = [0, 16], sizes = [4, 16], strides = [1, 1]} : vector<4x32xf32> to vector<4x16xf32>
    %1242 = vector.extract_strided_slice %1221 {offsets = [0, 16], sizes = [4, 16], strides = [1, 1]} : vector<4x32xf32> to vector<4x16xf32>
    %cst_413 = arith.constant dense<0.000000e+00> : vector<2x4xf32>
    %1243 = tpu.matmul %1240, %1241, %cst_413 {dimension_numbers = #tpu.dot_dimension_numbers<[1], [1], [0], [0], [0, 0, 1, 0], [], []>} : vector<2x16xf32>, vector<4x16xf32>, vector<2x4xf32> -> vector<2x4xf32>
    %cst_414 = arith.constant dense<0xFF800000> : vector<2xf32>
    %1244 = vector.multi_reduction <maximumf>, %1243, %cst_414 [1] : vector<2x4xf32> to vector<2xf32>
    %1245 = vector.shape_cast %1244 : vector<2xf32> to vector<2x1xf32>
    %1246 = vector.broadcast %1245 : vector<2x1xf32> to vector<2x4xf32>
    %1247 = arith.subf %1243, %1246 : vector<2x4xf32>
    %1248 = math.exp %1247 : vector<2x4xf32>
    %cst_415 = arith.constant dense<0.000000e+00> : vector<2xf32>
    %1249 = vector.multi_reduction <add>, %1248, %cst_415 [1] : vector<2x4xf32> to vector<2xf32>
    %1250 = vector.shape_cast %1249 : vector<2xf32> to vector<2x1xf32>
    %1251 = vector.broadcast %1250 : vector<2x1xf32> to vector<2x4xf32>
    %1252 = arith.divf %1248, %1251 : vector<2x4xf32>
    %cst_416 = arith.constant dense<0.000000e+00> : vector<2x16xf32>
    %1253 = tpu.matmul %1252, %1242, %cst_416 {dimension_numbers = #tpu.dot_dimension_numbers<[1], [0], [0], [1], [0, 0, 1, 1], [], []>} : vector<2x4xf32>, vector<4x16xf32>, vector<2x16xf32> -> vector<2x16xf32>
    %1254 = tpu.concatenate %1237, %1253 in 1 : vector<2x16xf32>, vector<2x16xf32> -> vector<2x32xf32>
    %1255 = vector.extract_strided_slice %1119 {offsets = [0, 96], sizes = [32, 32], strides = [1, 1]} : vector<32x128xbf16> to vector<32x32xbf16>
    %1256 = arith.truncf %1254 : vector<2x32xf32> to vector<2x32xbf16>
    %cst_417 = arith.constant dense<0.000000e+00> : vector<2x32xf32>
    %1257 = tpu.matmul %1256, %1255, %cst_417 {dimension_numbers = #tpu.dot_dimension_numbers<[1], [0], [0], [1], [0, 0, 1, 1], [], []>} : vector<2x32xbf16>, vector<32x32xbf16>, vector<2x32xf32> -> vector<2x32xf32>
    %1258 = vector.broadcast %1210 : vector<1x32xf32> to vector<2x32xf32>
    %1259 = arith.addf %1257, %1258 : vector<2x32xf32>
    %1260 = arith.addf %1205, %1259 : vector<2x32xf32>
    %1261 = vector.extract_strided_slice %1115 {offsets = [2, 64], sizes = [1, 32], strides = [1, 1]} : vector<4x128xf32> to vector<1x32xf32>
    %1262 = vector.extract_strided_slice %1115 {offsets = [2, 96], sizes = [1, 32], strides = [1, 1]} : vector<4x128xf32> to vector<1x32xf32>
    %cst_418 = arith.constant dense<0.000000e+00> : vector<2xf32>
    %1263 = vector.multi_reduction <add>, %1260, %cst_418 [1] : vector<2x32xf32> to vector<2xf32>
    %1264 = vector.shape_cast %1263 : vector<2xf32> to vector<2x1xf32>
    %cst_419 = arith.constant 3.200000e+01 : f32
    %1265 = vector.broadcast %cst_419 : f32 to vector<2x1xf32>
    %1266 = arith.divf %1264, %1265 : vector<2x1xf32>
    %1267 = vector.broadcast %1266 : vector<2x1xf32> to vector<2x32xf32>
    %1268 = arith.subf %1260, %1267 : vector<2x32xf32>
    %1269 = vector.broadcast %1266 : vector<2x1xf32> to vector<2x32xf32>
    %1270 = arith.subf %1260, %1269 : vector<2x32xf32>
    %1271 = arith.mulf %1268, %1270 : vector<2x32xf32>
    %cst_420 = arith.constant dense<0.000000e+00> : vector<2xf32>
    %1272 = vector.multi_reduction <add>, %1271, %cst_420 [1] : vector<2x32xf32> to vector<2xf32>
    %1273 = vector.shape_cast %1272 : vector<2xf32> to vector<2x1xf32>
    %cst_421 = arith.constant 3.200000e+01 : f32
    %1274 = vector.broadcast %cst_421 : f32 to vector<2x1xf32>
    %1275 = arith.divf %1273, %1274 : vector<2x1xf32>
    %1276 = vector.broadcast %1266 : vector<2x1xf32> to vector<2x32xf32>
    %1277 = arith.subf %1260, %1276 : vector<2x32xf32>
    %cst_422 = arith.constant 9.99999974E-6 : f32
    %1278 = vector.broadcast %cst_422 : f32 to vector<2x1xf32>
    %1279 = arith.addf %1275, %1278 : vector<2x1xf32>
    %1280 = math.rsqrt %1279 : vector<2x1xf32>
    %1281 = vector.broadcast %1280 : vector<2x1xf32> to vector<2x32xf32>
    %1282 = arith.mulf %1277, %1281 : vector<2x32xf32>
    %1283 = vector.broadcast %1261 : vector<1x32xf32> to vector<2x32xf32>
    %1284 = arith.mulf %1282, %1283 : vector<2x32xf32>
    %1285 = vector.broadcast %1262 : vector<1x32xf32> to vector<2x32xf32>
    %1286 = arith.addf %1284, %1285 : vector<2x32xf32>
    %1287 = arith.truncf %1286 : vector<2x32xf32> to vector<2x32xbf16>
    %cst_423 = arith.constant dense<0.000000e+00> : vector<2x2048xf32>
    %1288 = tpu.matmul %1287, %1121, %cst_423 {dimension_numbers = #tpu.dot_dimension_numbers<[1], [0], [0], [1], [0, 0, 1, 1], [], []>} : vector<2x32xbf16>, vector<32x2048xbf16>, vector<2x2048xf32> -> vector<2x2048xf32>
    %1289 = vector.broadcast %1125 : vector<1x2048xf32> to vector<2x2048xf32>
    %1290 = arith.addf %1288, %1289 : vector<2x2048xf32>
    %cst_424 = arith.constant 0.000000e+00 : f32
    %1291 = vector.broadcast %cst_424 : f32 to vector<2x2048xf32>
    %1292 = arith.maximumf %1290, %1291 : vector<2x2048xf32>
    %1293 = arith.truncf %1292 : vector<2x2048xf32> to vector<2x2048xbf16>
    %cst_425 = arith.constant dense<0.000000e+00> : vector<2x32xf32>
    %1294 = tpu.matmul %1293, %1123, %cst_425 {dimension_numbers = #tpu.dot_dimension_numbers<[1], [1], [0], [0], [0, 0, 1, 0], [], []>} : vector<2x2048xbf16>, vector<32x2048xbf16>, vector<2x32xf32> -> vector<2x32xf32>
    %1295 = vector.extract_strided_slice %1115 {offsets = [3, 64], sizes = [1, 32], strides = [1, 1]} : vector<4x128xf32> to vector<1x32xf32>
    %1296 = vector.broadcast %1295 : vector<1x32xf32> to vector<2x32xf32>
    %1297 = arith.addf %1294, %1296 : vector<2x32xf32>
    %1298 = arith.addf %1286, %1297 : vector<2x32xf32>
    %1299 = vector.extract_strided_slice %1115 {offsets = [3, 0], sizes = [1, 32], strides = [1, 1]} : vector<4x128xf32> to vector<1x32xf32>
    %1300 = vector.extract_strided_slice %1115 {offsets = [3, 32], sizes = [1, 32], strides = [1, 1]} : vector<4x128xf32> to vector<1x32xf32>
    %cst_426 = arith.constant dense<0.000000e+00> : vector<2xf32>
    %1301 = vector.multi_reduction <add>, %1298, %cst_426 [1] : vector<2x32xf32> to vector<2xf32>
    %1302 = vector.shape_cast %1301 : vector<2xf32> to vector<2x1xf32>
    %cst_427 = arith.constant 3.200000e+01 : f32
    %1303 = vector.broadcast %cst_427 : f32 to vector<2x1xf32>
    %1304 = arith.divf %1302, %1303 : vector<2x1xf32>
    %1305 = vector.broadcast %1304 : vector<2x1xf32> to vector<2x32xf32>
    %1306 = arith.subf %1298, %1305 : vector<2x32xf32>
    %1307 = vector.broadcast %1304 : vector<2x1xf32> to vector<2x32xf32>
    %1308 = arith.subf %1298, %1307 : vector<2x32xf32>
    %1309 = arith.mulf %1306, %1308 : vector<2x32xf32>
    %cst_428 = arith.constant dense<0.000000e+00> : vector<2xf32>
    %1310 = vector.multi_reduction <add>, %1309, %cst_428 [1] : vector<2x32xf32> to vector<2xf32>
    %1311 = vector.shape_cast %1310 : vector<2xf32> to vector<2x1xf32>
    %cst_429 = arith.constant 3.200000e+01 : f32
    %1312 = vector.broadcast %cst_429 : f32 to vector<2x1xf32>
    %1313 = arith.divf %1311, %1312 : vector<2x1xf32>
    %1314 = vector.broadcast %1304 : vector<2x1xf32> to vector<2x32xf32>
    %1315 = arith.subf %1298, %1314 : vector<2x32xf32>
    %cst_430 = arith.constant 9.99999974E-6 : f32
    %1316 = vector.broadcast %cst_430 : f32 to vector<2x1xf32>
    %1317 = arith.addf %1313, %1316 : vector<2x1xf32>
    %1318 = math.rsqrt %1317 : vector<2x1xf32>
    %1319 = vector.broadcast %1318 : vector<2x1xf32> to vector<2x32xf32>
    %1320 = arith.mulf %1315, %1319 : vector<2x32xf32>
    %1321 = vector.broadcast %1299 : vector<1x32xf32> to vector<2x32xf32>
    %1322 = arith.mulf %1320, %1321 : vector<2x32xf32>
    %1323 = vector.broadcast %1300 : vector<1x32xf32> to vector<2x32xf32>
    %1324 = arith.addf %1322, %1323 : vector<2x32xf32>
    %c5 = arith.constant 5 : index
    %c0_431 = arith.constant 0 : index
    %c0_432 = arith.constant 0 : index
    %1325 = vector.load %arg8[%c5, %c0_431, %c0_432] : memref<6x4x128xf32, #tpu.memory_space<vmem>>, vector<1x4x128xf32>
    %1326 = vector.shape_cast %1325 : vector<1x4x128xf32> to vector<4x128xf32>
    %c5_433 = arith.constant 5 : index
    %c0_434 = arith.constant 0 : index
    %c0_435 = arith.constant 0 : index
    %c0_436 = arith.constant 0 : index
    %1327 = vector.load %arg6[%c5_433, %c0_434, %c0_435, %c0_436] : memref<6x2x32x128xbf16, #tpu.memory_space<vmem>>, vector<1x1x32x128xbf16>
    %1328 = vector.shape_cast %1327 : vector<1x1x32x128xbf16> to vector<32x128xbf16>
    %c5_437 = arith.constant 5 : index
    %c1_438 = arith.constant 1 : index
    %c0_439 = arith.constant 0 : index
    %c0_440 = arith.constant 0 : index
    %1329 = vector.load %arg6[%c5_437, %c1_438, %c0_439, %c0_440] : memref<6x2x32x128xbf16, #tpu.memory_space<vmem>>, vector<1x1x32x128xbf16>
    %1330 = vector.shape_cast %1329 : vector<1x1x32x128xbf16> to vector<32x128xbf16>
    %c5_441 = arith.constant 5 : index
    %c0_442 = arith.constant 0 : index
    %c0_443 = arith.constant 0 : index
    %c0_444 = arith.constant 0 : index
    %1331 = vector.load %arg7[%c5_441, %c0_442, %c0_443, %c0_444] : memref<6x2x32x2048xbf16, #tpu.memory_space<vmem>>, vector<1x1x32x2048xbf16>
    %1332 = vector.shape_cast %1331 : vector<1x1x32x2048xbf16> to vector<32x2048xbf16>
    %c5_445 = arith.constant 5 : index
    %c1_446 = arith.constant 1 : index
    %c0_447 = arith.constant 0 : index
    %c0_448 = arith.constant 0 : index
    %1333 = vector.load %arg7[%c5_445, %c1_446, %c0_447, %c0_448] : memref<6x2x32x2048xbf16, #tpu.memory_space<vmem>>, vector<1x1x32x2048xbf16>
    %1334 = vector.shape_cast %1333 : vector<1x1x32x2048xbf16> to vector<32x2048xbf16>
    %c5_449 = arith.constant 5 : index
    %c0_450 = arith.constant 0 : index
    %c0_451 = arith.constant 0 : index
    %1335 = vector.load %arg9[%c5_449, %c0_450, %c0_451] : memref<6x1x2048xf32, #tpu.memory_space<vmem>>, vector<1x1x2048xf32>
    %1336 = vector.shape_cast %1335 : vector<1x1x2048xf32> to vector<1x2048xf32>
    %1337 = vector.extract_strided_slice %1326 {offsets = [0, 0], sizes = [1, 32], strides = [1, 1]} : vector<4x128xf32> to vector<1x32xf32>
    %1338 = vector.extract_strided_slice %1326 {offsets = [0, 32], sizes = [1, 32], strides = [1, 1]} : vector<4x128xf32> to vector<1x32xf32>
    %1339 = vector.extract_strided_slice %1326 {offsets = [0, 64], sizes = [1, 32], strides = [1, 1]} : vector<4x128xf32> to vector<1x32xf32>
    %1340 = vector.extract_strided_slice %1326 {offsets = [0, 96], sizes = [1, 32], strides = [1, 1]} : vector<4x128xf32> to vector<1x32xf32>
    %1341 = arith.truncf %1324 : vector<2x32xf32> to vector<2x32xbf16>
    %cst_452 = arith.constant dense<0.000000e+00> : vector<2x128xf32>
    %1342 = tpu.matmul %1341, %1328, %cst_452 {dimension_numbers = #tpu.dot_dimension_numbers<[1], [0], [0], [1], [0, 0, 1, 1], [], []>} : vector<2x32xbf16>, vector<32x128xbf16>, vector<2x128xf32> -> vector<2x128xf32>
    %1343 = vector.extract_strided_slice %1342 {offsets = [0, 0], sizes = [2, 32], strides = [1, 1]} : vector<2x128xf32> to vector<2x32xf32>
    %1344 = vector.broadcast %1337 : vector<1x32xf32> to vector<2x32xf32>
    %1345 = arith.addf %1343, %1344 : vector<2x32xf32>
    %1346 = vector.extract_strided_slice %1342 {offsets = [0, 32], sizes = [2, 32], strides = [1, 1]} : vector<2x128xf32> to vector<2x32xf32>
    %1347 = vector.broadcast %1338 : vector<1x32xf32> to vector<2x32xf32>
    %1348 = arith.addf %1346, %1347 : vector<2x32xf32>
    %1349 = vector.extract_strided_slice %1342 {offsets = [0, 64], sizes = [2, 32], strides = [1, 1]} : vector<2x128xf32> to vector<2x32xf32>
    %1350 = vector.broadcast %1339 : vector<1x32xf32> to vector<2x32xf32>
    %1351 = arith.addf %1349, %1350 : vector<2x32xf32>
    %1352 = vector.extract_strided_slice %1345 {offsets = [0, 0], sizes = [2, 16], strides = [1, 1]} : vector<2x32xf32> to vector<2x16xf32>
    %cst_453 = arith.constant 2.500000e-01 : f32
    %1353 = vector.broadcast %cst_453 : f32 to vector<2x16xf32>
    %1354 = arith.mulf %1352, %1353 : vector<2x16xf32>
    %1355 = vector.extract_strided_slice %1348 {offsets = [0, 0], sizes = [2, 16], strides = [1, 1]} : vector<2x32xf32> to vector<2x16xf32>
    %1356 = vector.extract_strided_slice %1351 {offsets = [0, 0], sizes = [2, 16], strides = [1, 1]} : vector<2x32xf32> to vector<2x16xf32>
    %cst_454 = arith.constant dense<0.000000e+00> : vector<2x2xf32>
    %1357 = tpu.matmul %1354, %1355, %cst_454 {dimension_numbers = #tpu.dot_dimension_numbers<[1], [1], [0], [0], [0, 0, 1, 0], [], []>} : vector<2x16xf32>, vector<2x16xf32>, vector<2x2xf32> -> vector<2x2xf32>
    %cst_455 = arith.constant dense<0xFF800000> : vector<2xf32>
    %1358 = vector.multi_reduction <maximumf>, %1357, %cst_455 [1] : vector<2x2xf32> to vector<2xf32>
    %1359 = vector.shape_cast %1358 : vector<2xf32> to vector<2x1xf32>
    %1360 = vector.broadcast %1359 : vector<2x1xf32> to vector<2x2xf32>
    %1361 = arith.subf %1357, %1360 : vector<2x2xf32>
    %1362 = math.exp %1361 : vector<2x2xf32>
    %cst_456 = arith.constant dense<0.000000e+00> : vector<2xf32>
    %1363 = vector.multi_reduction <add>, %1362, %cst_456 [1] : vector<2x2xf32> to vector<2xf32>
    %1364 = vector.shape_cast %1363 : vector<2xf32> to vector<2x1xf32>
    %1365 = vector.broadcast %1364 : vector<2x1xf32> to vector<2x2xf32>
    %1366 = arith.divf %1362, %1365 : vector<2x2xf32>
    %cst_457 = arith.constant dense<0.000000e+00> : vector<2x16xf32>
    %1367 = tpu.matmul %1366, %1356, %cst_457 {dimension_numbers = #tpu.dot_dimension_numbers<[1], [0], [0], [1], [0, 0, 1, 1], [], []>} : vector<2x2xf32>, vector<2x16xf32>, vector<2x16xf32> -> vector<2x16xf32>
    %1368 = vector.extract_strided_slice %1345 {offsets = [0, 16], sizes = [2, 16], strides = [1, 1]} : vector<2x32xf32> to vector<2x16xf32>
    %cst_458 = arith.constant 2.500000e-01 : f32
    %1369 = vector.broadcast %cst_458 : f32 to vector<2x16xf32>
    %1370 = arith.mulf %1368, %1369 : vector<2x16xf32>
    %1371 = vector.extract_strided_slice %1348 {offsets = [0, 16], sizes = [2, 16], strides = [1, 1]} : vector<2x32xf32> to vector<2x16xf32>
    %1372 = vector.extract_strided_slice %1351 {offsets = [0, 16], sizes = [2, 16], strides = [1, 1]} : vector<2x32xf32> to vector<2x16xf32>
    %cst_459 = arith.constant dense<0.000000e+00> : vector<2x2xf32>
    %1373 = tpu.matmul %1370, %1371, %cst_459 {dimension_numbers = #tpu.dot_dimension_numbers<[1], [1], [0], [0], [0, 0, 1, 0], [], []>} : vector<2x16xf32>, vector<2x16xf32>, vector<2x2xf32> -> vector<2x2xf32>
    %cst_460 = arith.constant dense<0xFF800000> : vector<2xf32>
    %1374 = vector.multi_reduction <maximumf>, %1373, %cst_460 [1] : vector<2x2xf32> to vector<2xf32>
    %1375 = vector.shape_cast %1374 : vector<2xf32> to vector<2x1xf32>
    %1376 = vector.broadcast %1375 : vector<2x1xf32> to vector<2x2xf32>
    %1377 = arith.subf %1373, %1376 : vector<2x2xf32>
    %1378 = math.exp %1377 : vector<2x2xf32>
    %cst_461 = arith.constant dense<0.000000e+00> : vector<2xf32>
    %1379 = vector.multi_reduction <add>, %1378, %cst_461 [1] : vector<2x2xf32> to vector<2xf32>
    %1380 = vector.shape_cast %1379 : vector<2xf32> to vector<2x1xf32>
    %1381 = vector.broadcast %1380 : vector<2x1xf32> to vector<2x2xf32>
    %1382 = arith.divf %1378, %1381 : vector<2x2xf32>
    %cst_462 = arith.constant dense<0.000000e+00> : vector<2x16xf32>
    %1383 = tpu.matmul %1382, %1372, %cst_462 {dimension_numbers = #tpu.dot_dimension_numbers<[1], [0], [0], [1], [0, 0, 1, 1], [], []>} : vector<2x2xf32>, vector<2x16xf32>, vector<2x16xf32> -> vector<2x16xf32>
    %1384 = tpu.concatenate %1367, %1383 in 1 : vector<2x16xf32>, vector<2x16xf32> -> vector<2x32xf32>
    %1385 = vector.extract_strided_slice %1328 {offsets = [0, 96], sizes = [32, 32], strides = [1, 1]} : vector<32x128xbf16> to vector<32x32xbf16>
    %1386 = arith.truncf %1384 : vector<2x32xf32> to vector<2x32xbf16>
    %cst_463 = arith.constant dense<0.000000e+00> : vector<2x32xf32>
    %1387 = tpu.matmul %1386, %1385, %cst_463 {dimension_numbers = #tpu.dot_dimension_numbers<[1], [0], [0], [1], [0, 0, 1, 1], [], []>} : vector<2x32xbf16>, vector<32x32xbf16>, vector<2x32xf32> -> vector<2x32xf32>
    %1388 = vector.broadcast %1340 : vector<1x32xf32> to vector<2x32xf32>
    %1389 = arith.addf %1387, %1388 : vector<2x32xf32>
    %1390 = arith.addf %1324, %1389 : vector<2x32xf32>
    %1391 = vector.extract_strided_slice %1326 {offsets = [2, 0], sizes = [1, 32], strides = [1, 1]} : vector<4x128xf32> to vector<1x32xf32>
    %1392 = vector.extract_strided_slice %1326 {offsets = [2, 32], sizes = [1, 32], strides = [1, 1]} : vector<4x128xf32> to vector<1x32xf32>
    %cst_464 = arith.constant dense<0.000000e+00> : vector<2xf32>
    %1393 = vector.multi_reduction <add>, %1390, %cst_464 [1] : vector<2x32xf32> to vector<2xf32>
    %1394 = vector.shape_cast %1393 : vector<2xf32> to vector<2x1xf32>
    %cst_465 = arith.constant 3.200000e+01 : f32
    %1395 = vector.broadcast %cst_465 : f32 to vector<2x1xf32>
    %1396 = arith.divf %1394, %1395 : vector<2x1xf32>
    %1397 = vector.broadcast %1396 : vector<2x1xf32> to vector<2x32xf32>
    %1398 = arith.subf %1390, %1397 : vector<2x32xf32>
    %1399 = vector.broadcast %1396 : vector<2x1xf32> to vector<2x32xf32>
    %1400 = arith.subf %1390, %1399 : vector<2x32xf32>
    %1401 = arith.mulf %1398, %1400 : vector<2x32xf32>
    %cst_466 = arith.constant dense<0.000000e+00> : vector<2xf32>
    %1402 = vector.multi_reduction <add>, %1401, %cst_466 [1] : vector<2x32xf32> to vector<2xf32>
    %1403 = vector.shape_cast %1402 : vector<2xf32> to vector<2x1xf32>
    %cst_467 = arith.constant 3.200000e+01 : f32
    %1404 = vector.broadcast %cst_467 : f32 to vector<2x1xf32>
    %1405 = arith.divf %1403, %1404 : vector<2x1xf32>
    %1406 = vector.broadcast %1396 : vector<2x1xf32> to vector<2x32xf32>
    %1407 = arith.subf %1390, %1406 : vector<2x32xf32>
    %cst_468 = arith.constant 9.99999974E-6 : f32
    %1408 = vector.broadcast %cst_468 : f32 to vector<2x1xf32>
    %1409 = arith.addf %1405, %1408 : vector<2x1xf32>
    %1410 = math.rsqrt %1409 : vector<2x1xf32>
    %1411 = vector.broadcast %1410 : vector<2x1xf32> to vector<2x32xf32>
    %1412 = arith.mulf %1407, %1411 : vector<2x32xf32>
    %1413 = vector.broadcast %1391 : vector<1x32xf32> to vector<2x32xf32>
    %1414 = arith.mulf %1412, %1413 : vector<2x32xf32>
    %1415 = vector.broadcast %1392 : vector<1x32xf32> to vector<2x32xf32>
    %1416 = arith.addf %1414, %1415 : vector<2x32xf32>
    %cst_469 = arith.constant dense<0.000000e+00> : vector<4x128xf32>
    %1417 = tpu.matmul %269, %1330, %cst_469 {dimension_numbers = #tpu.dot_dimension_numbers<[1], [0], [0], [1], [0, 0, 1, 1], [], []>} : vector<4x32xbf16>, vector<32x128xbf16>, vector<4x128xf32> -> vector<4x128xf32>
    %1418 = vector.extract_strided_slice %1326 {offsets = [1, 0], sizes = [1, 32], strides = [1, 1]} : vector<4x128xf32> to vector<1x32xf32>
    %1419 = vector.extract_strided_slice %1326 {offsets = [1, 32], sizes = [1, 32], strides = [1, 1]} : vector<4x128xf32> to vector<1x32xf32>
    %1420 = vector.extract_strided_slice %1326 {offsets = [1, 64], sizes = [1, 32], strides = [1, 1]} : vector<4x128xf32> to vector<1x32xf32>
    %1421 = vector.extract_strided_slice %1326 {offsets = [1, 96], sizes = [1, 32], strides = [1, 1]} : vector<4x128xf32> to vector<1x32xf32>
    %1422 = arith.truncf %1416 : vector<2x32xf32> to vector<2x32xbf16>
    %cst_470 = arith.constant dense<0.000000e+00> : vector<2x128xf32>
    %1423 = tpu.matmul %1422, %1330, %cst_470 {dimension_numbers = #tpu.dot_dimension_numbers<[1], [0], [0], [1], [0, 0, 1, 1], [], []>} : vector<2x32xbf16>, vector<32x128xbf16>, vector<2x128xf32> -> vector<2x128xf32>
    %1424 = vector.extract_strided_slice %1423 {offsets = [0, 0], sizes = [2, 32], strides = [1, 1]} : vector<2x128xf32> to vector<2x32xf32>
    %1425 = vector.broadcast %1418 : vector<1x32xf32> to vector<2x32xf32>
    %1426 = arith.addf %1424, %1425 : vector<2x32xf32>
    %1427 = vector.extract_strided_slice %1417 {offsets = [0, 32], sizes = [4, 32], strides = [1, 1]} : vector<4x128xf32> to vector<4x32xf32>
    %1428 = vector.broadcast %1419 : vector<1x32xf32> to vector<4x32xf32>
    %1429 = arith.addf %1427, %1428 : vector<4x32xf32>
    %1430 = vector.extract_strided_slice %1417 {offsets = [0, 64], sizes = [4, 32], strides = [1, 1]} : vector<4x128xf32> to vector<4x32xf32>
    %1431 = vector.broadcast %1420 : vector<1x32xf32> to vector<4x32xf32>
    %1432 = arith.addf %1430, %1431 : vector<4x32xf32>
    %1433 = vector.extract_strided_slice %1426 {offsets = [0, 0], sizes = [2, 16], strides = [1, 1]} : vector<2x32xf32> to vector<2x16xf32>
    %cst_471 = arith.constant 2.500000e-01 : f32
    %1434 = vector.broadcast %cst_471 : f32 to vector<2x16xf32>
    %1435 = arith.mulf %1433, %1434 : vector<2x16xf32>
    %1436 = vector.extract_strided_slice %1429 {offsets = [0, 0], sizes = [4, 16], strides = [1, 1]} : vector<4x32xf32> to vector<4x16xf32>
    %1437 = vector.extract_strided_slice %1432 {offsets = [0, 0], sizes = [4, 16], strides = [1, 1]} : vector<4x32xf32> to vector<4x16xf32>
    %cst_472 = arith.constant dense<0.000000e+00> : vector<2x4xf32>
    %1438 = tpu.matmul %1435, %1436, %cst_472 {dimension_numbers = #tpu.dot_dimension_numbers<[1], [1], [0], [0], [0, 0, 1, 0], [], []>} : vector<2x16xf32>, vector<4x16xf32>, vector<2x4xf32> -> vector<2x4xf32>
    %cst_473 = arith.constant dense<0xFF800000> : vector<2xf32>
    %1439 = vector.multi_reduction <maximumf>, %1438, %cst_473 [1] : vector<2x4xf32> to vector<2xf32>
    %1440 = vector.shape_cast %1439 : vector<2xf32> to vector<2x1xf32>
    %1441 = vector.broadcast %1440 : vector<2x1xf32> to vector<2x4xf32>
    %1442 = arith.subf %1438, %1441 : vector<2x4xf32>
    %1443 = math.exp %1442 : vector<2x4xf32>
    %cst_474 = arith.constant dense<0.000000e+00> : vector<2xf32>
    %1444 = vector.multi_reduction <add>, %1443, %cst_474 [1] : vector<2x4xf32> to vector<2xf32>
    %1445 = vector.shape_cast %1444 : vector<2xf32> to vector<2x1xf32>
    %1446 = vector.broadcast %1445 : vector<2x1xf32> to vector<2x4xf32>
    %1447 = arith.divf %1443, %1446 : vector<2x4xf32>
    %cst_475 = arith.constant dense<0.000000e+00> : vector<2x16xf32>
    %1448 = tpu.matmul %1447, %1437, %cst_475 {dimension_numbers = #tpu.dot_dimension_numbers<[1], [0], [0], [1], [0, 0, 1, 1], [], []>} : vector<2x4xf32>, vector<4x16xf32>, vector<2x16xf32> -> vector<2x16xf32>
    %1449 = vector.extract_strided_slice %1426 {offsets = [0, 16], sizes = [2, 16], strides = [1, 1]} : vector<2x32xf32> to vector<2x16xf32>
    %cst_476 = arith.constant 2.500000e-01 : f32
    %1450 = vector.broadcast %cst_476 : f32 to vector<2x16xf32>
    %1451 = arith.mulf %1449, %1450 : vector<2x16xf32>
    %1452 = vector.extract_strided_slice %1429 {offsets = [0, 16], sizes = [4, 16], strides = [1, 1]} : vector<4x32xf32> to vector<4x16xf32>
    %1453 = vector.extract_strided_slice %1432 {offsets = [0, 16], sizes = [4, 16], strides = [1, 1]} : vector<4x32xf32> to vector<4x16xf32>
    %cst_477 = arith.constant dense<0.000000e+00> : vector<2x4xf32>
    %1454 = tpu.matmul %1451, %1452, %cst_477 {dimension_numbers = #tpu.dot_dimension_numbers<[1], [1], [0], [0], [0, 0, 1, 0], [], []>} : vector<2x16xf32>, vector<4x16xf32>, vector<2x4xf32> -> vector<2x4xf32>
    %cst_478 = arith.constant dense<0xFF800000> : vector<2xf32>
    %1455 = vector.multi_reduction <maximumf>, %1454, %cst_478 [1] : vector<2x4xf32> to vector<2xf32>
    %1456 = vector.shape_cast %1455 : vector<2xf32> to vector<2x1xf32>
    %1457 = vector.broadcast %1456 : vector<2x1xf32> to vector<2x4xf32>
    %1458 = arith.subf %1454, %1457 : vector<2x4xf32>
    %1459 = math.exp %1458 : vector<2x4xf32>
    %cst_479 = arith.constant dense<0.000000e+00> : vector<2xf32>
    %1460 = vector.multi_reduction <add>, %1459, %cst_479 [1] : vector<2x4xf32> to vector<2xf32>
    %1461 = vector.shape_cast %1460 : vector<2xf32> to vector<2x1xf32>
    %1462 = vector.broadcast %1461 : vector<2x1xf32> to vector<2x4xf32>
    %1463 = arith.divf %1459, %1462 : vector<2x4xf32>
    %cst_480 = arith.constant dense<0.000000e+00> : vector<2x16xf32>
    %1464 = tpu.matmul %1463, %1453, %cst_480 {dimension_numbers = #tpu.dot_dimension_numbers<[1], [0], [0], [1], [0, 0, 1, 1], [], []>} : vector<2x4xf32>, vector<4x16xf32>, vector<2x16xf32> -> vector<2x16xf32>
    %1465 = tpu.concatenate %1448, %1464 in 1 : vector<2x16xf32>, vector<2x16xf32> -> vector<2x32xf32>
    %1466 = vector.extract_strided_slice %1330 {offsets = [0, 96], sizes = [32, 32], strides = [1, 1]} : vector<32x128xbf16> to vector<32x32xbf16>
    %1467 = arith.truncf %1465 : vector<2x32xf32> to vector<2x32xbf16>
    %cst_481 = arith.constant dense<0.000000e+00> : vector<2x32xf32>
    %1468 = tpu.matmul %1467, %1466, %cst_481 {dimension_numbers = #tpu.dot_dimension_numbers<[1], [0], [0], [1], [0, 0, 1, 1], [], []>} : vector<2x32xbf16>, vector<32x32xbf16>, vector<2x32xf32> -> vector<2x32xf32>
    %1469 = vector.broadcast %1421 : vector<1x32xf32> to vector<2x32xf32>
    %1470 = arith.addf %1468, %1469 : vector<2x32xf32>
    %1471 = arith.addf %1416, %1470 : vector<2x32xf32>
    %1472 = vector.extract_strided_slice %1326 {offsets = [2, 64], sizes = [1, 32], strides = [1, 1]} : vector<4x128xf32> to vector<1x32xf32>
    %1473 = vector.extract_strided_slice %1326 {offsets = [2, 96], sizes = [1, 32], strides = [1, 1]} : vector<4x128xf32> to vector<1x32xf32>
    %cst_482 = arith.constant dense<0.000000e+00> : vector<2xf32>
    %1474 = vector.multi_reduction <add>, %1471, %cst_482 [1] : vector<2x32xf32> to vector<2xf32>
    %1475 = vector.shape_cast %1474 : vector<2xf32> to vector<2x1xf32>
    %cst_483 = arith.constant 3.200000e+01 : f32
    %1476 = vector.broadcast %cst_483 : f32 to vector<2x1xf32>
    %1477 = arith.divf %1475, %1476 : vector<2x1xf32>
    %1478 = vector.broadcast %1477 : vector<2x1xf32> to vector<2x32xf32>
    %1479 = arith.subf %1471, %1478 : vector<2x32xf32>
    %1480 = vector.broadcast %1477 : vector<2x1xf32> to vector<2x32xf32>
    %1481 = arith.subf %1471, %1480 : vector<2x32xf32>
    %1482 = arith.mulf %1479, %1481 : vector<2x32xf32>
    %cst_484 = arith.constant dense<0.000000e+00> : vector<2xf32>
    %1483 = vector.multi_reduction <add>, %1482, %cst_484 [1] : vector<2x32xf32> to vector<2xf32>
    %1484 = vector.shape_cast %1483 : vector<2xf32> to vector<2x1xf32>
    %cst_485 = arith.constant 3.200000e+01 : f32
    %1485 = vector.broadcast %cst_485 : f32 to vector<2x1xf32>
    %1486 = arith.divf %1484, %1485 : vector<2x1xf32>
    %1487 = vector.broadcast %1477 : vector<2x1xf32> to vector<2x32xf32>
    %1488 = arith.subf %1471, %1487 : vector<2x32xf32>
    %cst_486 = arith.constant 9.99999974E-6 : f32
    %1489 = vector.broadcast %cst_486 : f32 to vector<2x1xf32>
    %1490 = arith.addf %1486, %1489 : vector<2x1xf32>
    %1491 = math.rsqrt %1490 : vector<2x1xf32>
    %1492 = vector.broadcast %1491 : vector<2x1xf32> to vector<2x32xf32>
    %1493 = arith.mulf %1488, %1492 : vector<2x32xf32>
    %1494 = vector.broadcast %1472 : vector<1x32xf32> to vector<2x32xf32>
    %1495 = arith.mulf %1493, %1494 : vector<2x32xf32>
    %1496 = vector.broadcast %1473 : vector<1x32xf32> to vector<2x32xf32>
    %1497 = arith.addf %1495, %1496 : vector<2x32xf32>
    %1498 = arith.truncf %1497 : vector<2x32xf32> to vector<2x32xbf16>
    %cst_487 = arith.constant dense<0.000000e+00> : vector<2x2048xf32>
    %1499 = tpu.matmul %1498, %1332, %cst_487 {dimension_numbers = #tpu.dot_dimension_numbers<[1], [0], [0], [1], [0, 0, 1, 1], [], []>} : vector<2x32xbf16>, vector<32x2048xbf16>, vector<2x2048xf32> -> vector<2x2048xf32>
    %1500 = vector.broadcast %1336 : vector<1x2048xf32> to vector<2x2048xf32>
    %1501 = arith.addf %1499, %1500 : vector<2x2048xf32>
    %cst_488 = arith.constant 0.000000e+00 : f32
    %1502 = vector.broadcast %cst_488 : f32 to vector<2x2048xf32>
    %1503 = arith.maximumf %1501, %1502 : vector<2x2048xf32>
    %1504 = arith.truncf %1503 : vector<2x2048xf32> to vector<2x2048xbf16>
    %cst_489 = arith.constant dense<0.000000e+00> : vector<2x32xf32>
    %1505 = tpu.matmul %1504, %1334, %cst_489 {dimension_numbers = #tpu.dot_dimension_numbers<[1], [1], [0], [0], [0, 0, 1, 0], [], []>} : vector<2x2048xbf16>, vector<32x2048xbf16>, vector<2x32xf32> -> vector<2x32xf32>
    %1506 = vector.extract_strided_slice %1326 {offsets = [3, 64], sizes = [1, 32], strides = [1, 1]} : vector<4x128xf32> to vector<1x32xf32>
    %1507 = vector.broadcast %1506 : vector<1x32xf32> to vector<2x32xf32>
    %1508 = arith.addf %1505, %1507 : vector<2x32xf32>
    %1509 = arith.addf %1497, %1508 : vector<2x32xf32>
    %1510 = vector.extract_strided_slice %1326 {offsets = [3, 0], sizes = [1, 32], strides = [1, 1]} : vector<4x128xf32> to vector<1x32xf32>
    %1511 = vector.extract_strided_slice %1326 {offsets = [3, 32], sizes = [1, 32], strides = [1, 1]} : vector<4x128xf32> to vector<1x32xf32>
    %cst_490 = arith.constant dense<0.000000e+00> : vector<2xf32>
    %1512 = vector.multi_reduction <add>, %1509, %cst_490 [1] : vector<2x32xf32> to vector<2xf32>
    %1513 = vector.shape_cast %1512 : vector<2xf32> to vector<2x1xf32>
    %cst_491 = arith.constant 3.200000e+01 : f32
    %1514 = vector.broadcast %cst_491 : f32 to vector<2x1xf32>
    %1515 = arith.divf %1513, %1514 : vector<2x1xf32>
    %1516 = vector.broadcast %1515 : vector<2x1xf32> to vector<2x32xf32>
    %1517 = arith.subf %1509, %1516 : vector<2x32xf32>
    %1518 = vector.broadcast %1515 : vector<2x1xf32> to vector<2x32xf32>
    %1519 = arith.subf %1509, %1518 : vector<2x32xf32>
    %1520 = arith.mulf %1517, %1519 : vector<2x32xf32>
    %cst_492 = arith.constant dense<0.000000e+00> : vector<2xf32>
    %1521 = vector.multi_reduction <add>, %1520, %cst_492 [1] : vector<2x32xf32> to vector<2xf32>
    %1522 = vector.shape_cast %1521 : vector<2xf32> to vector<2x1xf32>
    %cst_493 = arith.constant 3.200000e+01 : f32
    %1523 = vector.broadcast %cst_493 : f32 to vector<2x1xf32>
    %1524 = arith.divf %1522, %1523 : vector<2x1xf32>
    %1525 = vector.broadcast %1515 : vector<2x1xf32> to vector<2x32xf32>
    %1526 = arith.subf %1509, %1525 : vector<2x32xf32>
    %cst_494 = arith.constant 9.99999974E-6 : f32
    %1527 = vector.broadcast %cst_494 : f32 to vector<2x1xf32>
    %1528 = arith.addf %1524, %1527 : vector<2x1xf32>
    %1529 = math.rsqrt %1528 : vector<2x1xf32>
    %1530 = vector.broadcast %1529 : vector<2x1xf32> to vector<2x32xf32>
    %1531 = arith.mulf %1526, %1530 : vector<2x32xf32>
    %1532 = vector.broadcast %1510 : vector<1x32xf32> to vector<2x32xf32>
    %1533 = arith.mulf %1531, %1532 : vector<2x32xf32>
    %1534 = vector.broadcast %1511 : vector<1x32xf32> to vector<2x32xf32>
    %1535 = arith.addf %1533, %1534 : vector<2x32xf32>
    %c0_495 = arith.constant 0 : index
    %c0_496 = arith.constant 0 : index
    %1536 = vector.load %arg10[%c0_495, %c0_496] : memref<2x32xf32, #tpu.memory_space<vmem>>, vector<2x32xf32>
    tpu.vector_store %arg10[%c0_495, %c0_496], %1535 {strides = array<i32>} : memref<2x32xf32, #tpu.memory_space<vmem>>, vector<2x32xf32>,
    return
  }
}

</mosaic_0001>

<bundles_post_ra>
// kernel: tpu_custom_call.1
= control target key start
LH: loop header
LB: loop body
LE: loop exit
PB: predicated region body
PF: predicated region fallthrough
CT: control target
= control target key end

     0   :  { %15 = vsyncpa [#allocation3], 0  ;;  %s18261_s0 = inlined_call_operand.hbm [shape: f32[2,16,32], index: 0, kind: input, shape index: {}]   ;;  %s18262_s1 = inlined_call_operand.hbm [shape: f32[2,16,32], index: 1, kind: input, shape index: {}]   ;;  %s18263_s2 = inlined_call_operand.hbm [shape: f32[2,16], index: 2, kind: input, shape index: {}]   ;;  %s18264_s3 = inlined_call_operand.hbm [shape: f32[4,32], index: 3, kind: input, shape index: {}]   ;;  %s18265_s4 = inlined_call_operand.vmem [shape: f32[3,32,8], index: 4, kind: input, shape index: {}]   ;;  %s18266_s5 = inlined_call_operand.hbm [shape: f32[1,8], index: 5, kind: input, shape index: {}]   ;;  %s18267_s6 = inlined_call_operand.hbm [shape: bf16[6,2,32,128], index: 6, kind: input, shape index: {}]   ;;  %s18268_s7 = inlined_call_operand.hbm [shape: bf16[6,2,32,2048], index: 7, kind: input, shape index: {}]   ;;  %s18269_s8 = inlined_call_operand.hbm [shape: f32[6,4,128], index: 8, kind: input, shape index: {}]   ;;  %s18270_s9 = inlined_call_operand.hbm [shape: f32[6,1,2048], index: 9, kind: input, shape index: {}]   ;;  %s18271_s10 = inlined_call_operand.hbm [shape: f32[2,32], index: 10, kind: output, shape index: {}]  }
   0x1   :  { %16 = vsyncpa [#allocation6], 0 }
   0x2   :  { %17 = vsyncpa [#allocation9], 0 }
   0x3   :  { %18 = vsyncpa [#allocation12], 0 }
   0x4   :  { %19 = vsyncpa [#allocation15], 0 }
   0x5   :  { %20 = vsyncpa [#allocation4], 0  ;;  %s16486_s13 = smov [#allocation5]   ;;  %s16487_s15 = smov [#allocation8]  }
   0x6   :  { %s38_s14 = sshll.u32 %s16486_s13, 4  ;;  %s61_s16 = sshll.u32 %s16487_s15, 4  ;;  %s39_s14 = int_to_ptr.vmem [resolvable:$true] %s38_s14  ;;  %s62_s16 = int_to_ptr.vmem [resolvable:$true] %s61_s16 }
   0x7   :  { %s16254_s19 = scalar_lea.hbm %s18262_s1, 512 }
   0x8   :  { %p16255_p0 = scmp.ne.s32.totalorder %s18262_s1, %s16254_s19  ;;  %p16258_p1 = scmp.lt.u32.totalorder %s16254_s19, %s18262_s1 }
   0xa   :  { %p16260_p2 = pnand %p16258_p1, %p16255_p0 }
   0xc   :  { %16263 = shalt.err (!%p16260_p2)
}
   0xd   :  { %s16264_s24 = scalar_lea.vmem %s39_s14, 512  ;;  %p16269_p4 = scmp.lt.s32.totalorder %s39_s14, %s39_s14 }
   0xe   :  { %p16265_p3 = scmp.ne.s32.totalorder %s39_s14, %s16264_s24  ;;  %p16270_p5 = scmp.lt.s32.totalorder %s16264_s24, %s16264_s24 }
  0x10   :  { %p16271_p6 = por %p16270_p5, %p16269_p4 }
  0x12   :  { %p16272_p7 = pnand %p16271_p6, %p16265_p3 }
  0x14   :  { %16275 = shalt.err (!%p16272_p7)
}
  0x15   :  { %s16488_s25 = smov 128   ;;  %s16489_s26 = smov 8  }
  0x16   :  { %44 = dma.hbm_to_vmem [thread:$0]  %s18262_s1, 512, %s39_s14, [#allocation6], %s16488_s25, %s16488_s25, %s16489_s26  }
  0x17   :  { %s16276_s11 = scalar_lea.hbm %s18264_s3, 64 }
  0x18   :  { %p16277_p8 = scmp.ne.s32.totalorder %s18264_s3, %s16276_s11  ;;  %p16280_p9 = scmp.lt.u32.totalorder %s16276_s11, %s18264_s3 }
  0x1a   :  { %p16282_p10 = pnand %p16280_p9, %p16277_p8 }
  0x1c   :  { %16285 = shalt.err (!%p16282_p10)
}
  0x1d   :  { %s16286_s18 = scalar_lea.vmem %s62_s16, 64  ;;  %p16291_p12 = scmp.lt.s32.totalorder %s62_s16, %s62_s16 }
  0x1e   :  { %p16287_p11 = scmp.ne.s32.totalorder %s62_s16, %s16286_s18  ;;  %p16292_p13 = scmp.lt.s32.totalorder %s16286_s18, %s16286_s18 }
  0x20   :  { %p16293_p0 = por %p16292_p13, %p16291_p12 }
  0x22   :  { %p16294_p1 = pnand %p16293_p0, %p16287_p11 }
  0x24   :  { %16297 = shalt.err (!%p16294_p1)
}
  0x25   :  { %64 = dma.hbm_to_vmem [thread:$0]  %s18264_s3, 64, %s62_s16, [#allocation9]  }
  0x26   :  { %s16490_s19 = smov [#allocation11]   ;;  %s16298_s23 = scalar_lea.hbm %s18267_s6, 3072 }
  0x27   :  { %s82_s20 = sshll.u32 %s16490_s19, 4  ;;  %p16299_p2 = scmp.ne.s32.totalorder %s18267_s6, %s16298_s23  ;;  %s83_s20 = int_to_ptr.vmem [resolvable:$true] %s82_s20 }
  0x28   :  { %p16302_p3 = scmp.lt.u32.totalorder %s16298_s23, %s18267_s6 }
  0x2a   :  { %p16304_p4 = pnand %p16302_p3, %p16299_p2 }
  0x2c   :  { %16307 = shalt.err (!%p16304_p4)
}
  0x2d   :  { %s16308_s30 = scalar_lea.vmem %s83_s20, 3072  ;;  %p16313_p6 = scmp.lt.s32.totalorder %s83_s20, %s83_s20 }
  0x2e   :  { %p16309_p5 = scmp.ne.s32.totalorder %s83_s20, %s16308_s30  ;;  %p16314_p7 = scmp.lt.s32.totalorder %s16308_s30, %s16308_s30 }
  0x30   :  { %p16315_p8 = por %p16314_p7, %p16313_p6 }
  0x32   :  { %p16316_p9 = pnand %p16315_p8, %p16309_p5 }
  0x34   :  { %16319 = shalt.err (!%p16316_p9)
}
  0x35   :  { %s16491_s3 = smov 64   ;;  %s16492_s16 = smov 4  }
  0x36   :  { %88 = dma.hbm_to_vmem [thread:$0]  %s18267_s6, 3072, %s83_s20, [#allocation12], %s16491_s3, %s16491_s3, %s16492_s16  }
  0x37   :  { %s16493_s13 = smov [#allocation14]   ;;  %s16494_s17 = smov [#allocation2]  }
  0x38   :  { %s106_s15 = sshll.u32 %s16493_s13, 4  ;;  %s26_s18 = sshll.u32 %s16494_s17, 4  ;;  %s107_s15 = int_to_ptr.vmem [resolvable:$true] %s106_s15  ;;  %s27_s18 = int_to_ptr.vmem [resolvable:$true] %s26_s18 }
  0x39   :  { %s16320_s19 = scalar_lea.hbm %s18269_s8, 384 }
  0x3a   :  { %p16321_p10 = scmp.ne.s32.totalorder %s18269_s8, %s16320_s19  ;;  %p16324_p11 = scmp.lt.u32.totalorder %s16320_s19, %s18269_s8 }
  0x3c   :  { %p16326_p12 = pnand %p16324_p11, %p16321_p10 }
  0x3e   :  { %16329 = shalt.err (!%p16326_p12)
}
  0x3f   :  { %s16330_s6 = scalar_lea.vmem %s107_s15, 384  ;;  %p16335_p0 = scmp.lt.s32.totalorder %s107_s15, %s107_s15 }
  0x40   :  { %p16331_p13 = scmp.ne.s32.totalorder %s107_s15, %s16330_s6  ;;  %p16336_p1 = scmp.lt.s32.totalorder %s16330_s6, %s16330_s6 }
  0x42   :  { %p16337_p2 = por %p16336_p1, %p16335_p0 }
  0x44   :  { %p16338_p3 = pnand %p16337_p2, %p16331_p13 }
  0x46   :  { %16341 = shalt.err (!%p16338_p3)
}
  0x47   :  { %112 = dma.hbm_to_vmem [thread:$0]  %s18269_s8, 384, %s107_s15, [#allocation15], %s16491_s3, %s16491_s3, %s16492_s16  }
  0x48   :  { %s16342_s30 = scalar_lea.hbm %s18261_s0, 512 }
  0x49   :  { %p16343_p4 = scmp.ne.s32.totalorder %s18261_s0, %s16342_s30  ;;  %p16346_p5 = scmp.lt.u32.totalorder %s16342_s30, %s18261_s0 }
  0x4b   :  { %p16348_p6 = pnand %p16346_p5, %p16343_p4 }
  0x4d   :  { %16351 = shalt.err (!%p16348_p6)
}
  0x4e   :  { %s16352_s1 = scalar_lea.vmem %s27_s18, 512  ;;  %p16357_p8 = scmp.lt.s32.totalorder %s27_s18, %s27_s18 }
  0x4f   :  { %p16353_p7 = scmp.ne.s32.totalorder %s27_s18, %s16352_s1  ;;  %p16358_p9 = scmp.lt.s32.totalorder %s16352_s1, %s16352_s1 }
  0x51   :  { %p16359_p10 = por %p16358_p9, %p16357_p8 }
  0x53   :  { %p16360_p11 = pnand %p16359_p10, %p16353_p7 }
  0x55   :  { %16363 = shalt.err (!%p16360_p11)
}
  0x56   :  { %32 = dma.hbm_to_vmem [thread:$0]  %s18261_s0, 512, %s27_s18, [#allocation3], %s16488_s25, %s16488_s25, %s16489_s26  }
  0x57   :  { %s16495_s15 = smov [#allocation7]   ;;  %s16496_s19 = smov [#allocation10]  }
  0x58   :  { %s51_s14 = sshll.u32 %s16495_s15, 4  ;;  %s73_s21 = sshll.u32 %s16496_s19, 4  ;;  %s52_s14 = int_to_ptr.vmem [resolvable:$true] %s51_s14  ;;  %s74_s21 = int_to_ptr.vmem [resolvable:$true] %s73_s21 }
  0x59   :  { %s16364_s24 = scalar_lea.hbm %s18263_s2, 32 }
  0x5a   :  { %p16365_p12 = scmp.ne.s32.totalorder %s18263_s2, %s16364_s24  ;;  %p16368_p13 = scmp.lt.u32.totalorder %s16364_s24, %s18263_s2 }
  0x5c   :  { %p16370_p0 = pnand %p16368_p13, %p16365_p12 }
  0x5e   :  { %16373 = shalt.err (!%p16370_p0)
}
  0x5f   :  { %s16374_s0 = scalar_lea.vmem %s52_s14, 32  ;;  %p16379_p2 = scmp.lt.s32.totalorder %s52_s14, %s52_s14 }
  0x60   :  { %p16375_p1 = scmp.ne.s32.totalorder %s52_s14, %s16374_s0  ;;  %p16380_p3 = scmp.lt.s32.totalorder %s16374_s0, %s16374_s0 }
  0x62   :  { %p16381_p4 = por %p16380_p3, %p16379_p2 }
  0x64   :  { %p16382_p5 = pnand %p16381_p4, %p16375_p1 }
  0x66   :  { %16385 = shalt.err (!%p16382_p5)
}
  0x67   :  { %54 = dma.hbm_to_vmem [thread:$0]  %s18263_s2, 32, %s52_s14, [#allocation6]  }
  0x68   :  { %s16386_s11 = scalar_lea.hbm %s18266_s5, 16 }
  0x69   :  { %p16387_p6 = scmp.ne.s32.totalorder %s18266_s5, %s16386_s11  ;;  %p16390_p7 = scmp.lt.u32.totalorder %s16386_s11, %s18266_s5 }
  0x6b   :  { %p16392_p8 = pnand %p16390_p7, %p16387_p6 }
  0x6d   :  { %16395 = shalt.err (!%p16392_p8)
}
  0x6e   :  { %s16396_s8 = scalar_lea.vmem %s74_s21, 16  ;;  %s16400_s16 = scalar_lea.vmem %s74_s21, 32 }
  0x6f   :  { %p16397_p9 = scmp.ne.s32.totalorder %s74_s21, %s16396_s8  ;;  %p16401_p10 = scmp.lt.s32.totalorder %s74_s21, %s74_s21 }
  0x70   :  { %p16402_p11 = scmp.lt.s32.totalorder %s16400_s16, %s16396_s8 }
  0x72   :  { %p16403_p12 = por %p16402_p11, %p16401_p10 }
  0x74   :  { %p16404_p13 = pnand %p16403_p12, %p16397_p9 }
  0x76   :  { %16407 = shalt.err (!%p16404_p13)
}
  0x77   :  { %76 = dma.hbm_to_vmem [thread:$0]  %s18266_s5, 16, %s74_s21, [#allocation9]  }
  0x78   :  { %s16497_s14 = smov [#allocation13]   ;;  %s16408_s24 = scalar_lea.hbm %s18268_s7, 49152 }
  0x79   :  { %s94_s19 = sshll.u32 %s16497_s14, 4  ;;  %p16409_p0 = scmp.ne.s32.totalorder %s18268_s7, %s16408_s24  ;;  %s95_s19 = int_to_ptr.vmem [resolvable:$true] %s94_s19 }
  0x7a   :  { %p16412_p1 = scmp.lt.u32.totalorder %s16408_s24, %s18268_s7 }
  0x7c   :  { %p16414_p2 = pnand %p16412_p1, %p16409_p0 }
  0x7e   :  { %16417 = shalt.err (!%p16414_p2)
}
  0x7f   :  { %s16418_s0 = scalar_lea.vmem %s95_s19, 49152  ;;  %p16423_p4 = scmp.lt.s32.totalorder %s95_s19, %s95_s19 }
  0x80   :  { %p16419_p3 = scmp.ne.s32.totalorder %s95_s19, %s16418_s0  ;;  %p16424_p5 = scmp.lt.s32.totalorder %s16418_s0, %s16418_s0 }
  0x82   :  { %p16425_p6 = por %p16424_p5, %p16423_p4 }
  0x84   :  { %p16426_p7 = pnand %p16425_p6, %p16419_p3 }
  0x86   :  { %16429 = shalt.err (!%p16426_p7)
}
  0x87   :  { %s16498_s5 = smov 1024   ;;  %s16499_s18 = smov [#allocation16]  }
  0x88   :  { %100 = dma.hbm_to_vmem [thread:$0]  %s18268_s7, 49152, %s95_s19, [#allocation12], %s16498_s5, %s16498_s5, %s16491_s3  }
  0x89   :  { %s118_s29 = sshll.u32 %s16499_s18, 4  ;;  %s16430_s12 = scalar_lea.hbm %s18270_s9, 1536  ;;  %s119_s29 = int_to_ptr.vmem [resolvable:$true] %s118_s29 }
  0x8a   :  { %p16431_p8 = scmp.ne.s32.totalorder %s18270_s9, %s16430_s12  ;;  %p16434_p9 = scmp.lt.u32.totalorder %s16430_s12, %s18270_s9 }
  0x8c   :  { %p16436_p10 = pnand %p16434_p9, %p16431_p8 }
  0x8e   :  { %16439 = shalt.err (!%p16436_p10)
}
  0x8f   :  { %s16440_s16 = scalar_lea.vmem %s119_s29, 1536  ;;  %p16445_p12 = scmp.lt.s32.totalorder %s119_s29, %s119_s29 }
  0x90   :  { %p16441_p11 = scmp.ne.s32.totalorder %s119_s29, %s16440_s16  ;;  %p16446_p13 = scmp.lt.s32.totalorder %s16440_s16, %s16440_s16 }
  0x92   :  { %p16447_p0 = por %p16446_p13, %p16445_p12 }
  0x94   :  { %p16448_p1 = pnand %p16447_p0, %p16441_p11 }
  0x96   :  { %16451 = shalt.err (!%p16448_p1)
}
  0x97   :  { %s16500_s7 = smov 256   ;;  %s16501_s2 = smov 16  }
  0x98   :  { %124 = dma.hbm_to_vmem [thread:$0]  %s18270_s9, 1536, %s119_s29, [#allocation15], %s16500_s7, %s16500_s7, %s16501_s2  }
  0x99   :  { %16474 = dma.done.wait [#allocation3], 512  }
  0x9a   :  { %16475 = vsyncadd [#allocation3], 4294966784 }
  0x9b   :  { %16476 = dma.done.wait [#allocation6], 544  }
  0x9c   :  { %16477 = vsyncadd [#allocation6], 4294966752 }
  0x9d   :  { %16478 = dma.done.wait [#allocation9], 80  }
  0x9e   :  { %16479 = vsyncadd [#allocation9], 4294967216 }
  0x9f   :  { %16480 = dma.done.wait [#allocation12], 52224  }
  0xa0   :  { %16481 = vsyncadd [#allocation12], 4294915072 }
  0xa1   :  { %16482 = dma.done.wait [#allocation15], 1920  }
  0xa2   :  { %16483 = vsyncadd [#allocation15], 4294965376  ;;  %v14476_v0 = vld [vmem:[%s18265_s4 + $0x20] sm:$0xff]  ;;  %v14477_v1 = vld [vmem:[%s18265_s4 + $0x28] sm:$0xff]  ;;  %vm166_vm0 = vcmask 1046528   ;;  %vm170_vm1 = vcmask 261120  }
  0xa3   :  { %v14478_v2 = vld [vmem:[%s18265_s4 + $0x30] sm:$0xff]  ;;  %v16695_v3 = vpack.c.bf16 %v14477_v1, %v14476_v0  ;;  %v14479_v4 = vld [vmem:[%s18265_s4 + $0x38] sm:$0xff]  ;;  %v16700_v5 = vld [vmem:[#allocation2] sm:$0xff]  ;;  %vm334_vm2 = vcmask 1045504   ;;  %v16502_v50 = vmov 0.0   ;;  %vm743_vm3 = vcmask 1040384  }
  0xa4   :  { %v16702_v6 = vld [vmem:[#allocation2 + $0x8] sm:$0xff]  ;;  %v16704_v7 = vpack.c.bf16 %v14479_v4, %v14478_v2  ;;  %v167_v8 = vrot.slane %v16700_v5, 1  ;;  %v459_v10 = vld [vmem:[#allocation2 + $0x10] sm:$0xff]  ;;  %v16708_v11 = vld [vmem:[#allocation2 + $0x18] sm:$0xff]  ;;  %v335_v23 = vrot.slane %v16700_v5, 2  ;;  %vm16503_vm4 = vmmov 0  }
  0xa5   :  { %v168_v9 = vrot.slane %v16702_v6, 1  ;;  %v155_v12 = vld [vmem:[%s18265_s4] sm:$0xff]  ;;  %15962 = vmatprep.subr.bf16.mxu0 %v16695_v3  ;;  %15986 = vmatprep.subr.bf16.mxu1 %v16695_v3  ;;  %v463_v13 = vrot.slane %v459_v10, 1  ;;  %v464_v14 = vrot.slane %v16708_v11, 1  ;;  %v156_v15 = vld [vmem:[%s18265_s4 + $0x8] sm:$0xff]  ;;  %v157_v19 = vld [vmem:[%s18265_s4 + $0x10] sm:$0xff] }
  0xa6   :  { %15964 = vmatpush3.bf16.msra.mxu0 %v16695_v3  ;;  %15988 = vmatpush3.bf16.msra.mxu1 %v16695_v3  ;;  %v16725_v18 = vpack.c.bf16 %v156_v15, %v155_v12  ;;  %v16730_v20 = vld [vmem:[#allocation5] sm:$0xff]  ;;  %v16732_v21 = vld [vmem:[#allocation5 + $0x8] sm:$0xff]  ;;  %v158_v22 = vld [vmem:[%s18265_s4 + $0x18] sm:$0xff]  ;;  %v336_v24 = vrot.slane %v16702_v6, 2  ;;  %v624_v27 = vrot.slane %v459_v10, 2  ;;  %v625_v28 = vrot.slane %v16708_v11, 2 }
  0xa7   :  { %v169_v16 = vsel %vm166_vm0, %v167_v8, %v168_v9  ;;  %15966 = vmatprep.subr.bf16.mxu0 %v16704_v7  ;;  %15990 = vmatprep.subr.bf16.mxu1 %v16704_v7  ;;  %v465_v17 = vsel %vm166_vm0, %v463_v13, %v464_v14  ;;  %v16741_v25 = vld [vmem:[#allocation5 + $0x10] sm:$0xff]  ;;  %v16743_v26 = vld [vmem:[#allocation5 + $0x18] sm:$0xff]  ;;  %v749_v29 = vrot.slane %v16730_v20, 1  ;;  %v750_v30 = vrot.slane %v16732_v21, 1  ;;  %v14484_v31 = vld [vmem:[%s18265_s4 + $0x40] sm:$0xff]  ;;  %s16506_s15 = smov 112  }
  0xa8   :  { %15357 = vmatprep.mubr.msk.f32.mxu0 %vm170_vm1, %v169_v16  ;;  %15390 = vmatprep.mubr.msk.f32.mxu1 %vm170_vm1, %v465_v17  ;;  %v14485_v32 = vld [vmem:[%s18265_s4 + $0x48] sm:$0xff]  ;;  %v1031_v33 = vrot.slane %v16741_v25, 1  ;;  %v1032_v34 = vrot.slane %v16743_v26, 1  ;;  %v15973_v35 = vpack.c.bf16 %v158_v22, %v157_v19  ;;  %v14486_v36 = vld [vmem:[%s18265_s4 + $0x50] sm:$0xff]  ;;  %v14487_v37 = vld [vmem:[%s18265_s4 + $0x58] sm:$0xff]  ;;  %v337_v40 = vsel %vm334_vm2, %v335_v23, %v336_v24  ;;  %s16504_s4 = smov 96  }
  0xa9   :  { %v15977_v38 = vpack.c.bf16 %v14485_v32, %v14484_v31  ;;  %v15981_v39 = vpack.c.bf16 %v14487_v37, %v14486_v36  ;;  %v626_v41 = vsel %vm334_vm2, %v624_v27, %v625_v28  ;;  %v751_v42 = vsel %vm166_vm0, %v749_v29, %v750_v30  ;;  %v14490_v51 = vld [vmem:[#allocation10] ss:$0 sm:$0xff]  ;;  %s16507_s14 = smov 48   ;;  %s16508_s19 = smov 32  }
  0xaa   :  { %15968 = vmatpush3.bf16.msra.mxu0 %v16704_v7  ;;  %15992 = vmatpush3.bf16.msra.mxu1 %v16704_v7  ;;  %v1033_v43 = vsel %vm166_vm0, %v1031_v33, %v1032_v34  ;;  %v910_v44 = vrot.slane %v16730_v20, 2  ;;  %v911_v45 = vrot.slane %v16732_v21, 2  ;;  %v1192_v46 = vrot.slane %v16741_v25, 2 }
  0xab   :  { %15970 = vmatprep.subr.bf16.mxu0 %v16725_v18  ;;  %15994 = vmatprep.subr.bf16.mxu1 %v16725_v18  ;;  %v1193_v47 = vrot.slane %v16743_v26, 2  ;;  %vm1321_vm5 = vcmask 64512   ;;  %vm1323_vm6 = vcmask 130048   ;;  %vm1544_vm7 = vcmask 9216  }
  0xac   :  { %v912_v48 = vsel %vm334_vm2, %v910_v44, %v911_v45  ;;  %vm1562_vm8 = vcmask 1041408   ;;  %vm1558_vm9 = vcmask 15360   ;;  %vm1861_vm10 = vcmask 254976  }
  0xad   :  { %15358 = vmatmul.mubr.msk.f32.vlgmr.msra.gmra.mrb[0].mxu0 %vm170_vm1, %v168_v9  ;;  %15391 = vmatmul.mubr.msk.f32.vlgmr.msra.gmra.mrb[0].mxu1 %vm170_vm1, %v464_v14  ;;  %v1194_v49 = vsel %vm334_vm2, %v1192_v46, %v1193_v47  ;;  %vm2070_vm11 = vcmask 25600   ;;  %vm2088_vm12 = vcmask 1043456   ;;  %vm2084_vm13 = vcmask 31744  }
  0xae   :  { %15972 = vmatpush3.bf16.msra.mxu0 %v16725_v18  ;;  %15996 = vmatpush3.bf16.msra.mxu1 %v16725_v18 }
  0xaf   :  { %15974 = vmatprep.subr.bf16.mxu0 %v15973_v35  ;;  %15998 = vmatprep.subr.bf16.mxu1 %v15973_v35 }
  0xb0   :  { %15368 = vmatprep.mubr.msk.f32.mxu0 %vm170_vm1, %v16700_v5  ;;  %15401 = vmatprep.mubr.msk.f32.mxu1 %vm170_vm1, %v459_v10 }
  0xb2   :  { %15976 = vmatpush3.bf16.msra.mxu0 %v15973_v35  ;;  %16000 = vmatpush3.bf16.msra.mxu1 %v15973_v35 }
  0xb3   :  { %15978 = vmatprep.subr.bf16.mxu0 %v15977_v38  ;;  %16002 = vmatprep.subr.bf16.mxu1 %v15977_v38 }
  0xb5   :  { %15369 = vmatmul.mubr.msk.f32.vlgmr.msra.gmra.mrb[0].mxu0 %vm170_vm1, %v16702_v6  ;;  %15402 = vmatmul.mubr.msk.f32.vlgmr.msra.gmra.mrb[0].mxu1 %vm170_vm1, %v16708_v11 }
  0xb6   :  { %15980 = vmatpush3.bf16.msra.mxu0 %v15977_v38  ;;  %16004 = vmatpush3.bf16.msra.mxu1 %v15977_v38 }
  0xb7   :  { %15982 = vmatprep.subr.bf16.mxu0 %v15981_v39  ;;  %16006 = vmatprep.subr.bf16.mxu1 %v15981_v39 }
  0xb8   :  { %15379 = vmatprep.mubr.msk.f32.mxu0 %vm170_vm1, %v337_v40  ;;  %15412 = vmatprep.mubr.msk.f32.mxu1 %vm170_vm1, %v626_v41 }
  0xba   :  { %15984 = vmatpush3.bf16.msra.mxu0 %v15981_v39  ;;  %16008 = vmatpush3.bf16.msra.mxu1 %v15981_v39 }
  0xbb   :  { %16010 = vmatprep.subr.bf16.mxu0 %v16695_v3  ;;  %16034 = vmatprep.subr.bf16.mxu1 %v16695_v3 }
  0xbd   :  { %15380 = vmatmul.mubr.msk.f32.vlgmr.msra.gmra.mrb[0].mxu0 %vm170_vm1, %v336_v24  ;;  %15413 = vmatmul.mubr.msk.f32.vlgmr.msra.gmra.mrb[0].mxu1 %vm170_vm1, %v625_v28 }
  0xbe   :  { %16012 = vmatpush3.bf16.msra.mxu0 %v16695_v3  ;;  %16036 = vmatpush3.bf16.msra.mxu1 %v16695_v3 }
  0xbf   :  { %16014 = vmatprep.subr.bf16.mxu0 %v16704_v7  ;;  %16038 = vmatprep.subr.bf16.mxu1 %v16704_v7 }
  0xc0   :  { %15423 = vmatprep.mubr.msk.f32.mxu0 %vm170_vm1, %v751_v42  ;;  %15456 = vmatprep.mubr.msk.f32.mxu1 %vm170_vm1, %v1033_v43 }
  0xc2   :  { %16016 = vmatpush3.bf16.msra.mxu0 %v16704_v7  ;;  %16040 = vmatpush3.bf16.msra.mxu1 %v16704_v7 }
  0xc3   :  { %16018 = vmatprep.subr.bf16.mxu0 %v16725_v18  ;;  %16042 = vmatprep.subr.bf16.mxu1 %v16725_v18 }
  0xc5   :  { %15424 = vmatmul.mubr.msk.f32.vlgmr.msra.gmra.mrb[2].mxu0 %vm170_vm1, %v750_v30  ;;  %15457 = vmatmul.mubr.msk.f32.vlgmr.msra.gmra.mrb[2].mxu1 %vm170_vm1, %v1032_v34 }
  0xc6   :  { %16020 = vmatpush3.bf16.msra.mxu0 %v16725_v18  ;;  %16044 = vmatpush3.bf16.msra.mxu1 %v16725_v18 }
  0xc7   :  { %16022 = vmatprep.subr.bf16.mxu0 %v15973_v35  ;;  %16046 = vmatprep.subr.bf16.mxu1 %v15973_v35 }
  0xc8   :  { %15434 = vmatprep.mubr.msk.f32.mxu0 %vm170_vm1, %v16730_v20  ;;  %15467 = vmatprep.mubr.msk.f32.mxu1 %vm170_vm1, %v16741_v25 }
  0xca   :  { %16024 = vmatpush3.bf16.msra.mxu0 %v15973_v35  ;;  %16048 = vmatpush3.bf16.msra.mxu1 %v15973_v35 }
  0xcb   :  { %16026 = vmatprep.subr.bf16.mxu0 %v15977_v38  ;;  %16050 = vmatprep.subr.bf16.mxu1 %v15977_v38 }
  0xcd   :  { %15435 = vmatmul.mubr.msk.f32.vlgmr.msra.gmra.mrb[2].mxu0 %vm170_vm1, %v16732_v21  ;;  %15468 = vmatmul.mubr.msk.f32.vlgmr.msra.gmra.mrb[2].mxu1 %vm170_vm1, %v16743_v26 }
  0xce   :  { %16028 = vmatpush3.bf16.msra.mxu0 %v15977_v38  ;;  %16052 = vmatpush3.bf16.msra.mxu1 %v15977_v38 }
  0xcf   :  { %16030 = vmatprep.subr.bf16.mxu0 %v15981_v39  ;;  %16054 = vmatprep.subr.bf16.mxu1 %v15981_v39 }
  0xd0   :  { %15445 = vmatprep.mubr.msk.f32.mxu0 %vm170_vm1, %v912_v48  ;;  %15478 = vmatprep.mubr.msk.f32.mxu1 %vm170_vm1, %v1194_v49 }
  0xd2   :  { %16032 = vmatpush3.bf16.msra.mxu0 %v15981_v39  ;;  %16056 = vmatpush3.bf16.msra.mxu1 %v15981_v39 }
  0xd3   :  { %15481 = vmatprep.subr.bf16.mxu0 %v16502_v50  ;;  %15489 = vmatprep.subr.mxu1 %v16502_v50 }
  0xd5   :  { %15446 = vmatmul.mubr.msk.f32.vlgmr.msra.gmra.mrb[2].mxu0 %vm170_vm1, %v911_v45  ;;  %15479 = vmatmul.mubr.msk.f32.vlgmr.msra.gmra.mrb[2].mxu1 %vm170_vm1, %v1193_v47 }
  0xd6   :  { %15485 = vmatprep.mubr.msk.bf16.mxu0 %vm16503_vm4, %v16502_v50  ;;  %15491 = vmatprep.mubr.msk.f32.mxu1 %vm16503_vm4, %v16502_v50 }
 0x190   :  { %v15381_v52 = vpop.f32.mrb[0].mxu0  ;;  %v15414_v53 = vpop.f32.mrb[0].mxu1 }
 0x191   :  { %v427_v54 = vadd.f32 %v15381_v52, %v14490_v51  ;;  %v709_v55 = vadd.f32 %v15414_v53, %v14490_v51  ;;  %v408_v56 = vpop.f32.mrb[1].mxu0  ;;  %v697_v57 = vpop.f32.mrb[1].mxu1 }
 0x192   :  { %v426_v58 = vadd.f32 %v14490_v51, %v408_v56  ;;  %v708_v59 = vadd.f32 %v14490_v51, %v697_v57 }
 0x193   :  { %v445_v62 = vrot.slane %v427_v54, 1  ;;  %v727_v63 = vrot.slane %v709_v55, 1 }
 0x194   :  { %v429_v60 = vrot.slane %v426_v58, 1  ;;  %v711_v61 = vrot.slane %v708_v59, 1 }
 0x195   :  { %v447_v4 = vmax.f32 %v427_v54, %v445_v62  ;;  %v729_v5 = vmax.f32 %v709_v55, %v727_v63 }
 0x196   :  { %v431_v0 = vmax.f32 %v426_v58, %v429_v60  ;;  %v713_v1 = vmax.f32 %v708_v59, %v711_v61 }
 0x197   :  { %v448_v12 = vmax.f32 %v447_v4, 0.0  ;;  %v730_v13 = vmax.f32 %v729_v5, 0.0 }
 0x198   :  { %v432_v2 = vmax.f32 %v431_v0, 0.0  ;;  %v714_v3 = vmax.f32 %v713_v1, 0.0  ;;  %v16822_v1 = vld [vmem:[#allocation11] sm:$0xff]  }
 0x199   :  { %v451_v20 = vrot.slane %v448_v12, 2  ;;  %v733_v21 = vrot.slane %v730_v13, 2  ;;  %v454_v24 = vrot.slane %v448_v12, 4  ;;  %v736_v25 = vrot.slane %v730_v13, 4  ;;  %15482 = vmatpush3.bf16.msra.mxu0 %v16822_v1 }
 0x19a   :  { %v435_v6 = vrot.slane %v432_v2, 2  ;;  %v717_v7 = vrot.slane %v714_v3, 2  ;;  %v438_v9 = vrot.slane %v432_v2, 4  ;;  %v720_v11 = vrot.slane %v714_v3, 4  ;;  %15483 = vmatprep.subr.bf16.mxu0 %v16502_v50 }
 0x19b   :  { %v441_v15 = vrot.slane %v432_v2, 6  ;;  %v723_v17 = vrot.slane %v714_v3, 6 }
 0x19c   :  { %v437_v8 = vadd.f32 %v435_v6, %v432_v2  ;;  %v719_v10 = vadd.f32 %v717_v7, %v714_v3 }
 0x19e   :  { %v440_v14 = vadd.f32 %v438_v9, %v437_v8  ;;  %v722_v16 = vadd.f32 %v720_v11, %v719_v10  ;;  %v16826_v8 = vld [vmem:[#allocation11 + $0x8] sm:$0xff]  }
 0x19f   :  { %15484 = vmatpush3.bf16.msra.mxu0 %v16826_v8 }
 0x1a0   :  { %v725_v18 = vadd.f32 %v723_v17, %v722_v16  ;;  %v443_v19 = vadd.f32 %v441_v15, %v440_v14  ;;  %15504 = vmatprep.subr.mxu0 %v16502_v50 }
 0x1a2   :  { %v731_v22 = vadd.f32 %v730_v13, %v725_v18  ;;  %v449_v23 = vadd.f32 %v448_v12, %v443_v19  ;;  %v1312_v19 = vld [vmem:[#allocation7] sm:$0x3] }
 0x1a4   :  { %v735_v26 = vadd.f32 %v733_v21, %v731_v22  ;;  %v453_v27 = vadd.f32 %v451_v20, %v449_v23 }
 0x1a6   :  { %v738_v28 = vadd.f32 %v736_v25, %v735_v26  ;;  %v456_v29 = vadd.f32 %v454_v24, %v453_v27  ;;  %v1460_v25 = vlaneseq }
 0x1a8   :  { %v15447_v30 = vpop.f32.mrb[2].mxu0  ;;  %v15480_v31 = vpop.f32.mrb[2].mxu1  ;;  %v739_v32 = vmul.f32 0.14285715, %v738_v28  ;;  %v457_v40 = vmul.f32 0.14285715, %v456_v29 }
 0x1a9   :  { %v995_v33 = vadd.f32 %v15447_v30, %v14490_v51  ;;  %v1277_v34 = vadd.f32 %v15480_v31, %v14490_v51  ;;  %v983_v35 = vpop.f32.mrb[3].mxu0  ;;  %v1265_v36 = vpop.f32.mrb[3].mxu1  ;;  %v16845_v26 = vshrl.u32 %v1460_v25, 7  ;;  %v16850_v28 = vld [vmem:[#allocation14] sm:$0xf] }
 0x1aa   :  { %v994_v37 = vadd.f32 %v14490_v51, %v983_v35  ;;  %v1276_v38 = vadd.f32 %v14490_v51, %v1265_v36  ;;  %v741_v39 = vrot.slane %v739_v32, 7 }
 0x1ab   :  { %v1013_v44 = vrot.slane %v995_v33, 1  ;;  %v1295_v45 = vrot.slane %v1277_v34, 1  ;;  %v16848_v27 = vsub.s32 0, %v16845_v26 }
 0x1ac   :  { %v997_v41 = vrot.slane %v994_v37, 1  ;;  %v1279_v42 = vrot.slane %v1276_v38, 1  ;;  %v744_v43 = vsel %vm743_vm3, %v457_v40, %v741_v39 }
 0x1ad   :  { %v1015_v52 = vmax.f32 %v995_v33, %v1013_v44  ;;  %v1297_v53 = vmax.f32 %v1277_v34, %v1295_v45  ;;  %v16854_v29 = vrot.slane %v16850_v28, %v16848_v27 }
 0x1ae   :  { %v999_v46 = vmax.f32 %v994_v37, %v997_v41  ;;  %v1281_v47 = vmax.f32 %v1276_v38, %v1279_v42 }
 0x1af   :  { %v1016_v59 = vmax.f32 %v1015_v52, 0.0  ;;  %v1298_v60 = vmax.f32 %v1297_v53, 0.0 }
 0x1b0   :  { %v1000_v48 = vmax.f32 %v999_v46, 0.0  ;;  %v1282_v49 = vmax.f32 %v1281_v47, 0.0 }
 0x1b1   :  { %v1019_v5 = vrot.slane %v1016_v59, 2  ;;  %v1301_v7 = vrot.slane %v1298_v60, 2  ;;  %v1022_v10 = vrot.slane %v1016_v59, 4  ;;  %v1304_v12 = vrot.slane %v1298_v60, 4 }
 0x1b2   :  { %v1003_v54 = vrot.slane %v1000_v48, 2  ;;  %v1285_v55 = vrot.slane %v1282_v49, 2  ;;  %v1006_v57 = vrot.slane %v1000_v48, 4  ;;  %v1288_v51 = vrot.slane %v1282_v49, 4 }
 0x1b3   :  { %v1009_v62 = vrot.slane %v1000_v48, 6  ;;  %v1291_v0 = vrot.slane %v1282_v49, 6 }
 0x1b4   :  { %v1005_v56 = vadd.f32 %v1003_v54, %v1000_v48  ;;  %v1287_v58 = vadd.f32 %v1285_v55, %v1282_v49 }
 0x1b6   :  { %v1008_v61 = vadd.f32 %v1006_v57, %v1005_v56  ;;  %v1290_v63 = vadd.f32 %v1288_v51, %v1287_v58 }
 0x1b8   :  { %v1011_v2 = vadd.f32 %v1009_v62, %v1008_v61  ;;  %v1293_v3 = vadd.f32 %v1291_v0, %v1290_v63 }
 0x1ba   :  { %v1017_v4 = vadd.f32 %v1016_v59, %v1011_v2  ;;  %v1299_v6 = vadd.f32 %v1298_v60, %v1293_v3 }
 0x1bc   :  { %v1021_v9 = vadd.f32 %v1019_v5, %v1017_v4  ;;  %v1303_v11 = vadd.f32 %v1301_v7, %v1299_v6 }
 0x1be   :  { %v1024_v13 = vadd.f32 %v1022_v10, %v1021_v9  ;;  %v1306_v14 = vadd.f32 %v1304_v12, %v1303_v11 }
 0x1c0   :  { %v1307_v15 = vmul.f32 0.14285715, %v1306_v14  ;;  %v1025_v16 = vmul.f32 0.14285715, %v1024_v13 }
 0x1c2   :  { %v1309_v17 = vrot.slane %v1307_v15, 7 }
 0x1c4   :  { %v1311_v18 = vsel %vm743_vm3, %v1025_v16, %v1309_v17  ;;  %v16901_v17 = vld [vmem:[#allocation11 + $0x10] sm:$0xff]  }
 0x1c5   :  { %1314 = vrot.lane.b32.xlu0 %v1311_v18, %s16489_s26  ;;  %s16505_s26 = smov 80   ;;  %v16904_v18 = vld [vmem:[#allocation11 + $0x18] sm:$0xff]  }
 0x1c9   :  { %1318 = vrot.lane.b32.xlu0 %v1312_v19, %s16501_s2  ;;  %v1325_v19 = vld [vmem:[#allocation8] sm:$0xf] }
 0x237   :  { %v1315_v20 = vpop.permute.xlu0 %1314 }
 0x238   :  { %v1322_v21 = vsel %vm1321_vm5, %v744_v43, %v1315_v20  ;;  %v16913_v20 = vpack.c.bf16 %v1325_v19, %v1325_v19 }
 0x23b   :  { %v1319_v22 = vpop.permute.xlu0 %1318 }
 0x23c   :  { %v16838_v23 = vsel %vm1323_vm6, %v1322_v21, %v1319_v22 }
 0x23d   :  { %v1404_v24 = vpack.c.bf16 %v16838_v23, %v16838_v23 }
 0x23f   :  { %15486 = vmatmul.mubr.msk.bf16.vlgmr.msra.gmra.mrb[4].mxu0 %vm170_vm1, %v1404_v24 }
 0x240   :  { %15506 = vmatprep.mubr.msk.f32.mxu0 %vm16503_vm4, %v16502_v50 }
 0x312   :  { %v1454_v30 = vpop.f32.mrb[4].mxu0 }
 0x313   :  { %v1464_v31 = vadd.f32 %v16854_v29, %v1454_v30  ;;  %v15487_v32 = vpop.f32.mrb[5].mxu0 }
 0x314   :  { %v1457_v33 = vpop.f32.mrb[6].mxu0 }
 0x315   :  { %1467 = vrot.lane.b32.xlu1 %v1464_v31, %s16504_s4  ;;  %v15488_v34 = vpop.f32.mrb[7].mxu0  ;;  %v1465_v36 = vmul.f32 0.25, %v1464_v31 }
 0x387   :  { %v1468_v35 = vpop.permute.xlu1 %1467 }
 0x388   :  { %15490 = vmatpush3.xpose.msk.msra.mxu1 %vm1323_vm6, %v1468_v35 }
 0x389   :  { %15494 = vmatprep.subr.mxu1 %v16502_v50 }
 0x38b   :  { %15492 = vmatmul.mubr.msk.f32.vlgmr.msra.gmra.mrb[4].mxu1 %vm1323_vm6, %v1465_v36 }
 0x38c   :  { %15496 = vmatprep.mubr.msk.f32.mxu1 %vm16503_vm4, %v16502_v50 }
 0x45e   :  { %v1540_v37 = vpop.f32.mrb[4].mxu1 }
 0x45f   :  { %v15493_v38 = vpop.f32.mrb[5].mxu1  ;;  %v1545_v39 = vsel %vm1544_vm7, %v1540_v37, -inf }
 0x460   :  { %1546 = vmax.xlane.f32.xlu1 %v1545_v39 }
 0x471   :  { %1637 = vrot.lane.b32.xlu1 %v1464_v31, %s16505_s26 }
 0x475   :  { %1635 = vrot.lane.b32.xlu1 %v1465_v36, %s16506_s15 }
 0x4ed   :  { %v1547_v40 = vpop.xlane.xlu1 %1546 }
 0x4ee   :  { %v1548_v41 = vsub.f32 %v1540_v37, %v1547_v40 }
 0x4f0   :  { %v1549_v42 = vmul.f32 1.442695, %v1548_v41 }
 0x4f1   :  { %v1638_v48 = vpop.permute.xlu1 %1637 }
 0x4f2   :  { %16122 = vpow2.f32 %v1549_v42 }
 0x4f5   :  { %v1636_v52 = vpop.permute.xlu1 %1635 }
 0x4fc   :  { %v16123_v43 = vpop.eup %16122 }
 0x4fd   :  { %v1551_v44 = vsel %vm1544_vm7, %v16123_v43, 0.0 }
 0x4fe   :  { %1552 = vadd.xlane.f32.xlu0 %v1551_v44 }
 0x514   :  { %1556 = vrot.lane.b32.xlu0 %v1464_v31, %s16491_s3 }
 0x58b   :  { %v1553_v45 = vpop.xlane.xlu0 %1552 }
 0x58c   :  { %16124 = vrcp.f32 %v1553_v45 }
 0x58f   :  { %v1557_v46 = vpop.permute.xlu0 %1556 }
 0x590   :  { %15495 = vmatpush3.msk.msra.mxu1 %vm1562_vm8, %v1557_v46 }
 0x591   :  { %15499 = vmatprep.subr.mxu1 %v16502_v50 }
 0x596   :  { %v16125_v47 = vpop.eup %16124 }
 0x597   :  { %v1555_v49 = vmul.f32 %v16125_v47, %v16123_v43 }
 0x599   :  { %15497 = vmatmul.mubr.msk.f32.vlgmr.msra.gmra.mrb[6].mxu1 %vm1558_vm9, %v1555_v49 }
 0x59a   :  { %15500 = vmatpush3.xpose.msk.msra.mxu1 %vm1323_vm6, %v1638_v48  ;;  %15501 = vmatprep.mubr.msk.f32.mxu1 %vm16503_vm4, %v16502_v50 }
 0x59b   :  { %15509 = vmatprep.subr.bf16.mxu1 %v16502_v50 }
 0x59d   :  { %15502 = vmatmul.mubr.msk.f32.vlgmr.msra.gmra.mrb[8].mxu1 %vm1323_vm6, %v1636_v52 }
 0x59e   :  { %15513 = vmatprep.mubr.msk.bf16.mxu1 %vm16503_vm4, %v16502_v50 }
 0x66c   :  { %v1631_v53 = vpop.f32.mrb[6].mxu1 }
 0x66d   :  { %v15498_v54 = vpop.f32.mrb[7].mxu1 }
 0x670   :  { %v1709_v55 = vpop.f32.mrb[8].mxu1 }
 0x671   :  { %v15503_v56 = vpop.f32.mrb[9].mxu1  ;;  %v1713_v57 = vsel %vm1544_vm7, %v1709_v55, -inf }
 0x672   :  { %1714 = vmax.xlane.f32.xlu0 %v1713_v57 }
 0x688   :  { %1724 = vrot.lane.b32.xlu0 %v1464_v31, %s16507_s14  ;;  %v16930_v31 = vsub.s32 1, %v16845_v26 }
 0x68a   :  { %v16934_v32 = vrot.slane %v16850_v28, %v16930_v31 }
 0x6ff   :  { %v1715_v58 = vpop.xlane.xlu0 %1714 }
 0x700   :  { %v1716_v51 = vsub.f32 %v1709_v55, %v1715_v58 }
 0x702   :  { %v1717_v59 = vmul.f32 1.442695, %v1716_v51 }
 0x703   :  { %v1725_v60 = vpop.permute.xlu0 %1724 }
 0x704   :  { %16126 = vpow2.f32 %v1717_v59  ;;  %15505 = vmatpush3.msk.msra.mxu0 %vm1562_vm8, %v1725_v60 }
 0x705   :  { %15517 = vmatprep.subr.bf16.mxu0 %v16502_v50 }
 0x70e   :  { %v16127_v61 = vpop.eup %16126 }
 0x70f   :  { %v1719_v62 = vsel %vm1544_vm7, %v16127_v61, 0.0 }
 0x710   :  { %1720 = vadd.xlane.f32.xlu1 %v1719_v62 }
 0x721   :  { %1807 = vrot.lane.b32.xlu1 %v16822_v1, %s16508_s19 }
 0x725   :  { %1809 = vrot.lane.b32.xlu1 %v16826_v8, %s16508_s19 }
 0x79d   :  { %v1721_v63 = vpop.xlane.xlu1 %1720 }
 0x79e   :  { %16128 = vrcp.f32 %v1721_v63 }
 0x7a1   :  { %v1808_v3 = vpop.permute.xlu1 %1807 }
 0x7a2   :  { %15510 = vmatpush3.bf16.msra.mxu1 %v1808_v3 }
 0x7a3   :  { %15511 = vmatprep.subr.bf16.mxu1 %v16502_v50 }
 0x7a5   :  { %v1810_v4 = vpop.permute.xlu1 %1809 }
 0x7a6   :  { %15512 = vmatpush3.bf16.msra.mxu1 %v1810_v4 }
 0x7a7   :  { %15525 = vmatprep.subr.bf16.mxu1 %v16502_v50 }
 0x7a8   :  { %v16129_v0 = vpop.eup %16128 }
 0x7a9   :  { %v1723_v2 = vmul.f32 %v16129_v0, %v16127_v61 }
 0x7ab   :  { %15507 = vmatmul.mubr.msk.f32.vlgmr.msra.gmra.mrb[8].mxu0 %vm1558_vm9, %v1723_v2 }
 0x7ac   :  { %15521 = vmatprep.mubr.msk.bf16.mxu0 %vm16503_vm4, %v16502_v50  ;;  %15518 = vmatpush3.bf16.msra.mxu0 %v16901_v17 }
 0x7ad   :  { %15519 = vmatprep.subr.bf16.mxu0 %v16502_v50 }
 0x7b0   :  { %15520 = vmatpush3.bf16.msra.mxu0 %v16904_v18 }
 0x7b1   :  { %15533 = vmatprep.subr.mxu0 %v16502_v50 }
 0x7b3   :  { %15522 = vmatmul.mubr.msk.bf16.vlgmr.msra.gmra.mrb[12].mxu0 %vm170_vm1, %v16913_v20 }
 0x7b4   :  { %15535 = vmatprep.mubr.msk.f32.mxu0 %vm16503_vm4, %v16502_v50 }
 0x87e   :  { %v1797_v1 = vpop.f32.mrb[8].mxu0 }
 0x87f   :  { %1802 = vrot.lane.b32.xlu0 %v1797_v1, %s16501_s2  ;;  %v15508_v5 = vpop.f32.mrb[9].mxu0 }
 0x883   :  { %1814 = vrot.lane.b32.xlu0 %v16854_v29, %s16508_s19  ;;  %v16921_v29 = vsub.s32 2, %v16845_v26 }
 0x885   :  { %v16925_v30 = vrot.slane %v16850_v28, %v16921_v29 }
 0x886   :  { %v1935_v33 = vpop.f32.mrb[12].mxu0 }
 0x887   :  { %v1990_v34 = vadd.f32 %v16934_v32, %v1935_v33  ;;  %v15523_v35 = vpop.f32.mrb[13].mxu0 }
 0x888   :  { %v1938_v36 = vpop.f32.mrb[14].mxu0 }
 0x889   :  { %v15524_v37 = vpop.f32.mrb[15].mxu0 }
 0x8f1   :  { %v1803_v6 = vpop.permute.xlu0 %1802 }
 0x8f2   :  { %v1805_v7 = vsel %vm1323_vm6, %v1631_v53, %v1803_v6 }
 0x8f3   :  { %v1806_v8 = vpack.c.bf16 %v1805_v7, %v1805_v7 }
 0x8f5   :  { %15514 = vmatmul.mubr.msk.bf16.vlgmr.msra.gmra.mrb[12].mxu1 %vm170_vm1, %v1806_v8  ;;  %v1815_v9 = vpop.permute.xlu0 %1814 }
 0x8f6   :  { %15529 = vmatprep.mubr.msk.bf16.mxu1 %vm16503_vm4, %v16502_v50  ;;  %15526 = vmatpush3.bf16.msra.mxu1 %v16901_v17 }
 0x8f7   :  { %15527 = vmatprep.subr.bf16.mxu1 %v16502_v50 }
 0x8fa   :  { %15528 = vmatpush3.bf16.msra.mxu1 %v16904_v18 }
 0x8fb   :  { %15543 = vmatprep.subr.mxu1 %v16502_v50 }
 0x9c8   :  { %v1854_v10 = vpop.f32.mrb[12].mxu1 }
 0x9c9   :  { %v1855_v11 = vadd.f32 %v1854_v10, %v1815_v9  ;;  %v15515_v12 = vpop.f32.mrb[13].mxu1 }
 0x9ca   :  { %v1857_v13 = vpop.f32.mrb[14].mxu1 }
 0x9cb   :  { %v15516_v14 = vpop.f32.mrb[15].mxu1  ;;  %v1860_v15 = vadd.f32 %v1855_v11, %v16838_v23 }
 0x9cd   :  { %v1862_v16 = vsel %vm1861_vm10, %v1860_v15, 0.0 }
 0x9ce   :  { %1863 = vadd.xlane.f32.xlu1 %v1862_v16 }
 0x9df   :  { %1993 = vrot.lane.b32.xlu1 %v1990_v34, %s16504_s4 }
 0x9e3   :  { %2163 = vrot.lane.b32.xlu1 %v1990_v34, %s16505_s26 }
 0xa5b   :  { %v1864_v21 = vpop.xlane.xlu1 %1863 }
 0xa5c   :  { %v1866_v22 = vmul.f32 0.03125, %v1864_v21 }
 0xa5e   :  { %v1867_v23 = vsub.f32 %v1860_v15, %v1866_v22 }
 0xa5f   :  { %v1994_v47 = vpop.permute.xlu1 %1993 }
 0xa60   :  { %v1868_v24 = vmul.f32 %v1867_v23, %v1867_v23  ;;  %15534 = vmatpush3.xpose.msk.msra.mxu0 %vm1323_vm6, %v1994_v47  ;;  %v1337_v47 = vld [vmem:[#allocation13] sm:$0xff] }
 0xa61   :  { %15538 = vmatprep.subr.mxu0 %v16502_v50 }
 0xa62   :  { %v1869_v25 = vsel %vm1861_vm10, %v1868_v24, 0.0 }
 0xa63   :  { %1870 = vadd.xlane.f32.xlu0 %v1869_v25  ;;  %v2164_v48 = vpop.permute.xlu1 %2163 }
 0xa79   :  { %1882 = vrot.lane.b32.xlu0 %v16925_v30, %s16504_s4 }
 0xaf0   :  { %v1871_v38 = vpop.xlane.xlu0 %1870 }
 0xaf1   :  { %v1872_v39 = vmul.f32 0.03125, %v1871_v38 }
 0xaf3   :  { %v1873_v40 = vadd.f32 1e-05, %v1872_v39 }
 0xaf4   :  { %v1883_v43 = vpop.permute.xlu0 %1882 }
 0xaf5   :  { %16130 = vrsqrt.f32 %v1873_v40 }
 0xaff   :  { %v16131_v41 = vpop.eup %16130 }
 0xb00   :  { %v1875_v42 = vmul.f32 %v16131_v41, %v1867_v23 }
 0xb02   :  { %v1880_v44 = vmul.f32 %v16925_v30, %v1875_v42 }
 0xb04   :  { %v16940_v45 = vadd.f32 %v1883_v43, %v1880_v44 }
 0xb06   :  { %v1941_v46 = vpack.c.bf16 %v16940_v45, %v16940_v45 }
 0xb08   :  { %15530 = vmatmul.mubr.msk.bf16.vlgmr.msra.gmra.mrb[16].mxu1 %vm170_vm1, %v1941_v46 }
 0xb09   :  { %15545 = vmatprep.mubr.msk.f32.mxu1 %vm16503_vm4, %v16502_v50  ;;  %15544 = vmatpush3.xpose.msk.msra.mxu1 %vm1323_vm6, %v2164_v48  ;;  %v1345_v48 = vld [vmem:[#allocation13 + $0x40] sm:$0xff] }
 0xb0a   :  { %15553 = vmatprep.subr.bf16.mxu1 %v16502_v50 }
 0xbdb   :  { %v1979_v49 = vpop.f32.mrb[16].mxu1 }
 0xbdc   :  { %v1989_v52 = vadd.f32 %v16934_v32, %v1979_v49  ;;  %v15531_v53 = vpop.f32.mrb[17].mxu1  ;;  %v1338_v49 = vld [vmem:[#allocation13 + $0x8] sm:$0xff] }
 0xbdd   :  { %v1982_v54 = vpop.f32.mrb[18].mxu1  ;;  %v14535_v53 = vcombine.high %v1337_v47, %v1345_v48 }
 0xbde   :  { %v15532_v55 = vpop.f32.mrb[19].mxu1  ;;  %v1991_v56 = vmul.f32 0.25, %v1989_v52  ;;  %v14534_v52 = vcombine.low %v1337_v47, %v1345_v48  ;;  %v1346_v54 = vld [vmem:[#allocation13 + $0x48] sm:$0xff]  ;;  %v1343_v47 = vld [vmem:[#allocation13 + $0x30] sm:$0xff] }
 0xbdf   :  { %v14537_v55 = vcombine.high %v1338_v49, %v1346_v54  ;;  %v1351_v48 = vld [vmem:[#allocation13 + $0x70] sm:$0xff] }
 0xbe0   :  { %2161 = vrot.lane.b32.xlu0 %v1991_v56, %s16506_s15  ;;  %15536 = vmatmul.mubr.msk.f32.vlgmr.msra.gmra.mrb[10].mxu0 %vm1323_vm6, %v1991_v56  ;;  %v1353_v56 = vld [vmem:[#allocation13 + $0x80] sm:$0xff] }
 0xbe1   :  { %15540 = vmatprep.mubr.msk.f32.mxu0 %vm16503_vm4, %v16502_v50 }
 0xc52   :  { %v2162_v57 = vpop.permute.xlu0 %2161 }
 0xc53   :  { %15546 = vmatmul.mubr.msk.f32.vlgmr.msra.gmra.mrb[10].mxu1 %vm1323_vm6, %v2162_v57  ;;  %v1361_v57 = vld [vmem:[#allocation13 + $0xc0] sm:$0xff] }
 0xc54   :  { %15557 = vmatprep.mubr.msk.bf16.mxu1 %vm16503_vm4, %v16502_v50 }
 0xcb3   :  { %v2066_v58 = vpop.f32.mrb[10].mxu0 }
 0xcb4   :  { %v15537_v51 = vpop.f32.mrb[11].mxu0  ;;  %v2071_v59 = vsel %vm2070_vm11, %v2066_v58, -inf }
 0xcb5   :  { %2072 = vmax.xlane.f32.xlu1 %v2071_v59  ;;  %v14551_v51 = vcombine.high %v1353_v56, %v1361_v57  ;;  %v1362_v59 = vld [vmem:[#allocation13 + $0xc8] sm:$0xff] }
 0xd26   :  { %v2235_v60 = vpop.f32.mrb[10].mxu1 }
 0xd27   :  { %v15547_v61 = vpop.f32.mrb[11].mxu1  ;;  %v2239_v62 = vsel %vm2070_vm11, %v2235_v60, -inf }
 0xd28   :  { %2240 = vmax.xlane.f32.xlu0 %v2239_v62 }
 0xd42   :  { %v2073_v63 = vpop.xlane.xlu1 %2072 }
 0xd43   :  { %v2074_v0 = vsub.f32 %v2066_v58, %v2073_v63  ;;  %v1354_v58 = vld [vmem:[#allocation13 + $0x88] sm:$0xff]  ;;  %v1339_v63 = vld [vmem:[#allocation13 + $0x10] sm:$0xff] }
 0xd44   :  { %v14552_v61 = vcombine.low %v1354_v58, %v1362_v59  ;;  %v14553_v62 = vcombine.high %v1354_v58, %v1362_v59  ;;  %v1360_v58 = vld [vmem:[#allocation13 + $0xb8] sm:$0xff]  ;;  %v14546_v59 = vcombine.low %v1343_v47, %v1351_v48 }
 0xd45   :  { %v2075_v2 = vmul.f32 1.442695, %v2074_v0  ;;  %v1347_v0 = vld [vmem:[#allocation13 + $0x50] sm:$0xff] }
 0xd47   :  { %16132 = vpow2.f32 %v2075_v2  ;;  %v1340_v2 = vld [vmem:[#allocation13 + $0x18] sm:$0xff] }
 0xd51   :  { %v16133_v3 = vpop.eup %16132 }
 0xd52   :  { %v2077_v4 = vsel %vm2070_vm11, %v16133_v3, 0.0 }
 0xd53   :  { %2078 = vadd.xlane.f32.xlu0 %v2077_v4  ;;  %v1348_v4 = vld [vmem:[#allocation13 + $0x58] sm:$0xff] }
 0xd69   :  { %2082 = vrot.lane.b32.xlu0 %v1990_v34, %s16491_s3 }
 0xdb5   :  { %v2241_v1 = vpop.xlane.xlu0 %2240 }
 0xdb6   :  { %v2242_v5 = vsub.f32 %v2235_v60, %v2241_v1  ;;  %v14550_v60 = vcombine.low %v1353_v56, %v1361_v57  ;;  %v14538_v1 = vcombine.low %v1339_v63, %v1347_v0  ;;  %v1359_v56 = vld [vmem:[#allocation13 + $0xb0] sm:$0xff] }
 0xdb7   :  { %v1367_v57 = vld [vmem:[#allocation13 + $0xf0] sm:$0xff] }
 0xdb8   :  { %v2243_v6 = vmul.f32 1.442695, %v2242_v5  ;;  %v14540_v5 = vcombine.low %v1340_v2, %v1348_v4 }
 0xdba   :  { %16134 = vpow2.f32 %v2243_v6  ;;  %v14541_v6 = vcombine.high %v1340_v2, %v1348_v4  ;;  %v1371_v2 = vld [vmem:[#allocation13 + $0x108] sm:$0xff]  ;;  %v14562_v4 = vcombine.low %v1359_v56, %v1367_v57 }
 0xdc4   :  { %v16135_v7 = vpop.eup %16134 }
 0xdc5   :  { %v2245_v8 = vsel %vm2070_vm11, %v16135_v7, 0.0 }
 0xdc6   :  { %2246 = vadd.xlane.f32.xlu1 %v2245_v8 }
 0xdd7   :  { %2250 = vrot.lane.b32.xlu1 %v1990_v34, %s16507_s14 }
 0xddb   :  { %2333 = vrot.lane.b32.xlu1 %v16901_v17, %s16508_s19 }
 0xddf   :  { %2335 = vrot.lane.b32.xlu1 %v16904_v18, %s16508_s19 }
 0xde0   :  { %v2079_v9 = vpop.xlane.xlu0 %2078 }
 0xde1   :  { %16136 = vrcp.f32 %v2079_v9 }
 0xde4   :  { %v2083_v10 = vpop.permute.xlu0 %2082 }
 0xde5   :  { %15539 = vmatpush3.msk.msra.mxu0 %vm2088_vm12, %v2083_v10 }
 0xde6   :  { %15548 = vmatprep.subr.mxu0 %v16502_v50 }
 0xdeb   :  { %v16137_v11 = vpop.eup %16136 }
 0xdec   :  { %v2081_v12 = vmul.f32 %v16137_v11, %v16133_v3  ;;  %v16509_v3 = vmov 0  }
 0xdee   :  { %15541 = vmatmul.mubr.msk.f32.vlgmr.msra.gmra.mrb[16].mxu0 %vm2084_vm13, %v2081_v12 }
 0xdef   :  { %15550 = vmatprep.mubr.msk.f32.mxu0 %vm16503_vm4, %v16502_v50 }
 0xe53   :  { %v2247_v13 = vpop.xlane.xlu1 %2246 }
 0xe54   :  { %16138 = vrcp.f32 %v2247_v13 }
 0xe57   :  { %v2251_v14 = vpop.permute.xlu1 %2250 }
 0xe58   :  { %15549 = vmatpush3.msk.msra.mxu0 %vm2088_vm12, %v2251_v14 }
 0xe59   :  { %2654 = vmatprep.subr.bf16.mxu0 %v14535_v53 }
 0xe5b   :  { %v2334_v17 = vpop.permute.xlu1 %2333 }
 0xe5c   :  { %15554 = vmatpush3.bf16.msra.mxu1 %v2334_v17  ;;  %v1356_v17 = vld [vmem:[#allocation13 + $0x98] sm:$0xff] }
 0xe5d   :  { %15555 = vmatprep.subr.bf16.mxu1 %v16502_v50 }
 0xe5e   :  { %v16139_v15 = vpop.eup %16138 }
 0xe5f   :  { %v2249_v16 = vmul.f32 %v16139_v15, %v16135_v7  ;;  %v2336_v18 = vpop.permute.xlu1 %2335  ;;  %v1355_v15 = vld [vmem:[#allocation13 + $0x90] sm:$0xff] }
 0xe60   :  { %15556 = vmatpush3.bf16.msra.mxu1 %v2336_v18  ;;  %v1364_v18 = vld [vmem:[#allocation13 + $0xd8] sm:$0xff] }
 0xe61   :  { %15551 = vmatmul.mubr.msk.f32.vlgmr.msra.gmra.mrb[18].mxu0 %vm2084_vm13, %v2249_v16  ;;  %2695 = vmatprep.subr.bf16.mxu1 %v14537_v55  ;;  %v1363_v16 = vld [vmem:[#allocation13 + $0xd0] sm:$0xff] }
 0xe62   :  { %2655 = vmatpush1.bf16.msra.mxu0 %v14534_v52  ;;  %2686 = vmatprep.mubr.bf16.mxu0 %v16509_v3  ;;  %v1352_v52 = vld [vmem:[#allocation13 + $0x78] sm:$0xff] }
 0xe63   :  { %2656 = vmatprep.subr.bf16.mxu0 %v14551_v51  ;;  %v1368_v51 = vld [vmem:[#allocation13 + $0xf8] sm:$0xff] }
 0xe66   :  { %2657 = vmatpush1.bf16.msra.mxu0 %v14550_v60 }
 0xec1   :  { %v2157_v19 = vpop.f32.mrb[16].mxu0 }
 0xec2   :  { %v15542_v21 = vpop.f32.mrb[17].mxu0 }
 0xf34   :  { %v2323_v22 = vpop.f32.mrb[18].mxu0 }
 0xf35   :  { %2328 = vrot.lane.b32.xlu0 %v2323_v22, %s16501_s2  ;;  %v15552_v23 = vpop.f32.mrb[19].mxu0  ;;  %v14555_v22 = vcombine.high %v1355_v15, %v1363_v16 }
 0xf36   :  { %v14557_v23 = vcombine.high %v1356_v17, %v1364_v18 }
 0xf39   :  { %2340 = vrot.lane.b32.xlu0 %v16934_v32, %s16508_s19 }
 0xfa7   :  { %v2329_v24 = vpop.permute.xlu0 %2328 }
 0xfa8   :  { %v2331_v25 = vsel %vm1323_vm6, %v2157_v19, %v2329_v24  ;;  %v1341_v24 = vld [vmem:[#allocation13 + $0x20] sm:$0xff] }
 0xfa9   :  { %v2332_v33 = vpack.c.bf16 %v2331_v25, %v2331_v25  ;;  %v1349_v25 = vld [vmem:[#allocation13 + $0x60] sm:$0xff] }
 0xfab   :  { %15558 = vmatmul.mubr.msk.bf16.vlgmr.msra.gmra.mrb[20].mxu1 %vm170_vm1, %v2332_v33  ;;  %v2341_v34 = vpop.permute.xlu0 %2340  ;;  %v1342_v33 = vld [vmem:[#allocation13 + $0x28] sm:$0xff] }
 0xfac   :  { %2727 = vmatprep.mubr.bf16.mxu1 %v16509_v3 }
0x107e   :  { %v2380_v35 = vpop.f32.mrb[20].mxu1 }
0x107f   :  { %v2381_v36 = vadd.f32 %v2380_v35, %v2341_v34  ;;  %v15559_v37 = vpop.f32.mrb[21].mxu1  ;;  %v1350_v34 = vld [vmem:[#allocation13 + $0x68] sm:$0xff]  ;;  %v14554_v35 = vcombine.low %v1355_v15, %v1363_v16 }
0x1080   :  { %v2383_v38 = vpop.f32.mrb[22].mxu1  ;;  %v14543_v37 = vcombine.high %v1341_v24, %v1349_v25 }
0x1081   :  { %v15560_v39 = vpop.f32.mrb[23].mxu1  ;;  %v2386_v40 = vadd.f32 %v2381_v36, %v16940_v45  ;;  %v14536_v45 = vcombine.low %v1338_v49, %v1346_v54  ;;  %v14556_v36 = vcombine.low %v1356_v17, %v1364_v18  ;;  %v14545_v38 = vcombine.high %v1342_v33, %v1350_v34  ;;  %v1344_v49 = vld [vmem:[#allocation13 + $0x38] sm:$0xff]  ;;  %v1372_v17 = vld [vmem:[#allocation13 + $0x110] sm:$0xff] }
0x1082   :  { %v1357_v39 = vld [vmem:[#allocation13 + $0xa0] sm:$0xff]  ;;  %v14549_v55 = vcombine.high %v1344_v49, %v1352_v52  ;;  %v14548_v60 = vcombine.low %v1344_v49, %v1352_v52  ;;  %v1380_v18 = vld [vmem:[#allocation13 + $0x150] sm:$0xff]  ;;  %v17039_v52 = vsub.s32 5, %v16845_v26 }
0x1083   :  { %v2387_v41 = vsel %vm1861_vm10, %v2386_v40, 0.0  ;;  %2696 = vmatpush1.bf16.msra.mxu1 %v14536_v45  ;;  %v14547_v45 = vcombine.high %v1343_v47, %v1351_v48 }
0x1084   :  { %2388 = vadd.xlane.f32.xlu1 %v2387_v41  ;;  %2697 = vmatprep.subr.bf16.mxu1 %v14553_v62  ;;  %v1358_v41 = vld [vmem:[#allocation13 + $0xa8] sm:$0xff]  ;;  %v14565_v62 = vcombine.high %v1360_v58, %v1368_v51 }
0x1087   :  { %2698 = vmatpush1.bf16.msra.mxu1 %v14552_v61  ;;  %v14563_v61 = vcombine.high %v1359_v56, %v1367_v57  ;;  %v1388_v57 = vld [vmem:[#allocation13 + $0x190] sm:$0xff] }
0x1088   :  { %2777 = vmatprep.subr.bf16.mxu1 %v14541_v6 }
0x1095   :  { %2404 = vrot.lane.b32.xlu1 %v16925_v30, %s16508_s19 }
0x1111   :  { %v2389_v32 = vpop.xlane.xlu1 %2388 }
0x1112   :  { %v2390_v42 = vmul.f32 0.03125, %v2389_v32  ;;  %v1366_v32 = vld [vmem:[#allocation13 + $0xe8] sm:$0xff] }
0x1113   :  { %v14560_v54 = vcombine.low %v1358_v41, %v1366_v32 }
0x1114   :  { %v2391_v43 = vsub.f32 %v2386_v40, %v2390_v42  ;;  %v1365_v40 = vld [vmem:[#allocation13 + $0xe0] sm:$0xff]  ;;  %v14542_v42 = vcombine.low %v1341_v24, %v1349_v25  ;;  %v14578_v24 = vcombine.low %v1372_v17, %v1380_v18 }
0x1115   :  { %v2405_v13 = vpop.permute.xlu1 %2404  ;;  %v14558_v53 = vcombine.low %v1357_v39, %v1365_v40 }
0x1116   :  { %v2392_v44 = vmul.f32 %v2391_v43, %v2391_v43 }
0x1118   :  { %v2393_v46 = vsel %vm1861_vm10, %v2392_v44, 0.0  ;;  %v14559_v44 = vcombine.high %v1357_v39, %v1365_v40 }
0x1119   :  { %2394 = vadd.xlane.f32.xlu0 %v2393_v46  ;;  %v14561_v46 = vcombine.high %v1358_v41, %v1366_v32 }
0x112f   :  { %2400 = vrot.lane.b32.xlu0 %v16925_v30, %s16491_s3  ;;  %v14539_v30 = vcombine.high %v1339_v63, %v1347_v0  ;;  %v1370_v63 = vld [vmem:[#allocation13 + $0x100] sm:$0xff] }
0x1130   :  { %v1378_v0 = vld [vmem:[#allocation13 + $0x140] sm:$0xff] }
0x1131   :  { %2736 = vmatprep.subr.bf16.mxu0 %v14539_v30  ;;  %v1379_v30 = vld [vmem:[#allocation13 + $0x148] sm:$0xff] }
0x1132   :  { %v14577_v6 = vcombine.high %v1371_v2, %v1379_v30 }
0x11a6   :  { %v2395_v7 = vpop.xlane.xlu0 %2394 }
0x11a7   :  { %v2396_v8 = vmul.f32 0.03125, %v2395_v7  ;;  %v14574_v7 = vcombine.low %v1370_v63, %v1378_v0 }
0x11a9   :  { %v2397_v9 = vadd.f32 1e-05, %v2396_v8  ;;  %v14576_v8 = vcombine.low %v1371_v2, %v1379_v30 }
0x11aa   :  { %v2401_v11 = vpop.permute.xlu0 %2400 }
0x11ab   :  { %16140 = vrsqrt.f32 %v2397_v9  ;;  %v1386_v9 = vld [vmem:[#allocation13 + $0x180] sm:$0xff] }
0x11b5   :  { %v16141_v10 = vpop.eup %16140 }
0x11b6   :  { %v2399_v12 = vmul.f32 %v16141_v10, %v2391_v43  ;;  %v14544_v43 = vcombine.low %v1342_v33, %v1350_v34  ;;  %v1394_v10 = vld [vmem:[#allocation13 + $0x1c0] sm:$0xff]  ;;  %v17020_v34 = vsub.s32 3, %v16845_v26 }
0x11b8   :  { %v2403_v14 = vmul.f32 %v2401_v11, %v2399_v12  ;;  %v1387_v11 = vld [vmem:[#allocation13 + $0x188] sm:$0xff]  ;;  %v14591_v12 = vcombine.high %v1386_v9, %v1394_v10 }
0x11ba   :  { %v16991_v19 = vadd.f32 %v2405_v13, %v2403_v14  ;;  %v1395_v13 = vld [vmem:[#allocation13 + $0x1c8] sm:$0xff]  ;;  %v14590_v14 = vcombine.low %v1386_v9, %v1394_v10 }
0x11bb   :  { %v14592_v15 = vcombine.low %v1387_v11, %v1395_v13  ;;  %v14593_v16 = vcombine.high %v1387_v11, %v1395_v13 }
0x11bc   :  { %v16995_v21 = vpack.c.bf16 %v16991_v19, %v16991_v19 }
0x11be   :  { %14566 = vmatmul.mubr.msk.bf16.vlgmr.msra.gmra.mrb[20].mxu0 %vm170_vm1, %v16995_v21  ;;  %14567 = vmatmul.mubr.msk.bf16.vlgmr.msra.gmra.mrb[24].mxu1 %vm170_vm1, %v16995_v21 }
0x11bf   :  { %2737 = vmatpush1.bf16.msra.mxu0 %v14538_v1  ;;  %2778 = vmatpush1.bf16.msra.mxu1 %v14540_v5  ;;  %v14564_v1 = vcombine.low %v1360_v58, %v1368_v51  ;;  %v14575_v5 = vcombine.high %v1370_v63, %v1378_v0  ;;  %v17048_v63 = vsub.s32 6, %v16845_v26 }
0x11c0   :  { %2738 = vmatprep.subr.bf16.mxu0 %v14555_v22  ;;  %2779 = vmatprep.subr.bf16.mxu1 %v14557_v23  ;;  %v1373_v22 = vld [vmem:[#allocation13 + $0x118] sm:$0xff] }
0x11c1   :  { %2768 = vmatprep.mubr.bf16.mxu0 %v16509_v3  ;;  %2809 = vmatprep.mubr.bf16.mxu1 %v16509_v3  ;;  %v1381_v23 = vld [vmem:[#allocation13 + $0x158] sm:$0xff] }
0x11c2   :  { %v14580_v25 = vcombine.low %v1373_v22, %v1381_v23  ;;  %v14581_v33 = vcombine.high %v1373_v22, %v1381_v23  ;;  %v17058_v22 = vld [vmem:[#allocation16 + $0x8] sm:$0xff] }
0x11c3   :  { %2739 = vmatpush1.bf16.msra.mxu0 %v14554_v35  ;;  %2780 = vmatpush1.bf16.msra.mxu1 %v14556_v36  ;;  %v17024_v35 = vrot.slane %v16850_v28, %v17020_v34  ;;  %v17028_v36 = vld [vmem:[#allocation16] sm:$0xff] }
0x11c4   :  { %2818 = vmatprep.subr.bf16.mxu0 %v14543_v37  ;;  %2859 = vmatprep.subr.bf16.mxu1 %v14545_v38  ;;  %v2414_v37 = vrot.slane %v17028_v36, %v16848_v27  ;;  %v2422_v38 = vrot.slane %v17028_v36, %v16921_v29  ;;  %v2418_v39 = vrot.slane %v17028_v36, %v16930_v31 }
0x11c5   :  { %3179 = vrot.lane.b32.xlu1 %v17024_v35, %s16491_s3  ;;  %v2426_v40 = vrot.slane %v17028_v36, %v17020_v34  ;;  %v2434_v30 = vrot.slane %v17028_v36, %v17039_v52 }
0x11c6   :  { %14568 = vmatmul.mubr.msk.bf16.vlgmr.msra.gmra.mrb[24].mxu0 %vm170_vm1, %v16995_v21  ;;  %14569 = vmatmul.mubr.msk.bf16.vlgmr.msra.gmra.mrb[28].mxu1 %vm170_vm1, %v16995_v21 }
0x11c7   :  { %2819 = vmatpush1.bf16.msra.mxu0 %v14542_v42  ;;  %2860 = vmatpush1.bf16.msra.mxu1 %v14544_v43 }
0x11c8   :  { %2820 = vmatprep.subr.bf16.mxu0 %v14559_v44  ;;  %2861 = vmatprep.subr.bf16.mxu1 %v14561_v46 }
0x11c9   :  { %2850 = vmatprep.mubr.bf16.mxu0 %v16509_v3  ;;  %2891 = vmatprep.mubr.bf16.mxu1 %v16509_v3 }
0x11cb   :  { %2821 = vmatpush1.bf16.msra.mxu0 %v14558_v53  ;;  %2862 = vmatpush1.bf16.msra.mxu1 %v14560_v54  ;;  %v17042_v53 = vsub.s32 7, %v16845_v26 }
0x11cc   :  { %2900 = vmatprep.subr.bf16.mxu0 %v14547_v45  ;;  %2941 = vmatprep.subr.bf16.mxu1 %v14549_v55 }
0x11ce   :  { %14570 = vmatmul.mubr.msk.bf16.vlgmr.msra.gmra.mrb[28].mxu0 %vm170_vm1, %v16995_v21  ;;  %14571 = vmatmul.mubr.msk.bf16.vlgmr.msra.gmra.mrb[32].mxu1 %vm170_vm1, %v16995_v21 }
0x11cf   :  { %2901 = vmatpush1.bf16.msra.mxu0 %v14546_v59  ;;  %2942 = vmatpush1.bf16.msra.mxu1 %v14548_v60  ;;  %v1396_v59 = vld [vmem:[#allocation13 + $0x1d0] sm:$0xff]  ;;  %v1389_v60 = vld [vmem:[#allocation13 + $0x198] sm:$0xff] }
0x11d0   :  { %2902 = vmatprep.subr.bf16.mxu0 %v14563_v61  ;;  %2943 = vmatprep.subr.bf16.mxu1 %v14565_v62  ;;  %v1397_v61 = vld [vmem:[#allocation13 + $0x1d8] sm:$0xff]  ;;  %v17045_v62 = vsub.s32 4, %v16845_v26 }
0x11d1   :  { %2932 = vmatprep.mubr.bf16.mxu0 %v16509_v3  ;;  %2973 = vmatprep.mubr.bf16.mxu1 %v16509_v3 }
0x11d3   :  { %2903 = vmatpush1.bf16.msra.mxu0 %v14562_v4  ;;  %2944 = vmatpush1.bf16.msra.mxu1 %v14564_v1  ;;  %v2442_v4 = vrot.slane %v17028_v36, %v17042_v53 }
0x11d4   :  { %3182 = vmatprep.subr.bf16.mxu0 %v14575_v5  ;;  %3222 = vmatprep.subr.bf16.mxu1 %v14577_v6  ;;  %v14595_v6 = vcombine.high %v1388_v57, %v1396_v59 }
0x11d6   :  { %14572 = vmatmul.mubr.msk.bf16.vlgmr.msra.gmra.mrb[32].mxu0 %vm170_vm1, %v16995_v21  ;;  %14573 = vmatmul.mubr.msk.bf16.vlgmr.msra.gmra.mrb[36].mxu1 %vm170_vm1, %v16995_v21  ;;  %v14579_v21 = vcombine.high %v1372_v17, %v1380_v18 }
0x11dc   :  { %3183 = vmatpush1.bf16.xpose.msra.mxu0 %v14574_v7  ;;  %3223 = vmatpush1.bf16.xpose.msra.mxu1 %v14576_v8  ;;  %v14597_v7 = vcombine.high %v1389_v60, %v1397_v61 }
0x11dd   :  { %3184 = vmatprep.subr.bf16.mxu0 %v14591_v12  ;;  %3224 = vmatprep.subr.bf16.mxu1 %v14593_v16  ;;  %v2438_v16 = vrot.slane %v17028_v36, %v17048_v63 }
0x11e4   :  { %3185 = vmatpush1.bf16.xpose.msra.mxu0 %v14590_v14  ;;  %3225 = vmatpush1.bf16.xpose.msra.mxu1 %v14592_v15  ;;  %v2430_v15 = vrot.slane %v17028_v36, %v17045_v62  ;;  %v2458_v36 = vrot.slane %v17058_v22, %v17020_v34 }
0x11e5   :  { %3262 = vmatprep.subr.bf16.mxu0 %v14579_v21  ;;  %3302 = vmatprep.subr.bf16.mxu1 %v14581_v33  ;;  %v1374_v21 = vld [vmem:[#allocation13 + $0x120] sm:$0xff] }
0x1291   :  { %v2688_v41 = vpop.f32.mrb[20].mxu0  ;;  %v2729_v28 = vpop.f32.mrb[24].mxu1 }
0x1292   :  { %v2689_v32 = vadd.f32 %v2688_v41, %v2414_v37  ;;  %v2730_v42 = vadd.f32 %v2729_v28, %v2422_v38  ;;  %v2690_v43 = vpop.f32.mrb[21].mxu0  ;;  %v2731_v44 = vpop.f32.mrb[25].mxu1  ;;  %v1382_v37 = vld [vmem:[#allocation13 + $0x160] sm:$0xff]  ;;  %v14594_v38 = vcombine.low %v1388_v57, %v1396_v59  ;;  %v2450_v28 = vrot.slane %v17058_v22, %v16930_v31 }
0x1293   :  { %v2691_v46 = vadd.f32 %v2690_v43, %v2418_v39  ;;  %v2732_v47 = vadd.f32 %v2731_v44, %v2426_v40  ;;  %v2692_v48 = vpop.f32.mrb[22].mxu0  ;;  %v2733_v49 = vpop.f32.mrb[26].mxu1  ;;  %v14596_v39 = vcombine.low %v1389_v60, %v1397_v61  ;;  %v14583_v43 = vcombine.high %v1374_v21, %v1382_v37 }
0x1294   :  { %v2982_v54 = vmax.f32 %v2689_v32, 0.0  ;;  %v2984_v45 = vmax.f32 %v2730_v42, 0.0  ;;  %v2693_v55 = vpop.f32.mrb[23].mxu0  ;;  %v2734_v56 = vpop.f32.mrb[27].mxu1 }
0x1295   :  { %v2983_v58 = vmax.f32 %v2691_v46, 0.0  ;;  %v2985_v51 = vmax.f32 %v2732_v47, 0.0 }
0x1296   :  { %v2998_v1 = vpack.c.bf16 %v2982_v54, %v2982_v54  ;;  %v3000_v5 = vpack.c.bf16 %v2984_v45, %v2984_v45 }
0x1297   :  { %v2999_v0 = vpack.c.bf16 %v2983_v58, %v2983_v58  ;;  %v3001_v2 = vpack.c.bf16 %v2985_v51, %v2985_v51 }
0x1299   :  { %v2770_v8 = vpop.f32.mrb[24].mxu0  ;;  %v2811_v9 = vpop.f32.mrb[28].mxu1  ;;  %3214 = vmatprep.mubr.bf16.mxu0 %v2999_v0  ;;  %3254 = vmatprep.mubr.bf16.mxu1 %v3001_v2  ;;  %v1390_v0 = vld [vmem:[#allocation13 + $0x1a0] sm:$0xff] }
0x129a   :  { %v2772_v10 = vpop.f32.mrb[25].mxu0  ;;  %v2813_v11 = vpop.f32.mrb[29].mxu1  ;;  %3215 = vmatmul.mubr.bf16.vlgmr.msra.gmra.mrb[36].mxu0 %v2998_v1  ;;  %3255 = vmatmul.mubr.bf16.vlgmr.msra.gmra.mrb[40].mxu1 %v3000_v5  ;;  %v2771_v32 = vadd.f32 %v2770_v8, %v2430_v15  ;;  %v2812_v42 = vadd.f32 %v2811_v9, %v2438_v16  ;;  %v1398_v2 = vld [vmem:[#allocation13 + $0x1e0] sm:$0xff]  ;;  %v14582_v1 = vcombine.low %v1374_v21, %v1382_v37  ;;  %v1384_v37 = vld [vmem:[#allocation13 + $0x170] sm:$0xff] }
0x129b   :  { %v2773_v26 = vadd.f32 %v2772_v10, %v2434_v30  ;;  %v2814_v12 = vadd.f32 %v2813_v11, %v2442_v4  ;;  %3263 = vmatpush1.bf16.xpose.msra.mxu0 %v14578_v24  ;;  %3303 = vmatpush1.bf16.xpose.msra.mxu1 %v14580_v25  ;;  %v2774_v13 = vpop.f32.mrb[26].mxu0  ;;  %v2815_v14 = vpop.f32.mrb[30].mxu1  ;;  %v1375_v24 = vld [vmem:[#allocation13 + $0x128] sm:$0xff] }
0x129c   :  { %v2775_v17 = vpop.f32.mrb[27].mxu0  ;;  %v2816_v18 = vpop.f32.mrb[31].mxu1  ;;  %3264 = vmatprep.subr.bf16.mxu0 %v14595_v6  ;;  %3304 = vmatprep.subr.bf16.mxu1 %v14597_v7  ;;  %v1383_v25 = vld [vmem:[#allocation13 + $0x168] sm:$0xff]  ;;  %v2986_v57 = vmax.f32 %v2771_v32, 0.0  ;;  %v2988_v58 = vmax.f32 %v2812_v42, 0.0 }
0x129d   :  { %v2987_v23 = vmax.f32 %v2773_v26, 0.0  ;;  %v2989_v33 = vmax.f32 %v2814_v12, 0.0  ;;  %v14585_v44 = vcombine.high %v1375_v24, %v1383_v25  ;;  %v1391_v30 = vld [vmem:[#allocation13 + $0x1a8] sm:$0xff]  ;;  %v14584_v8 = vcombine.low %v1375_v24, %v1383_v25  ;;  %v1377_v25 = vld [vmem:[#allocation13 + $0x138] sm:$0xff] }
0x129e   :  { %v1399_v4 = vld [vmem:[#allocation13 + $0x1e8] sm:$0xff]  ;;  %v3002_v6 = vpack.c.bf16 %v2986_v57, %v2986_v57  ;;  %v3004_v7 = vpack.c.bf16 %v2988_v58, %v2988_v58  ;;  %v14599_v26 = vcombine.high %v1390_v0, %v1398_v2  ;;  %v2446_v17 = vrot.slane %v17058_v22, %v16848_v27  ;;  %v1393_v58 = vld [vmem:[#allocation13 + $0x1b8] sm:$0xff] }
0x129f   :  { %v3003_v40 = vpack.c.bf16 %v2987_v23, %v2987_v23  ;;  %v3005_v41 = vpack.c.bf16 %v2989_v33, %v2989_v33  ;;  %v14601_v12 = vcombine.high %v1391_v30, %v1399_v4  ;;  %v2454_v23 = vrot.slane %v17058_v22, %v16921_v29  ;;  %v1376_v33 = vld [vmem:[#allocation13 + $0x130] sm:$0xff] }
0x12a0   :  { %v2466_v24 = vrot.slane %v17058_v22, %v17039_v52  ;;  %v14586_v57 = vcombine.low %v1376_v33, %v1384_v37 }
0x12a1   :  { %v2852_v46 = vpop.f32.mrb[28].mxu0  ;;  %v2893_v47 = vpop.f32.mrb[32].mxu1  ;;  %3294 = vmatprep.mubr.bf16.mxu0 %v3003_v40  ;;  %3334 = vmatprep.mubr.bf16.mxu1 %v3005_v41  ;;  %v14598_v40 = vcombine.low %v1390_v0, %v1398_v2 }
0x12a2   :  { %v2854_v48 = vpop.f32.mrb[29].mxu0  ;;  %v2895_v49 = vpop.f32.mrb[33].mxu1  ;;  %v2853_v41 = vadd.f32 %v2852_v46, %v2446_v17  ;;  %v2894_v32 = vadd.f32 %v2893_v47, %v2454_v23 }
0x12a3   :  { %v2855_v54 = vadd.f32 %v2854_v48, %v2450_v28  ;;  %v2896_v45 = vadd.f32 %v2895_v49, %v2458_v36  ;;  %3265 = vmatpush1.bf16.xpose.msra.mxu0 %v14594_v38  ;;  %3305 = vmatpush1.bf16.xpose.msra.mxu1 %v14596_v39  ;;  %v2856_v55 = vpop.f32.mrb[30].mxu0  ;;  %v2897_v56 = vpop.f32.mrb[34].mxu1  ;;  %v1385_v38 = vld [vmem:[#allocation13 + $0x178] sm:$0xff]  ;;  %v2474_v39 = vrot.slane %v17058_v22, %v17042_v53 }
0x12a4   :  { %v2857_v51 = vpop.f32.mrb[31].mxu0  ;;  %v2898_v59 = vpop.f32.mrb[35].mxu1  ;;  %3342 = vmatprep.subr.bf16.mxu0 %v14583_v43  ;;  %3382 = vmatprep.subr.bf16.mxu1 %v14585_v44  ;;  %v14600_v28 = vcombine.low %v1391_v30, %v1399_v4  ;;  %v14587_v36 = vcombine.high %v1376_v33, %v1384_v37  ;;  %v14589_v42 = vcombine.high %v1377_v25, %v1385_v38  ;;  %v2990_v48 = vmax.f32 %v2853_v41, 0.0  ;;  %v1400_v55 = vld [vmem:[#allocation13 + $0x1f0] sm:$0xff] }
0x12a5   :  { %v2991_v60 = vmax.f32 %v2855_v54, 0.0  ;;  %v2993_v61 = vmax.f32 %v2896_v45, 0.0  ;;  %v2992_v49 = vmax.f32 %v2894_v32, 0.0  ;;  %v1392_v45 = vld [vmem:[#allocation13 + $0x1b0] sm:$0xff]  ;;  %v1401_v51 = vld [vmem:[#allocation13 + $0x1f8] sm:$0xff]  ;;  %v14588_v59 = vcombine.low %v1377_v25, %v1385_v38 }
0x12a6   :  { %v3006_v46 = vpack.c.bf16 %v2990_v48, %v2990_v48  ;;  %v14603_v47 = vcombine.high %v1392_v45, %v1400_v55  ;;  %v14605_v0 = vcombine.high %v1393_v58, %v1401_v51  ;;  %v2462_v30 = vrot.slane %v17058_v22, %v17045_v62 }
0x12a7   :  { %v3007_v5 = vpack.c.bf16 %v2991_v60, %v2991_v60  ;;  %v3009_v9 = vpack.c.bf16 %v2993_v61, %v2993_v61  ;;  %v3008_v60 = vpack.c.bf16 %v2992_v49, %v2992_v49  ;;  %v2470_v4 = vrot.slane %v17058_v22, %v17048_v63  ;;  %v3180_v22 = vpop.permute.xlu1 %3179 }
0x12a9   :  { %v17064_v10 = vpop.f32.mrb[32].mxu0  ;;  %v17066_v11 = vpop.f32.mrb[36].mxu1 }
0x12aa   :  { %3295 = vmatmul.mubr.bf16.vlgmr.msra.gmra.mrb[40].mxu0 %v3002_v6  ;;  %3335 = vmatmul.mubr.bf16.vlgmr.msra.gmra.mrb[44].mxu1 %v3004_v7  ;;  %v2936_v13 = vpop.f32.mrb[33].mxu0  ;;  %v2977_v14 = vpop.f32.mrb[37].mxu1  ;;  %v14604_v6 = vcombine.low %v1393_v58, %v1401_v51  ;;  %v2976_v7 = vadd.f32 %v17066_v11, %v2470_v4 }
0x12ab   :  { %3343 = vmatpush1.bf16.xpose.msra.mxu0 %v14582_v1  ;;  %3374 = vmatprep.mubr.bf16.mxu0 %v3007_v5  ;;  %v2938_v15 = vpop.f32.mrb[34].mxu0  ;;  %v2979_v16 = vpop.f32.mrb[38].mxu1  ;;  %v2937_v43 = vadd.f32 %v2936_v13, %v2466_v24  ;;  %v2978_v44 = vadd.f32 %v2977_v14, %v2474_v39  ;;  %v14602_v1 = vcombine.low %v1392_v45, %v1400_v55 }
0x12ac   :  { %3383 = vmatpush1.bf16.xpose.msra.mxu1 %v14584_v8  ;;  %3414 = vmatprep.mubr.bf16.mxu1 %v3009_v9  ;;  %v2939_v18 = vpop.f32.mrb[35].mxu0  ;;  %v2980_v21 = vpop.f32.mrb[39].mxu1  ;;  %v2935_v5 = vadd.f32 %v17064_v10, %v2462_v30  ;;  %v2996_v9 = vmax.f32 %v2976_v7, 0.0 }
0x12ad   :  { %3344 = vmatprep.subr.bf16.mxu0 %v14599_v26  ;;  %3384 = vmatprep.subr.bf16.mxu1 %v14601_v12  ;;  %v2995_v54 = vmax.f32 %v2937_v43, 0.0  ;;  %v2997_v56 = vmax.f32 %v2978_v44, 0.0 }
0x12ae   :  { %v2994_v8 = vmax.f32 %v2935_v5, 0.0  ;;  %v3012_v12 = vpack.c.bf16 %v2996_v9, %v2996_v9  ;;  %v16102_v9 = vld [vmem:[#allocation11 + $0x20] sm:$0xff]  }
0x12af   :  { %v3011_v61 = vpack.c.bf16 %v2995_v54, %v2995_v54  ;;  %v3013_v2 = vpack.c.bf16 %v2997_v56, %v2997_v56 }
0x12b0   :  { %v3010_v26 = vpack.c.bf16 %v2994_v8, %v2994_v8 }
0x12b3   :  { %3345 = vmatpush1.bf16.xpose.msra.mxu0 %v14598_v40 }
0x12b4   :  { %3385 = vmatpush1.bf16.xpose.msra.mxu1 %v14600_v28  ;;  %3422 = vmatprep.subr.bf16.mxu0 %v14587_v36 }
0x12b5   :  { %3462 = vmatprep.subr.bf16.mxu1 %v14589_v42 }
0x12ba   :  { %3375 = vmatmul.mubr.bf16.vlgmr.msra.gmra.mrb[44].mxu0 %v3006_v46 }
0x12bb   :  { %3415 = vmatmul.mubr.bf16.vlgmr.msra.gmra.mrb[48].mxu1 %v3008_v60  ;;  %3423 = vmatpush1.bf16.xpose.msra.mxu0 %v14586_v57 }
0x12bc   :  { %3454 = vmatprep.mubr.bf16.mxu0 %v3011_v61  ;;  %3463 = vmatpush1.bf16.xpose.msra.mxu1 %v14588_v59 }
0x12bd   :  { %3494 = vmatprep.mubr.bf16.mxu1 %v3013_v2  ;;  %3424 = vmatprep.subr.bf16.mxu0 %v14603_v47 }
0x12be   :  { %3464 = vmatprep.subr.bf16.mxu1 %v14605_v0 }
0x12c3   :  { %3425 = vmatpush1.bf16.xpose.msra.mxu0 %v14602_v1 }
0x12c4   :  { %3465 = vmatpush1.bf16.xpose.msra.mxu1 %v14604_v6  ;;  %15561 = vmatprep.subr.bf16.mxu0 %v16502_v50 }
0x12c5   :  { %15569 = vmatprep.subr.mxu1 %v16502_v50 }
0x12ca   :  { %3455 = vmatmul.mubr.bf16.vlgmr.msra.gmra.mrb[48].mxu0 %v3010_v26  ;;  %v17094_v26 = vld [vmem:[#allocation11 + $0x28] sm:$0xff]  }
0x12cb   :  { %3495 = vmatmul.mubr.bf16.vlgmr.msra.gmra.mrb[52].mxu1 %v3012_v12  ;;  %15565 = vmatprep.mubr.msk.bf16.mxu0 %vm16503_vm4, %v16502_v50 }
0x12cc   :  { %15571 = vmatprep.mubr.msk.f32.mxu1 %vm16503_vm4, %v16502_v50  ;;  %15562 = vmatpush3.bf16.msra.mxu0 %v16102_v9 }
0x12cd   :  { %15563 = vmatprep.subr.bf16.mxu0 %v16502_v50 }
0x12d0   :  { %15564 = vmatpush3.bf16.msra.mxu0 %v17094_v26 }
0x12d1   :  { %15574 = vmatprep.subr.mxu0 %v16502_v50 }
0x136d   :  { %v3256_v10 = vpop.f32.mrb[40].mxu1  ;;  %v3216_v11 = vpop.f32.mrb[36].mxu0 }
0x136e   :  { %v3217_v13 = vadd.f32 %v3216_v11, %v3180_v22  ;;  %v3218_v14 = vpop.f32.mrb[37].mxu0  ;;  %v3258_v15 = vpop.f32.mrb[41].mxu1 }
0x136f   :  { %v3219_v16 = vpop.f32.mrb[38].mxu0  ;;  %v3259_v17 = vpop.f32.mrb[42].mxu1 }
0x1370   :  { %v3220_v18 = vpop.f32.mrb[39].mxu0  ;;  %v3260_v21 = vpop.f32.mrb[43].mxu1  ;;  %v3257_v23 = vadd.f32 %v3256_v10, %v3217_v13  ;;  %v17106_v17 = vld [vmem:[#allocation14 + $0x4] sm:$0xf] }
0x1371   :  { %v17110_v18 = vrot.slane %v17106_v17, %v16848_v27 }
0x137d   :  { %v3296_v33 = vpop.f32.mrb[40].mxu0  ;;  %v3336_v37 = vpop.f32.mrb[44].mxu1 }
0x137e   :  { %v3297_v24 = vadd.f32 %v3296_v33, %v3257_v23  ;;  %v3298_v25 = vpop.f32.mrb[41].mxu0  ;;  %v3338_v38 = vpop.f32.mrb[45].mxu1 }
0x137f   :  { %v3299_v39 = vpop.f32.mrb[42].mxu0  ;;  %v3339_v40 = vpop.f32.mrb[46].mxu1 }
0x1380   :  { %v3337_v41 = vadd.f32 %v3336_v37, %v3297_v24  ;;  %v3300_v28 = vpop.f32.mrb[43].mxu0  ;;  %v3340_v36 = vpop.f32.mrb[47].mxu1 }
0x138d   :  { %v3376_v32 = vpop.f32.mrb[44].mxu0 }
0x138e   :  { %v3377_v42 = vadd.f32 %v3376_v32, %v3337_v41  ;;  %v3416_v43 = vpop.f32.mrb[48].mxu1  ;;  %v3378_v44 = vpop.f32.mrb[45].mxu0 }
0x138f   :  { %v3418_v48 = vpop.f32.mrb[49].mxu1  ;;  %v3379_v49 = vpop.f32.mrb[46].mxu0 }
0x1390   :  { %v3419_v54 = vpop.f32.mrb[50].mxu1  ;;  %v3380_v45 = vpop.f32.mrb[47].mxu0  ;;  %v3417_v55 = vadd.f32 %v3416_v43, %v3377_v42 }
0x1391   :  { %v3420_v56 = vpop.f32.mrb[51].mxu1 }
0x139d   :  { %v3456_v57 = vpop.f32.mrb[48].mxu0 }
0x139e   :  { %v3457_v58 = vadd.f32 %v3456_v57, %v3417_v55  ;;  %v3496_v51 = vpop.f32.mrb[52].mxu1  ;;  %v3458_v46 = vpop.f32.mrb[49].mxu0 }
0x139f   :  { %v3498_v59 = vpop.f32.mrb[53].mxu1  ;;  %v3459_v60 = vpop.f32.mrb[50].mxu0 }
0x13a0   :  { %v3497_v47 = vadd.f32 %v3496_v51, %v3457_v58  ;;  %v3499_v61 = vpop.f32.mrb[54].mxu1  ;;  %v3460_v0 = vpop.f32.mrb[51].mxu0 }
0x13a1   :  { %v3500_v2 = vpop.f32.mrb[55].mxu1 }
0x13a2   :  { %v3502_v30 = vadd.f32 %v3497_v47, %v16991_v19 }
0x13a4   :  { %v3503_v4 = vsel %vm1861_vm10, %v3502_v30, 0.0 }
0x13a5   :  { %3504 = vadd.xlane.f32.xlu0 %v3503_v4 }
0x13bb   :  { %3517 = vrot.lane.b32.xlu0 %v17024_v35, %s16504_s4 }
0x1432   :  { %v3505_v1 = vpop.xlane.xlu0 %3504 }
0x1433   :  { %v3506_v5 = vmul.f32 0.03125, %v3505_v1 }
0x1435   :  { %v3507_v6 = vsub.f32 %v3502_v30, %v3506_v5 }
0x1436   :  { %v3518_v13 = vpop.permute.xlu0 %3517 }
0x1437   :  { %v3508_v7 = vmul.f32 %v3507_v6, %v3507_v6 }
0x1439   :  { %v3509_v8 = vsel %vm1861_vm10, %v3508_v7, 0.0 }
0x143a   :  { %3510 = vadd.xlane.f32.xlu1 %v3509_v8 }
0x14c7   :  { %v3511_v19 = vpop.xlane.xlu1 %3510 }
0x14c8   :  { %v3512_v12 = vmul.f32 0.03125, %v3511_v19 }
0x14ca   :  { %v3513_v22 = vadd.f32 1e-05, %v3512_v12 }
0x14cc   :  { %16142 = vrsqrt.f32 %v3513_v22 }
0x14d6   :  { %v16143_v10 = vpop.eup %16142 }
0x14d7   :  { %v3515_v11 = vmul.f32 %v16143_v10, %v3507_v6 }
0x14d9   :  { %v3516_v14 = vmul.f32 %v3515_v11, %v17024_v35 }
0x14db   :  { %v17099_v15 = vadd.f32 %v3518_v13, %v3516_v14 }
0x14dd   :  { %v3602_v16 = vpack.c.bf16 %v17099_v15, %v17099_v15 }
0x14df   :  { %15566 = vmatmul.mubr.msk.bf16.vlgmr.msra.gmra.mrb[52].mxu0 %vm170_vm1, %v3602_v16 }
0x14e0   :  { %15576 = vmatprep.mubr.msk.f32.mxu0 %vm16503_vm4, %v16502_v50 }
0x15b2   :  { %v3652_v21 = vpop.f32.mrb[52].mxu0 }
0x15b3   :  { %v3662_v23 = vadd.f32 %v17110_v18, %v3652_v21  ;;  %v15567_v35 = vpop.f32.mrb[53].mxu0  ;;  %v17160_v21 = vrot.slane %v17106_v17, %v16921_v29 }
0x15b4   :  { %v3655_v33 = vpop.f32.mrb[54].mxu0 }
0x15b5   :  { %3832 = vrot.lane.b32.xlu0 %v3662_v23, %s16505_s26  ;;  %3665 = vrot.lane.b32.xlu1 %v3662_v23, %s16504_s4  ;;  %v15568_v37 = vpop.f32.mrb[55].mxu0  ;;  %v3663_v24 = vmul.f32 0.25, %v3662_v23 }
0x15b9   :  { %3830 = vrot.lane.b32.xlu1 %v3663_v24, %s16506_s15 }
0x1627   :  { %v3666_v25 = vpop.permute.xlu1 %3665  ;;  %v3833_v38 = vpop.permute.xlu0 %3832 }
0x1628   :  { %15570 = vmatpush3.xpose.msk.msra.mxu1 %vm1323_vm6, %v3666_v25  ;;  %v17181_v25 = vrot.slane %v17106_v17, %v16930_v31 }
0x1629   :  { %15579 = vmatprep.subr.mxu1 %v16502_v50 }
0x162b   :  { %15572 = vmatmul.mubr.msk.f32.vlgmr.msra.gmra.mrb[56].mxu1 %vm1323_vm6, %v3663_v24  ;;  %v3831_v39 = vpop.permute.xlu1 %3830 }
0x162c   :  { %15580 = vmatpush3.xpose.msk.msra.mxu1 %vm1323_vm6, %v3833_v38  ;;  %15581 = vmatprep.mubr.msk.f32.mxu1 %vm16503_vm4, %v16502_v50 }
0x162d   :  { %15589 = vmatprep.subr.bf16.mxu1 %v16502_v50 }
0x162f   :  { %15582 = vmatmul.mubr.msk.f32.vlgmr.msra.gmra.mrb[58].mxu1 %vm1323_vm6, %v3831_v39 }
0x1630   :  { %15593 = vmatprep.mubr.msk.bf16.mxu1 %vm16503_vm4, %v16502_v50 }
0x16fe   :  { %v3738_v40 = vpop.f32.mrb[56].mxu1 }
0x16ff   :  { %v15573_v41 = vpop.f32.mrb[57].mxu1  ;;  %v3742_v28 = vsel %vm1544_vm7, %v3738_v40, -inf }
0x1700   :  { %3743 = vmax.xlane.f32.xlu0 %v3742_v28 }
0x1702   :  { %v3904_v36 = vpop.f32.mrb[58].mxu1 }
0x1703   :  { %v15583_v32 = vpop.f32.mrb[59].mxu1  ;;  %v3908_v42 = vsel %vm1544_vm7, %v3904_v36, -inf }
0x1704   :  { %3909 = vmax.xlane.f32.xlu1 %v3908_v42 }
0x1715   :  { %3753 = vrot.lane.b32.xlu1 %v3662_v23, %s16491_s3 }
0x1719   :  { %4002 = vrot.lane.b32.xlu1 %v16102_v9, %s16508_s19 }
0x178d   :  { %v3744_v43 = vpop.xlane.xlu0 %3743 }
0x178e   :  { %v3745_v44 = vsub.f32 %v3738_v40, %v3744_v43 }
0x1790   :  { %v3746_v48 = vmul.f32 1.442695, %v3745_v44 }
0x1791   :  { %v3910_v49 = vpop.xlane.xlu1 %3909 }
0x1792   :  { %16144 = vpow2.f32 %v3746_v48  ;;  %v3911_v54 = vsub.f32 %v3904_v36, %v3910_v49 }
0x1794   :  { %v3912_v45 = vmul.f32 1.442695, %v3911_v54 }
0x1795   :  { %v3754_v55 = vpop.permute.xlu1 %3753 }
0x1796   :  { %16146 = vpow2.f32 %v3912_v45  ;;  %15575 = vmatpush3.msk.msra.mxu0 %vm1562_vm8, %v3754_v55 }
0x1797   :  { %15584 = vmatprep.subr.mxu0 %v16502_v50 }
0x1799   :  { %v4003_v30 = vpop.permute.xlu1 %4002 }
0x179a   :  { %15590 = vmatpush3.bf16.msra.mxu1 %v4003_v30 }
0x179b   :  { %15591 = vmatprep.subr.bf16.mxu1 %v16502_v50 }
0x179c   :  { %v16145_v56 = vpop.eup %16144 }
0x179d   :  { %v3748_v57 = vsel %vm1544_vm7, %v16145_v56, 0.0 }
0x179e   :  { %3749 = vadd.xlane.f32.xlu0 %v3748_v57 }
0x17a0   :  { %v16147_v58 = vpop.eup %16146 }
0x17a1   :  { %v3914_v51 = vsel %vm1544_vm7, %v16147_v58, 0.0 }
0x17a2   :  { %3915 = vadd.xlane.f32.xlu0 %v3914_v51 }
0x17b8   :  { %3919 = vrot.lane.b32.xlu0 %v3662_v23, %s16507_s14  ;;  %v17163_v23 = vld [vmem:[#allocation11 + $0x38] sm:$0xff]  }
0x17bc   :  { %4004 = vrot.lane.b32.xlu0 %v17094_v26, %s16508_s19 }
0x182b   :  { %v3750_v46 = vpop.xlane.xlu0 %3749 }
0x182c   :  { %16148 = vrcp.f32 %v3750_v46 }
0x182f   :  { %v3916_v59 = vpop.xlane.xlu0 %3915 }
0x1830   :  { %16150 = vrcp.f32 %v3916_v59 }
0x1833   :  { %v3920_v61 = vpop.permute.xlu0 %3919 }
0x1836   :  { %v16149_v60 = vpop.eup %16148 }
0x1837   :  { %v3752_v47 = vmul.f32 %v16149_v60, %v16145_v56  ;;  %v4005_v4 = vpop.permute.xlu0 %4004 }
0x1838   :  { %15592 = vmatpush3.bf16.msra.mxu1 %v4005_v4 }
0x1839   :  { %15577 = vmatmul.mubr.msk.f32.vlgmr.msra.gmra.mrb[56].mxu0 %vm1558_vm9, %v3752_v47  ;;  %15605 = vmatprep.subr.bf16.mxu1 %v16502_v50 }
0x183a   :  { %v16151_v0 = vpop.eup %16150  ;;  %15585 = vmatpush3.msk.msra.mxu0 %vm1562_vm8, %v3920_v61  ;;  %15586 = vmatprep.mubr.msk.f32.mxu0 %vm16503_vm4, %v16502_v50 }
0x183b   :  { %v3918_v2 = vmul.f32 %v16151_v0, %v16147_v58  ;;  %15597 = vmatprep.subr.bf16.mxu0 %v16502_v50 }
0x183d   :  { %15587 = vmatmul.mubr.msk.f32.vlgmr.msra.gmra.mrb[58].mxu0 %vm1558_vm9, %v3918_v2 }
0x183e   :  { %15601 = vmatprep.mubr.msk.bf16.mxu0 %vm16503_vm4, %v16502_v50 }
0x190c   :  { %v3826_v1 = vpop.f32.mrb[56].mxu0 }
0x190d   :  { %v15578_v5 = vpop.f32.mrb[57].mxu0 }
0x1910   :  { %v3992_v6 = vpop.f32.mrb[58].mxu0 }
0x1911   :  { %3997 = vrot.lane.b32.xlu1 %v3992_v6, %s16501_s2  ;;  %v15588_v7 = vpop.f32.mrb[59].mxu0 }
0x1915   :  { %4009 = vrot.lane.b32.xlu1 %v17110_v18, %s16508_s19  ;;  %v17156_v18 = vld [vmem:[#allocation11 + $0x30] sm:$0xff]  }
0x1916   :  { %15598 = vmatpush3.bf16.msra.mxu0 %v17156_v18 }
0x1917   :  { %15599 = vmatprep.subr.bf16.mxu0 %v16502_v50 }
0x191a   :  { %15600 = vmatpush3.bf16.msra.mxu0 %v17163_v23 }
0x191b   :  { %15613 = vmatprep.subr.mxu0 %v16502_v50 }
0x191d   :  { %15602 = vmatmul.mubr.msk.bf16.vlgmr.msra.gmra.mrb[60].mxu0 %vm170_vm1, %v16913_v20 }
0x191e   :  { %15615 = vmatprep.mubr.msk.f32.mxu0 %vm16503_vm4, %v16502_v50 }
0x1983   :  { %v3998_v8 = vpop.permute.xlu1 %3997 }
0x1984   :  { %v4000_v9 = vsel %vm1323_vm6, %v3826_v1, %v3998_v8 }
0x1985   :  { %v4001_v26 = vpack.c.bf16 %v4000_v9, %v4000_v9 }
0x1987   :  { %15594 = vmatmul.mubr.msk.bf16.vlgmr.msra.gmra.mrb[60].mxu1 %vm170_vm1, %v4001_v26  ;;  %v4010_v19 = vpop.permute.xlu1 %4009 }
0x1988   :  { %15609 = vmatprep.mubr.msk.bf16.mxu1 %vm16503_vm4, %v16502_v50  ;;  %15606 = vmatpush3.bf16.msra.mxu1 %v17156_v18 }
0x1989   :  { %15607 = vmatprep.subr.bf16.mxu1 %v16502_v50 }
0x198c   :  { %15608 = vmatpush3.bf16.msra.mxu1 %v17163_v23 }
0x198d   :  { %15623 = vmatprep.subr.mxu1 %v16502_v50 }
0x19f0   :  { %v4125_v38 = vpop.f32.mrb[60].mxu0 }
0x19f1   :  { %v4180_v39 = vadd.f32 %v17181_v25, %v4125_v38  ;;  %v15603_v40 = vpop.f32.mrb[61].mxu0 }
0x19f2   :  { %v4128_v41 = vpop.f32.mrb[62].mxu0 }
0x19f3   :  { %v15604_v28 = vpop.f32.mrb[63].mxu0 }
0x1a5a   :  { %v4049_v12 = vpop.f32.mrb[60].mxu1 }
0x1a5b   :  { %v4050_v22 = vadd.f32 %v4049_v12, %v4010_v19  ;;  %v15595_v10 = vpop.f32.mrb[61].mxu1 }
0x1a5c   :  { %v4052_v11 = vpop.f32.mrb[62].mxu1 }
0x1a5d   :  { %v15596_v13 = vpop.f32.mrb[63].mxu1  ;;  %v4055_v14 = vadd.f32 %v4050_v22, %v17099_v15 }
0x1a5f   :  { %v4056_v16 = vsel %vm1861_vm10, %v4055_v14, 0.0 }
0x1a60   :  { %4057 = vadd.xlane.f32.xlu0 %v4056_v16 }
0x1a76   :  { %4075 = vrot.lane.b32.xlu0 %v17160_v21, %s16504_s4 }
0x1a7a   :  { %4350 = vrot.lane.b32.xlu0 %v4180_v39, %s16505_s26 }
0x1aed   :  { %v4058_v15 = vpop.xlane.xlu0 %4057 }
0x1aee   :  { %v4059_v35 = vmul.f32 0.03125, %v4058_v15 }
0x1af0   :  { %v4060_v33 = vsub.f32 %v4055_v14, %v4059_v35 }
0x1af1   :  { %v4076_v48 = vpop.permute.xlu0 %4075 }
0x1af2   :  { %v4061_v37 = vmul.f32 %v4060_v33, %v4060_v33 }
0x1af4   :  { %v4062_v24 = vsel %vm1861_vm10, %v4061_v37, 0.0 }
0x1af5   :  { %4063 = vadd.xlane.f32.xlu1 %v4062_v24  ;;  %v4351_v56 = vpop.permute.xlu0 %4350 }
0x1b06   :  { %4183 = vrot.lane.b32.xlu1 %v4180_v39, %s16504_s4 }
0x1b82   :  { %v4064_v36 = vpop.xlane.xlu1 %4063 }
0x1b83   :  { %v4065_v32 = vmul.f32 0.03125, %v4064_v36 }
0x1b85   :  { %v4066_v42 = vadd.f32 1e-05, %v4065_v32 }
0x1b86   :  { %v4184_v55 = vpop.permute.xlu1 %4183 }
0x1b87   :  { %16152 = vrsqrt.f32 %v4066_v42  ;;  %15614 = vmatpush3.xpose.msk.msra.mxu0 %vm1323_vm6, %v4184_v55 }
0x1b88   :  { %15618 = vmatprep.subr.mxu0 %v16502_v50 }
0x1b91   :  { %v16153_v43 = vpop.eup %16152 }
0x1b92   :  { %v4068_v44 = vmul.f32 %v16153_v43, %v4060_v33 }
0x1b94   :  { %v4073_v49 = vmul.f32 %v17160_v21, %v4068_v44 }
0x1b96   :  { %v17187_v54 = vadd.f32 %v4076_v48, %v4073_v49 }
0x1b98   :  { %v4131_v45 = vpack.c.bf16 %v17187_v54, %v17187_v54 }
0x1b9a   :  { %15610 = vmatmul.mubr.msk.bf16.vlgmr.msra.gmra.mrb[64].mxu1 %vm170_vm1, %v4131_v45 }
0x1b9b   :  { %15625 = vmatprep.mubr.msk.f32.mxu1 %vm16503_vm4, %v16502_v50  ;;  %15624 = vmatpush3.xpose.msk.msra.mxu1 %vm1323_vm6, %v4351_v56 }
0x1b9c   :  { %15633 = vmatprep.subr.bf16.mxu1 %v16502_v50 }
0x1c6d   :  { %v4169_v57 = vpop.f32.mrb[64].mxu1 }
0x1c6e   :  { %v4179_v58 = vadd.f32 %v17181_v25, %v4169_v57  ;;  %v15611_v51 = vpop.f32.mrb[65].mxu1 }
0x1c6f   :  { %v4172_v46 = vpop.f32.mrb[66].mxu1 }
0x1c70   :  { %v4181_v59 = vmul.f32 0.25, %v4179_v58  ;;  %v15612_v60 = vpop.f32.mrb[67].mxu1  ;;  %v3534_v46 = vld [vmem:[#allocation13 + $0x200] sm:$0xff] }
0x1c71   :  { %v3535_v60 = vld [vmem:[#allocation13 + $0x208] sm:$0xff] }
0x1c72   :  { %4348 = vrot.lane.b32.xlu1 %v4181_v59, %s16506_s15  ;;  %15616 = vmatmul.mubr.msk.f32.vlgmr.msra.gmra.mrb[64].mxu0 %vm1323_vm6, %v4181_v59  ;;  %v3542_v59 = vld [vmem:[#allocation13 + $0x240] sm:$0xff] }
0x1c73   :  { %15620 = vmatprep.mubr.msk.f32.mxu0 %vm16503_vm4, %v16502_v50 }
0x1ce4   :  { %v4349_v47 = vpop.permute.xlu1 %4348 }
0x1ce5   :  { %15626 = vmatmul.mubr.msk.f32.vlgmr.msra.gmra.mrb[68].mxu1 %vm1323_vm6, %v4349_v47  ;;  %v14632_v47 = vcombine.high %v3534_v46, %v3542_v59 }
0x1ce6   :  { %15637 = vmatprep.mubr.msk.bf16.mxu1 %vm16503_vm4, %v16502_v50 }
0x1d45   :  { %v4256_v61 = vpop.f32.mrb[64].mxu0 }
0x1d46   :  { %v15617_v0 = vpop.f32.mrb[65].mxu0  ;;  %v4260_v2 = vsel %vm2070_vm11, %v4256_v61, -inf }
0x1d47   :  { %4261 = vmax.xlane.f32.xlu0 %v4260_v2 }
0x1db8   :  { %v4422_v30 = vpop.f32.mrb[68].mxu1 }
0x1db9   :  { %v15627_v4 = vpop.f32.mrb[69].mxu1  ;;  %v4426_v1 = vsel %vm2070_vm11, %v4422_v30, -inf }
0x1dba   :  { %4427 = vmax.xlane.f32.xlu1 %v4426_v1  ;;  %v3558_v4 = vld [vmem:[#allocation13 + $0x2c0] sm:$0xff]  ;;  %v3551_v1 = vld [vmem:[#allocation13 + $0x288] sm:$0xff] }
0x1dcb   :  { %4271 = vrot.lane.b32.xlu1 %v4180_v39, %s16491_s3 }
0x1dcf   :  { %4520 = vrot.lane.b32.xlu1 %v17156_v18, %s16508_s19 }
0x1dd4   :  { %v4262_v5 = vpop.xlane.xlu0 %4261 }
0x1dd5   :  { %v4263_v6 = vsub.f32 %v4256_v61, %v4262_v5  ;;  %v3543_v61 = vld [vmem:[#allocation13 + $0x248] sm:$0xff] }
0x1dd6   :  { %v14633_v0 = vcombine.low %v3535_v60, %v3543_v61  ;;  %v14634_v2 = vcombine.high %v3535_v60, %v3543_v61  ;;  %v3548_v61 = vld [vmem:[#allocation13 + $0x270] sm:$0xff] }
0x1dd7   :  { %v4264_v7 = vmul.f32 1.442695, %v4263_v6  ;;  %v3559_v6 = vld [vmem:[#allocation13 + $0x2c8] sm:$0xff] }
0x1dd9   :  { %16154 = vpow2.f32 %v4264_v7 }
0x1de3   :  { %v16155_v8 = vpop.eup %16154 }
0x1de4   :  { %v4266_v9 = vsel %vm2070_vm11, %v16155_v8, 0.0 }
0x1de5   :  { %4267 = vadd.xlane.f32.xlu0 %v4266_v9  ;;  %v3536_v9 = vld [vmem:[#allocation13 + $0x210] sm:$0xff] }
0x1e47   :  { %v4428_v26 = vpop.xlane.xlu1 %4427 }
0x1e48   :  { %v4429_v19 = vsub.f32 %v4422_v30, %v4428_v26  ;;  %v3550_v30 = vld [vmem:[#allocation13 + $0x280] sm:$0xff]  ;;  %v3544_v26 = vld [vmem:[#allocation13 + $0x250] sm:$0xff] }
0x1e49   :  { %v14648_v5 = vcombine.high %v3550_v30, %v3558_v4  ;;  %v14647_v7 = vcombine.low %v3550_v30, %v3558_v4 }
0x1e4a   :  { %v4430_v12 = vmul.f32 1.442695, %v4429_v19  ;;  %v3537_v19 = vld [vmem:[#allocation13 + $0x218] sm:$0xff] }
0x1e4b   :  { %v4272_v22 = vpop.permute.xlu1 %4271 }
0x1e4c   :  { %16156 = vpow2.f32 %v4430_v12  ;;  %15619 = vmatpush3.msk.msra.mxu0 %vm2088_vm12, %v4272_v22  ;;  %v14635_v12 = vcombine.low %v3536_v9, %v3544_v26  ;;  %v14636_v22 = vcombine.high %v3536_v9, %v3544_v26 }
0x1e4d   :  { %15628 = vmatprep.subr.mxu0 %v16502_v50 }
0x1e56   :  { %v16157_v10 = vpop.eup %16156 }
0x1e57   :  { %v4432_v11 = vsel %vm2070_vm11, %v16157_v10, 0.0 }
0x1e58   :  { %4433 = vadd.xlane.f32.xlu0 %v4432_v11 }
0x1e6e   :  { %4437 = vrot.lane.b32.xlu0 %v4180_v39, %s16507_s14 }
0x1e72   :  { %v4268_v13 = vpop.xlane.xlu0 %4267  ;;  %4522 = vrot.lane.b32.xlu0 %v17163_v23, %s16508_s19  ;;  %v4521_v23 = vpop.permute.xlu1 %4520 }
0x1e73   :  { %16158 = vrcp.f32 %v4268_v13  ;;  %15634 = vmatpush3.bf16.msra.mxu1 %v4521_v23 }
0x1e74   :  { %15635 = vmatprep.subr.bf16.mxu1 %v16502_v50 }
0x1e7d   :  { %v16159_v14 = vpop.eup %16158 }
0x1e7e   :  { %v4270_v16 = vmul.f32 %v16159_v14, %v16155_v8  ;;  %v14649_v8 = vcombine.low %v3551_v1, %v3559_v6 }
0x1e80   :  { %15621 = vmatmul.mubr.msk.f32.vlgmr.msra.gmra.mrb[66].mxu0 %vm2084_vm13, %v4270_v16 }
0x1e81   :  { %15630 = vmatprep.mubr.msk.f32.mxu0 %vm16503_vm4, %v16502_v50 }
0x1ee5   :  { %v4434_v18 = vpop.xlane.xlu0 %4433 }
0x1ee6   :  { %16160 = vrcp.f32 %v4434_v18 }
0x1ee9   :  { %v4438_v15 = vpop.permute.xlu0 %4437 }
0x1eea   :  { %15629 = vmatpush3.msk.msra.mxu0 %vm2088_vm12, %v4438_v15 }
0x1eeb   :  { %4841 = vmatprep.subr.bf16.mxu0 %v14632_v47  ;;  %v3540_v47 = vld [vmem:[#allocation13 + $0x230] sm:$0xff] }
0x1eec   :  { %v14643_v9 = vcombine.low %v3540_v47, %v3548_v61 }
0x1eed   :  { %v4523_v37 = vpop.permute.xlu0 %4522 }
0x1eee   :  { %15636 = vmatpush3.bf16.msra.mxu1 %v4523_v37 }
0x1eef   :  { %4882 = vmatprep.subr.bf16.mxu1 %v14634_v2  ;;  %v3549_v2 = vld [vmem:[#allocation13 + $0x278] sm:$0xff] }
0x1ef0   :  { %v16161_v35 = vpop.eup %16160 }
0x1ef1   :  { %v4436_v33 = vmul.f32 %v16161_v35, %v16157_v10  ;;  %v3545_v10 = vld [vmem:[#allocation13 + $0x258] sm:$0xff] }
0x1ef2   :  { %v14637_v11 = vcombine.low %v3537_v19, %v3545_v10  ;;  %v14638_v13 = vcombine.high %v3537_v19, %v3545_v10  ;;  %v3575_v10 = vld [vmem:[#allocation13 + $0x340] sm:$0xff] }
0x1ef3   :  { %15631 = vmatmul.mubr.msk.f32.vlgmr.msra.gmra.mrb[68].mxu0 %vm2084_vm13, %v4436_v33 }
0x1ef4   :  { %4873 = vmatprep.mubr.bf16.mxu0 %v16509_v3 }
0x1f53   :  { %v4344_v24 = vpop.f32.mrb[66].mxu0 }
0x1f54   :  { %v15622_v38 = vpop.f32.mrb[67].mxu0 }
0x1f55   :  { %v3560_v38 = vld [vmem:[#allocation13 + $0x2d0] sm:$0xff] }
0x1fc6   :  { %v4510_v39 = vpop.f32.mrb[68].mxu0 }
0x1fc7   :  { %4515 = vrot.lane.b32.xlu1 %v4510_v39, %s16501_s2  ;;  %v15632_v40 = vpop.f32.mrb[69].mxu0  ;;  %v3553_v39 = vld [vmem:[#allocation13 + $0x298] sm:$0xff] }
0x1fc8   :  { %v3561_v40 = vld [vmem:[#allocation13 + $0x2d8] sm:$0xff] }
0x1fcb   :  { %4527 = vrot.lane.b32.xlu1 %v17181_v25, %s16508_s19 }
0x2039   :  { %v4516_v41 = vpop.permute.xlu1 %4515 }
0x203a   :  { %v4518_v28 = vsel %vm1323_vm6, %v4344_v24, %v4516_v41  ;;  %v3552_v24 = vld [vmem:[#allocation13 + $0x290] sm:$0xff] }
0x203b   :  { %v4519_v36 = vpack.c.bf16 %v4518_v28, %v4518_v28 }
0x203d   :  { %15638 = vmatmul.mubr.msk.bf16.vlgmr.msra.gmra.mrb[72].mxu1 %vm170_vm1, %v4519_v36  ;;  %v4528_v32 = vpop.permute.xlu1 %4527  ;;  %v14652_v36 = vcombine.high %v3552_v24, %v3560_v38 }
0x203e   :  { %4914 = vmatprep.mubr.bf16.mxu1 %v16509_v3  ;;  %4883 = vmatpush1.bf16.msra.mxu1 %v14633_v0  ;;  %v3541_v0 = vld [vmem:[#allocation13 + $0x238] sm:$0xff] }
0x203f   :  { %v14645_v26 = vcombine.low %v3541_v0, %v3549_v2 }
0x2110   :  { %v4567_v42 = vpop.f32.mrb[72].mxu1 }
0x2111   :  { %v4568_v43 = vadd.f32 %v4567_v42, %v4528_v32  ;;  %v15639_v44 = vpop.f32.mrb[73].mxu1  ;;  %v14654_v32 = vcombine.high %v3553_v39, %v3561_v40  ;;  %v3538_v42 = vld [vmem:[#allocation13 + $0x220] sm:$0xff] }
0x2112   :  { %v4570_v48 = vpop.f32.mrb[74].mxu1  ;;  %v3539_v44 = vld [vmem:[#allocation13 + $0x228] sm:$0xff] }
0x2113   :  { %v15640_v49 = vpop.f32.mrb[75].mxu1  ;;  %v4573_v45 = vadd.f32 %v4568_v43, %v17187_v54  ;;  %v14631_v54 = vcombine.low %v3534_v46, %v3542_v59  ;;  %v3546_v43 = vld [vmem:[#allocation13 + $0x260] sm:$0xff]  ;;  %v3547_v48 = vld [vmem:[#allocation13 + $0x268] sm:$0xff] }
0x2114   :  { %v14651_v49 = vcombine.low %v3552_v24, %v3560_v38  ;;  %v14639_v46 = vcombine.low %v3538_v42, %v3546_v43  ;;  %v14641_v59 = vcombine.low %v3539_v44, %v3547_v48  ;;  %v3584_v24 = vld [vmem:[#allocation13 + $0x388] sm:$0xff] }
0x2115   :  { %v4574_v55 = vsel %vm1861_vm10, %v4573_v45, 0.0  ;;  %4842 = vmatpush1.bf16.msra.mxu0 %v14631_v54 }
0x2116   :  { %4575 = vadd.xlane.f32.xlu0 %v4574_v55  ;;  %4843 = vmatprep.subr.bf16.mxu0 %v14648_v5  ;;  %v14640_v55 = vcombine.high %v3538_v42, %v3546_v43  ;;  %v14646_v5 = vcombine.high %v3541_v0, %v3549_v2  ;;  %v3569_v42 = vld [vmem:[#allocation13 + $0x310] sm:$0xff] }
0x2117   :  { %v3577_v43 = vld [vmem:[#allocation13 + $0x350] sm:$0xff] }
0x2119   :  { %4844 = vmatpush1.bf16.msra.mxu0 %v14647_v7  ;;  %v3564_v7 = vld [vmem:[#allocation13 + $0x2f0] sm:$0xff] }
0x211a   :  { %4923 = vmatprep.subr.bf16.mxu0 %v14636_v22  ;;  %v3567_v22 = vld [vmem:[#allocation13 + $0x300] sm:$0xff] }
0x212c   :  { %4587 = vrot.lane.b32.xlu0 %v17160_v21, %s16491_s3 }
0x21a3   :  { %v4576_v25 = vpop.xlane.xlu0 %4575 }
0x21a4   :  { %v4577_v56 = vmul.f32 0.03125, %v4576_v25  ;;  %v14642_v25 = vcombine.high %v3539_v44, %v3547_v48  ;;  %v3570_v44 = vld [vmem:[#allocation13 + $0x318] sm:$0xff] }
0x21a5   :  { %v3578_v48 = vld [vmem:[#allocation13 + $0x358] sm:$0xff] }
0x21a6   :  { %v4578_v57 = vsub.f32 %v4573_v45, %v4577_v56  ;;  %v14653_v45 = vcombine.low %v3553_v39, %v3561_v40  ;;  %v3554_v56 = vld [vmem:[#allocation13 + $0x2a0] sm:$0xff]  ;;  %v3592_v39 = vld [vmem:[#allocation13 + $0x3c8] sm:$0xff] }
0x21a7   :  { %v4588_v35 = vpop.permute.xlu0 %4587 }
0x21a8   :  { %v4579_v58 = vmul.f32 %v4578_v57, %v4578_v57 }
0x21aa   :  { %v4580_v51 = vsel %vm1861_vm10, %v4579_v58, 0.0  ;;  %v3555_v58 = vld [vmem:[#allocation13 + $0x2a8] sm:$0xff] }
0x21ab   :  { %4581 = vadd.xlane.f32.xlu1 %v4580_v51  ;;  %v3563_v51 = vld [vmem:[#allocation13 + $0x2e8] sm:$0xff] }
0x21ac   :  { %v14658_v54 = vcombine.high %v3555_v58, %v3563_v51  ;;  %v14657_v4 = vcombine.low %v3555_v58, %v3563_v51 }
0x21bc   :  { %4591 = vrot.lane.b32.xlu1 %v17160_v21, %s16508_s19  ;;  %v14650_v21 = vcombine.high %v3551_v1, %v3559_v6  ;;  %v14644_v1 = vcombine.high %v3540_v47, %v3548_v61  ;;  %v3556_v6 = vld [vmem:[#allocation13 + $0x2b0] sm:$0xff] }
0x21bd   :  { %v14660_v19 = vcombine.high %v3556_v6, %v3564_v7 }
0x21be   :  { %4884 = vmatprep.subr.bf16.mxu1 %v14650_v21  ;;  %v3565_v21 = vld [vmem:[#allocation13 + $0x2f8] sm:$0xff] }
0x21bf   :  { %4885 = vmatpush1.bf16.msra.mxu1 %v14649_v8  ;;  %v3557_v8 = vld [vmem:[#allocation13 + $0x2b8] sm:$0xff] }
0x21c0   :  { %4964 = vmatprep.subr.bf16.mxu1 %v14638_v13  ;;  %v3576_v13 = vld [vmem:[#allocation13 + $0x348] sm:$0xff] }
0x2238   :  { %v4582_v14 = vpop.xlane.xlu1 %4581 }
0x2239   :  { %v4583_v16 = vmul.f32 0.03125, %v4582_v14  ;;  %v14659_v14 = vcombine.low %v3556_v6, %v3564_v7 }
0x223b   :  { %v4584_v18 = vadd.f32 1e-05, %v4583_v16  ;;  %v14661_v16 = vcombine.low %v3557_v8, %v3565_v21 }
0x223c   :  { %v4592_v23 = vpop.permute.xlu1 %4591 }
0x223d   :  { %16162 = vrsqrt.f32 %v4584_v18  ;;  %v14672_v18 = vcombine.high %v3567_v22, %v3575_v10 }
0x2247   :  { %v16163_v15 = vpop.eup %16162 }
0x2248   :  { %v4586_v33 = vmul.f32 %v16163_v15, %v4578_v57  ;;  %v3562_v57 = vld [vmem:[#allocation13 + $0x2e0] sm:$0xff] }
0x2249   :  { %v14656_v60 = vcombine.high %v3554_v56, %v3562_v57  ;;  %v14655_v30 = vcombine.low %v3554_v56, %v3562_v57  ;;  %v17272_v56 = vld [vmem:[#allocation16 + $0x10] sm:$0xff] }
0x224a   :  { %v4590_v37 = vmul.f32 %v4588_v35, %v4586_v33  ;;  %v14671_v35 = vcombine.low %v3567_v22, %v3575_v10  ;;  %v4601_v57 = vrot.slane %v17272_v56, %v16848_v27  ;;  %v4609_v58 = vrot.slane %v17272_v56, %v16921_v29 }
0x224b   :  { %v4605_v51 = vrot.slane %v17272_v56, %v16930_v31 }
0x224c   :  { %v17238_v41 = vadd.f32 %v4592_v23, %v4590_v37  ;;  %v3583_v23 = vld [vmem:[#allocation13 + $0x380] sm:$0xff] }
0x224d   :  { %v3591_v37 = vld [vmem:[#allocation13 + $0x3c0] sm:$0xff] }
0x224e   :  { %v17242_v28 = vpack.c.bf16 %v17238_v41, %v17238_v41  ;;  %v14688_v38 = vcombine.high %v3583_v23, %v3591_v37  ;;  %v14687_v40 = vcombine.low %v3583_v23, %v3591_v37 }
0x2250   :  { %14663 = vmatmul.mubr.msk.bf16.vlgmr.msra.gmra.mrb[72].mxu0 %vm170_vm1, %v17242_v28  ;;  %14664 = vmatmul.mubr.msk.bf16.vlgmr.msra.gmra.mrb[76].mxu1 %vm170_vm1, %v17242_v28 }
0x2251   :  { %4924 = vmatpush1.bf16.msra.mxu0 %v14635_v12  ;;  %4965 = vmatpush1.bf16.msra.mxu1 %v14637_v11  ;;  %v14662_v12 = vcombine.high %v3557_v8, %v3565_v21  ;;  %v3568_v11 = vld [vmem:[#allocation13 + $0x308] sm:$0xff]  ;;  %v3585_v8 = vld [vmem:[#allocation13 + $0x390] sm:$0xff] }
0x2252   :  { %4925 = vmatprep.subr.bf16.mxu0 %v14652_v36  ;;  %4966 = vmatprep.subr.bf16.mxu1 %v14654_v32  ;;  %v14674_v15 = vcombine.high %v3568_v11, %v3576_v13  ;;  %v14673_v33 = vcombine.low %v3568_v11, %v3576_v13  ;;  %v14689_v36 = vcombine.low %v3584_v24, %v3592_v39 }
0x2253   :  { %4955 = vmatprep.mubr.bf16.mxu0 %v16509_v3  ;;  %4996 = vmatprep.mubr.bf16.mxu1 %v16509_v3  ;;  %v14690_v32 = vcombine.high %v3584_v24, %v3592_v39  ;;  %v4621_v11 = vrot.slane %v17272_v56, %v17039_v52  ;;  %v4629_v13 = vrot.slane %v17272_v56, %v17042_v53 }
0x2255   :  { %4926 = vmatpush1.bf16.msra.mxu0 %v14651_v49  ;;  %4967 = vmatpush1.bf16.msra.mxu1 %v14653_v45  ;;  %v14675_v49 = vcombine.low %v3569_v42, %v3577_v43  ;;  %v14677_v45 = vcombine.low %v3570_v44, %v3578_v48 }
0x2256   :  { %5005 = vmatprep.subr.bf16.mxu0 %v14640_v55  ;;  %5046 = vmatprep.subr.bf16.mxu1 %v14642_v25  ;;  %v14678_v55 = vcombine.high %v3570_v44, %v3578_v48  ;;  %v17268_v25 = vrot.slane %v17106_v17, %v17020_v34  ;;  %v17290_v44 = vld [vmem:[#allocation16 + $0x18] sm:$0xff] }
0x2258   :  { %14665 = vmatmul.mubr.msk.bf16.vlgmr.msra.gmra.mrb[76].mxu0 %vm170_vm1, %v17242_v28  ;;  %14666 = vmatmul.mubr.msk.bf16.vlgmr.msra.gmra.mrb[80].mxu1 %vm170_vm1, %v17242_v28 }
0x2259   :  { %5006 = vmatpush1.bf16.msra.mxu0 %v14639_v46  ;;  %5047 = vmatpush1.bf16.msra.mxu1 %v14641_v59  ;;  %v4613_v46 = vrot.slane %v17272_v56, %v17020_v34 }
0x225a   :  { %5007 = vmatprep.subr.bf16.mxu0 %v14656_v60  ;;  %5048 = vmatprep.subr.bf16.mxu1 %v14658_v54 }
0x225b   :  { %5037 = vmatprep.mubr.bf16.mxu0 %v16509_v3  ;;  %5078 = vmatprep.mubr.bf16.mxu1 %v16509_v3 }
0x225c   :  { %5366 = vrot.lane.b32.xlu0 %v17268_v25, %s16491_s3 }
0x225d   :  { %5008 = vmatpush1.bf16.msra.mxu0 %v14655_v30  ;;  %5049 = vmatpush1.bf16.msra.mxu1 %v14657_v4 }
0x225e   :  { %5087 = vmatprep.subr.bf16.mxu0 %v14644_v1  ;;  %5128 = vmatprep.subr.bf16.mxu1 %v14646_v5 }
0x2260   :  { %14667 = vmatmul.mubr.msk.bf16.vlgmr.msra.gmra.mrb[80].mxu0 %vm170_vm1, %v17242_v28  ;;  %14668 = vmatmul.mubr.msk.bf16.vlgmr.msra.gmra.mrb[84].mxu1 %vm170_vm1, %v17242_v28 }
0x2261   :  { %5088 = vmatpush1.bf16.msra.mxu0 %v14643_v9  ;;  %5129 = vmatpush1.bf16.msra.mxu1 %v14645_v26  ;;  %v3593_v26 = vld [vmem:[#allocation13 + $0x3d0] sm:$0xff] }
0x2262   :  { %5089 = vmatprep.subr.bf16.mxu0 %v14660_v19  ;;  %5130 = vmatprep.subr.bf16.mxu1 %v14662_v12  ;;  %v3586_v19 = vld [vmem:[#allocation13 + $0x398] sm:$0xff] }
0x2263   :  { %5119 = vmatprep.mubr.bf16.mxu0 %v16509_v3  ;;  %5160 = vmatprep.mubr.bf16.mxu1 %v16509_v3  ;;  %v3594_v12 = vld [vmem:[#allocation13 + $0x3d8] sm:$0xff] }
0x2265   :  { %5090 = vmatpush1.bf16.msra.mxu0 %v14659_v14  ;;  %5131 = vmatpush1.bf16.msra.mxu1 %v14661_v16 }
0x2266   :  { %5369 = vmatprep.subr.bf16.mxu0 %v14672_v18  ;;  %5409 = vmatprep.subr.bf16.mxu1 %v14674_v15  ;;  %v14692_v18 = vcombine.high %v3585_v8, %v3593_v26  ;;  %v14694_v15 = vcombine.high %v3586_v19, %v3594_v12 }
0x2268   :  { %14669 = vmatmul.mubr.msk.bf16.vlgmr.msra.gmra.mrb[84].mxu0 %vm170_vm1, %v17242_v28  ;;  %14670 = vmatmul.mubr.msk.bf16.vlgmr.msra.gmra.mrb[88].mxu1 %vm170_vm1, %v17242_v28  ;;  %v14676_v28 = vcombine.high %v3569_v42, %v3577_v43 }
0x226e   :  { %5370 = vmatpush1.bf16.xpose.msra.mxu0 %v14671_v35  ;;  %5410 = vmatpush1.bf16.xpose.msra.mxu1 %v14673_v33 }
0x226f   :  { %5371 = vmatprep.subr.bf16.mxu0 %v14688_v38  ;;  %5411 = vmatprep.subr.bf16.mxu1 %v14690_v32  ;;  %v4625_v32 = vrot.slane %v17272_v56, %v17048_v63 }
0x2276   :  { %5372 = vmatpush1.bf16.xpose.msra.mxu0 %v14687_v40  ;;  %5412 = vmatpush1.bf16.xpose.msra.mxu1 %v14689_v36  ;;  %v4617_v36 = vrot.slane %v17272_v56, %v17045_v62  ;;  %v4645_v56 = vrot.slane %v17290_v44, %v17020_v34 }
0x2277   :  { %5449 = vmatprep.subr.bf16.mxu0 %v14676_v28  ;;  %5489 = vmatprep.subr.bf16.mxu1 %v14678_v55  ;;  %v3571_v28 = vld [vmem:[#allocation13 + $0x320] sm:$0xff] }
0x2323   :  { %v4875_v59 = vpop.f32.mrb[72].mxu0  ;;  %v4916_v17 = vpop.f32.mrb[76].mxu1 }
0x2324   :  { %v4876_v60 = vadd.f32 %v4875_v59, %v4601_v57  ;;  %v4917_v54 = vadd.f32 %v4916_v17, %v4609_v58  ;;  %v4877_v47 = vpop.f32.mrb[73].mxu0  ;;  %v4918_v61 = vpop.f32.mrb[77].mxu1  ;;  %v3579_v57 = vld [vmem:[#allocation13 + $0x360] sm:$0xff]  ;;  %v14691_v58 = vcombine.low %v3585_v8, %v3593_v26  ;;  %v4637_v17 = vrot.slane %v17290_v44, %v16930_v31 }
0x2325   :  { %v4878_v0 = vadd.f32 %v4877_v47, %v4605_v51  ;;  %v4919_v2 = vadd.f32 %v4918_v61, %v4613_v46  ;;  %v4879_v30 = vpop.f32.mrb[74].mxu0  ;;  %v4920_v4 = vpop.f32.mrb[78].mxu1  ;;  %v14693_v51 = vcombine.low %v3586_v19, %v3594_v12  ;;  %v14680_v47 = vcombine.high %v3571_v28, %v3579_v57 }
0x2326   :  { %v5169_v1 = vmax.f32 %v4876_v60, 0.0  ;;  %v5171_v5 = vmax.f32 %v4917_v54, 0.0  ;;  %v4880_v6 = vpop.f32.mrb[75].mxu0  ;;  %v4921_v7 = vpop.f32.mrb[79].mxu1 }
0x2327   :  { %v5170_v21 = vmax.f32 %v4878_v0, 0.0  ;;  %v5172_v9 = vmax.f32 %v4919_v2, 0.0 }
0x2328   :  { %v5185_v14 = vpack.c.bf16 %v5169_v1, %v5169_v1  ;;  %v5187_v16 = vpack.c.bf16 %v5171_v5, %v5171_v5 }
0x2329   :  { %v5186_v22 = vpack.c.bf16 %v5170_v21, %v5170_v21  ;;  %v5188_v10 = vpack.c.bf16 %v5172_v9, %v5172_v9 }
0x232b   :  { %v4957_v35 = vpop.f32.mrb[76].mxu0  ;;  %v4998_v33 = vpop.f32.mrb[80].mxu1  ;;  %5401 = vmatprep.mubr.bf16.mxu0 %v5186_v22  ;;  %5441 = vmatprep.mubr.bf16.mxu1 %v5188_v10  ;;  %v3587_v22 = vld [vmem:[#allocation13 + $0x3a0] sm:$0xff] }
0x232c   :  { %v4959_v23 = vpop.f32.mrb[77].mxu0  ;;  %v5000_v37 = vpop.f32.mrb[81].mxu1  ;;  %5402 = vmatmul.mubr.bf16.vlgmr.msra.gmra.mrb[88].mxu0 %v5185_v14  ;;  %5442 = vmatmul.mubr.bf16.vlgmr.msra.gmra.mrb[92].mxu1 %v5187_v16  ;;  %v4958_v60 = vadd.f32 %v4957_v35, %v4617_v36  ;;  %v4999_v54 = vadd.f32 %v4998_v33, %v4625_v32  ;;  %v3595_v10 = vld [vmem:[#allocation13 + $0x3e0] sm:$0xff]  ;;  %v14679_v16 = vcombine.low %v3571_v28, %v3579_v57  ;;  %v3581_v57 = vld [vmem:[#allocation13 + $0x370] sm:$0xff] }
0x232d   :  { %v4960_v24 = vadd.f32 %v4959_v23, %v4621_v11  ;;  %v5001_v38 = vadd.f32 %v5000_v37, %v4629_v13  ;;  %5450 = vmatpush1.bf16.xpose.msra.mxu0 %v14675_v49  ;;  %5490 = vmatpush1.bf16.xpose.msra.mxu1 %v14677_v45  ;;  %v4961_v39 = vpop.f32.mrb[78].mxu0  ;;  %v5002_v40 = vpop.f32.mrb[82].mxu1  ;;  %v3572_v49 = vld [vmem:[#allocation13 + $0x328] sm:$0xff] }
0x232e   :  { %v4962_v42 = vpop.f32.mrb[79].mxu0  ;;  %v5003_v43 = vpop.f32.mrb[83].mxu1  ;;  %5451 = vmatprep.subr.bf16.mxu0 %v14692_v18  ;;  %5491 = vmatprep.subr.bf16.mxu1 %v14694_v15  ;;  %v3580_v45 = vld [vmem:[#allocation13 + $0x368] sm:$0xff]  ;;  %v5173_v8 = vmax.f32 %v4958_v60, 0.0  ;;  %v5175_v21 = vmax.f32 %v4999_v54, 0.0 }
0x232f   :  { %v5174_v48 = vmax.f32 %v4960_v24, 0.0  ;;  %v5176_v55 = vmax.f32 %v5001_v38, 0.0  ;;  %v14682_v61 = vcombine.high %v3572_v49, %v3580_v45  ;;  %v3588_v11 = vld [vmem:[#allocation13 + $0x3a8] sm:$0xff]  ;;  %v14681_v33 = vcombine.low %v3572_v49, %v3580_v45  ;;  %v3574_v45 = vld [vmem:[#allocation13 + $0x338] sm:$0xff] }
0x2330   :  { %v3596_v13 = vld [vmem:[#allocation13 + $0x3e8] sm:$0xff]  ;;  %v5189_v18 = vpack.c.bf16 %v5173_v8, %v5173_v8  ;;  %v5191_v15 = vpack.c.bf16 %v5175_v21, %v5175_v21  ;;  %v14696_v24 = vcombine.high %v3587_v22, %v3595_v10  ;;  %v4633_v42 = vrot.slane %v17290_v44, %v16848_v27  ;;  %v3590_v21 = vld [vmem:[#allocation13 + $0x3b8] sm:$0xff] }
0x2331   :  { %v5190_v46 = vpack.c.bf16 %v5174_v48, %v5174_v48  ;;  %v5192_v59 = vpack.c.bf16 %v5176_v55, %v5176_v55  ;;  %v14698_v38 = vcombine.high %v3588_v11, %v3596_v13  ;;  %v4641_v48 = vrot.slane %v17290_v44, %v16921_v29  ;;  %v3573_v55 = vld [vmem:[#allocation13 + $0x330] sm:$0xff] }
0x2332   :  { %v4653_v49 = vrot.slane %v17290_v44, %v17039_v52  ;;  %v14683_v8 = vcombine.low %v3573_v55, %v3581_v57 }
0x2333   :  { %v5039_v0 = vpop.f32.mrb[80].mxu0  ;;  %v5080_v2 = vpop.f32.mrb[84].mxu1  ;;  %5481 = vmatprep.mubr.bf16.mxu0 %v5190_v46  ;;  %5521 = vmatprep.mubr.bf16.mxu1 %v5192_v59  ;;  %v14695_v46 = vcombine.low %v3587_v22, %v3595_v10 }
0x2334   :  { %v5041_v30 = vpop.f32.mrb[81].mxu0  ;;  %v5082_v4 = vpop.f32.mrb[85].mxu1  ;;  %v5040_v59 = vadd.f32 %v5039_v0, %v4633_v42  ;;  %v5081_v60 = vadd.f32 %v5080_v2, %v4641_v48 }
0x2335   :  { %v5042_v1 = vadd.f32 %v5041_v30, %v4637_v17  ;;  %v5083_v5 = vadd.f32 %v5082_v4, %v4645_v56  ;;  %5452 = vmatpush1.bf16.xpose.msra.mxu0 %v14691_v58  ;;  %5492 = vmatpush1.bf16.xpose.msra.mxu1 %v14693_v51  ;;  %v5043_v6 = vpop.f32.mrb[82].mxu0  ;;  %v5084_v7 = vpop.f32.mrb[86].mxu1  ;;  %v3582_v58 = vld [vmem:[#allocation13 + $0x378] sm:$0xff]  ;;  %v4661_v51 = vrot.slane %v17290_v44, %v17042_v53 }
0x2336   :  { %v5044_v9 = vpop.f32.mrb[83].mxu0  ;;  %v5085_v26 = vpop.f32.mrb[87].mxu1  ;;  %5529 = vmatprep.subr.bf16.mxu0 %v14680_v47  ;;  %5569 = vmatprep.subr.bf16.mxu1 %v14682_v61  ;;  %v14697_v17 = vcombine.low %v3588_v11, %v3596_v13  ;;  %v14684_v56 = vcombine.high %v3573_v55, %v3581_v57  ;;  %v14686_v54 = vcombine.high %v3574_v45, %v3582_v58  ;;  %v5177_v30 = vmax.f32 %v5040_v59, 0.0  ;;  %v3597_v6 = vld [vmem:[#allocation13 + $0x3f0] sm:$0xff] }
0x2337   :  { %v5178_v19 = vmax.f32 %v5042_v1, 0.0  ;;  %v5180_v12 = vmax.f32 %v5083_v5, 0.0  ;;  %v5179_v4 = vmax.f32 %v5081_v60, 0.0  ;;  %v3589_v5 = vld [vmem:[#allocation13 + $0x3b0] sm:$0xff]  ;;  %v3598_v9 = vld [vmem:[#allocation13 + $0x3f8] sm:$0xff]  ;;  %v14685_v26 = vcombine.low %v3574_v45, %v3582_v58 }
0x2338   :  { %v5193_v0 = vpack.c.bf16 %v5177_v30, %v5177_v30  ;;  %v14700_v2 = vcombine.high %v3589_v5, %v3597_v6  ;;  %v14702_v22 = vcombine.high %v3590_v21, %v3598_v9  ;;  %v4649_v11 = vrot.slane %v17290_v44, %v17045_v62 }
0x2339   :  { %v5194_v14 = vpack.c.bf16 %v5178_v19, %v5178_v19  ;;  %v5196_v35 = vpack.c.bf16 %v5180_v12, %v5180_v12  ;;  %v5195_v19 = vpack.c.bf16 %v5179_v4, %v5179_v4  ;;  %v4657_v13 = vrot.slane %v17290_v44, %v17048_v63  ;;  %v5367_v44 = vpop.permute.xlu0 %5366 }
0x233b   :  { %v17296_v23 = vpop.f32.mrb[84].mxu0  ;;  %v17298_v37 = vpop.f32.mrb[88].mxu1 }
0x233c   :  { %5482 = vmatmul.mubr.bf16.vlgmr.msra.gmra.mrb[92].mxu0 %v5189_v18  ;;  %5522 = vmatmul.mubr.bf16.vlgmr.msra.gmra.mrb[96].mxu1 %v5191_v15  ;;  %v5123_v39 = vpop.f32.mrb[85].mxu0  ;;  %v5164_v40 = vpop.f32.mrb[89].mxu1  ;;  %v14701_v18 = vcombine.low %v3590_v21, %v3598_v9  ;;  %v5163_v15 = vadd.f32 %v17298_v37, %v4657_v13 }
0x233d   :  { %5530 = vmatpush1.bf16.xpose.msra.mxu0 %v14679_v16  ;;  %5561 = vmatprep.mubr.bf16.mxu0 %v5194_v14  ;;  %v5125_v36 = vpop.f32.mrb[86].mxu0  ;;  %v5166_v32 = vpop.f32.mrb[90].mxu1  ;;  %v5124_v47 = vadd.f32 %v5123_v39, %v4653_v49  ;;  %v5165_v61 = vadd.f32 %v5164_v40, %v4661_v51  ;;  %v14699_v14 = vcombine.low %v3589_v5, %v3597_v6 }
0x233e   :  { %5570 = vmatpush1.bf16.xpose.msra.mxu1 %v14681_v33  ;;  %5601 = vmatprep.mubr.bf16.mxu1 %v5196_v35  ;;  %v5126_v43 = vpop.f32.mrb[87].mxu0  ;;  %v5167_v28 = vpop.f32.mrb[91].mxu1  ;;  %v5122_v16 = vadd.f32 %v17296_v23, %v4649_v11  ;;  %v5183_v33 = vmax.f32 %v5163_v15, 0.0 }
0x233f   :  { %5531 = vmatprep.subr.bf16.mxu0 %v14696_v24  ;;  %5571 = vmatprep.subr.bf16.mxu1 %v14698_v38  ;;  %v5182_v1 = vmax.f32 %v5124_v47, 0.0  ;;  %v5184_v7 = vmax.f32 %v5165_v61, 0.0 }
0x2340   :  { %v5181_v35 = vmax.f32 %v5122_v16, 0.0  ;;  %v5199_v38 = vpack.c.bf16 %v5183_v33, %v5183_v33  ;;  %v17323_v33 = vld [vmem:[#allocation11 + $0x40] sm:$0xff]  }
0x2341   :  { %v5198_v12 = vpack.c.bf16 %v5182_v1, %v5182_v1  ;;  %v5200_v10 = vpack.c.bf16 %v5184_v7, %v5184_v7 }
0x2342   :  { %v5197_v24 = vpack.c.bf16 %v5181_v35, %v5181_v35 }
0x2345   :  { %5532 = vmatpush1.bf16.xpose.msra.mxu0 %v14695_v46 }
0x2346   :  { %5572 = vmatpush1.bf16.xpose.msra.mxu1 %v14697_v17  ;;  %5609 = vmatprep.subr.bf16.mxu0 %v14684_v56 }
0x2347   :  { %5649 = vmatprep.subr.bf16.mxu1 %v14686_v54 }
0x234c   :  { %5562 = vmatmul.mubr.bf16.vlgmr.msra.gmra.mrb[96].mxu0 %v5193_v0 }
0x234d   :  { %5602 = vmatmul.mubr.bf16.vlgmr.msra.gmra.mrb[100].mxu1 %v5195_v19  ;;  %5610 = vmatpush1.bf16.xpose.msra.mxu0 %v14683_v8 }
0x234e   :  { %5641 = vmatprep.mubr.bf16.mxu0 %v5198_v12  ;;  %5650 = vmatpush1.bf16.xpose.msra.mxu1 %v14685_v26 }
0x234f   :  { %5681 = vmatprep.mubr.bf16.mxu1 %v5200_v10  ;;  %5611 = vmatprep.subr.bf16.mxu0 %v14700_v2 }
0x2350   :  { %5651 = vmatprep.subr.bf16.mxu1 %v14702_v22 }
0x2355   :  { %5612 = vmatpush1.bf16.xpose.msra.mxu0 %v14699_v14 }
0x2356   :  { %5652 = vmatpush1.bf16.xpose.msra.mxu1 %v14701_v18  ;;  %15641 = vmatprep.subr.bf16.mxu0 %v16502_v50 }
0x2357   :  { %15649 = vmatprep.subr.mxu1 %v16502_v50 }
0x235c   :  { %5642 = vmatmul.mubr.bf16.vlgmr.msra.gmra.mrb[100].mxu0 %v5197_v24 }
0x235d   :  { %5682 = vmatmul.mubr.bf16.vlgmr.msra.gmra.mrb[104].mxu1 %v5199_v38  ;;  %15645 = vmatprep.mubr.msk.bf16.mxu0 %vm16503_vm4, %v16502_v50 }
0x235e   :  { %15651 = vmatprep.mubr.msk.f32.mxu1 %vm16503_vm4, %v16502_v50  ;;  %15642 = vmatpush3.bf16.msra.mxu0 %v17323_v33 }
0x235f   :  { %15643 = vmatprep.subr.bf16.mxu0 %v16502_v50 }
0x23ff   :  { %v5443_v23 = vpop.f32.mrb[92].mxu1  ;;  %v5403_v37 = vpop.f32.mrb[88].mxu0 }
0x2400   :  { %v5404_v39 = vadd.f32 %v5403_v37, %v5367_v44  ;;  %v5405_v40 = vpop.f32.mrb[89].mxu0  ;;  %v5445_v36 = vpop.f32.mrb[93].mxu1 }
0x2401   :  { %v5406_v32 = vpop.f32.mrb[90].mxu0  ;;  %v5446_v42 = vpop.f32.mrb[94].mxu1 }
0x2402   :  { %v5407_v43 = vpop.f32.mrb[91].mxu0  ;;  %v5447_v28 = vpop.f32.mrb[95].mxu1  ;;  %v5444_v48 = vadd.f32 %v5443_v23, %v5404_v39  ;;  %v17338_v42 = vld [vmem:[#allocation14 + $0x8] sm:$0xf] }
0x2403   :  { %v17342_v43 = vrot.slane %v17338_v42, %v16848_v27 }
0x240f   :  { %v5483_v55 = vpop.f32.mrb[92].mxu0  ;;  %v5523_v57 = vpop.f32.mrb[96].mxu1 }
0x2410   :  { %v5484_v49 = vadd.f32 %v5483_v55, %v5444_v48  ;;  %v5485_v45 = vpop.f32.mrb[93].mxu0  ;;  %v5525_v58 = vpop.f32.mrb[97].mxu1 }
0x2411   :  { %v5486_v51 = vpop.f32.mrb[94].mxu0  ;;  %v5526_v46 = vpop.f32.mrb[98].mxu1 }
0x2412   :  { %v5524_v59 = vadd.f32 %v5523_v57, %v5484_v49  ;;  %v5487_v17 = vpop.f32.mrb[95].mxu0  ;;  %v5527_v56 = vpop.f32.mrb[99].mxu1 }
0x241f   :  { %v5563_v60 = vpop.f32.mrb[96].mxu0 }
0x2420   :  { %v5564_v54 = vadd.f32 %v5563_v60, %v5524_v59  ;;  %v5603_v47 = vpop.f32.mrb[100].mxu1  ;;  %v5565_v61 = vpop.f32.mrb[97].mxu0 }
0x2421   :  { %v5605_v30 = vpop.f32.mrb[101].mxu1  ;;  %v5566_v4 = vpop.f32.mrb[98].mxu0 }
0x2422   :  { %v5604_v1 = vadd.f32 %v5603_v47, %v5564_v54  ;;  %v5606_v5 = vpop.f32.mrb[102].mxu1  ;;  %v5567_v6 = vpop.f32.mrb[99].mxu0 }
0x2423   :  { %v5607_v7 = vpop.f32.mrb[103].mxu1 }
0x242f   :  { %v5643_v8 = vpop.f32.mrb[100].mxu0 }
0x2430   :  { %v5644_v21 = vadd.f32 %v5643_v8, %v5604_v1  ;;  %v5683_v9 = vpop.f32.mrb[104].mxu1  ;;  %v5645_v0 = vpop.f32.mrb[101].mxu0 }
0x2431   :  { %v5685_v26 = vpop.f32.mrb[105].mxu1  ;;  %v5646_v19 = vpop.f32.mrb[102].mxu0 }
0x2432   :  { %v5684_v2 = vadd.f32 %v5683_v9, %v5644_v21  ;;  %v5686_v12 = vpop.f32.mrb[106].mxu1  ;;  %v5647_v22 = vpop.f32.mrb[103].mxu0 }
0x2433   :  { %v5687_v10 = vpop.f32.mrb[107].mxu1 }
0x2434   :  { %v5689_v11 = vadd.f32 %v5684_v2, %v17238_v41  ;;  %v16107_v41 = vld [vmem:[#allocation11 + $0x48] sm:$0xff]  }
0x2435   :  { %15644 = vmatpush3.bf16.msra.mxu0 %v16107_v41 }
0x2436   :  { %v5690_v13 = vsel %vm1861_vm10, %v5689_v11, 0.0  ;;  %15654 = vmatprep.subr.mxu0 %v16502_v50 }
0x2437   :  { %5691 = vadd.xlane.f32.xlu1 %v5690_v13 }
0x24c4   :  { %v5692_v14 = vpop.xlane.xlu1 %5691 }
0x24c5   :  { %v5693_v16 = vmul.f32 0.03125, %v5692_v14 }
0x24c7   :  { %v5694_v18 = vsub.f32 %v5689_v11, %v5693_v16 }
0x24c9   :  { %v5695_v15 = vmul.f32 %v5694_v18, %v5694_v18 }
0x24cb   :  { %v5696_v35 = vsel %vm1861_vm10, %v5695_v15, 0.0 }
0x24cc   :  { %5697 = vadd.xlane.f32.xlu0 %v5696_v35 }
0x24e2   :  { %5704 = vrot.lane.b32.xlu0 %v17268_v25, %s16504_s4 }
0x2559   :  { %v5698_v24 = vpop.xlane.xlu0 %5697 }
0x255a   :  { %v5699_v38 = vmul.f32 0.03125, %v5698_v24 }
0x255c   :  { %v5700_v44 = vadd.f32 1e-05, %v5699_v38 }
0x255d   :  { %v5705_v39 = vpop.permute.xlu0 %5704 }
0x255e   :  { %16164 = vrsqrt.f32 %v5700_v44 }
0x2568   :  { %v16165_v23 = vpop.eup %16164 }
0x2569   :  { %v5702_v37 = vmul.f32 %v16165_v23, %v5694_v18 }
0x256b   :  { %v5703_v40 = vmul.f32 %v5702_v37, %v17268_v25 }
0x256d   :  { %v17331_v36 = vadd.f32 %v5705_v39, %v5703_v40 }
0x256f   :  { %v5789_v32 = vpack.c.bf16 %v17331_v36, %v17331_v36 }
0x2571   :  { %15646 = vmatmul.mubr.msk.bf16.vlgmr.msra.gmra.mrb[104].mxu0 %vm170_vm1, %v5789_v32 }
0x2572   :  { %15656 = vmatprep.mubr.msk.f32.mxu0 %vm16503_vm4, %v16502_v50 }
0x2644   :  { %v5839_v28 = vpop.f32.mrb[104].mxu0 }
0x2645   :  { %v5849_v48 = vadd.f32 %v17342_v43, %v5839_v28  ;;  %v15647_v25 = vpop.f32.mrb[105].mxu0  ;;  %v17391_v28 = vld [vmem:[#allocation11 + $0x58] sm:$0xff]  }
0x2646   :  { %v5842_v55 = vpop.f32.mrb[106].mxu0 }
0x2647   :  { %5852 = vrot.lane.b32.xlu1 %v5849_v48, %s16504_s4  ;;  %v15648_v57 = vpop.f32.mrb[107].mxu0  ;;  %v5850_v49 = vmul.f32 0.25, %v5849_v48 }
0x2649   :  { %6017 = vrot.lane.b32.xlu0 %v5850_v49, %s16506_s15 }
0x264b   :  { %6019 = vrot.lane.b32.xlu1 %v5849_v48, %s16505_s26 }
0x26b9   :  { %v5853_v45 = vpop.permute.xlu1 %5852 }
0x26ba   :  { %15650 = vmatpush3.xpose.msk.msra.mxu1 %vm1323_vm6, %v5853_v45  ;;  %v17413_v45 = vrot.slane %v17338_v42, %v16930_v31 }
0x26bb   :  { %15659 = vmatprep.subr.mxu1 %v16502_v50  ;;  %v6018_v51 = vpop.permute.xlu0 %6017 }
0x26bd   :  { %v6020_v58 = vpop.permute.xlu1 %6019  ;;  %15652 = vmatmul.mubr.msk.f32.vlgmr.msra.gmra.mrb[70].mxu1 %vm1323_vm6, %v5850_v49  ;;  %v17407_v49 = vrot.slane %v17338_v42, %v16921_v29 }
0x26be   :  { %15660 = vmatpush3.xpose.msk.msra.mxu1 %vm1323_vm6, %v6020_v58  ;;  %15661 = vmatprep.mubr.msk.f32.mxu1 %vm16503_vm4, %v16502_v50 }
0x26bf   :  { %15669 = vmatprep.subr.bf16.mxu1 %v16502_v50 }
0x26c1   :  { %15662 = vmatmul.mubr.msk.f32.vlgmr.msra.gmra.mrb[108].mxu1 %vm1323_vm6, %v6018_v51 }
0x26c2   :  { %15673 = vmatprep.mubr.msk.bf16.mxu1 %vm16503_vm4, %v16502_v50 }
0x2790   :  { %v5925_v46 = vpop.f32.mrb[70].mxu1 }
0x2791   :  { %v15653_v59 = vpop.f32.mrb[71].mxu1  ;;  %v5929_v17 = vsel %vm1544_vm7, %v5925_v46, -inf }
0x2792   :  { %5930 = vmax.xlane.f32.xlu1 %v5929_v17 }
0x2794   :  { %v6091_v56 = vpop.f32.mrb[108].mxu1 }
0x2795   :  { %v15663_v60 = vpop.f32.mrb[109].mxu1  ;;  %v6095_v54 = vsel %vm1544_vm7, %v6091_v56, -inf }
0x2796   :  { %6096 = vmax.xlane.f32.xlu0 %v6095_v54 }
0x281f   :  { %v5931_v47 = vpop.xlane.xlu1 %5930 }
0x2820   :  { %v5932_v61 = vsub.f32 %v5925_v46, %v5931_v47 }
0x2822   :  { %v5933_v30 = vmul.f32 1.442695, %v5932_v61 }
0x2823   :  { %v6097_v4 = vpop.xlane.xlu0 %6096 }
0x2824   :  { %16166 = vpow2.f32 %v5933_v30  ;;  %v6098_v1 = vsub.f32 %v6091_v56, %v6097_v4 }
0x2826   :  { %v6099_v5 = vmul.f32 1.442695, %v6098_v1 }
0x2828   :  { %16168 = vpow2.f32 %v6099_v5 }
0x282e   :  { %v16167_v6 = vpop.eup %16166 }
0x282f   :  { %v5935_v7 = vsel %vm1544_vm7, %v16167_v6, 0.0 }
0x2830   :  { %5936 = vadd.xlane.f32.xlu0 %v5935_v7 }
0x2832   :  { %v16169_v8 = vpop.eup %16168 }
0x2833   :  { %v6101_v21 = vsel %vm1544_vm7, %v16169_v8, 0.0 }
0x2834   :  { %6102 = vadd.xlane.f32.xlu1 %v6101_v21 }
0x2845   :  { %6106 = vrot.lane.b32.xlu1 %v5849_v48, %s16507_s14 }
0x2846   :  { %5940 = vrot.lane.b32.xlu0 %v5849_v48, %s16491_s3 }
0x2849   :  { %6189 = vrot.lane.b32.xlu1 %v17323_v33, %s16508_s19 }
0x284d   :  { %6191 = vrot.lane.b32.xlu1 %v16107_v41, %s16508_s19 }
0x28bd   :  { %v5937_v9 = vpop.xlane.xlu0 %5936 }
0x28be   :  { %16170 = vrcp.f32 %v5937_v9 }
0x28c1   :  { %v6103_v0 = vpop.xlane.xlu1 %6102  ;;  %v5941_v26 = vpop.permute.xlu0 %5940 }
0x28c2   :  { %16172 = vrcp.f32 %v6103_v0  ;;  %15655 = vmatpush3.msk.msra.mxu0 %vm1562_vm8, %v5941_v26 }
0x28c3   :  { %15664 = vmatprep.subr.mxu0 %v16502_v50 }
0x28c5   :  { %v6107_v12 = vpop.permute.xlu1 %6106 }
0x28c8   :  { %v16171_v19 = vpop.eup %16170 }
0x28c9   :  { %v5939_v2 = vmul.f32 %v16171_v19, %v16167_v6  ;;  %v6190_v11 = vpop.permute.xlu1 %6189 }
0x28ca   :  { %15670 = vmatpush3.bf16.msra.mxu1 %v6190_v11 }
0x28cb   :  { %15657 = vmatmul.mubr.msk.f32.vlgmr.msra.gmra.mrb[70].mxu0 %vm1558_vm9, %v5939_v2  ;;  %15671 = vmatprep.subr.bf16.mxu1 %v16502_v50 }
0x28cc   :  { %v16173_v22 = vpop.eup %16172  ;;  %15665 = vmatpush3.msk.msra.mxu0 %vm1562_vm8, %v6107_v12  ;;  %15666 = vmatprep.mubr.msk.f32.mxu0 %vm16503_vm4, %v16502_v50 }
0x28cd   :  { %v6105_v10 = vmul.f32 %v16173_v22, %v16169_v8  ;;  %15677 = vmatprep.subr.bf16.mxu0 %v16502_v50  ;;  %v6192_v13 = vpop.permute.xlu1 %6191 }
0x28ce   :  { %15672 = vmatpush3.bf16.msra.mxu1 %v6192_v13 }
0x28cf   :  { %15667 = vmatmul.mubr.msk.f32.vlgmr.msra.gmra.mrb[108].mxu0 %vm1558_vm9, %v6105_v10  ;;  %15685 = vmatprep.subr.bf16.mxu1 %v16502_v50 }
0x28d0   :  { %15681 = vmatprep.mubr.msk.bf16.mxu0 %vm16503_vm4, %v16502_v50 }
0x299e   :  { %v6013_v14 = vpop.f32.mrb[70].mxu0 }
0x299f   :  { %v15658_v16 = vpop.f32.mrb[71].mxu0 }
0x29a2   :  { %v6179_v18 = vpop.f32.mrb[108].mxu0 }
0x29a3   :  { %6184 = vrot.lane.b32.xlu0 %v6179_v18, %s16501_s2  ;;  %v15668_v15 = vpop.f32.mrb[109].mxu0 }
0x29a7   :  { %6196 = vrot.lane.b32.xlu0 %v17342_v43, %s16508_s19  ;;  %v17388_v43 = vld [vmem:[#allocation11 + $0x50] sm:$0xff]  }
0x29a8   :  { %15678 = vmatpush3.bf16.msra.mxu0 %v17388_v43 }
0x29a9   :  { %15679 = vmatprep.subr.bf16.mxu0 %v16502_v50 }
0x29ac   :  { %15680 = vmatpush3.bf16.msra.mxu0 %v17391_v28 }
0x29ad   :  { %15693 = vmatprep.subr.mxu0 %v16502_v50 }
0x29af   :  { %15682 = vmatmul.mubr.msk.bf16.vlgmr.msra.gmra.mrb[112].mxu0 %vm170_vm1, %v16913_v20 }
0x29b0   :  { %15695 = vmatprep.mubr.msk.f32.mxu0 %vm16503_vm4, %v16502_v50 }
0x2a15   :  { %v6185_v35 = vpop.permute.xlu0 %6184 }
0x2a16   :  { %v6187_v33 = vsel %vm1323_vm6, %v6013_v14, %v6185_v35 }
0x2a17   :  { %v6188_v41 = vpack.c.bf16 %v6187_v33, %v6187_v33 }
0x2a19   :  { %15674 = vmatmul.mubr.msk.bf16.vlgmr.msra.gmra.mrb[112].mxu1 %vm170_vm1, %v6188_v41  ;;  %v6197_v24 = vpop.permute.xlu0 %6196 }
0x2a1a   :  { %15689 = vmatprep.mubr.msk.bf16.mxu1 %vm16503_vm4, %v16502_v50  ;;  %15686 = vmatpush3.bf16.msra.mxu1 %v17388_v43 }
0x2a1b   :  { %15687 = vmatprep.subr.bf16.mxu1 %v16502_v50 }
0x2a1e   :  { %15688 = vmatpush3.bf16.msra.mxu1 %v17391_v28 }
0x2a1f   :  { %15703 = vmatprep.subr.mxu1 %v16502_v50 }
0x2a82   :  { %v6312_v58 = vpop.f32.mrb[112].mxu0 }
0x2a83   :  { %v6367_v51 = vadd.f32 %v17413_v45, %v6312_v58  ;;  %v15683_v46 = vpop.f32.mrb[113].mxu0 }
0x2a84   :  { %v6315_v59 = vpop.f32.mrb[114].mxu0 }
0x2a85   :  { %v15684_v17 = vpop.f32.mrb[115].mxu0 }
0x2aec   :  { %v6236_v38 = vpop.f32.mrb[112].mxu1 }
0x2aed   :  { %v6237_v44 = vadd.f32 %v6236_v38, %v6197_v24  ;;  %v15675_v23 = vpop.f32.mrb[113].mxu1 }
0x2aee   :  { %v6239_v37 = vpop.f32.mrb[114].mxu1 }
0x2aef   :  { %v15676_v39 = vpop.f32.mrb[115].mxu1  ;;  %v6242_v40 = vadd.f32 %v6237_v44, %v17331_v36 }
0x2af1   :  { %v6243_v32 = vsel %vm1861_vm10, %v6242_v40, 0.0 }
0x2af2   :  { %6244 = vadd.xlane.f32.xlu1 %v6243_v32 }
0x2b03   :  { %6370 = vrot.lane.b32.xlu1 %v6367_v51, %s16504_s4 }
0x2b07   :  { %6537 = vrot.lane.b32.xlu1 %v6367_v51, %s16505_s26 }
0x2b7f   :  { %v6245_v36 = vpop.xlane.xlu1 %6244 }
0x2b80   :  { %v6246_v48 = vmul.f32 0.03125, %v6245_v36 }
0x2b82   :  { %v6247_v25 = vsub.f32 %v6242_v40, %v6246_v48 }
0x2b83   :  { %v6371_v6 = vpop.permute.xlu1 %6370 }
0x2b84   :  { %v6248_v55 = vmul.f32 %v6247_v25, %v6247_v25  ;;  %15694 = vmatpush3.xpose.msk.msra.mxu0 %vm1323_vm6, %v6371_v6 }
0x2b85   :  { %15698 = vmatprep.subr.mxu0 %v16502_v50 }
0x2b86   :  { %v6249_v57 = vsel %vm1861_vm10, %v6248_v55, 0.0 }
0x2b87   :  { %6250 = vadd.xlane.f32.xlu0 %v6249_v57  ;;  %v6538_v7 = vpop.permute.xlu1 %6537 }
0x2b9d   :  { %6262 = vrot.lane.b32.xlu0 %v17407_v49, %s16504_s4 }
0x2c14   :  { %v6251_v56 = vpop.xlane.xlu0 %6250 }
0x2c15   :  { %v6252_v60 = vmul.f32 0.03125, %v6251_v56 }
0x2c17   :  { %v6253_v54 = vadd.f32 1e-05, %v6252_v60 }
0x2c18   :  { %v6263_v30 = vpop.permute.xlu0 %6262 }
0x2c19   :  { %16174 = vrsqrt.f32 %v6253_v54 }
0x2c23   :  { %v16175_v47 = vpop.eup %16174 }
0x2c24   :  { %v6255_v61 = vmul.f32 %v16175_v47, %v6247_v25 }
0x2c26   :  { %v6260_v4 = vmul.f32 %v17407_v49, %v6255_v61 }
0x2c28   :  { %v17419_v1 = vadd.f32 %v6263_v30, %v6260_v4 }
0x2c2a   :  { %v6318_v5 = vpack.c.bf16 %v17419_v1, %v17419_v1 }
0x2c2c   :  { %15690 = vmatmul.mubr.msk.bf16.vlgmr.msra.gmra.mrb[116].mxu1 %vm170_vm1, %v6318_v5 }
0x2c2d   :  { %15705 = vmatprep.mubr.msk.f32.mxu1 %vm16503_vm4, %v16502_v50  ;;  %15704 = vmatpush3.xpose.msk.msra.mxu1 %vm1323_vm6, %v6538_v7 }
0x2c2e   :  { %15713 = vmatprep.subr.bf16.mxu1 %v16502_v50 }
0x2cff   :  { %v6356_v8 = vpop.f32.mrb[116].mxu1 }
0x2d00   :  { %v6366_v21 = vadd.f32 %v17413_v45, %v6356_v8  ;;  %v15691_v9 = vpop.f32.mrb[117].mxu1 }
0x2d01   :  { %v6359_v0 = vpop.f32.mrb[118].mxu1 }
0x2d02   :  { %v6368_v26 = vmul.f32 0.25, %v6366_v21  ;;  %v15692_v19 = vpop.f32.mrb[119].mxu1  ;;  %v5721_v0 = vld [vmem:[#allocation13 + $0x400] sm:$0xff] }
0x2d03   :  { %v5722_v19 = vld [vmem:[#allocation13 + $0x408] sm:$0xff] }
0x2d04   :  { %6535 = vrot.lane.b32.xlu0 %v6368_v26, %s16506_s15  ;;  %15696 = vmatmul.mubr.msk.f32.vlgmr.msra.gmra.mrb[110].mxu0 %vm1323_vm6, %v6368_v26  ;;  %v5729_v26 = vld [vmem:[#allocation13 + $0x440] sm:$0xff] }
0x2d05   :  { %15700 = vmatprep.mubr.msk.f32.mxu0 %vm16503_vm4, %v16502_v50 }
0x2d76   :  { %v6536_v2 = vpop.permute.xlu0 %6535 }
0x2d77   :  { %15706 = vmatmul.mubr.msk.f32.vlgmr.msra.gmra.mrb[110].mxu1 %vm1323_vm6, %v6536_v2  ;;  %v14728_v2 = vcombine.low %v5721_v0, %v5729_v26 }
0x2d78   :  { %15717 = vmatprep.mubr.msk.bf16.mxu1 %vm16503_vm4, %v16502_v50 }
0x2dd7   :  { %v6443_v12 = vpop.f32.mrb[110].mxu0 }
0x2dd8   :  { %v15697_v22 = vpop.f32.mrb[111].mxu0  ;;  %v6447_v10 = vsel %vm2070_vm11, %v6443_v12, -inf }
0x2dd9   :  { %6448 = vmax.xlane.f32.xlu1 %v6447_v10  ;;  %v5730_v22 = vld [vmem:[#allocation13 + $0x448] sm:$0xff] }
0x2dda   :  { %v14731_v10 = vcombine.high %v5722_v19, %v5730_v22 }
0x2e4a   :  { %v6609_v11 = vpop.f32.mrb[110].mxu1 }
0x2e4b   :  { %v15707_v13 = vpop.f32.mrb[111].mxu1  ;;  %v6613_v14 = vsel %vm2070_vm11, %v6609_v11, -inf }
0x2e4c   :  { %6614 = vmax.xlane.f32.xlu0 %v6613_v14  ;;  %v5745_v13 = vld [vmem:[#allocation13 + $0x4c0] sm:$0xff]  ;;  %v5738_v14 = vld [vmem:[#allocation13 + $0x488] sm:$0xff] }
0x2e66   :  { %v6449_v16 = vpop.xlane.xlu1 %6448 }
0x2e67   :  { %v6450_v18 = vsub.f32 %v6443_v12, %v6449_v16  ;;  %v14729_v12 = vcombine.high %v5721_v0, %v5729_v26 }
0x2e69   :  { %v6451_v15 = vmul.f32 1.442695, %v6450_v18  ;;  %v5746_v18 = vld [vmem:[#allocation13 + $0x4c8] sm:$0xff] }
0x2e6b   :  { %16176 = vpow2.f32 %v6451_v15 }
0x2e75   :  { %v16177_v35 = vpop.eup %16176 }
0x2e76   :  { %v6453_v33 = vsel %vm2070_vm11, %v16177_v35, 0.0 }
0x2e77   :  { %6454 = vadd.xlane.f32.xlu0 %v6453_v33  ;;  %v14747_v33 = vcombine.high %v5738_v14, %v5746_v18 }
0x2e8d   :  { %6458 = vrot.lane.b32.xlu0 %v6367_v51, %s16491_s3 }
0x2ed9   :  { %v6615_v41 = vpop.xlane.xlu0 %6614 }
0x2eda   :  { %v6616_v24 = vsub.f32 %v6609_v11, %v6615_v41  ;;  %v5737_v11 = vld [vmem:[#allocation13 + $0x480] sm:$0xff]  ;;  %v5723_v41 = vld [vmem:[#allocation13 + $0x410] sm:$0xff] }
0x2edb   :  { %v14745_v16 = vcombine.high %v5737_v11, %v5745_v13  ;;  %v14744_v15 = vcombine.low %v5737_v11, %v5745_v13 }
0x2edc   :  { %v6617_v38 = vmul.f32 1.442695, %v6616_v24  ;;  %v5731_v24 = vld [vmem:[#allocation13 + $0x450] sm:$0xff] }
0x2ede   :  { %16178 = vpow2.f32 %v6617_v38  ;;  %v5724_v38 = vld [vmem:[#allocation13 + $0x418] sm:$0xff] }
0x2ee8   :  { %v16179_v44 = vpop.eup %16178 }
0x2ee9   :  { %v6619_v23 = vsel %vm2070_vm11, %v16179_v44, 0.0 }
0x2eea   :  { %6620 = vadd.xlane.f32.xlu1 %v6619_v23  ;;  %v5732_v23 = vld [vmem:[#allocation13 + $0x458] sm:$0xff] }
0x2efb   :  { %6624 = vrot.lane.b32.xlu1 %v6367_v51, %s16507_s14 }
0x2eff   :  { %6707 = vrot.lane.b32.xlu1 %v17388_v43, %s16508_s19 }
0x2f03   :  { %6709 = vrot.lane.b32.xlu1 %v17391_v28, %s16508_s19 }
0x2f04   :  { %v6455_v37 = vpop.xlane.xlu0 %6454 }
0x2f05   :  { %16180 = vrcp.f32 %v6455_v37  ;;  %v14734_v37 = vcombine.low %v5724_v38, %v5732_v23 }
0x2f08   :  { %v6459_v39 = vpop.permute.xlu0 %6458 }
0x2f09   :  { %15699 = vmatpush3.msk.msra.mxu0 %vm2088_vm12, %v6459_v39  ;;  %v14735_v39 = vcombine.high %v5724_v38, %v5732_v23  ;;  %v5762_v23 = vld [vmem:[#allocation13 + $0x540] sm:$0xff] }
0x2f0a   :  { %15708 = vmatprep.subr.mxu0 %v16502_v50 }
0x2f0f   :  { %v16181_v40 = vpop.eup %16180 }
0x2f10   :  { %v6457_v32 = vmul.f32 %v16181_v40, %v16177_v35  ;;  %v14746_v35 = vcombine.low %v5738_v14, %v5746_v18  ;;  %v5743_v18 = vld [vmem:[#allocation13 + $0x4b0] sm:$0xff] }
0x2f12   :  { %15701 = vmatmul.mubr.msk.f32.vlgmr.msra.gmra.mrb[116].mxu0 %vm2084_vm13, %v6457_v32 }
0x2f13   :  { %15710 = vmatprep.mubr.msk.f32.mxu0 %vm16503_vm4, %v16502_v50 }
0x2f77   :  { %v6621_v36 = vpop.xlane.xlu1 %6620 }
0x2f78   :  { %16182 = vrcp.f32 %v6621_v36 }
0x2f7b   :  { %v6625_v43 = vpop.permute.xlu1 %6624 }
0x2f7c   :  { %15709 = vmatpush3.msk.msra.mxu0 %vm2088_vm12, %v6625_v43 }
0x2f7d   :  { %7028 = vmatprep.subr.bf16.mxu0 %v14729_v12  ;;  %v5727_v12 = vld [vmem:[#allocation13 + $0x430] sm:$0xff] }
0x2f7f   :  { %v6708_v25 = vpop.permute.xlu1 %6707 }
0x2f80   :  { %15714 = vmatpush3.bf16.msra.mxu1 %v6708_v25 }
0x2f81   :  { %15715 = vmatprep.subr.bf16.mxu1 %v16502_v50 }
0x2f82   :  { %v16183_v28 = vpop.eup %16182 }
0x2f83   :  { %v6623_v48 = vmul.f32 %v16183_v28, %v16179_v44  ;;  %v6710_v55 = vpop.permute.xlu1 %6709  ;;  %v14732_v44 = vcombine.low %v5723_v41, %v5731_v24 }
0x2f84   :  { %15716 = vmatpush3.bf16.msra.mxu1 %v6710_v55 }
0x2f85   :  { %15711 = vmatmul.mubr.msk.f32.vlgmr.msra.gmra.mrb[118].mxu0 %vm2084_vm13, %v6623_v48  ;;  %7069 = vmatprep.subr.bf16.mxu1 %v14731_v10  ;;  %v5736_v10 = vld [vmem:[#allocation13 + $0x478] sm:$0xff] }
0x2f86   :  { %7060 = vmatprep.mubr.bf16.mxu0 %v16509_v3  ;;  %7029 = vmatpush1.bf16.msra.mxu0 %v14728_v2 }
0x2f87   :  { %7030 = vmatprep.subr.bf16.mxu0 %v14745_v16 }
0x2f8a   :  { %7031 = vmatpush1.bf16.msra.mxu0 %v14744_v15  ;;  %v5751_v15 = vld [vmem:[#allocation13 + $0x4f0] sm:$0xff] }
0x2f8b   :  { %v14757_v38 = vcombine.high %v5743_v18, %v5751_v15 }
0x2fe5   :  { %v6531_v57 = vpop.f32.mrb[116].mxu0 }
0x2fe6   :  { %v15702_v58 = vpop.f32.mrb[117].mxu0 }
0x2fe7   :  { %v5747_v58 = vld [vmem:[#allocation13 + $0x4d0] sm:$0xff] }
0x3058   :  { %v6697_v51 = vpop.f32.mrb[118].mxu0 }
0x3059   :  { %6702 = vrot.lane.b32.xlu0 %v6697_v51, %s16501_s2  ;;  %v15712_v46 = vpop.f32.mrb[119].mxu0  ;;  %v5740_v51 = vld [vmem:[#allocation13 + $0x498] sm:$0xff] }
0x305a   :  { %v5748_v46 = vld [vmem:[#allocation13 + $0x4d8] sm:$0xff] }
0x305d   :  { %6714 = vrot.lane.b32.xlu0 %v17413_v45, %s16508_s19 }
0x30cb   :  { %v6703_v59 = vpop.permute.xlu0 %6702 }
0x30cc   :  { %v6705_v17 = vsel %vm1323_vm6, %v6531_v57, %v6703_v59  ;;  %v5739_v57 = vld [vmem:[#allocation13 + $0x490] sm:$0xff] }
0x30cd   :  { %v6706_v56 = vpack.c.bf16 %v6705_v17, %v6705_v17 }
0x30cf   :  { %15718 = vmatmul.mubr.msk.bf16.vlgmr.msra.gmra.mrb[120].mxu1 %vm170_vm1, %v6706_v56  ;;  %v6715_v60 = vpop.permute.xlu0 %6714  ;;  %v14749_v56 = vcombine.high %v5739_v57, %v5747_v58 }
0x30d0   :  { %7101 = vmatprep.mubr.bf16.mxu1 %v16509_v3 }
0x31a2   :  { %v6754_v54 = vpop.f32.mrb[120].mxu1 }
0x31a3   :  { %v6755_v47 = vadd.f32 %v6754_v54, %v6715_v60  ;;  %v15719_v61 = vpop.f32.mrb[121].mxu1  ;;  %v14751_v60 = vcombine.high %v5740_v51, %v5748_v46  ;;  %v5725_v54 = vld [vmem:[#allocation13 + $0x420] sm:$0xff] }
0x31a4   :  { %v6757_v30 = vpop.f32.mrb[122].mxu1  ;;  %v5726_v61 = vld [vmem:[#allocation13 + $0x428] sm:$0xff] }
0x31a5   :  { %v15720_v4 = vpop.f32.mrb[123].mxu1  ;;  %v6760_v5 = vadd.f32 %v6755_v47, %v17419_v1  ;;  %v14730_v1 = vcombine.low %v5722_v19, %v5730_v22  ;;  %v5733_v47 = vld [vmem:[#allocation13 + $0x460] sm:$0xff]  ;;  %v5734_v30 = vld [vmem:[#allocation13 + $0x468] sm:$0xff]  ;;  %v5735_v22 = vld [vmem:[#allocation13 + $0x470] sm:$0xff] }
0x31a6   :  { %v14748_v4 = vcombine.low %v5739_v57, %v5747_v58  ;;  %v14736_v0 = vcombine.low %v5725_v54, %v5733_v47  ;;  %v14738_v26 = vcombine.low %v5726_v61, %v5734_v30  ;;  %v14741_v14 = vcombine.high %v5727_v12, %v5735_v22  ;;  %v5771_v57 = vld [vmem:[#allocation13 + $0x588] sm:$0xff] }
0x31a7   :  { %v6761_v6 = vsel %vm1861_vm10, %v6760_v5, 0.0  ;;  %7070 = vmatpush1.bf16.msra.mxu1 %v14730_v1  ;;  %v5728_v1 = vld [vmem:[#allocation13 + $0x438] sm:$0xff] }
0x31a8   :  { %6762 = vadd.xlane.f32.xlu1 %v6761_v6  ;;  %7071 = vmatprep.subr.bf16.mxu1 %v14747_v33  ;;  %v14737_v6 = vcombine.high %v5725_v54, %v5733_v47  ;;  %v14743_v16 = vcombine.high %v5728_v1, %v5736_v10  ;;  %v5752_v33 = vld [vmem:[#allocation13 + $0x4f8] sm:$0xff]  ;;  %v5756_v54 = vld [vmem:[#allocation13 + $0x510] sm:$0xff] }
0x31a9   :  { %v5764_v47 = vld [vmem:[#allocation13 + $0x550] sm:$0xff] }
0x31ab   :  { %7072 = vmatpush1.bf16.msra.mxu1 %v14746_v35  ;;  %v5744_v35 = vld [vmem:[#allocation13 + $0x4b8] sm:$0xff] }
0x31ac   :  { %7151 = vmatprep.subr.bf16.mxu1 %v14735_v39  ;;  %v5763_v39 = vld [vmem:[#allocation13 + $0x548] sm:$0xff] }
0x31b9   :  { %6778 = vrot.lane.b32.xlu1 %v17407_v49, %s16508_s19 }
0x3235   :  { %v6763_v45 = vpop.xlane.xlu1 %6762 }
0x3236   :  { %v6764_v7 = vmul.f32 0.03125, %v6763_v45  ;;  %v14739_v45 = vcombine.high %v5726_v61, %v5734_v30  ;;  %v5757_v61 = vld [vmem:[#allocation13 + $0x518] sm:$0xff] }
0x3237   :  { %v5765_v30 = vld [vmem:[#allocation13 + $0x558] sm:$0xff] }
0x3238   :  { %v6765_v8 = vsub.f32 %v6760_v5, %v6764_v7  ;;  %v14750_v5 = vcombine.low %v5740_v51, %v5748_v46  ;;  %v5741_v7 = vld [vmem:[#allocation13 + $0x4a0] sm:$0xff]  ;;  %v5779_v51 = vld [vmem:[#allocation13 + $0x5c8] sm:$0xff] }
0x3239   :  { %v6779_v25 = vpop.permute.xlu1 %6778 }
0x323a   :  { %v6766_v21 = vmul.f32 %v6765_v8, %v6765_v8 }
0x323c   :  { %v6767_v9 = vsel %vm1861_vm10, %v6766_v21, 0.0  ;;  %v5742_v21 = vld [vmem:[#allocation13 + $0x4a8] sm:$0xff] }
0x323d   :  { %6768 = vadd.xlane.f32.xlu0 %v6767_v9  ;;  %v5750_v9 = vld [vmem:[#allocation13 + $0x4e8] sm:$0xff] }
0x323e   :  { %v14755_v2 = vcombine.high %v5742_v21, %v5750_v9  ;;  %v14754_v13 = vcombine.low %v5742_v21, %v5750_v9 }
0x3253   :  { %6774 = vrot.lane.b32.xlu0 %v17407_v49, %s16491_s3  ;;  %v14733_v49 = vcombine.high %v5723_v41, %v5731_v24  ;;  %v14740_v41 = vcombine.low %v5727_v12, %v5735_v22  ;;  %v14742_v24 = vcombine.low %v5728_v1, %v5736_v10 }
0x3255   :  { %7110 = vmatprep.subr.bf16.mxu0 %v14733_v49  ;;  %v5754_v49 = vld [vmem:[#allocation13 + $0x500] sm:$0xff] }
0x32ca   :  { %v6769_v40 = vpop.xlane.xlu0 %6768 }
0x32cb   :  { %v6770_v32 = vmul.f32 0.03125, %v6769_v40  ;;  %v14756_v40 = vcombine.low %v5743_v18, %v5751_v15 }
0x32cd   :  { %v6771_v36 = vadd.f32 1e-05, %v6770_v32  ;;  %v14758_v32 = vcombine.low %v5744_v35, %v5752_v33 }
0x32ce   :  { %v6775_v28 = vpop.permute.xlu0 %6774 }
0x32cf   :  { %16184 = vrsqrt.f32 %v6771_v36  ;;  %v14769_v36 = vcombine.high %v5754_v49, %v5762_v23 }
0x32d9   :  { %v16185_v43 = vpop.eup %16184 }
0x32da   :  { %v6773_v48 = vmul.f32 %v16185_v43, %v6765_v8  ;;  %v5749_v8 = vld [vmem:[#allocation13 + $0x4e0] sm:$0xff] }
0x32db   :  { %v14753_v19 = vcombine.high %v5741_v7, %v5749_v8  ;;  %v14752_v11 = vcombine.low %v5741_v7, %v5749_v8  ;;  %v17504_v7 = vld [vmem:[#allocation16 + $0x20] sm:$0xff] }
0x32dc   :  { %v6777_v55 = vmul.f32 %v6775_v28, %v6773_v48  ;;  %v14768_v28 = vcombine.low %v5754_v49, %v5762_v23  ;;  %v6788_v8 = vrot.slane %v17504_v7, %v16848_v27  ;;  %v6796_v21 = vrot.slane %v17504_v7, %v16921_v29 }
0x32dd   :  { %v6792_v9 = vrot.slane %v17504_v7, %v16930_v31 }
0x32de   :  { %v17470_v59 = vadd.f32 %v6779_v25, %v6777_v55  ;;  %v5770_v25 = vld [vmem:[#allocation13 + $0x580] sm:$0xff] }
0x32df   :  { %v5778_v55 = vld [vmem:[#allocation13 + $0x5c0] sm:$0xff] }
0x32e0   :  { %v17474_v17 = vpack.c.bf16 %v17470_v59, %v17470_v59  ;;  %v14785_v58 = vcombine.high %v5770_v25, %v5778_v55  ;;  %v14784_v46 = vcombine.low %v5770_v25, %v5778_v55 }
0x32e2   :  { %14760 = vmatmul.mubr.msk.bf16.vlgmr.msra.gmra.mrb[120].mxu0 %vm170_vm1, %v17474_v17  ;;  %14761 = vmatmul.mubr.msk.bf16.vlgmr.msra.gmra.mrb[124].mxu1 %vm170_vm1, %v17474_v17 }
0x32e3   :  { %7111 = vmatpush1.bf16.msra.mxu0 %v14732_v44  ;;  %7152 = vmatpush1.bf16.msra.mxu1 %v14734_v37  ;;  %v14759_v44 = vcombine.high %v5744_v35, %v5752_v33  ;;  %v5755_v37 = vld [vmem:[#allocation13 + $0x508] sm:$0xff]  ;;  %v5772_v35 = vld [vmem:[#allocation13 + $0x590] sm:$0xff] }
0x32e4   :  { %7112 = vmatprep.subr.bf16.mxu0 %v14749_v56  ;;  %7153 = vmatprep.subr.bf16.mxu1 %v14751_v60  ;;  %v14771_v43 = vcombine.high %v5755_v37, %v5763_v39  ;;  %v14770_v48 = vcombine.low %v5755_v37, %v5763_v39  ;;  %v14786_v56 = vcombine.low %v5771_v57, %v5779_v51 }
0x32e5   :  { %7142 = vmatprep.mubr.bf16.mxu0 %v16509_v3  ;;  %7183 = vmatprep.mubr.bf16.mxu1 %v16509_v3  ;;  %v14787_v60 = vcombine.high %v5771_v57, %v5779_v51  ;;  %v6808_v37 = vrot.slane %v17504_v7, %v17039_v52  ;;  %v6816_v39 = vrot.slane %v17504_v7, %v17042_v53 }
0x32e7   :  { %7113 = vmatpush1.bf16.msra.mxu0 %v14748_v4  ;;  %7154 = vmatpush1.bf16.msra.mxu1 %v14750_v5  ;;  %v14772_v4 = vcombine.low %v5756_v54, %v5764_v47  ;;  %v14774_v5 = vcombine.low %v5757_v61, %v5765_v30 }
0x32e8   :  { %7192 = vmatprep.subr.bf16.mxu0 %v14737_v6  ;;  %7233 = vmatprep.subr.bf16.mxu1 %v14739_v45  ;;  %v14775_v6 = vcombine.high %v5757_v61, %v5765_v30  ;;  %v17500_v45 = vrot.slane %v17338_v42, %v17020_v34  ;;  %v17522_v61 = vld [vmem:[#allocation16 + $0x28] sm:$0xff] }
0x32ea   :  { %14762 = vmatmul.mubr.msk.bf16.vlgmr.msra.gmra.mrb[124].mxu0 %vm170_vm1, %v17474_v17  ;;  %14763 = vmatmul.mubr.msk.bf16.vlgmr.msra.gmra.mrb[128].mxu1 %vm170_vm1, %v17474_v17 }
0x32eb   :  { %7193 = vmatpush1.bf16.msra.mxu0 %v14736_v0  ;;  %7234 = vmatpush1.bf16.msra.mxu1 %v14738_v26  ;;  %v6800_v0 = vrot.slane %v17504_v7, %v17020_v34 }
0x32ec   :  { %7194 = vmatprep.subr.bf16.mxu0 %v14753_v19  ;;  %7235 = vmatprep.subr.bf16.mxu1 %v14755_v2 }
0x32ed   :  { %7224 = vmatprep.mubr.bf16.mxu0 %v16509_v3  ;;  %7265 = vmatprep.mubr.bf16.mxu1 %v16509_v3 }
0x32ee   :  { %7553 = vrot.lane.b32.xlu1 %v17500_v45, %s16491_s3 }
0x32ef   :  { %7195 = vmatpush1.bf16.msra.mxu0 %v14752_v11  ;;  %7236 = vmatpush1.bf16.msra.mxu1 %v14754_v13 }
0x32f0   :  { %7274 = vmatprep.subr.bf16.mxu0 %v14741_v14  ;;  %7315 = vmatprep.subr.bf16.mxu1 %v14743_v16 }
0x32f2   :  { %14764 = vmatmul.mubr.msk.bf16.vlgmr.msra.gmra.mrb[128].mxu0 %vm170_vm1, %v17474_v17  ;;  %14765 = vmatmul.mubr.msk.bf16.vlgmr.msra.gmra.mrb[132].mxu1 %vm170_vm1, %v17474_v17 }
0x32f3   :  { %7275 = vmatpush1.bf16.msra.mxu0 %v14740_v41  ;;  %7316 = vmatpush1.bf16.msra.mxu1 %v14742_v24  ;;  %v5780_v24 = vld [vmem:[#allocation13 + $0x5d0] sm:$0xff] }
0x32f4   :  { %7276 = vmatprep.subr.bf16.mxu0 %v14757_v38  ;;  %7317 = vmatprep.subr.bf16.mxu1 %v14759_v44  ;;  %v5773_v38 = vld [vmem:[#allocation13 + $0x598] sm:$0xff] }
0x32f5   :  { %7306 = vmatprep.mubr.bf16.mxu0 %v16509_v3  ;;  %7347 = vmatprep.mubr.bf16.mxu1 %v16509_v3  ;;  %v5781_v44 = vld [vmem:[#allocation13 + $0x5d8] sm:$0xff] }
0x32f7   :  { %7277 = vmatpush1.bf16.msra.mxu0 %v14756_v40  ;;  %7318 = vmatpush1.bf16.msra.mxu1 %v14758_v32 }
0x32f8   :  { %7556 = vmatprep.subr.bf16.mxu0 %v14769_v36  ;;  %7596 = vmatprep.subr.bf16.mxu1 %v14771_v43  ;;  %v14789_v36 = vcombine.high %v5772_v35, %v5780_v24  ;;  %v14791_v43 = vcombine.high %v5773_v38, %v5781_v44 }
0x32fa   :  { %14766 = vmatmul.mubr.msk.bf16.vlgmr.msra.gmra.mrb[132].mxu0 %vm170_vm1, %v17474_v17  ;;  %14767 = vmatmul.mubr.msk.bf16.vlgmr.msra.gmra.mrb[136].mxu1 %vm170_vm1, %v17474_v17  ;;  %v14773_v17 = vcombine.high %v5756_v54, %v5764_v47 }
0x3300   :  { %7557 = vmatpush1.bf16.xpose.msra.mxu0 %v14768_v28  ;;  %7597 = vmatpush1.bf16.xpose.msra.mxu1 %v14770_v48 }
0x3301   :  { %7558 = vmatprep.subr.bf16.mxu0 %v14785_v58  ;;  %7598 = vmatprep.subr.bf16.mxu1 %v14787_v60  ;;  %v6812_v60 = vrot.slane %v17504_v7, %v17048_v63 }
0x3308   :  { %7559 = vmatpush1.bf16.xpose.msra.mxu0 %v14784_v46  ;;  %7599 = vmatpush1.bf16.xpose.msra.mxu1 %v14786_v56  ;;  %v6804_v56 = vrot.slane %v17504_v7, %v17045_v62  ;;  %v6832_v7 = vrot.slane %v17522_v61, %v17020_v34 }
0x3309   :  { %7636 = vmatprep.subr.bf16.mxu0 %v14773_v17  ;;  %7676 = vmatprep.subr.bf16.mxu1 %v14775_v6  ;;  %v5758_v17 = vld [vmem:[#allocation13 + $0x520] sm:$0xff] }
0x33b5   :  { %v7062_v26 = vpop.f32.mrb[120].mxu0  ;;  %v7103_v42 = vpop.f32.mrb[124].mxu1 }
0x33b6   :  { %v7063_v19 = vadd.f32 %v7062_v26, %v6788_v8  ;;  %v7104_v2 = vadd.f32 %v7103_v42, %v6796_v21  ;;  %v7064_v12 = vpop.f32.mrb[121].mxu0  ;;  %v7105_v22 = vpop.f32.mrb[125].mxu1  ;;  %v5766_v8 = vld [vmem:[#allocation13 + $0x560] sm:$0xff]  ;;  %v14788_v21 = vcombine.low %v5772_v35, %v5780_v24  ;;  %v6824_v42 = vrot.slane %v17522_v61, %v16930_v31 }
0x33b7   :  { %v7065_v1 = vadd.f32 %v7064_v12, %v6792_v9  ;;  %v7106_v10 = vadd.f32 %v7105_v22, %v6800_v0  ;;  %v7066_v11 = vpop.f32.mrb[122].mxu0  ;;  %v7107_v13 = vpop.f32.mrb[126].mxu1  ;;  %v14790_v9 = vcombine.low %v5773_v38, %v5781_v44  ;;  %v14777_v12 = vcombine.high %v5758_v17, %v5766_v8 }
0x33b8   :  { %v7356_v14 = vmax.f32 %v7063_v19, 0.0  ;;  %v7358_v16 = vmax.f32 %v7104_v2, 0.0  ;;  %v7067_v18 = vpop.f32.mrb[123].mxu0  ;;  %v7108_v15 = vpop.f32.mrb[127].mxu1 }
0x33b9   :  { %v7357_v33 = vmax.f32 %v7065_v1, 0.0  ;;  %v7359_v41 = vmax.f32 %v7106_v10, 0.0 }
0x33ba   :  { %v7372_v40 = vpack.c.bf16 %v7356_v14, %v7356_v14  ;;  %v7374_v32 = vpack.c.bf16 %v7358_v16, %v7358_v16 }
0x33bb   :  { %v7373_v49 = vpack.c.bf16 %v7357_v33, %v7357_v33  ;;  %v7375_v23 = vpack.c.bf16 %v7359_v41, %v7359_v41 }
0x33bd   :  { %v7144_v28 = vpop.f32.mrb[124].mxu0  ;;  %v7185_v48 = vpop.f32.mrb[128].mxu1  ;;  %7588 = vmatprep.mubr.bf16.mxu0 %v7373_v49  ;;  %7628 = vmatprep.mubr.bf16.mxu1 %v7375_v23  ;;  %v5774_v49 = vld [vmem:[#allocation13 + $0x5a0] sm:$0xff] }
0x33be   :  { %v7146_v25 = vpop.f32.mrb[125].mxu0  ;;  %v7187_v55 = vpop.f32.mrb[129].mxu1  ;;  %7589 = vmatmul.mubr.bf16.vlgmr.msra.gmra.mrb[136].mxu0 %v7372_v40  ;;  %7629 = vmatmul.mubr.bf16.vlgmr.msra.gmra.mrb[140].mxu1 %v7374_v32  ;;  %v7145_v19 = vadd.f32 %v7144_v28, %v6804_v56  ;;  %v7186_v2 = vadd.f32 %v7185_v48, %v6812_v60  ;;  %v5782_v23 = vld [vmem:[#allocation13 + $0x5e0] sm:$0xff]  ;;  %v14776_v32 = vcombine.low %v5758_v17, %v5766_v8  ;;  %v5768_v8 = vld [vmem:[#allocation13 + $0x570] sm:$0xff] }
0x33bf   :  { %v7147_v57 = vadd.f32 %v7146_v25, %v6808_v37  ;;  %v7188_v58 = vadd.f32 %v7187_v55, %v6816_v39  ;;  %7637 = vmatpush1.bf16.xpose.msra.mxu0 %v14772_v4  ;;  %7677 = vmatpush1.bf16.xpose.msra.mxu1 %v14774_v5  ;;  %v7148_v51 = vpop.f32.mrb[126].mxu0  ;;  %v7189_v46 = vpop.f32.mrb[130].mxu1  ;;  %v5759_v4 = vld [vmem:[#allocation13 + $0x528] sm:$0xff] }
0x33c0   :  { %v7149_v54 = vpop.f32.mrb[127].mxu0  ;;  %v7190_v47 = vpop.f32.mrb[131].mxu1  ;;  %7638 = vmatprep.subr.bf16.mxu0 %v14789_v36  ;;  %7678 = vmatprep.subr.bf16.mxu1 %v14791_v43  ;;  %v5767_v5 = vld [vmem:[#allocation13 + $0x568] sm:$0xff]  ;;  %v7360_v35 = vmax.f32 %v7145_v19, 0.0  ;;  %v7362_v33 = vmax.f32 %v7186_v2, 0.0 }
0x33c1   :  { %v7361_v30 = vmax.f32 %v7147_v57, 0.0  ;;  %v7363_v6 = vmax.f32 %v7188_v58, 0.0  ;;  %v14779_v22 = vcombine.high %v5759_v4, %v5767_v5  ;;  %v5775_v37 = vld [vmem:[#allocation13 + $0x5a8] sm:$0xff]  ;;  %v14778_v48 = vcombine.low %v5759_v4, %v5767_v5  ;;  %v5761_v5 = vld [vmem:[#allocation13 + $0x538] sm:$0xff] }
0x33c2   :  { %v5783_v39 = vld [vmem:[#allocation13 + $0x5e8] sm:$0xff]  ;;  %v7376_v36 = vpack.c.bf16 %v7360_v35, %v7360_v35  ;;  %v7378_v43 = vpack.c.bf16 %v7362_v33, %v7362_v33  ;;  %v14793_v57 = vcombine.high %v5774_v49, %v5782_v23  ;;  %v6820_v54 = vrot.slane %v17522_v61, %v16848_v27  ;;  %v5777_v33 = vld [vmem:[#allocation13 + $0x5b8] sm:$0xff] }
0x33c3   :  { %v7377_v0 = vpack.c.bf16 %v7361_v30, %v7361_v30  ;;  %v7379_v26 = vpack.c.bf16 %v7363_v6, %v7363_v6  ;;  %v14795_v58 = vcombine.high %v5775_v37, %v5783_v39  ;;  %v6828_v30 = vrot.slane %v17522_v61, %v16921_v29  ;;  %v5760_v6 = vld [vmem:[#allocation13 + $0x530] sm:$0xff] }
0x33c4   :  { %v6840_v4 = vrot.slane %v17522_v61, %v17039_v52  ;;  %v14780_v35 = vcombine.low %v5760_v6, %v5768_v8 }
0x33c5   :  { %v7226_v1 = vpop.f32.mrb[128].mxu0  ;;  %v7267_v10 = vpop.f32.mrb[132].mxu1  ;;  %7668 = vmatprep.mubr.bf16.mxu0 %v7377_v0  ;;  %7708 = vmatprep.mubr.bf16.mxu1 %v7379_v26  ;;  %v14792_v0 = vcombine.low %v5774_v49, %v5782_v23 }
0x33c6   :  { %v7228_v11 = vpop.f32.mrb[129].mxu0  ;;  %v7269_v13 = vpop.f32.mrb[133].mxu1  ;;  %v7227_v26 = vadd.f32 %v7226_v1, %v6820_v54  ;;  %v7268_v19 = vadd.f32 %v7267_v10, %v6828_v30 }
0x33c7   :  { %v7229_v14 = vadd.f32 %v7228_v11, %v6824_v42  ;;  %v7270_v16 = vadd.f32 %v7269_v13, %v6832_v7  ;;  %7639 = vmatpush1.bf16.xpose.msra.mxu0 %v14788_v21  ;;  %7679 = vmatpush1.bf16.xpose.msra.mxu1 %v14790_v9  ;;  %v7230_v18 = vpop.f32.mrb[130].mxu0  ;;  %v7271_v15 = vpop.f32.mrb[134].mxu1  ;;  %v5769_v21 = vld [vmem:[#allocation13 + $0x578] sm:$0xff]  ;;  %v6848_v9 = vrot.slane %v17522_v61, %v17042_v53 }
0x33c8   :  { %v7231_v41 = vpop.f32.mrb[131].mxu0  ;;  %v7272_v24 = vpop.f32.mrb[135].mxu1  ;;  %7716 = vmatprep.subr.bf16.mxu0 %v14777_v12  ;;  %7756 = vmatprep.subr.bf16.mxu1 %v14779_v22  ;;  %v14794_v42 = vcombine.low %v5775_v37, %v5783_v39  ;;  %v14781_v7 = vcombine.high %v5760_v6, %v5768_v8  ;;  %v14783_v2 = vcombine.high %v5761_v5, %v5769_v21  ;;  %v7364_v11 = vmax.f32 %v7227_v26, 0.0  ;;  %v5784_v18 = vld [vmem:[#allocation13 + $0x5f0] sm:$0xff] }
0x33c9   :  { %v7365_v38 = vmax.f32 %v7229_v14, 0.0  ;;  %v7367_v44 = vmax.f32 %v7270_v16, 0.0  ;;  %v7366_v13 = vmax.f32 %v7268_v19, 0.0  ;;  %v5776_v16 = vld [vmem:[#allocation13 + $0x5b0] sm:$0xff]  ;;  %v5785_v41 = vld [vmem:[#allocation13 + $0x5f8] sm:$0xff]  ;;  %v14782_v24 = vcombine.low %v5761_v5, %v5769_v21 }
0x33ca   :  { %v7380_v1 = vpack.c.bf16 %v7364_v11, %v7364_v11  ;;  %v14797_v10 = vcombine.high %v5776_v16, %v5784_v18  ;;  %v14799_v49 = vcombine.high %v5777_v33, %v5785_v41  ;;  %v6836_v37 = vrot.slane %v17522_v61, %v17045_v62 }
0x33cb   :  { %v7381_v40 = vpack.c.bf16 %v7365_v38, %v7365_v38  ;;  %v7383_v28 = vpack.c.bf16 %v7367_v44, %v7367_v44  ;;  %v7382_v38 = vpack.c.bf16 %v7366_v13, %v7366_v13  ;;  %v6844_v39 = vrot.slane %v17522_v61, %v17048_v63  ;;  %v7554_v61 = vpop.permute.xlu1 %7553 }
0x33cd   :  { %v17528_v25 = vpop.f32.mrb[132].mxu0  ;;  %v17530_v55 = vpop.f32.mrb[136].mxu1 }
0x33ce   :  { %7669 = vmatmul.mubr.bf16.vlgmr.msra.gmra.mrb[140].mxu0 %v7376_v36  ;;  %7709 = vmatmul.mubr.bf16.vlgmr.msra.gmra.mrb[144].mxu1 %v7378_v43  ;;  %v7310_v51 = vpop.f32.mrb[133].mxu0  ;;  %v7351_v46 = vpop.f32.mrb[137].mxu1  ;;  %v14798_v36 = vcombine.low %v5777_v33, %v5785_v41  ;;  %v7350_v43 = vadd.f32 %v17530_v55, %v6844_v39 }
0x33cf   :  { %7717 = vmatpush1.bf16.xpose.msra.mxu0 %v14776_v32  ;;  %7748 = vmatprep.mubr.bf16.mxu0 %v7381_v40  ;;  %v7312_v56 = vpop.f32.mrb[134].mxu0  ;;  %v7353_v60 = vpop.f32.mrb[138].mxu1  ;;  %v7311_v12 = vadd.f32 %v7310_v51, %v6840_v4  ;;  %v7352_v22 = vadd.f32 %v7351_v46, %v6848_v9  ;;  %v14796_v40 = vcombine.low %v5776_v16, %v5784_v18 }
0x33d0   :  { %7757 = vmatpush1.bf16.xpose.msra.mxu1 %v14778_v48  ;;  %7788 = vmatprep.mubr.bf16.mxu1 %v7383_v28  ;;  %v7313_v47 = vpop.f32.mrb[135].mxu0  ;;  %v7354_v17 = vpop.f32.mrb[139].mxu1  ;;  %v7309_v32 = vadd.f32 %v17528_v25, %v6836_v37  ;;  %v7370_v48 = vmax.f32 %v7350_v43, 0.0 }
0x33d1   :  { %7718 = vmatprep.subr.bf16.mxu0 %v14793_v57  ;;  %7758 = vmatprep.subr.bf16.mxu1 %v14795_v58  ;;  %v7369_v14 = vmax.f32 %v7311_v12, 0.0  ;;  %v7371_v15 = vmax.f32 %v7352_v22, 0.0 }
0x33d2   :  { %v7368_v28 = vmax.f32 %v7309_v32, 0.0  ;;  %v7386_v58 = vpack.c.bf16 %v7370_v48, %v7370_v48  ;;  %v16110_v48 = vld [vmem:[#allocation11 + $0x60] sm:$0xff]  }
0x33d3   :  { %v7385_v44 = vpack.c.bf16 %v7369_v14, %v7369_v14  ;;  %v7387_v23 = vpack.c.bf16 %v7371_v15, %v7371_v15 }
0x33d4   :  { %v7384_v57 = vpack.c.bf16 %v7368_v28, %v7368_v28 }
0x33d7   :  { %7719 = vmatpush1.bf16.xpose.msra.mxu0 %v14792_v0 }
0x33d8   :  { %7759 = vmatpush1.bf16.xpose.msra.mxu1 %v14794_v42  ;;  %7796 = vmatprep.subr.bf16.mxu0 %v14781_v7 }
0x33d9   :  { %7836 = vmatprep.subr.bf16.mxu1 %v14783_v2 }
0x33de   :  { %7749 = vmatmul.mubr.bf16.vlgmr.msra.gmra.mrb[144].mxu0 %v7380_v1 }
0x33df   :  { %7789 = vmatmul.mubr.bf16.vlgmr.msra.gmra.mrb[148].mxu1 %v7382_v38  ;;  %7797 = vmatpush1.bf16.xpose.msra.mxu0 %v14780_v35 }
0x33e0   :  { %7828 = vmatprep.mubr.bf16.mxu0 %v7385_v44  ;;  %7837 = vmatpush1.bf16.xpose.msra.mxu1 %v14782_v24 }
0x33e1   :  { %7868 = vmatprep.mubr.bf16.mxu1 %v7387_v23  ;;  %7798 = vmatprep.subr.bf16.mxu0 %v14797_v10 }
0x33e2   :  { %7838 = vmatprep.subr.bf16.mxu1 %v14799_v49 }
0x33e7   :  { %7799 = vmatpush1.bf16.xpose.msra.mxu0 %v14796_v40 }
0x33e8   :  { %7839 = vmatpush1.bf16.xpose.msra.mxu1 %v14798_v36  ;;  %15721 = vmatprep.subr.bf16.mxu0 %v16502_v50 }
0x33e9   :  { %15729 = vmatprep.subr.mxu1 %v16502_v50 }
0x33ee   :  { %7829 = vmatmul.mubr.bf16.vlgmr.msra.gmra.mrb[148].mxu0 %v7384_v57  ;;  %v17558_v57 = vld [vmem:[#allocation11 + $0x68] sm:$0xff]  }
0x33ef   :  { %7869 = vmatmul.mubr.bf16.vlgmr.msra.gmra.mrb[152].mxu1 %v7386_v58  ;;  %15725 = vmatprep.mubr.msk.bf16.mxu0 %vm16503_vm4, %v16502_v50 }
0x33f0   :  { %15731 = vmatprep.mubr.msk.f32.mxu1 %vm16503_vm4, %v16502_v50  ;;  %15722 = vmatpush3.bf16.msra.mxu0 %v16110_v48 }
0x33f1   :  { %15723 = vmatprep.subr.bf16.mxu0 %v16502_v50 }
0x33f4   :  { %15724 = vmatpush3.bf16.msra.mxu0 %v17558_v57 }
0x33f5   :  { %15734 = vmatprep.subr.mxu0 %v16502_v50 }
0x3491   :  { %v7630_v25 = vpop.f32.mrb[140].mxu1  ;;  %v7590_v55 = vpop.f32.mrb[136].mxu0 }
0x3492   :  { %v7591_v51 = vadd.f32 %v7590_v55, %v7554_v61  ;;  %v7592_v46 = vpop.f32.mrb[137].mxu0  ;;  %v7632_v56 = vpop.f32.mrb[141].mxu1 }
0x3493   :  { %v7593_v60 = vpop.f32.mrb[138].mxu0  ;;  %v7633_v54 = vpop.f32.mrb[142].mxu1 }
0x3494   :  { %v7594_v47 = vpop.f32.mrb[139].mxu0  ;;  %v7634_v17 = vpop.f32.mrb[143].mxu1  ;;  %v7631_v30 = vadd.f32 %v7630_v25, %v7591_v51  ;;  %v17570_v54 = vld [vmem:[#allocation14 + $0xc] sm:$0xf] }
0x3495   :  { %v17574_v47 = vrot.slane %v17570_v54, %v16848_v27 }
0x34a1   :  { %v7670_v6 = vpop.f32.mrb[140].mxu0  ;;  %v7710_v8 = vpop.f32.mrb[144].mxu1 }
0x34a2   :  { %v7671_v4 = vadd.f32 %v7670_v6, %v7631_v30  ;;  %v7672_v5 = vpop.f32.mrb[141].mxu0  ;;  %v7712_v21 = vpop.f32.mrb[145].mxu1 }
0x34a3   :  { %v7673_v9 = vpop.f32.mrb[142].mxu0  ;;  %v7713_v0 = vpop.f32.mrb[146].mxu1 }
0x34a4   :  { %v7711_v26 = vadd.f32 %v7710_v8, %v7671_v4  ;;  %v7674_v42 = vpop.f32.mrb[143].mxu0  ;;  %v7714_v7 = vpop.f32.mrb[147].mxu1 }
0x34b1   :  { %v7750_v19 = vpop.f32.mrb[144].mxu0 }
0x34b2   :  { %v7751_v2 = vadd.f32 %v7750_v19, %v7711_v26  ;;  %v7790_v12 = vpop.f32.mrb[148].mxu1  ;;  %v7752_v22 = vpop.f32.mrb[145].mxu0 }
0x34b3   :  { %v7792_v11 = vpop.f32.mrb[149].mxu1  ;;  %v7753_v13 = vpop.f32.mrb[146].mxu0 }
0x34b4   :  { %v7791_v14 = vadd.f32 %v7790_v12, %v7751_v2  ;;  %v7793_v16 = vpop.f32.mrb[150].mxu1  ;;  %v7754_v18 = vpop.f32.mrb[147].mxu0 }
0x34b5   :  { %v7794_v15 = vpop.f32.mrb[151].mxu1 }
0x34c1   :  { %v7830_v35 = vpop.f32.mrb[148].mxu0 }
0x34c2   :  { %v7831_v33 = vadd.f32 %v7830_v35, %v7791_v14  ;;  %v7870_v41 = vpop.f32.mrb[152].mxu1  ;;  %v7832_v1 = vpop.f32.mrb[149].mxu0 }
0x34c3   :  { %v7872_v24 = vpop.f32.mrb[153].mxu1  ;;  %v7833_v38 = vpop.f32.mrb[150].mxu0 }
0x34c4   :  { %v7871_v10 = vadd.f32 %v7870_v41, %v7831_v33  ;;  %v7873_v44 = vpop.f32.mrb[154].mxu1  ;;  %v7834_v49 = vpop.f32.mrb[151].mxu0 }
0x34c5   :  { %v7874_v23 = vpop.f32.mrb[155].mxu1 }
0x34c6   :  { %v7876_v37 = vadd.f32 %v7871_v10, %v17470_v59 }
0x34c8   :  { %v7877_v39 = vsel %vm1861_vm10, %v7876_v37, 0.0 }
0x34c9   :  { %7878 = vadd.xlane.f32.xlu0 %v7877_v39 }
0x34df   :  { %7891 = vrot.lane.b32.xlu0 %v17500_v45, %s16504_s4 }
0x3556   :  { %v7879_v40 = vpop.xlane.xlu0 %7878 }
0x3557   :  { %v7880_v32 = vmul.f32 0.03125, %v7879_v40 }
0x3559   :  { %v7881_v36 = vsub.f32 %v7876_v37, %v7880_v32 }
0x355a   :  { %v7892_v51 = vpop.permute.xlu0 %7891 }
0x355b   :  { %v7882_v43 = vmul.f32 %v7881_v36, %v7881_v36 }
0x355d   :  { %v7883_v28 = vsel %vm1861_vm10, %v7882_v43, 0.0 }
0x355e   :  { %7884 = vadd.xlane.f32.xlu1 %v7883_v28 }
0x35eb   :  { %v7885_v59 = vpop.xlane.xlu1 %7884 }
0x35ec   :  { %v7886_v58 = vmul.f32 0.03125, %v7885_v59 }
0x35ee   :  { %v7887_v61 = vadd.f32 1e-05, %v7886_v58 }
0x35f0   :  { %16186 = vrsqrt.f32 %v7887_v61 }
0x35fa   :  { %v16187_v25 = vpop.eup %16186 }
0x35fb   :  { %v7889_v55 = vmul.f32 %v16187_v25, %v7881_v36 }
0x35fd   :  { %v7890_v46 = vmul.f32 %v7889_v55, %v17500_v45 }
0x35ff   :  { %v17563_v56 = vadd.f32 %v7892_v51, %v7890_v46 }
0x3601   :  { %v7976_v60 = vpack.c.bf16 %v17563_v56, %v17563_v56 }
0x3603   :  { %15726 = vmatmul.mubr.msk.bf16.vlgmr.msra.gmra.mrb[152].mxu0 %vm170_vm1, %v7976_v60 }
0x3604   :  { %15736 = vmatprep.mubr.msk.f32.mxu0 %vm16503_vm4, %v16502_v50 }
0x36d6   :  { %v8026_v17 = vpop.f32.mrb[152].mxu0 }
0x36d7   :  { %v8036_v30 = vadd.f32 %v17574_v47, %v8026_v17  ;;  %v15727_v45 = vpop.f32.mrb[153].mxu0  ;;  %v17624_v17 = vrot.slane %v17570_v54, %v16921_v29 }
0x36d8   :  { %v8029_v6 = vpop.f32.mrb[154].mxu0 }
0x36d9   :  { %8206 = vrot.lane.b32.xlu0 %v8036_v30, %s16505_s26  ;;  %8039 = vrot.lane.b32.xlu1 %v8036_v30, %s16504_s4  ;;  %v15728_v8 = vpop.f32.mrb[155].mxu0  ;;  %v8037_v4 = vmul.f32 0.25, %v8036_v30 }
0x36dd   :  { %8204 = vrot.lane.b32.xlu1 %v8037_v4, %s16506_s15 }
0x374b   :  { %v8040_v5 = vpop.permute.xlu1 %8039  ;;  %v8207_v21 = vpop.permute.xlu0 %8206 }
0x374c   :  { %15730 = vmatpush3.xpose.msk.msra.mxu1 %vm1323_vm6, %v8040_v5  ;;  %v17645_v5 = vrot.slane %v17570_v54, %v16930_v31 }
0x374d   :  { %15739 = vmatprep.subr.mxu1 %v16502_v50 }
0x374f   :  { %15732 = vmatmul.mubr.msk.f32.vlgmr.msra.gmra.mrb[156].mxu1 %vm1323_vm6, %v8037_v4  ;;  %v8205_v9 = vpop.permute.xlu1 %8204 }
0x3750   :  { %15740 = vmatpush3.xpose.msk.msra.mxu1 %vm1323_vm6, %v8207_v21  ;;  %15741 = vmatprep.mubr.msk.f32.mxu1 %vm16503_vm4, %v16502_v50 }
0x3751   :  { %15749 = vmatprep.subr.bf16.mxu1 %v16502_v50 }
0x3753   :  { %15742 = vmatmul.mubr.msk.f32.vlgmr.msra.gmra.mrb[158].mxu1 %vm1323_vm6, %v8205_v9 }
0x3754   :  { %15753 = vmatprep.mubr.msk.bf16.mxu1 %vm16503_vm4, %v16502_v50 }
0x3822   :  { %v8112_v0 = vpop.f32.mrb[156].mxu1 }
0x3823   :  { %v15733_v26 = vpop.f32.mrb[157].mxu1  ;;  %v8116_v42 = vsel %vm1544_vm7, %v8112_v0, -inf }
0x3824   :  { %8117 = vmax.xlane.f32.xlu0 %v8116_v42 }
0x3826   :  { %v8278_v7 = vpop.f32.mrb[158].mxu1 }
0x3827   :  { %v15743_v19 = vpop.f32.mrb[159].mxu1  ;;  %v8282_v2 = vsel %vm1544_vm7, %v8278_v7, -inf }
0x3828   :  { %8283 = vmax.xlane.f32.xlu1 %v8282_v2 }
0x3839   :  { %8127 = vrot.lane.b32.xlu1 %v8036_v30, %s16491_s3 }
0x383d   :  { %8376 = vrot.lane.b32.xlu1 %v16110_v48, %s16508_s19 }
0x38b1   :  { %v8118_v12 = vpop.xlane.xlu0 %8117 }
0x38b2   :  { %v8119_v22 = vsub.f32 %v8112_v0, %v8118_v12 }
0x38b4   :  { %v8120_v11 = vmul.f32 1.442695, %v8119_v22 }
0x38b5   :  { %v8284_v13 = vpop.xlane.xlu1 %8283 }
0x38b6   :  { %16188 = vpow2.f32 %v8120_v11  ;;  %v8285_v14 = vsub.f32 %v8278_v7, %v8284_v13 }
0x38b8   :  { %v8286_v16 = vmul.f32 1.442695, %v8285_v14 }
0x38b9   :  { %v8128_v18 = vpop.permute.xlu1 %8127 }
0x38ba   :  { %16190 = vpow2.f32 %v8286_v16  ;;  %15735 = vmatpush3.msk.msra.mxu0 %vm1562_vm8, %v8128_v18 }
0x38bb   :  { %15744 = vmatprep.subr.mxu0 %v16502_v50 }
0x38bd   :  { %v8377_v37 = vpop.permute.xlu1 %8376 }
0x38be   :  { %15750 = vmatpush3.bf16.msra.mxu1 %v8377_v37 }
0x38bf   :  { %15751 = vmatprep.subr.bf16.mxu1 %v16502_v50 }
0x38c0   :  { %v16189_v15 = vpop.eup %16188 }
0x38c1   :  { %v8122_v35 = vsel %vm1544_vm7, %v16189_v15, 0.0 }
0x38c2   :  { %8123 = vadd.xlane.f32.xlu0 %v8122_v35 }
0x38c4   :  { %v16191_v33 = vpop.eup %16190 }
0x38c5   :  { %v8288_v41 = vsel %vm1544_vm7, %v16191_v33, 0.0 }
0x38c6   :  { %8289 = vadd.xlane.f32.xlu0 %v8288_v41 }
0x38dc   :  { %8293 = vrot.lane.b32.xlu0 %v8036_v30, %s16507_s14  ;;  %v17627_v30 = vld [vmem:[#allocation11 + $0x78] sm:$0xff]  }
0x38e0   :  { %8378 = vrot.lane.b32.xlu0 %v17558_v57, %s16508_s19 }
0x394f   :  { %v8124_v1 = vpop.xlane.xlu0 %8123 }
0x3950   :  { %16192 = vrcp.f32 %v8124_v1 }
0x3953   :  { %v8290_v24 = vpop.xlane.xlu0 %8289 }
0x3954   :  { %16194 = vrcp.f32 %v8290_v24 }
0x3957   :  { %v8294_v44 = vpop.permute.xlu0 %8293 }
0x395a   :  { %v16193_v38 = vpop.eup %16192 }
0x395b   :  { %v8126_v10 = vmul.f32 %v16193_v38, %v16189_v15  ;;  %v8379_v39 = vpop.permute.xlu0 %8378 }
0x395c   :  { %15752 = vmatpush3.bf16.msra.mxu1 %v8379_v39 }
0x395d   :  { %15737 = vmatmul.mubr.msk.f32.vlgmr.msra.gmra.mrb[156].mxu0 %vm1558_vm9, %v8126_v10  ;;  %15765 = vmatprep.subr.bf16.mxu1 %v16502_v50 }
0x395e   :  { %v16195_v49 = vpop.eup %16194  ;;  %15745 = vmatpush3.msk.msra.mxu0 %vm1562_vm8, %v8294_v44  ;;  %15746 = vmatprep.mubr.msk.f32.mxu0 %vm16503_vm4, %v16502_v50 }
0x395f   :  { %v8292_v23 = vmul.f32 %v16195_v49, %v16191_v33  ;;  %15757 = vmatprep.subr.bf16.mxu0 %v16502_v50 }
0x3961   :  { %15747 = vmatmul.mubr.msk.f32.vlgmr.msra.gmra.mrb[158].mxu0 %vm1558_vm9, %v8292_v23 }
0x3962   :  { %15761 = vmatprep.mubr.msk.bf16.mxu0 %vm16503_vm4, %v16502_v50 }
0x3a30   :  { %v8200_v40 = vpop.f32.mrb[156].mxu0 }
0x3a31   :  { %v15738_v32 = vpop.f32.mrb[157].mxu0 }
0x3a34   :  { %v8366_v36 = vpop.f32.mrb[158].mxu0 }
0x3a35   :  { %8371 = vrot.lane.b32.xlu1 %v8366_v36, %s16501_s2  ;;  %v15748_v43 = vpop.f32.mrb[159].mxu0 }
0x3a39   :  { %8383 = vrot.lane.b32.xlu1 %v17574_v47, %s16508_s19  ;;  %v17620_v47 = vld [vmem:[#allocation11 + $0x70] sm:$0xff]  }
0x3a3a   :  { %15758 = vmatpush3.bf16.msra.mxu0 %v17620_v47 }
0x3a3b   :  { %15759 = vmatprep.subr.bf16.mxu0 %v16502_v50 }
0x3a3e   :  { %15760 = vmatpush3.bf16.msra.mxu0 %v17627_v30 }
0x3a3f   :  { %15773 = vmatprep.subr.mxu0 %v16502_v50 }
0x3a41   :  { %15762 = vmatmul.mubr.msk.bf16.vlgmr.msra.gmra.mrb[160].mxu0 %vm170_vm1, %v16913_v20 }
0x3a42   :  { %15775 = vmatprep.mubr.msk.f32.mxu0 %vm16503_vm4, %v16502_v50 }
0x3aa7   :  { %v8372_v28 = vpop.permute.xlu1 %8371 }
0x3aa8   :  { %v8374_v48 = vsel %vm1323_vm6, %v8200_v40, %v8372_v28 }
0x3aa9   :  { %v8375_v57 = vpack.c.bf16 %v8374_v48, %v8374_v48 }
0x3aab   :  { %15754 = vmatmul.mubr.msk.bf16.vlgmr.msra.gmra.mrb[160].mxu1 %vm170_vm1, %v8375_v57  ;;  %v8384_v59 = vpop.permute.xlu1 %8383 }
0x3aac   :  { %15769 = vmatprep.mubr.msk.bf16.mxu1 %vm16503_vm4, %v16502_v50  ;;  %15766 = vmatpush3.bf16.msra.mxu1 %v17620_v47 }
0x3aad   :  { %15767 = vmatprep.subr.bf16.mxu1 %v16502_v50 }
0x3ab0   :  { %15768 = vmatpush3.bf16.msra.mxu1 %v17627_v30 }
0x3ab1   :  { %15783 = vmatprep.subr.mxu1 %v16502_v50 }
0x3b14   :  { %v8499_v21 = vpop.f32.mrb[160].mxu0 }
0x3b15   :  { %v8554_v9 = vadd.f32 %v17645_v5, %v8499_v21  ;;  %v15763_v0 = vpop.f32.mrb[161].mxu0 }
0x3b16   :  { %v8502_v26 = vpop.f32.mrb[162].mxu0 }
0x3b17   :  { %v15764_v42 = vpop.f32.mrb[163].mxu0 }
0x3b7e   :  { %v8423_v58 = vpop.f32.mrb[160].mxu1 }
0x3b7f   :  { %v8424_v61 = vadd.f32 %v8423_v58, %v8384_v59  ;;  %v15755_v25 = vpop.f32.mrb[161].mxu1 }
0x3b80   :  { %v8426_v55 = vpop.f32.mrb[162].mxu1 }
0x3b81   :  { %v8429_v51 = vadd.f32 %v8424_v61, %v17563_v56  ;;  %v15756_v46 = vpop.f32.mrb[163].mxu1 }
0x3b83   :  { %v8430_v60 = vsel %vm1861_vm10, %v8429_v51, 0.0 }
0x3b84   :  { %8431 = vadd.xlane.f32.xlu0 %v8430_v60 }
0x3b9a   :  { %8449 = vrot.lane.b32.xlu0 %v17624_v17, %s16504_s4 }
0x3b9e   :  { %8724 = vrot.lane.b32.xlu0 %v8554_v9, %s16505_s26 }
0x3c11   :  { %v8432_v56 = vpop.xlane.xlu0 %8431 }
0x3c12   :  { %v8433_v45 = vmul.f32 0.03125, %v8432_v56 }
0x3c14   :  { %v8434_v6 = vsub.f32 %v8429_v51, %v8433_v45 }
0x3c15   :  { %v8450_v11 = vpop.permute.xlu0 %8449 }
0x3c16   :  { %v8435_v8 = vmul.f32 %v8434_v6, %v8434_v6 }
0x3c18   :  { %v8436_v4 = vsel %vm1861_vm10, %v8435_v8, 0.0 }
0x3c19   :  { %8437 = vadd.xlane.f32.xlu1 %v8436_v4  ;;  %v8725_v15 = vpop.permute.xlu0 %8724 }
0x3c2a   :  { %8557 = vrot.lane.b32.xlu1 %v8554_v9, %s16504_s4 }
0x3ca6   :  { %v8438_v7 = vpop.xlane.xlu1 %8437 }
0x3ca7   :  { %v8439_v19 = vmul.f32 0.03125, %v8438_v7 }
0x3ca9   :  { %v8440_v2 = vadd.f32 1e-05, %v8439_v19 }
0x3caa   :  { %v8558_v18 = vpop.permute.xlu1 %8557 }
0x3cab   :  { %16196 = vrsqrt.f32 %v8440_v2  ;;  %15774 = vmatpush3.xpose.msk.msra.mxu0 %vm1323_vm6, %v8558_v18 }
0x3cac   :  { %15778 = vmatprep.subr.mxu0 %v16502_v50 }
0x3cb5   :  { %v16197_v12 = vpop.eup %16196 }
0x3cb6   :  { %v8442_v22 = vmul.f32 %v16197_v12, %v8434_v6 }
0x3cb8   :  { %v8447_v13 = vmul.f32 %v17624_v17, %v8442_v22 }
0x3cba   :  { %v17651_v14 = vadd.f32 %v8450_v11, %v8447_v13 }
0x3cbc   :  { %v8505_v16 = vpack.c.bf16 %v17651_v14, %v17651_v14 }
0x3cbe   :  { %15770 = vmatmul.mubr.msk.bf16.vlgmr.msra.gmra.mrb[164].mxu1 %vm170_vm1, %v8505_v16 }
0x3cbf   :  { %15785 = vmatprep.mubr.msk.f32.mxu1 %vm16503_vm4, %v16502_v50  ;;  %15784 = vmatpush3.xpose.msk.msra.mxu1 %vm1323_vm6, %v8725_v15 }
0x3cc0   :  { %15793 = vmatprep.subr.bf16.mxu1 %v16502_v50 }
0x3d91   :  { %v8543_v35 = vpop.f32.mrb[164].mxu1 }
0x3d92   :  { %v8553_v33 = vadd.f32 %v17645_v5, %v8543_v35  ;;  %v15771_v41 = vpop.f32.mrb[165].mxu1 }
0x3d93   :  { %v8546_v1 = vpop.f32.mrb[166].mxu1 }
0x3d94   :  { %v8555_v24 = vmul.f32 0.25, %v8553_v33  ;;  %v15772_v38 = vpop.f32.mrb[167].mxu1  ;;  %v7908_v1 = vld [vmem:[#allocation13 + $0x600] sm:$0xff] }
0x3d96   :  { %8722 = vrot.lane.b32.xlu1 %v8555_v24, %s16506_s15  ;;  %15776 = vmatmul.mubr.msk.f32.vlgmr.msra.gmra.mrb[164].mxu0 %vm1323_vm6, %v8555_v24  ;;  %v7916_v24 = vld [vmem:[#allocation13 + $0x640] sm:$0xff] }
0x3d97   :  { %15780 = vmatprep.mubr.msk.f32.mxu0 %vm16503_vm4, %v16502_v50  ;;  %v14825_v38 = vcombine.low %v7908_v1, %v7916_v24 }
0x3e08   :  { %v8723_v10 = vpop.permute.xlu1 %8722 }
0x3e09   :  { %15786 = vmatmul.mubr.msk.f32.vlgmr.msra.gmra.mrb[168].mxu1 %vm1323_vm6, %v8723_v10  ;;  %v14826_v10 = vcombine.high %v7908_v1, %v7916_v24 }
0x3e0a   :  { %15797 = vmatprep.mubr.msk.bf16.mxu1 %vm16503_vm4, %v16502_v50 }
0x3e69   :  { %v8630_v44 = vpop.f32.mrb[164].mxu0 }
0x3e6a   :  { %v15777_v49 = vpop.f32.mrb[165].mxu0  ;;  %v8634_v23 = vsel %vm2070_vm11, %v8630_v44, -inf }
0x3e6b   :  { %8635 = vmax.xlane.f32.xlu0 %v8634_v23 }
0x3edc   :  { %v8796_v37 = vpop.f32.mrb[168].mxu1 }
0x3edd   :  { %v15787_v39 = vpop.f32.mrb[169].mxu1  ;;  %v8800_v40 = vsel %vm2070_vm11, %v8796_v37, -inf }
0x3ede   :  { %8801 = vmax.xlane.f32.xlu1 %v8800_v40  ;;  %v7932_v39 = vld [vmem:[#allocation13 + $0x6c0] sm:$0xff]  ;;  %v7925_v40 = vld [vmem:[#allocation13 + $0x688] sm:$0xff] }
0x3eef   :  { %8645 = vrot.lane.b32.xlu1 %v8554_v9, %s16491_s3 }
0x3ef3   :  { %8894 = vrot.lane.b32.xlu1 %v17620_v47, %s16508_s19 }
0x3ef8   :  { %v8636_v32 = vpop.xlane.xlu0 %8635 }
0x3ef9   :  { %v8637_v36 = vsub.f32 %v8630_v44, %v8636_v32  ;;  %v7917_v44 = vld [vmem:[#allocation13 + $0x648] sm:$0xff] }
0x3efb   :  { %v8638_v43 = vmul.f32 1.442695, %v8637_v36  ;;  %v7933_v36 = vld [vmem:[#allocation13 + $0x6c8] sm:$0xff] }
0x3efd   :  { %16198 = vpow2.f32 %v8638_v43 }
0x3f07   :  { %v16199_v28 = vpop.eup %16198 }
0x3f08   :  { %v8640_v48 = vsel %vm2070_vm11, %v16199_v28, 0.0 }
0x3f09   :  { %8641 = vadd.xlane.f32.xlu0 %v8640_v48  ;;  %v7910_v48 = vld [vmem:[#allocation13 + $0x610] sm:$0xff] }
0x3f6b   :  { %v8802_v57 = vpop.xlane.xlu1 %8801 }
0x3f6c   :  { %v8803_v59 = vsub.f32 %v8796_v37, %v8802_v57  ;;  %v7924_v37 = vld [vmem:[#allocation13 + $0x680] sm:$0xff]  ;;  %v7918_v57 = vld [vmem:[#allocation13 + $0x650] sm:$0xff] }
0x3f6d   :  { %v14842_v32 = vcombine.high %v7924_v37, %v7932_v39  ;;  %v14841_v43 = vcombine.low %v7924_v37, %v7932_v39 }
0x3f6e   :  { %v8804_v58 = vmul.f32 1.442695, %v8803_v59  ;;  %v7911_v59 = vld [vmem:[#allocation13 + $0x618] sm:$0xff] }
0x3f6f   :  { %v8646_v61 = vpop.permute.xlu1 %8645 }
0x3f70   :  { %16200 = vpow2.f32 %v8804_v58  ;;  %15779 = vmatpush3.msk.msra.mxu0 %vm2088_vm12, %v8646_v61  ;;  %v14829_v58 = vcombine.low %v7910_v48, %v7918_v57  ;;  %v14830_v61 = vcombine.high %v7910_v48, %v7918_v57 }
0x3f71   :  { %15788 = vmatprep.subr.mxu0 %v16502_v50 }
0x3f7a   :  { %v16201_v25 = vpop.eup %16200 }
0x3f7b   :  { %v8806_v55 = vsel %vm2070_vm11, %v16201_v25, 0.0 }
0x3f7c   :  { %8807 = vadd.xlane.f32.xlu0 %v8806_v55 }
0x3f92   :  { %8811 = vrot.lane.b32.xlu0 %v8554_v9, %s16507_s14 }
0x3f96   :  { %v8642_v51 = vpop.xlane.xlu0 %8641  ;;  %8896 = vrot.lane.b32.xlu0 %v17627_v30, %s16508_s19  ;;  %v8895_v30 = vpop.permute.xlu1 %8894 }
0x3f97   :  { %16202 = vrcp.f32 %v8642_v51  ;;  %15794 = vmatpush3.bf16.msra.mxu1 %v8895_v30 }
0x3f98   :  { %15795 = vmatprep.subr.bf16.mxu1 %v16502_v50 }
0x3fa1   :  { %v16203_v46 = vpop.eup %16202 }
0x3fa2   :  { %v8644_v60 = vmul.f32 %v16203_v46, %v16199_v28  ;;  %v14843_v28 = vcombine.low %v7925_v40, %v7933_v36 }
0x3fa4   :  { %15781 = vmatmul.mubr.msk.f32.vlgmr.msra.gmra.mrb[166].mxu0 %vm2084_vm13, %v8644_v60 }
0x3fa5   :  { %15790 = vmatprep.mubr.msk.f32.mxu0 %vm16503_vm4, %v16502_v50 }
0x4009   :  { %v8808_v47 = vpop.xlane.xlu0 %8807 }
0x400a   :  { %16204 = vrcp.f32 %v8808_v47 }
0x400d   :  { %v8812_v56 = vpop.permute.xlu0 %8811 }
0x400e   :  { %15789 = vmatpush3.msk.msra.mxu0 %vm2088_vm12, %v8812_v56 }
0x400f   :  { %9215 = vmatprep.subr.bf16.mxu0 %v14826_v10  ;;  %v7914_v10 = vld [vmem:[#allocation13 + $0x630] sm:$0xff] }
0x4011   :  { %v8897_v8 = vpop.permute.xlu0 %8896 }
0x4012   :  { %15796 = vmatpush3.bf16.msra.mxu1 %v8897_v8 }
0x4014   :  { %v16205_v45 = vpop.eup %16204 }
0x4015   :  { %v8810_v6 = vmul.f32 %v16205_v45, %v16201_v25  ;;  %v7919_v25 = vld [vmem:[#allocation13 + $0x658] sm:$0xff] }
0x4016   :  { %v14831_v55 = vcombine.low %v7911_v59, %v7919_v25  ;;  %v14832_v51 = vcombine.high %v7911_v59, %v7919_v25  ;;  %v7949_v25 = vld [vmem:[#allocation13 + $0x740] sm:$0xff] }
0x4017   :  { %15791 = vmatmul.mubr.msk.f32.vlgmr.msra.gmra.mrb[168].mxu0 %vm2084_vm13, %v8810_v6 }
0x4018   :  { %9247 = vmatprep.mubr.bf16.mxu0 %v16509_v3  ;;  %9216 = vmatpush1.bf16.msra.mxu0 %v14825_v38 }
0x4019   :  { %9217 = vmatprep.subr.bf16.mxu0 %v14842_v32 }
0x401c   :  { %9218 = vmatpush1.bf16.msra.mxu0 %v14841_v43  ;;  %v7938_v43 = vld [vmem:[#allocation13 + $0x6f0] sm:$0xff] }
0x401d   :  { %9297 = vmatprep.subr.bf16.mxu0 %v14830_v61  ;;  %v7941_v61 = vld [vmem:[#allocation13 + $0x700] sm:$0xff] }
0x4077   :  { %v8718_v4 = vpop.f32.mrb[166].mxu0 }
0x4078   :  { %v15782_v21 = vpop.f32.mrb[167].mxu0 }
0x4079   :  { %v7934_v21 = vld [vmem:[#allocation13 + $0x6d0] sm:$0xff] }
0x40ea   :  { %v8884_v9 = vpop.f32.mrb[168].mxu0 }
0x40eb   :  { %8889 = vrot.lane.b32.xlu1 %v8884_v9, %s16501_s2  ;;  %v15792_v0 = vpop.f32.mrb[169].mxu0  ;;  %v7927_v9 = vld [vmem:[#allocation13 + $0x698] sm:$0xff] }
0x40ec   :  { %v7935_v0 = vld [vmem:[#allocation13 + $0x6d8] sm:$0xff] }
0x40ef   :  { %8901 = vrot.lane.b32.xlu1 %v17645_v5, %s16508_s19 }
0x415d   :  { %v8890_v26 = vpop.permute.xlu1 %8889 }
0x415e   :  { %v8892_v42 = vsel %vm1323_vm6, %v8718_v4, %v8890_v26  ;;  %v7926_v4 = vld [vmem:[#allocation13 + $0x690] sm:$0xff] }
0x415f   :  { %v8893_v7 = vpack.c.bf16 %v8892_v42, %v8892_v42 }
0x4161   :  { %15798 = vmatmul.mubr.msk.bf16.vlgmr.msra.gmra.mrb[172].mxu1 %vm170_vm1, %v8893_v7  ;;  %v8902_v19 = vpop.permute.xlu1 %8901  ;;  %v14846_v7 = vcombine.high %v7926_v4, %v7934_v21 }
0x4162   :  { %9288 = vmatprep.mubr.bf16.mxu1 %v16509_v3 }
0x4234   :  { %v8941_v2 = vpop.f32.mrb[172].mxu1 }
0x4235   :  { %v8942_v12 = vadd.f32 %v8941_v2, %v8902_v19  ;;  %v15799_v22 = vpop.f32.mrb[173].mxu1  ;;  %v14848_v19 = vcombine.high %v7927_v9, %v7935_v0  ;;  %v7912_v2 = vld [vmem:[#allocation13 + $0x620] sm:$0xff] }
0x4236   :  { %v8944_v11 = vpop.f32.mrb[174].mxu1  ;;  %v7913_v22 = vld [vmem:[#allocation13 + $0x628] sm:$0xff] }
0x4237   :  { %v8947_v13 = vadd.f32 %v8942_v12, %v17651_v14  ;;  %v15800_v16 = vpop.f32.mrb[175].mxu1  ;;  %v7909_v14 = vld [vmem:[#allocation13 + $0x608] sm:$0xff]  ;;  %v7920_v12 = vld [vmem:[#allocation13 + $0x660] sm:$0xff] }
0x4238   :  { %v14827_v49 = vcombine.low %v7909_v14, %v7917_v44  ;;  %v14828_v23 = vcombine.high %v7909_v14, %v7917_v44  ;;  %v7921_v11 = vld [vmem:[#allocation13 + $0x668] sm:$0xff]  ;;  %v14847_v16 = vcombine.low %v7927_v9, %v7935_v0  ;;  %v14833_v1 = vcombine.low %v7912_v2, %v7920_v12  ;;  %v7922_v44 = vld [vmem:[#allocation13 + $0x670] sm:$0xff] }
0x4239   :  { %v8948_v18 = vsel %vm1861_vm10, %v8947_v13, 0.0  ;;  %v14835_v24 = vcombine.low %v7913_v22, %v7921_v11  ;;  %v14837_v48 = vcombine.low %v7914_v10, %v7922_v44  ;;  %v7966_v9 = vld [vmem:[#allocation13 + $0x7c8] sm:$0xff] }
0x423a   :  { %8949 = vadd.xlane.f32.xlu0 %v8948_v18  ;;  %9256 = vmatprep.subr.bf16.mxu1 %v14828_v23  ;;  %v14834_v18 = vcombine.high %v7912_v2, %v7920_v12  ;;  %v7923_v23 = vld [vmem:[#allocation13 + $0x678] sm:$0xff]  ;;  %v7943_v2 = vld [vmem:[#allocation13 + $0x710] sm:$0xff] }
0x423b   :  { %9257 = vmatpush1.bf16.msra.mxu1 %v14827_v49  ;;  %v7915_v49 = vld [vmem:[#allocation13 + $0x638] sm:$0xff]  ;;  %v7951_v12 = vld [vmem:[#allocation13 + $0x750] sm:$0xff] }
0x423c   :  { %v14840_v32 = vcombine.high %v7915_v49, %v7923_v23  ;;  %v14839_v57 = vcombine.low %v7915_v49, %v7923_v23 }
0x4250   :  { %8961 = vrot.lane.b32.xlu0 %v17624_v17, %s16491_s3 }
0x42c7   :  { %v8950_v5 = vpop.xlane.xlu0 %8949 }
0x42c8   :  { %v8951_v15 = vmul.f32 0.03125, %v8950_v5  ;;  %v14836_v5 = vcombine.high %v7913_v22, %v7921_v11  ;;  %v7944_v22 = vld [vmem:[#allocation13 + $0x718] sm:$0xff] }
0x42c9   :  { %v7952_v11 = vld [vmem:[#allocation13 + $0x758] sm:$0xff] }
0x42ca   :  { %v8952_v35 = vsub.f32 %v8947_v13, %v8951_v15  ;;  %v14845_v13 = vcombine.low %v7926_v4, %v7934_v21  ;;  %v7928_v15 = vld [vmem:[#allocation13 + $0x6a0] sm:$0xff]  ;;  %v7958_v4 = vld [vmem:[#allocation13 + $0x788] sm:$0xff] }
0x42cb   :  { %v8962_v45 = vpop.permute.xlu0 %8961 }
0x42cc   :  { %v8953_v33 = vmul.f32 %v8952_v35, %v8952_v35 }
0x42ce   :  { %v8954_v41 = vsel %vm1861_vm10, %v8953_v33, 0.0  ;;  %v7929_v33 = vld [vmem:[#allocation13 + $0x6a8] sm:$0xff] }
0x42cf   :  { %8955 = vadd.xlane.f32.xlu1 %v8954_v41  ;;  %v7937_v41 = vld [vmem:[#allocation13 + $0x6e8] sm:$0xff] }
0x42d0   :  { %v14852_v38 = vcombine.high %v7929_v33, %v7937_v41  ;;  %v14851_v39 = vcombine.low %v7929_v33, %v7937_v41 }
0x42e0   :  { %8965 = vrot.lane.b32.xlu1 %v17624_v17, %s16508_s19  ;;  %v14844_v17 = vcombine.high %v7925_v40, %v7933_v36  ;;  %v14838_v40 = vcombine.high %v7914_v10, %v7922_v44  ;;  %v7930_v36 = vld [vmem:[#allocation13 + $0x6b0] sm:$0xff] }
0x42e1   :  { %v14854_v59 = vcombine.high %v7930_v36, %v7938_v43 }
0x42e2   :  { %9258 = vmatprep.subr.bf16.mxu1 %v14844_v17  ;;  %v7939_v17 = vld [vmem:[#allocation13 + $0x6f8] sm:$0xff] }
0x42e3   :  { %9259 = vmatpush1.bf16.msra.mxu1 %v14843_v28  ;;  %v7931_v28 = vld [vmem:[#allocation13 + $0x6b8] sm:$0xff] }
0x42e4   :  { %9338 = vmatprep.subr.bf16.mxu1 %v14832_v51  ;;  %v7950_v51 = vld [vmem:[#allocation13 + $0x748] sm:$0xff] }
0x435c   :  { %v8956_v46 = vpop.xlane.xlu1 %8955 }
0x435d   :  { %v8957_v60 = vmul.f32 0.03125, %v8956_v46  ;;  %v14853_v46 = vcombine.low %v7930_v36, %v7938_v43 }
0x435f   :  { %v8958_v47 = vadd.f32 1e-05, %v8957_v60  ;;  %v14855_v60 = vcombine.low %v7931_v28, %v7939_v17 }
0x4360   :  { %v8966_v30 = vpop.permute.xlu1 %8965 }
0x4361   :  { %16206 = vrsqrt.f32 %v8958_v47  ;;  %v14866_v47 = vcombine.high %v7941_v61, %v7949_v25 }
0x436b   :  { %v16207_v56 = vpop.eup %16206 }
0x436c   :  { %v8960_v6 = vmul.f32 %v16207_v56, %v8952_v35  ;;  %v7936_v35 = vld [vmem:[#allocation13 + $0x6e0] sm:$0xff] }
0x436d   :  { %v14850_v14 = vcombine.high %v7928_v15, %v7936_v35  ;;  %v14849_v37 = vcombine.low %v7928_v15, %v7936_v35  ;;  %v17736_v15 = vld [vmem:[#allocation16 + $0x30] sm:$0xff] }
0x436e   :  { %v8964_v8 = vmul.f32 %v8962_v45, %v8960_v6  ;;  %v14865_v45 = vcombine.low %v7941_v61, %v7949_v25  ;;  %v8975_v35 = vrot.slane %v17736_v15, %v16848_v27  ;;  %v8983_v33 = vrot.slane %v17736_v15, %v16921_v29 }
0x436f   :  { %v8979_v41 = vrot.slane %v17736_v15, %v16930_v31 }
0x4370   :  { %v17702_v26 = vadd.f32 %v8966_v30, %v8964_v8  ;;  %v7957_v30 = vld [vmem:[#allocation13 + $0x780] sm:$0xff] }
0x4371   :  { %v7965_v8 = vld [vmem:[#allocation13 + $0x7c0] sm:$0xff] }
0x4372   :  { %v17706_v42 = vpack.c.bf16 %v17702_v26, %v17702_v26  ;;  %v14882_v21 = vcombine.high %v7957_v30, %v7965_v8  ;;  %v14881_v0 = vcombine.low %v7957_v30, %v7965_v8 }
0x4374   :  { %14857 = vmatmul.mubr.msk.bf16.vlgmr.msra.gmra.mrb[172].mxu0 %vm170_vm1, %v17706_v42  ;;  %14858 = vmatmul.mubr.msk.bf16.vlgmr.msra.gmra.mrb[176].mxu1 %vm170_vm1, %v17706_v42 }
0x4375   :  { %9298 = vmatpush1.bf16.msra.mxu0 %v14829_v58  ;;  %9339 = vmatpush1.bf16.msra.mxu1 %v14831_v55  ;;  %v14856_v58 = vcombine.high %v7931_v28, %v7939_v17  ;;  %v7942_v55 = vld [vmem:[#allocation13 + $0x708] sm:$0xff]  ;;  %v7959_v28 = vld [vmem:[#allocation13 + $0x790] sm:$0xff] }
0x4376   :  { %9299 = vmatprep.subr.bf16.mxu0 %v14846_v7  ;;  %9340 = vmatprep.subr.bf16.mxu1 %v14848_v19  ;;  %v14868_v56 = vcombine.high %v7942_v55, %v7950_v51  ;;  %v14867_v6 = vcombine.low %v7942_v55, %v7950_v51  ;;  %v14883_v7 = vcombine.low %v7958_v4, %v7966_v9 }
0x4377   :  { %9329 = vmatprep.mubr.bf16.mxu0 %v16509_v3  ;;  %9370 = vmatprep.mubr.bf16.mxu1 %v16509_v3  ;;  %v14884_v19 = vcombine.high %v7958_v4, %v7966_v9  ;;  %v8995_v55 = vrot.slane %v17736_v15, %v17039_v52  ;;  %v9003_v51 = vrot.slane %v17736_v15, %v17042_v53 }
0x4379   :  { %9300 = vmatpush1.bf16.msra.mxu0 %v14845_v13  ;;  %9341 = vmatpush1.bf16.msra.mxu1 %v14847_v16  ;;  %v14869_v13 = vcombine.low %v7943_v2, %v7951_v12  ;;  %v14871_v16 = vcombine.low %v7944_v22, %v7952_v11 }
0x437a   :  { %9379 = vmatprep.subr.bf16.mxu0 %v14834_v18  ;;  %9420 = vmatprep.subr.bf16.mxu1 %v14836_v5  ;;  %v14872_v18 = vcombine.high %v7944_v22, %v7952_v11  ;;  %v17732_v5 = vrot.slane %v17570_v54, %v17020_v34  ;;  %v17754_v22 = vld [vmem:[#allocation16 + $0x38] sm:$0xff] }
0x437c   :  { %14859 = vmatmul.mubr.msk.bf16.vlgmr.msra.gmra.mrb[176].mxu0 %vm170_vm1, %v17706_v42  ;;  %14860 = vmatmul.mubr.msk.bf16.vlgmr.msra.gmra.mrb[180].mxu1 %vm170_vm1, %v17706_v42 }
0x437d   :  { %9380 = vmatpush1.bf16.msra.mxu0 %v14833_v1  ;;  %9421 = vmatpush1.bf16.msra.mxu1 %v14835_v24  ;;  %v8987_v1 = vrot.slane %v17736_v15, %v17020_v34 }
0x437e   :  { %9381 = vmatprep.subr.bf16.mxu0 %v14850_v14  ;;  %9422 = vmatprep.subr.bf16.mxu1 %v14852_v38 }
0x437f   :  { %9411 = vmatprep.mubr.bf16.mxu0 %v16509_v3  ;;  %9452 = vmatprep.mubr.bf16.mxu1 %v16509_v3 }
0x4380   :  { %9740 = vrot.lane.b32.xlu0 %v17732_v5, %s16491_s3 }
0x4381   :  { %9382 = vmatpush1.bf16.msra.mxu0 %v14849_v37  ;;  %9423 = vmatpush1.bf16.msra.mxu1 %v14851_v39 }
0x4382   :  { %9461 = vmatprep.subr.bf16.mxu0 %v14838_v40  ;;  %9502 = vmatprep.subr.bf16.mxu1 %v14840_v32 }
0x4384   :  { %14861 = vmatmul.mubr.msk.bf16.vlgmr.msra.gmra.mrb[180].mxu0 %vm170_vm1, %v17706_v42  ;;  %14862 = vmatmul.mubr.msk.bf16.vlgmr.msra.gmra.mrb[184].mxu1 %vm170_vm1, %v17706_v42 }
0x4385   :  { %9462 = vmatpush1.bf16.msra.mxu0 %v14837_v48  ;;  %9503 = vmatpush1.bf16.msra.mxu1 %v14839_v57  ;;  %v7967_v57 = vld [vmem:[#allocation13 + $0x7d0] sm:$0xff] }
0x4386   :  { %9463 = vmatprep.subr.bf16.mxu0 %v14854_v59  ;;  %9504 = vmatprep.subr.bf16.mxu1 %v14856_v58  ;;  %v7960_v59 = vld [vmem:[#allocation13 + $0x798] sm:$0xff] }
0x4387   :  { %9493 = vmatprep.mubr.bf16.mxu0 %v16509_v3  ;;  %9534 = vmatprep.mubr.bf16.mxu1 %v16509_v3  ;;  %v7968_v58 = vld [vmem:[#allocation13 + $0x7d8] sm:$0xff] }
0x4389   :  { %9464 = vmatpush1.bf16.msra.mxu0 %v14853_v46  ;;  %9505 = vmatpush1.bf16.msra.mxu1 %v14855_v60 }
0x438a   :  { %9743 = vmatprep.subr.bf16.mxu0 %v14866_v47  ;;  %9783 = vmatprep.subr.bf16.mxu1 %v14868_v56  ;;  %v14886_v47 = vcombine.high %v7959_v28, %v7967_v57  ;;  %v14888_v56 = vcombine.high %v7960_v59, %v7968_v58 }
0x438c   :  { %14863 = vmatmul.mubr.msk.bf16.vlgmr.msra.gmra.mrb[184].mxu0 %vm170_vm1, %v17706_v42  ;;  %14864 = vmatmul.mubr.msk.bf16.vlgmr.msra.gmra.mrb[188].mxu1 %vm170_vm1, %v17706_v42  ;;  %v14870_v42 = vcombine.high %v7943_v2, %v7951_v12 }
0x4392   :  { %9744 = vmatpush1.bf16.xpose.msra.mxu0 %v14865_v45  ;;  %9784 = vmatpush1.bf16.xpose.msra.mxu1 %v14867_v6 }
0x4393   :  { %9745 = vmatprep.subr.bf16.mxu0 %v14882_v21  ;;  %9785 = vmatprep.subr.bf16.mxu1 %v14884_v19  ;;  %v8999_v19 = vrot.slane %v17736_v15, %v17048_v63 }
0x439a   :  { %9746 = vmatpush1.bf16.xpose.msra.mxu0 %v14881_v0  ;;  %9786 = vmatpush1.bf16.xpose.msra.mxu1 %v14883_v7  ;;  %v8991_v7 = vrot.slane %v17736_v15, %v17045_v62  ;;  %v9019_v15 = vrot.slane %v17754_v22, %v17020_v34 }
0x439b   :  { %9823 = vmatprep.subr.bf16.mxu0 %v14870_v42  ;;  %9863 = vmatprep.subr.bf16.mxu1 %v14872_v18  ;;  %v7945_v42 = vld [vmem:[#allocation13 + $0x720] sm:$0xff] }
0x4447   :  { %v9249_v24 = vpop.f32.mrb[172].mxu0  ;;  %v9290_v54 = vpop.f32.mrb[176].mxu1 }
0x4448   :  { %v9250_v14 = vadd.f32 %v9249_v24, %v8975_v35  ;;  %v9291_v38 = vadd.f32 %v9290_v54, %v8983_v33  ;;  %v9251_v10 = vpop.f32.mrb[173].mxu0  ;;  %v9292_v44 = vpop.f32.mrb[177].mxu1  ;;  %v7953_v35 = vld [vmem:[#allocation13 + $0x760] sm:$0xff]  ;;  %v14885_v33 = vcombine.low %v7959_v28, %v7967_v57  ;;  %v9011_v54 = vrot.slane %v17754_v22, %v16930_v31 }
0x4449   :  { %v9252_v49 = vadd.f32 %v9251_v10, %v8979_v41  ;;  %v9293_v23 = vadd.f32 %v9292_v44, %v8987_v1  ;;  %v9253_v37 = vpop.f32.mrb[174].mxu0  ;;  %v9294_v39 = vpop.f32.mrb[178].mxu1  ;;  %v14887_v41 = vcombine.low %v7960_v59, %v7968_v58  ;;  %v14874_v10 = vcombine.high %v7945_v42, %v7953_v35 }
0x444a   :  { %v9543_v40 = vmax.f32 %v9250_v14, 0.0  ;;  %v9545_v32 = vmax.f32 %v9291_v38, 0.0  ;;  %v9254_v36 = vpop.f32.mrb[175].mxu0  ;;  %v9295_v43 = vpop.f32.mrb[179].mxu1 }
0x444b   :  { %v9544_v17 = vmax.f32 %v9252_v49, 0.0  ;;  %v9546_v48 = vmax.f32 %v9293_v23, 0.0 }
0x444c   :  { %v9559_v46 = vpack.c.bf16 %v9543_v40, %v9543_v40  ;;  %v9561_v60 = vpack.c.bf16 %v9545_v32, %v9545_v32 }
0x444d   :  { %v9560_v61 = vpack.c.bf16 %v9544_v17, %v9544_v17  ;;  %v9562_v25 = vpack.c.bf16 %v9546_v48, %v9546_v48 }
0x444f   :  { %v9331_v45 = vpop.f32.mrb[176].mxu0  ;;  %v9372_v6 = vpop.f32.mrb[180].mxu1  ;;  %9775 = vmatprep.mubr.bf16.mxu0 %v9560_v61  ;;  %9815 = vmatprep.mubr.bf16.mxu1 %v9562_v25  ;;  %v7961_v61 = vld [vmem:[#allocation13 + $0x7a0] sm:$0xff] }
0x4450   :  { %v9333_v30 = vpop.f32.mrb[177].mxu0  ;;  %v9374_v8 = vpop.f32.mrb[181].mxu1  ;;  %9776 = vmatmul.mubr.bf16.vlgmr.msra.gmra.mrb[188].mxu0 %v9559_v46  ;;  %9816 = vmatmul.mubr.bf16.vlgmr.msra.gmra.mrb[192].mxu1 %v9561_v60  ;;  %v9332_v14 = vadd.f32 %v9331_v45, %v8991_v7  ;;  %v9373_v38 = vadd.f32 %v9372_v6, %v8999_v19  ;;  %v7969_v25 = vld [vmem:[#allocation13 + $0x7e0] sm:$0xff]  ;;  %v14873_v60 = vcombine.low %v7945_v42, %v7953_v35  ;;  %v7955_v35 = vld [vmem:[#allocation13 + $0x770] sm:$0xff] }
0x4451   :  { %v9334_v4 = vadd.f32 %v9333_v30, %v8995_v55  ;;  %v9375_v21 = vadd.f32 %v9374_v8, %v9003_v51  ;;  %9824 = vmatpush1.bf16.xpose.msra.mxu0 %v14869_v13  ;;  %9864 = vmatpush1.bf16.xpose.msra.mxu1 %v14871_v16  ;;  %v9335_v9 = vpop.f32.mrb[178].mxu0  ;;  %v9376_v0 = vpop.f32.mrb[182].mxu1  ;;  %v7946_v13 = vld [vmem:[#allocation13 + $0x728] sm:$0xff] }
0x4452   :  { %v9336_v2 = vpop.f32.mrb[179].mxu0  ;;  %v9377_v12 = vpop.f32.mrb[183].mxu1  ;;  %9825 = vmatprep.subr.bf16.mxu0 %v14886_v47  ;;  %9865 = vmatprep.subr.bf16.mxu1 %v14888_v56  ;;  %v7954_v16 = vld [vmem:[#allocation13 + $0x768] sm:$0xff]  ;;  %v9547_v28 = vmax.f32 %v9332_v14, 0.0  ;;  %v9549_v17 = vmax.f32 %v9373_v38, 0.0 }
0x4453   :  { %v9548_v11 = vmax.f32 %v9334_v4, 0.0  ;;  %v9550_v18 = vmax.f32 %v9375_v21, 0.0  ;;  %v14876_v44 = vcombine.high %v7946_v13, %v7954_v16  ;;  %v7962_v55 = vld [vmem:[#allocation13 + $0x7a8] sm:$0xff]  ;;  %v14875_v6 = vcombine.low %v7946_v13, %v7954_v16  ;;  %v7948_v16 = vld [vmem:[#allocation13 + $0x738] sm:$0xff] }
0x4454   :  { %v7970_v51 = vld [vmem:[#allocation13 + $0x7e8] sm:$0xff]  ;;  %v9563_v47 = vpack.c.bf16 %v9547_v28, %v9547_v28  ;;  %v9565_v56 = vpack.c.bf16 %v9549_v17, %v9549_v17  ;;  %v14890_v4 = vcombine.high %v7961_v61, %v7969_v25  ;;  %v9007_v2 = vrot.slane %v17754_v22, %v16848_v27  ;;  %v7964_v17 = vld [vmem:[#allocation13 + $0x7b8] sm:$0xff] }
0x4455   :  { %v9564_v1 = vpack.c.bf16 %v9548_v11, %v9548_v11  ;;  %v9566_v24 = vpack.c.bf16 %v9550_v18, %v9550_v18  ;;  %v14892_v21 = vcombine.high %v7962_v55, %v7970_v51  ;;  %v9015_v11 = vrot.slane %v17754_v22, %v16921_v29  ;;  %v7947_v18 = vld [vmem:[#allocation13 + $0x730] sm:$0xff] }
0x4456   :  { %v9027_v13 = vrot.slane %v17754_v22, %v17039_v52  ;;  %v14877_v28 = vcombine.low %v7947_v18, %v7955_v35 }
0x4457   :  { %v9413_v49 = vpop.f32.mrb[180].mxu0  ;;  %v9454_v23 = vpop.f32.mrb[184].mxu1  ;;  %9855 = vmatprep.mubr.bf16.mxu0 %v9564_v1  ;;  %9895 = vmatprep.mubr.bf16.mxu1 %v9566_v24  ;;  %v14889_v1 = vcombine.low %v7961_v61, %v7969_v25 }
0x4458   :  { %v9415_v37 = vpop.f32.mrb[181].mxu0  ;;  %v9456_v39 = vpop.f32.mrb[185].mxu1  ;;  %v9414_v24 = vadd.f32 %v9413_v49, %v9007_v2  ;;  %v9455_v14 = vadd.f32 %v9454_v23, %v9015_v11 }
0x4459   :  { %v9416_v40 = vadd.f32 %v9415_v37, %v9011_v54  ;;  %v9457_v32 = vadd.f32 %v9456_v39, %v9019_v15  ;;  %9826 = vmatpush1.bf16.xpose.msra.mxu0 %v14885_v33  ;;  %9866 = vmatpush1.bf16.xpose.msra.mxu1 %v14887_v41  ;;  %v9417_v36 = vpop.f32.mrb[182].mxu0  ;;  %v9458_v43 = vpop.f32.mrb[186].mxu1  ;;  %v7956_v33 = vld [vmem:[#allocation13 + $0x778] sm:$0xff]  ;;  %v9035_v41 = vrot.slane %v17754_v22, %v17042_v53 }
0x445a   :  { %v9418_v48 = vpop.f32.mrb[183].mxu0  ;;  %v9459_v57 = vpop.f32.mrb[187].mxu1  ;;  %9903 = vmatprep.subr.bf16.mxu0 %v14874_v10  ;;  %9943 = vmatprep.subr.bf16.mxu1 %v14876_v44  ;;  %v14891_v54 = vcombine.low %v7962_v55, %v7970_v51  ;;  %v14878_v15 = vcombine.high %v7947_v18, %v7955_v35  ;;  %v14880_v38 = vcombine.high %v7948_v16, %v7956_v33  ;;  %v9551_v37 = vmax.f32 %v9414_v24, 0.0  ;;  %v7971_v36 = vld [vmem:[#allocation13 + $0x7f0] sm:$0xff] }
0x445b   :  { %v9552_v59 = vmax.f32 %v9416_v40, 0.0  ;;  %v9554_v58 = vmax.f32 %v9457_v32, 0.0  ;;  %v9553_v39 = vmax.f32 %v9455_v14, 0.0  ;;  %v7963_v32 = vld [vmem:[#allocation13 + $0x7b0] sm:$0xff]  ;;  %v7972_v48 = vld [vmem:[#allocation13 + $0x7f8] sm:$0xff]  ;;  %v14879_v57 = vcombine.low %v7948_v16, %v7956_v33 }
0x445c   :  { %v9567_v49 = vpack.c.bf16 %v9551_v37, %v9551_v37  ;;  %v14894_v23 = vcombine.high %v7963_v32, %v7971_v36  ;;  %v14896_v61 = vcombine.high %v7964_v17, %v7972_v48  ;;  %v9023_v55 = vrot.slane %v17754_v22, %v17045_v62 }
0x445d   :  { %v9568_v46 = vpack.c.bf16 %v9552_v59, %v9552_v59  ;;  %v9570_v45 = vpack.c.bf16 %v9554_v58, %v9554_v58  ;;  %v9569_v59 = vpack.c.bf16 %v9553_v39, %v9553_v39  ;;  %v9031_v51 = vrot.slane %v17754_v22, %v17048_v63  ;;  %v9741_v22 = vpop.permute.xlu0 %9740 }
0x445f   :  { %v17760_v30 = vpop.f32.mrb[184].mxu0  ;;  %v17762_v8 = vpop.f32.mrb[188].mxu1 }
0x4460   :  { %9856 = vmatmul.mubr.bf16.vlgmr.msra.gmra.mrb[192].mxu0 %v9563_v47  ;;  %9896 = vmatmul.mubr.bf16.vlgmr.msra.gmra.mrb[196].mxu1 %v9565_v56  ;;  %v9497_v9 = vpop.f32.mrb[185].mxu0  ;;  %v9538_v0 = vpop.f32.mrb[189].mxu1  ;;  %v14895_v47 = vcombine.low %v7964_v17, %v7972_v48  ;;  %v9537_v56 = vadd.f32 %v17762_v8, %v9031_v51 }
0x4461   :  { %9904 = vmatpush1.bf16.xpose.msra.mxu0 %v14873_v60  ;;  %9935 = vmatprep.mubr.bf16.mxu0 %v9568_v46  ;;  %v9499_v7 = vpop.f32.mrb[186].mxu0  ;;  %v9540_v19 = vpop.f32.mrb[190].mxu1  ;;  %v9498_v10 = vadd.f32 %v9497_v9, %v9027_v13  ;;  %v9539_v44 = vadd.f32 %v9538_v0, %v9035_v41  ;;  %v14893_v46 = vcombine.low %v7963_v32, %v7971_v36 }
0x4462   :  { %9944 = vmatpush1.bf16.xpose.msra.mxu1 %v14875_v6  ;;  %9975 = vmatprep.mubr.bf16.mxu1 %v9570_v45  ;;  %v9500_v12 = vpop.f32.mrb[187].mxu0  ;;  %v9541_v42 = vpop.f32.mrb[191].mxu1  ;;  %v9496_v60 = vadd.f32 %v17760_v30, %v9023_v55  ;;  %v9557_v6 = vmax.f32 %v9537_v56, 0.0 }
0x4463   :  { %9905 = vmatprep.subr.bf16.mxu0 %v14890_v4  ;;  %9945 = vmatprep.subr.bf16.mxu1 %v14892_v21  ;;  %v9556_v40 = vmax.f32 %v9498_v10, 0.0  ;;  %v9558_v43 = vmax.f32 %v9539_v44, 0.0 }
0x4464   :  { %v9555_v45 = vmax.f32 %v9496_v60, 0.0  ;;  %v9573_v21 = vpack.c.bf16 %v9557_v6, %v9557_v6  ;;  %v17787_v6 = vld [vmem:[#allocation11 + $0x80] sm:$0xff]  }
0x4465   :  { %v9572_v58 = vpack.c.bf16 %v9556_v40, %v9556_v40  ;;  %v9574_v25 = vpack.c.bf16 %v9558_v43, %v9558_v43 }
0x4466   :  { %v9571_v4 = vpack.c.bf16 %v9555_v45, %v9555_v45 }
0x4469   :  { %9906 = vmatpush1.bf16.xpose.msra.mxu0 %v14889_v1 }
0x446a   :  { %9946 = vmatpush1.bf16.xpose.msra.mxu1 %v14891_v54  ;;  %9983 = vmatprep.subr.bf16.mxu0 %v14878_v15 }
0x446b   :  { %10023 = vmatprep.subr.bf16.mxu1 %v14880_v38 }
0x4470   :  { %9936 = vmatmul.mubr.bf16.vlgmr.msra.gmra.mrb[196].mxu0 %v9567_v49 }
0x4471   :  { %9976 = vmatmul.mubr.bf16.vlgmr.msra.gmra.mrb[200].mxu1 %v9569_v59  ;;  %9984 = vmatpush1.bf16.xpose.msra.mxu0 %v14877_v28 }
0x4472   :  { %10015 = vmatprep.mubr.bf16.mxu0 %v9572_v58  ;;  %10024 = vmatpush1.bf16.xpose.msra.mxu1 %v14879_v57 }
0x4473   :  { %10055 = vmatprep.mubr.bf16.mxu1 %v9574_v25  ;;  %9985 = vmatprep.subr.bf16.mxu0 %v14894_v23 }
0x4474   :  { %10025 = vmatprep.subr.bf16.mxu1 %v14896_v61 }
0x4479   :  { %9986 = vmatpush1.bf16.xpose.msra.mxu0 %v14893_v46 }
0x447a   :  { %10026 = vmatpush1.bf16.xpose.msra.mxu1 %v14895_v47  ;;  %15801 = vmatprep.subr.bf16.mxu0 %v16502_v50 }
0x447b   :  { %15809 = vmatprep.subr.mxu1 %v16502_v50 }
0x4480   :  { %10016 = vmatmul.mubr.bf16.vlgmr.msra.gmra.mrb[200].mxu0 %v9571_v4 }
0x4481   :  { %10056 = vmatmul.mubr.bf16.vlgmr.msra.gmra.mrb[204].mxu1 %v9573_v21  ;;  %15805 = vmatprep.mubr.msk.bf16.mxu0 %vm16503_vm4, %v16502_v50 }
0x4482   :  { %15811 = vmatprep.mubr.msk.f32.mxu1 %vm16503_vm4, %v16502_v50  ;;  %15802 = vmatpush3.bf16.msra.mxu0 %v17787_v6 }
0x4483   :  { %15803 = vmatprep.subr.bf16.mxu0 %v16502_v50 }
0x4523   :  { %v9817_v30 = vpop.f32.mrb[192].mxu1  ;;  %v9777_v8 = vpop.f32.mrb[188].mxu0 }
0x4524   :  { %v9778_v9 = vadd.f32 %v9777_v8, %v9741_v22  ;;  %v9779_v0 = vpop.f32.mrb[189].mxu0  ;;  %v9819_v7 = vpop.f32.mrb[193].mxu1 }
0x4525   :  { %v9780_v19 = vpop.f32.mrb[190].mxu0  ;;  %v9820_v2 = vpop.f32.mrb[194].mxu1 }
0x4526   :  { %v9781_v12 = vpop.f32.mrb[191].mxu0  ;;  %v9821_v42 = vpop.f32.mrb[195].mxu1  ;;  %v9818_v11 = vadd.f32 %v9817_v30, %v9778_v9  ;;  %v17802_v2 = vld [vmem:[#allocation14 + $0x10] sm:$0xf] }
0x4527   :  { %v17806_v12 = vrot.slane %v17802_v2, %v16848_v27 }
0x4533   :  { %v9857_v18 = vpop.f32.mrb[192].mxu0  ;;  %v9897_v35 = vpop.f32.mrb[196].mxu1 }
0x4534   :  { %v9858_v13 = vadd.f32 %v9857_v18, %v9818_v11  ;;  %v9859_v16 = vpop.f32.mrb[193].mxu0  ;;  %v9899_v33 = vpop.f32.mrb[197].mxu1 }
0x4535   :  { %v9860_v41 = vpop.f32.mrb[194].mxu0  ;;  %v9900_v1 = vpop.f32.mrb[198].mxu1 }
0x4536   :  { %v9898_v24 = vadd.f32 %v9897_v35, %v9858_v13  ;;  %v9861_v54 = vpop.f32.mrb[195].mxu0  ;;  %v9901_v15 = vpop.f32.mrb[199].mxu1 }
0x4543   :  { %v9937_v14 = vpop.f32.mrb[196].mxu0 }
0x4544   :  { %v9938_v38 = vadd.f32 %v9937_v14, %v9898_v24  ;;  %v9977_v10 = vpop.f32.mrb[200].mxu1  ;;  %v9939_v44 = vpop.f32.mrb[197].mxu0 }
0x4545   :  { %v9979_v37 = vpop.f32.mrb[201].mxu1  ;;  %v9940_v39 = vpop.f32.mrb[198].mxu0 }
0x4546   :  { %v9978_v40 = vadd.f32 %v9977_v10, %v9938_v38  ;;  %v9980_v32 = vpop.f32.mrb[202].mxu1  ;;  %v9941_v36 = vpop.f32.mrb[199].mxu0 }
0x4547   :  { %v9981_v43 = vpop.f32.mrb[203].mxu1 }
0x4553   :  { %v10017_v28 = vpop.f32.mrb[200].mxu0 }
0x4554   :  { %v10018_v17 = vadd.f32 %v10017_v28, %v9978_v40  ;;  %v10057_v48 = vpop.f32.mrb[204].mxu1  ;;  %v10019_v49 = vpop.f32.mrb[201].mxu0 }
0x4555   :  { %v10059_v57 = vpop.f32.mrb[205].mxu1  ;;  %v10020_v59 = vpop.f32.mrb[202].mxu0 }
0x4556   :  { %v10058_v23 = vadd.f32 %v10057_v48, %v10018_v17  ;;  %v10060_v58 = vpop.f32.mrb[206].mxu1  ;;  %v10021_v61 = vpop.f32.mrb[203].mxu0 }
0x4557   :  { %v10061_v25 = vpop.f32.mrb[207].mxu1 }
0x4558   :  { %v10063_v55 = vadd.f32 %v10058_v23, %v17702_v26  ;;  %v16115_v26 = vld [vmem:[#allocation11 + $0x88] sm:$0xff]  }
0x4559   :  { %15804 = vmatpush3.bf16.msra.mxu0 %v16115_v26 }
0x455a   :  { %v10064_v51 = vsel %vm1861_vm10, %v10063_v55, 0.0  ;;  %15814 = vmatprep.subr.mxu0 %v16502_v50 }
0x455b   :  { %10065 = vadd.xlane.f32.xlu1 %v10064_v51 }
0x45e8   :  { %v10066_v46 = vpop.xlane.xlu1 %10065 }
0x45e9   :  { %v10067_v60 = vmul.f32 0.03125, %v10066_v46 }
0x45eb   :  { %v10068_v47 = vsub.f32 %v10063_v55, %v10067_v60 }
0x45ed   :  { %v10069_v56 = vmul.f32 %v10068_v47, %v10068_v47 }
0x45ef   :  { %v10070_v45 = vsel %vm1861_vm10, %v10069_v56, 0.0 }
0x45f0   :  { %10071 = vadd.xlane.f32.xlu0 %v10070_v45 }
0x4606   :  { %10078 = vrot.lane.b32.xlu0 %v17732_v5, %s16504_s4 }
0x467d   :  { %v10072_v4 = vpop.xlane.xlu0 %10071 }
0x467e   :  { %v10073_v21 = vmul.f32 0.03125, %v10072_v4 }
0x4680   :  { %v10074_v22 = vadd.f32 1e-05, %v10073_v21 }
0x4681   :  { %v10079_v9 = vpop.permute.xlu0 %10078 }
0x4682   :  { %16208 = vrsqrt.f32 %v10074_v22 }
0x468c   :  { %v16209_v30 = vpop.eup %16208 }
0x468d   :  { %v10076_v8 = vmul.f32 %v16209_v30, %v10068_v47 }
0x468f   :  { %v10077_v0 = vmul.f32 %v10076_v8, %v17732_v5 }
0x4691   :  { %v17795_v7 = vadd.f32 %v10079_v9, %v10077_v0 }
0x4693   :  { %v10163_v19 = vpack.c.bf16 %v17795_v7, %v17795_v7 }
0x4695   :  { %15806 = vmatmul.mubr.msk.bf16.vlgmr.msra.gmra.mrb[204].mxu0 %vm170_vm1, %v10163_v19 }
0x4696   :  { %15816 = vmatprep.mubr.msk.f32.mxu0 %vm16503_vm4, %v16502_v50 }
0x4768   :  { %v10213_v42 = vpop.f32.mrb[204].mxu0 }
0x4769   :  { %v10223_v11 = vadd.f32 %v17806_v12, %v10213_v42  ;;  %v15807_v5 = vpop.f32.mrb[205].mxu0  ;;  %v17855_v42 = vld [vmem:[#allocation11 + $0x98] sm:$0xff]  }
0x476a   :  { %v10216_v18 = vpop.f32.mrb[206].mxu0 }
0x476b   :  { %10226 = vrot.lane.b32.xlu1 %v10223_v11, %s16504_s4  ;;  %v15808_v35 = vpop.f32.mrb[207].mxu0  ;;  %v10224_v13 = vmul.f32 0.25, %v10223_v11 }
0x476d   :  { %10391 = vrot.lane.b32.xlu0 %v10224_v13, %s16506_s15 }
0x476f   :  { %10393 = vrot.lane.b32.xlu1 %v10223_v11, %s16505_s26 }
0x47dd   :  { %v10227_v16 = vpop.permute.xlu1 %10226 }
0x47de   :  { %15810 = vmatpush3.xpose.msk.msra.mxu1 %vm1323_vm6, %v10227_v16  ;;  %v17877_v16 = vrot.slane %v17802_v2, %v16930_v31 }
0x47df   :  { %15819 = vmatprep.subr.mxu1 %v16502_v50  ;;  %v10392_v41 = vpop.permute.xlu0 %10391 }
0x47e1   :  { %v10394_v33 = vpop.permute.xlu1 %10393  ;;  %15812 = vmatmul.mubr.msk.f32.vlgmr.msra.gmra.mrb[170].mxu1 %vm1323_vm6, %v10224_v13  ;;  %v17871_v13 = vrot.slane %v17802_v2, %v16921_v29 }
0x47e2   :  { %15820 = vmatpush3.xpose.msk.msra.mxu1 %vm1323_vm6, %v10394_v33  ;;  %15821 = vmatprep.mubr.msk.f32.mxu1 %vm16503_vm4, %v16502_v50 }
0x47e3   :  { %15829 = vmatprep.subr.bf16.mxu1 %v16502_v50 }
0x47e5   :  { %15822 = vmatmul.mubr.msk.f32.vlgmr.msra.gmra.mrb[208].mxu1 %vm1323_vm6, %v10392_v41 }
0x47e6   :  { %15833 = vmatprep.mubr.msk.bf16.mxu1 %vm16503_vm4, %v16502_v50 }
0x48b4   :  { %v10299_v1 = vpop.f32.mrb[170].mxu1 }
0x48b5   :  { %v15813_v24 = vpop.f32.mrb[171].mxu1  ;;  %v10303_v54 = vsel %vm1544_vm7, %v10299_v1, -inf }
0x48b6   :  { %10304 = vmax.xlane.f32.xlu1 %v10303_v54 }
0x48b8   :  { %v10465_v15 = vpop.f32.mrb[208].mxu1 }
0x48b9   :  { %v15823_v14 = vpop.f32.mrb[209].mxu1  ;;  %v10469_v38 = vsel %vm1544_vm7, %v10465_v15, -inf }
0x48ba   :  { %10470 = vmax.xlane.f32.xlu0 %v10469_v38 }
0x4943   :  { %v10305_v10 = vpop.xlane.xlu1 %10304 }
0x4944   :  { %v10306_v44 = vsub.f32 %v10299_v1, %v10305_v10 }
0x4946   :  { %v10307_v37 = vmul.f32 1.442695, %v10306_v44 }
0x4947   :  { %v10471_v39 = vpop.xlane.xlu0 %10470 }
0x4948   :  { %16210 = vpow2.f32 %v10307_v37  ;;  %v10472_v40 = vsub.f32 %v10465_v15, %v10471_v39 }
0x494a   :  { %v10473_v32 = vmul.f32 1.442695, %v10472_v40 }
0x494c   :  { %16212 = vpow2.f32 %v10473_v32 }
0x4952   :  { %v16211_v36 = vpop.eup %16210 }
0x4953   :  { %v10309_v43 = vsel %vm1544_vm7, %v16211_v36, 0.0 }
0x4954   :  { %10310 = vadd.xlane.f32.xlu0 %v10309_v43 }
0x4956   :  { %v16213_v28 = vpop.eup %16212 }
0x4957   :  { %v10475_v17 = vsel %vm1544_vm7, %v16213_v28, 0.0 }
0x4958   :  { %10476 = vadd.xlane.f32.xlu1 %v10475_v17 }
0x4969   :  { %10480 = vrot.lane.b32.xlu1 %v10223_v11, %s16507_s14 }
0x496a   :  { %10314 = vrot.lane.b32.xlu0 %v10223_v11, %s16491_s3 }
0x496d   :  { %10563 = vrot.lane.b32.xlu1 %v17787_v6, %s16508_s19 }
0x4971   :  { %10565 = vrot.lane.b32.xlu1 %v16115_v26, %s16508_s19 }
0x49e1   :  { %v10311_v48 = vpop.xlane.xlu0 %10310 }
0x49e2   :  { %16214 = vrcp.f32 %v10311_v48 }
0x49e5   :  { %v10477_v49 = vpop.xlane.xlu1 %10476  ;;  %v10315_v57 = vpop.permute.xlu0 %10314 }
0x49e6   :  { %16216 = vrcp.f32 %v10477_v49  ;;  %15815 = vmatpush3.msk.msra.mxu0 %vm1562_vm8, %v10315_v57 }
0x49e7   :  { %15824 = vmatprep.subr.mxu0 %v16502_v50 }
0x49e9   :  { %v10481_v58 = vpop.permute.xlu1 %10480 }
0x49ec   :  { %v16215_v59 = vpop.eup %16214 }
0x49ed   :  { %v10313_v23 = vmul.f32 %v16215_v59, %v16211_v36  ;;  %v10564_v55 = vpop.permute.xlu1 %10563 }
0x49ee   :  { %15830 = vmatpush3.bf16.msra.mxu1 %v10564_v55 }
0x49ef   :  { %15817 = vmatmul.mubr.msk.f32.vlgmr.msra.gmra.mrb[170].mxu0 %vm1558_vm9, %v10313_v23  ;;  %15831 = vmatprep.subr.bf16.mxu1 %v16502_v50 }
0x49f0   :  { %v16217_v61 = vpop.eup %16216  ;;  %15825 = vmatpush3.msk.msra.mxu0 %vm1562_vm8, %v10481_v58  ;;  %15826 = vmatprep.mubr.msk.f32.mxu0 %vm16503_vm4, %v16502_v50 }
0x49f1   :  { %v10479_v25 = vmul.f32 %v16217_v61, %v16213_v28  ;;  %15837 = vmatprep.subr.bf16.mxu0 %v16502_v50  ;;  %v10566_v51 = vpop.permute.xlu1 %10565 }
0x49f2   :  { %15832 = vmatpush3.bf16.msra.mxu1 %v10566_v51 }
0x49f3   :  { %15827 = vmatmul.mubr.msk.f32.vlgmr.msra.gmra.mrb[208].mxu0 %vm1558_vm9, %v10479_v25  ;;  %15845 = vmatprep.subr.bf16.mxu1 %v16502_v50 }
0x49f4   :  { %15841 = vmatprep.mubr.msk.bf16.mxu0 %vm16503_vm4, %v16502_v50 }
0x4ac2   :  { %v10387_v46 = vpop.f32.mrb[170].mxu0 }
0x4ac3   :  { %v15818_v60 = vpop.f32.mrb[171].mxu0 }
0x4ac6   :  { %v10553_v47 = vpop.f32.mrb[208].mxu0 }
0x4ac7   :  { %10558 = vrot.lane.b32.xlu0 %v10553_v47, %s16501_s2  ;;  %v15828_v56 = vpop.f32.mrb[209].mxu0 }
0x4acb   :  { %10570 = vrot.lane.b32.xlu0 %v17806_v12, %s16508_s19  ;;  %v17852_v12 = vld [vmem:[#allocation11 + $0x90] sm:$0xff]  }
0x4acc   :  { %15838 = vmatpush3.bf16.msra.mxu0 %v17852_v12 }
0x4acd   :  { %15839 = vmatprep.subr.bf16.mxu0 %v16502_v50 }
0x4ad0   :  { %15840 = vmatpush3.bf16.msra.mxu0 %v17855_v42 }
0x4ad1   :  { %15853 = vmatprep.subr.mxu0 %v16502_v50 }
0x4ad3   :  { %15842 = vmatmul.mubr.msk.bf16.vlgmr.msra.gmra.mrb[212].mxu0 %vm170_vm1, %v16913_v20 }
0x4ad4   :  { %15855 = vmatprep.mubr.msk.f32.mxu0 %vm16503_vm4, %v16502_v50 }
0x4b39   :  { %v10559_v45 = vpop.permute.xlu0 %10558 }
0x4b3a   :  { %v10561_v6 = vsel %vm1323_vm6, %v10387_v46, %v10559_v45 }
0x4b3b   :  { %v10562_v26 = vpack.c.bf16 %v10561_v6, %v10561_v6 }
0x4b3d   :  { %15834 = vmatmul.mubr.msk.bf16.vlgmr.msra.gmra.mrb[212].mxu1 %vm170_vm1, %v10562_v26  ;;  %v10571_v4 = vpop.permute.xlu0 %10570 }
0x4b3e   :  { %15849 = vmatprep.mubr.msk.bf16.mxu1 %vm16503_vm4, %v16502_v50  ;;  %15846 = vmatpush3.bf16.msra.mxu1 %v17852_v12 }
0x4b3f   :  { %15847 = vmatprep.subr.bf16.mxu1 %v16502_v50 }
0x4b42   :  { %15848 = vmatpush3.bf16.msra.mxu1 %v17855_v42 }
0x4b43   :  { %15863 = vmatprep.subr.mxu1 %v16502_v50 }
0x4ba6   :  { %v10686_v33 = vpop.f32.mrb[212].mxu0 }
0x4ba7   :  { %v10741_v41 = vadd.f32 %v17877_v16, %v10686_v33  ;;  %v15843_v1 = vpop.f32.mrb[213].mxu0 }
0x4ba8   :  { %v10689_v24 = vpop.f32.mrb[214].mxu0 }
0x4ba9   :  { %v15844_v54 = vpop.f32.mrb[215].mxu0 }
0x4c10   :  { %v10610_v21 = vpop.f32.mrb[212].mxu1 }
0x4c11   :  { %v10611_v22 = vadd.f32 %v10610_v21, %v10571_v4  ;;  %v15835_v30 = vpop.f32.mrb[213].mxu1 }
0x4c12   :  { %v10613_v8 = vpop.f32.mrb[214].mxu1 }
0x4c13   :  { %v10616_v9 = vadd.f32 %v10611_v22, %v17795_v7  ;;  %v15836_v0 = vpop.f32.mrb[215].mxu1 }
0x4c15   :  { %v10617_v19 = vsel %vm1861_vm10, %v10616_v9, 0.0 }
0x4c16   :  { %10618 = vadd.xlane.f32.xlu1 %v10617_v19 }
0x4c27   :  { %10744 = vrot.lane.b32.xlu1 %v10741_v41, %s16504_s4 }
0x4c2b   :  { %10911 = vrot.lane.b32.xlu1 %v10741_v41, %s16505_s26 }
0x4ca3   :  { %v10619_v7 = vpop.xlane.xlu1 %10618 }
0x4ca4   :  { %v10620_v11 = vmul.f32 0.03125, %v10619_v7 }
0x4ca6   :  { %v10621_v5 = vsub.f32 %v10616_v9, %v10620_v11 }
0x4ca7   :  { %v10745_v36 = vpop.permute.xlu1 %10744 }
0x4ca8   :  { %v10622_v18 = vmul.f32 %v10621_v5, %v10621_v5  ;;  %15854 = vmatpush3.xpose.msk.msra.mxu0 %vm1323_vm6, %v10745_v36 }
0x4ca9   :  { %15858 = vmatprep.subr.mxu0 %v16502_v50 }
0x4caa   :  { %v10623_v35 = vsel %vm1861_vm10, %v10622_v18, 0.0 }
0x4cab   :  { %10624 = vadd.xlane.f32.xlu0 %v10623_v35  ;;  %v10912_v43 = vpop.permute.xlu1 %10911 }
0x4cc1   :  { %10636 = vrot.lane.b32.xlu0 %v17871_v13, %s16504_s4 }
0x4d38   :  { %v10625_v15 = vpop.xlane.xlu0 %10624 }
0x4d39   :  { %v10626_v14 = vmul.f32 0.03125, %v10625_v15 }
0x4d3b   :  { %v10627_v38 = vadd.f32 1e-05, %v10626_v14 }
0x4d3c   :  { %v10637_v37 = vpop.permute.xlu0 %10636 }
0x4d3d   :  { %16218 = vrsqrt.f32 %v10627_v38 }
0x4d47   :  { %v16219_v10 = vpop.eup %16218 }
0x4d48   :  { %v10629_v44 = vmul.f32 %v16219_v10, %v10621_v5 }
0x4d4a   :  { %v10634_v39 = vmul.f32 %v17871_v13, %v10629_v44 }
0x4d4c   :  { %v17883_v40 = vadd.f32 %v10637_v37, %v10634_v39 }
0x4d4e   :  { %v10692_v32 = vpack.c.bf16 %v17883_v40, %v17883_v40 }
0x4d50   :  { %15850 = vmatmul.mubr.msk.bf16.vlgmr.msra.gmra.mrb[216].mxu1 %vm170_vm1, %v10692_v32 }
0x4d51   :  { %15865 = vmatprep.mubr.msk.f32.mxu1 %vm16503_vm4, %v16502_v50  ;;  %15864 = vmatpush3.xpose.msk.msra.mxu1 %vm1323_vm6, %v10912_v43 }
0x4d52   :  { %15873 = vmatprep.subr.bf16.mxu1 %v16502_v50 }
0x4e23   :  { %v10730_v28 = vpop.f32.mrb[216].mxu1 }
0x4e24   :  { %v10740_v17 = vadd.f32 %v17877_v16, %v10730_v28  ;;  %v15851_v48 = vpop.f32.mrb[217].mxu1 }
0x4e25   :  { %v10733_v49 = vpop.f32.mrb[218].mxu1 }
0x4e26   :  { %v10742_v57 = vmul.f32 0.25, %v10740_v17  ;;  %v15852_v59 = vpop.f32.mrb[219].mxu1  ;;  %v10095_v49 = vld [vmem:[#allocation13 + $0x800] sm:$0xff] }
0x4e27   :  { %v10096_v59 = vld [vmem:[#allocation13 + $0x808] sm:$0xff] }
0x4e28   :  { %10909 = vrot.lane.b32.xlu0 %v10742_v57, %s16506_s15  ;;  %15856 = vmatmul.mubr.msk.f32.vlgmr.msra.gmra.mrb[210].mxu0 %vm1323_vm6, %v10742_v57  ;;  %v10103_v57 = vld [vmem:[#allocation13 + $0x840] sm:$0xff] }
0x4e29   :  { %15860 = vmatprep.mubr.msk.f32.mxu0 %vm16503_vm4, %v16502_v50 }
0x4e9a   :  { %v10910_v23 = vpop.permute.xlu0 %10909 }
0x4e9b   :  { %15866 = vmatmul.mubr.msk.f32.vlgmr.msra.gmra.mrb[210].mxu1 %vm1323_vm6, %v10910_v23  ;;  %v14922_v23 = vcombine.low %v10095_v49, %v10103_v57 }
0x4e9c   :  { %15877 = vmatprep.mubr.msk.bf16.mxu1 %vm16503_vm4, %v16502_v50 }
0x4efb   :  { %v10817_v58 = vpop.f32.mrb[210].mxu0 }
0x4efc   :  { %v15857_v61 = vpop.f32.mrb[211].mxu0  ;;  %v10821_v25 = vsel %vm2070_vm11, %v10817_v58, -inf }
0x4efd   :  { %10822 = vmax.xlane.f32.xlu1 %v10821_v25 }
0x4f6e   :  { %v10983_v55 = vpop.f32.mrb[210].mxu1 }
0x4f6f   :  { %v15867_v51 = vpop.f32.mrb[211].mxu1  ;;  %v10987_v46 = vsel %vm2070_vm11, %v10983_v55, -inf }
0x4f70   :  { %10988 = vmax.xlane.f32.xlu0 %v10987_v46  ;;  %v10119_v51 = vld [vmem:[#allocation13 + $0x8c0] sm:$0xff]  ;;  %v10112_v46 = vld [vmem:[#allocation13 + $0x888] sm:$0xff] }
0x4f8a   :  { %v10823_v60 = vpop.xlane.xlu1 %10822 }
0x4f8b   :  { %v10824_v47 = vsub.f32 %v10817_v58, %v10823_v60  ;;  %v14923_v58 = vcombine.high %v10095_v49, %v10103_v57 }
0x4f8d   :  { %v10825_v56 = vmul.f32 1.442695, %v10824_v47  ;;  %v10120_v47 = vld [vmem:[#allocation13 + $0x8c8] sm:$0xff] }
0x4f8f   :  { %16220 = vpow2.f32 %v10825_v56 }
0x4f99   :  { %v16221_v45 = vpop.eup %16220 }
0x4f9a   :  { %v10827_v6 = vsel %vm2070_vm11, %v16221_v45, 0.0 }
0x4f9b   :  { %10828 = vadd.xlane.f32.xlu0 %v10827_v6  ;;  %v14941_v6 = vcombine.high %v10112_v46, %v10120_v47 }
0x4fb1   :  { %10832 = vrot.lane.b32.xlu0 %v10741_v41, %s16491_s3 }
0x4ffd   :  { %v10989_v26 = vpop.xlane.xlu0 %10988 }
0x4ffe   :  { %v10990_v4 = vsub.f32 %v10983_v55, %v10989_v26  ;;  %v10111_v55 = vld [vmem:[#allocation13 + $0x880] sm:$0xff]  ;;  %v10097_v26 = vld [vmem:[#allocation13 + $0x810] sm:$0xff] }
0x4fff   :  { %v14939_v60 = vcombine.high %v10111_v55, %v10119_v51  ;;  %v14938_v56 = vcombine.low %v10111_v55, %v10119_v51 }
0x5000   :  { %v10991_v21 = vmul.f32 1.442695, %v10990_v4  ;;  %v10105_v4 = vld [vmem:[#allocation13 + $0x850] sm:$0xff] }
0x5002   :  { %16222 = vpow2.f32 %v10991_v21  ;;  %v10098_v21 = vld [vmem:[#allocation13 + $0x818] sm:$0xff] }
0x500c   :  { %v16223_v22 = vpop.eup %16222 }
0x500d   :  { %v10993_v30 = vsel %vm2070_vm11, %v16223_v22, 0.0 }
0x500e   :  { %10994 = vadd.xlane.f32.xlu1 %v10993_v30  ;;  %v10106_v30 = vld [vmem:[#allocation13 + $0x858] sm:$0xff] }
0x501f   :  { %10998 = vrot.lane.b32.xlu1 %v10741_v41, %s16507_s14 }
0x5023   :  { %11081 = vrot.lane.b32.xlu1 %v17852_v12, %s16508_s19 }
0x5027   :  { %11083 = vrot.lane.b32.xlu1 %v17855_v42, %s16508_s19 }
0x5028   :  { %v10829_v8 = vpop.xlane.xlu0 %10828 }
0x5029   :  { %16224 = vrcp.f32 %v10829_v8  ;;  %v14928_v8 = vcombine.low %v10098_v21, %v10106_v30 }
0x502c   :  { %v10833_v9 = vpop.permute.xlu0 %10832 }
0x502d   :  { %15859 = vmatpush3.msk.msra.mxu0 %vm2088_vm12, %v10833_v9  ;;  %v14929_v9 = vcombine.high %v10098_v21, %v10106_v30  ;;  %v10136_v30 = vld [vmem:[#allocation13 + $0x940] sm:$0xff] }
0x502e   :  { %15868 = vmatprep.subr.mxu0 %v16502_v50 }
0x5033   :  { %v16225_v0 = vpop.eup %16224 }
0x5034   :  { %v10831_v19 = vmul.f32 %v16225_v0, %v16221_v45  ;;  %v14940_v45 = vcombine.low %v10112_v46, %v10120_v47  ;;  %v10117_v47 = vld [vmem:[#allocation13 + $0x8b0] sm:$0xff] }
0x5036   :  { %15861 = vmatmul.mubr.msk.f32.vlgmr.msra.gmra.mrb[216].mxu0 %vm2084_vm13, %v10831_v19 }
0x5037   :  { %15870 = vmatprep.mubr.msk.f32.mxu0 %vm16503_vm4, %v16502_v50 }
0x509b   :  { %v10995_v7 = vpop.xlane.xlu1 %10994 }
0x509c   :  { %16226 = vrcp.f32 %v10995_v7 }
0x509f   :  { %v10999_v12 = vpop.permute.xlu1 %10998 }
0x50a0   :  { %15869 = vmatpush3.msk.msra.mxu0 %vm2088_vm12, %v10999_v12 }
0x50a1   :  { %11402 = vmatprep.subr.bf16.mxu0 %v14923_v58  ;;  %v10101_v58 = vld [vmem:[#allocation13 + $0x830] sm:$0xff] }
0x50a3   :  { %v11082_v5 = vpop.permute.xlu1 %11081 }
0x50a4   :  { %15874 = vmatpush3.bf16.msra.mxu1 %v11082_v5 }
0x50a5   :  { %15875 = vmatprep.subr.bf16.mxu1 %v16502_v50 }
0x50a6   :  { %v16227_v42 = vpop.eup %16226 }
0x50a7   :  { %v10997_v11 = vmul.f32 %v16227_v42, %v16223_v22  ;;  %v11084_v18 = vpop.permute.xlu1 %11083  ;;  %v14926_v22 = vcombine.low %v10097_v26, %v10105_v4 }
0x50a8   :  { %15876 = vmatpush3.bf16.msra.mxu1 %v11084_v18 }
0x50a9   :  { %15871 = vmatmul.mubr.msk.f32.vlgmr.msra.gmra.mrb[218].mxu0 %vm2084_vm13, %v10997_v11 }
0x50aa   :  { %11434 = vmatprep.mubr.bf16.mxu0 %v16509_v3  ;;  %11403 = vmatpush1.bf16.msra.mxu0 %v14922_v23 }
0x50ab   :  { %11404 = vmatprep.subr.bf16.mxu0 %v14939_v60 }
0x50ae   :  { %11405 = vmatpush1.bf16.msra.mxu0 %v14938_v56  ;;  %v10125_v56 = vld [vmem:[#allocation13 + $0x8f0] sm:$0xff] }
0x50af   :  { %v14951_v21 = vcombine.high %v10117_v47, %v10125_v56 }
0x5109   :  { %v10905_v35 = vpop.f32.mrb[216].mxu0 }
0x510a   :  { %v15862_v33 = vpop.f32.mrb[217].mxu0 }
0x510b   :  { %v10121_v33 = vld [vmem:[#allocation13 + $0x8d0] sm:$0xff] }
0x517c   :  { %v11071_v41 = vpop.f32.mrb[218].mxu0 }
0x517d   :  { %11076 = vrot.lane.b32.xlu0 %v11071_v41, %s16501_s2  ;;  %v15872_v1 = vpop.f32.mrb[219].mxu0  ;;  %v10114_v41 = vld [vmem:[#allocation13 + $0x898] sm:$0xff] }
0x517e   :  { %v10122_v1 = vld [vmem:[#allocation13 + $0x8d8] sm:$0xff] }
0x5181   :  { %11088 = vrot.lane.b32.xlu0 %v17877_v16, %s16508_s19 }
0x51ef   :  { %v11077_v24 = vpop.permute.xlu0 %11076 }
0x51f0   :  { %v11079_v54 = vsel %vm1323_vm6, %v10905_v35, %v11077_v24  ;;  %v10113_v35 = vld [vmem:[#allocation13 + $0x890] sm:$0xff] }
0x51f1   :  { %v11080_v15 = vpack.c.bf16 %v11079_v54, %v11079_v54 }
0x51f3   :  { %15878 = vmatmul.mubr.msk.bf16.vlgmr.msra.gmra.mrb[220].mxu1 %vm170_vm1, %v11080_v15  ;;  %v11089_v14 = vpop.permute.xlu0 %11088  ;;  %v14943_v15 = vcombine.high %v10113_v35, %v10121_v33 }
0x51f4   :  { %11475 = vmatprep.mubr.bf16.mxu1 %v16509_v3 }
0x52c6   :  { %v11128_v38 = vpop.f32.mrb[220].mxu1 }
0x52c7   :  { %v11129_v10 = vadd.f32 %v11128_v38, %v11089_v14  ;;  %v15879_v44 = vpop.f32.mrb[221].mxu1  ;;  %v14945_v14 = vcombine.high %v10114_v41, %v10122_v1  ;;  %v10099_v38 = vld [vmem:[#allocation13 + $0x820] sm:$0xff] }
0x52c8   :  { %v11131_v37 = vpop.f32.mrb[222].mxu1  ;;  %v10100_v44 = vld [vmem:[#allocation13 + $0x828] sm:$0xff] }
0x52c9   :  { %v11134_v39 = vadd.f32 %v11129_v10, %v17883_v40  ;;  %v15880_v32 = vpop.f32.mrb[223].mxu1  ;;  %v10104_v40 = vld [vmem:[#allocation13 + $0x848] sm:$0xff]  ;;  %v10107_v10 = vld [vmem:[#allocation13 + $0x860] sm:$0xff] }
0x52ca   :  { %v14924_v61 = vcombine.low %v10096_v59, %v10104_v40  ;;  %v14925_v25 = vcombine.high %v10096_v59, %v10104_v40  ;;  %v10108_v37 = vld [vmem:[#allocation13 + $0x868] sm:$0xff]  ;;  %v14944_v32 = vcombine.low %v10114_v41, %v10122_v1  ;;  %v14930_v49 = vcombine.low %v10099_v38, %v10107_v10  ;;  %v10109_v40 = vld [vmem:[#allocation13 + $0x870] sm:$0xff] }
0x52cb   :  { %v11135_v36 = vsel %vm1861_vm10, %v11134_v39, 0.0  ;;  %v14932_v57 = vcombine.low %v10100_v44, %v10108_v37  ;;  %v14935_v46 = vcombine.high %v10101_v58, %v10109_v40  ;;  %v10153_v41 = vld [vmem:[#allocation13 + $0x9c8] sm:$0xff] }
0x52cc   :  { %11136 = vadd.xlane.f32.xlu1 %v11135_v36  ;;  %11443 = vmatprep.subr.bf16.mxu1 %v14925_v25  ;;  %v14931_v36 = vcombine.high %v10099_v38, %v10107_v10  ;;  %v10110_v25 = vld [vmem:[#allocation13 + $0x878] sm:$0xff]  ;;  %v10130_v38 = vld [vmem:[#allocation13 + $0x910] sm:$0xff] }
0x52cd   :  { %11444 = vmatpush1.bf16.msra.mxu1 %v14924_v61  ;;  %v10102_v61 = vld [vmem:[#allocation13 + $0x838] sm:$0xff]  ;;  %v10138_v10 = vld [vmem:[#allocation13 + $0x950] sm:$0xff] }
0x52ce   :  { %11445 = vmatprep.subr.bf16.mxu1 %v14941_v6  ;;  %v14937_v60 = vcombine.high %v10102_v61, %v10110_v25  ;;  %v10126_v6 = vld [vmem:[#allocation13 + $0x8f8] sm:$0xff] }
0x52d1   :  { %11446 = vmatpush1.bf16.msra.mxu1 %v14940_v45  ;;  %v10118_v45 = vld [vmem:[#allocation13 + $0x8b8] sm:$0xff] }
0x52d2   :  { %11525 = vmatprep.subr.bf16.mxu1 %v14929_v9  ;;  %v10137_v9 = vld [vmem:[#allocation13 + $0x948] sm:$0xff] }
0x52dd   :  { %11152 = vrot.lane.b32.xlu1 %v17871_v13, %s16508_s19 }
0x5359   :  { %v11137_v16 = vpop.xlane.xlu1 %11136 }
0x535a   :  { %v11138_v43 = vmul.f32 0.03125, %v11137_v16  ;;  %v14933_v16 = vcombine.high %v10100_v44, %v10108_v37  ;;  %v10131_v44 = vld [vmem:[#allocation13 + $0x918] sm:$0xff] }
0x535b   :  { %v10139_v37 = vld [vmem:[#allocation13 + $0x958] sm:$0xff] }
0x535c   :  { %v11139_v28 = vsub.f32 %v11134_v39, %v11138_v43  ;;  %v14942_v39 = vcombine.low %v10113_v35, %v10121_v33  ;;  %v10115_v43 = vld [vmem:[#allocation13 + $0x8a0] sm:$0xff]  ;;  %v10145_v35 = vld [vmem:[#allocation13 + $0x988] sm:$0xff] }
0x535d   :  { %v11153_v5 = vpop.permute.xlu1 %11152 }
0x535e   :  { %v11140_v17 = vmul.f32 %v11139_v28, %v11139_v28 }
0x5360   :  { %v11141_v48 = vsel %vm1861_vm10, %v11140_v17, 0.0  ;;  %v10116_v17 = vld [vmem:[#allocation13 + $0x8a8] sm:$0xff] }
0x5361   :  { %11142 = vadd.xlane.f32.xlu0 %v11141_v48  ;;  %v10124_v48 = vld [vmem:[#allocation13 + $0x8e8] sm:$0xff] }
0x5362   :  { %v14949_v23 = vcombine.high %v10116_v17, %v10124_v48  ;;  %v14948_v51 = vcombine.low %v10116_v17, %v10124_v48 }
0x5377   :  { %11148 = vrot.lane.b32.xlu0 %v17871_v13, %s16491_s3  ;;  %v14927_v13 = vcombine.high %v10097_v26, %v10105_v4  ;;  %v14934_v26 = vcombine.low %v10101_v58, %v10109_v40  ;;  %v14936_v4 = vcombine.low %v10102_v61, %v10110_v25 }
0x5379   :  { %11484 = vmatprep.subr.bf16.mxu0 %v14927_v13  ;;  %v10128_v13 = vld [vmem:[#allocation13 + $0x900] sm:$0xff] }
0x53ee   :  { %v11143_v0 = vpop.xlane.xlu0 %11142 }
0x53ef   :  { %v11144_v19 = vmul.f32 0.03125, %v11143_v0  ;;  %v14950_v0 = vcombine.low %v10117_v47, %v10125_v56 }
0x53f1   :  { %v11145_v7 = vadd.f32 1e-05, %v11144_v19  ;;  %v14952_v19 = vcombine.low %v10118_v45, %v10126_v6 }
0x53f2   :  { %v11149_v42 = vpop.permute.xlu0 %11148 }
0x53f3   :  { %16228 = vrsqrt.f32 %v11145_v7  ;;  %v14963_v7 = vcombine.high %v10128_v13, %v10136_v30 }
0x53fd   :  { %v16229_v12 = vpop.eup %16228 }
0x53fe   :  { %v11147_v11 = vmul.f32 %v16229_v12, %v11139_v28  ;;  %v10123_v28 = vld [vmem:[#allocation13 + $0x8e0] sm:$0xff] }
0x53ff   :  { %v14947_v59 = vcombine.high %v10115_v43, %v10123_v28  ;;  %v14946_v55 = vcombine.low %v10115_v43, %v10123_v28  ;;  %v17968_v43 = vld [vmem:[#allocation16 + $0x40] sm:$0xff] }
0x5400   :  { %v11151_v18 = vmul.f32 %v11149_v42, %v11147_v11  ;;  %v14962_v42 = vcombine.low %v10128_v13, %v10136_v30  ;;  %v11162_v28 = vrot.slane %v17968_v43, %v16848_v27  ;;  %v11170_v17 = vrot.slane %v17968_v43, %v16921_v29 }
0x5401   :  { %v11166_v48 = vrot.slane %v17968_v43, %v16930_v31 }
0x5402   :  { %v17934_v24 = vadd.f32 %v11153_v5, %v11151_v18  ;;  %v10144_v5 = vld [vmem:[#allocation13 + $0x980] sm:$0xff] }
0x5403   :  { %v10152_v18 = vld [vmem:[#allocation13 + $0x9c0] sm:$0xff] }
0x5404   :  { %v17938_v54 = vpack.c.bf16 %v17934_v24, %v17934_v24  ;;  %v14979_v33 = vcombine.high %v10144_v5, %v10152_v18  ;;  %v14978_v1 = vcombine.low %v10144_v5, %v10152_v18 }
0x5406   :  { %14954 = vmatmul.mubr.msk.bf16.vlgmr.msra.gmra.mrb[220].mxu0 %vm170_vm1, %v17938_v54  ;;  %14955 = vmatmul.mubr.msk.bf16.vlgmr.msra.gmra.mrb[224].mxu1 %vm170_vm1, %v17938_v54 }
0x5407   :  { %11485 = vmatpush1.bf16.msra.mxu0 %v14926_v22  ;;  %11526 = vmatpush1.bf16.msra.mxu1 %v14928_v8  ;;  %v14953_v22 = vcombine.high %v10118_v45, %v10126_v6  ;;  %v10129_v8 = vld [vmem:[#allocation13 + $0x908] sm:$0xff]  ;;  %v10146_v45 = vld [vmem:[#allocation13 + $0x990] sm:$0xff] }
0x5408   :  { %11486 = vmatprep.subr.bf16.mxu0 %v14943_v15  ;;  %11527 = vmatprep.subr.bf16.mxu1 %v14945_v14  ;;  %v14965_v12 = vcombine.high %v10129_v8, %v10137_v9  ;;  %v14964_v11 = vcombine.low %v10129_v8, %v10137_v9  ;;  %v14980_v15 = vcombine.low %v10145_v35, %v10153_v41 }
0x5409   :  { %11516 = vmatprep.mubr.bf16.mxu0 %v16509_v3  ;;  %11557 = vmatprep.mubr.bf16.mxu1 %v16509_v3  ;;  %v14981_v14 = vcombine.high %v10145_v35, %v10153_v41  ;;  %v11182_v8 = vrot.slane %v17968_v43, %v17039_v52  ;;  %v11190_v9 = vrot.slane %v17968_v43, %v17042_v53 }
0x540b   :  { %11487 = vmatpush1.bf16.msra.mxu0 %v14942_v39  ;;  %11528 = vmatpush1.bf16.msra.mxu1 %v14944_v32  ;;  %v14966_v39 = vcombine.low %v10130_v38, %v10138_v10  ;;  %v14968_v32 = vcombine.low %v10131_v44, %v10139_v37 }
0x540c   :  { %11566 = vmatprep.subr.bf16.mxu0 %v14931_v36  ;;  %11607 = vmatprep.subr.bf16.mxu1 %v14933_v16  ;;  %v14969_v36 = vcombine.high %v10131_v44, %v10139_v37  ;;  %v17964_v16 = vrot.slane %v17802_v2, %v17020_v34  ;;  %v17986_v44 = vld [vmem:[#allocation16 + $0x48] sm:$0xff] }
0x540e   :  { %14956 = vmatmul.mubr.msk.bf16.vlgmr.msra.gmra.mrb[224].mxu0 %vm170_vm1, %v17938_v54  ;;  %14957 = vmatmul.mubr.msk.bf16.vlgmr.msra.gmra.mrb[228].mxu1 %vm170_vm1, %v17938_v54 }
0x540f   :  { %11567 = vmatpush1.bf16.msra.mxu0 %v14930_v49  ;;  %11608 = vmatpush1.bf16.msra.mxu1 %v14932_v57  ;;  %v11174_v49 = vrot.slane %v17968_v43, %v17020_v34 }
0x5410   :  { %11568 = vmatprep.subr.bf16.mxu0 %v14947_v59  ;;  %11609 = vmatprep.subr.bf16.mxu1 %v14949_v23 }
0x5411   :  { %11598 = vmatprep.mubr.bf16.mxu0 %v16509_v3  ;;  %11639 = vmatprep.mubr.bf16.mxu1 %v16509_v3 }
0x5412   :  { %11927 = vrot.lane.b32.xlu1 %v17964_v16, %s16491_s3 }
0x5413   :  { %11569 = vmatpush1.bf16.msra.mxu0 %v14946_v55  ;;  %11610 = vmatpush1.bf16.msra.mxu1 %v14948_v51 }
0x5414   :  { %11648 = vmatprep.subr.bf16.mxu0 %v14935_v46  ;;  %11689 = vmatprep.subr.bf16.mxu1 %v14937_v60 }
0x5416   :  { %14958 = vmatmul.mubr.msk.bf16.vlgmr.msra.gmra.mrb[228].mxu0 %vm170_vm1, %v17938_v54  ;;  %14959 = vmatmul.mubr.msk.bf16.vlgmr.msra.gmra.mrb[232].mxu1 %vm170_vm1, %v17938_v54 }
0x5417   :  { %11649 = vmatpush1.bf16.msra.mxu0 %v14934_v26  ;;  %11690 = vmatpush1.bf16.msra.mxu1 %v14936_v4  ;;  %v10154_v4 = vld [vmem:[#allocation13 + $0x9d0] sm:$0xff] }
0x5418   :  { %11650 = vmatprep.subr.bf16.mxu0 %v14951_v21  ;;  %11691 = vmatprep.subr.bf16.mxu1 %v14953_v22  ;;  %v10147_v21 = vld [vmem:[#allocation13 + $0x998] sm:$0xff] }
0x5419   :  { %11680 = vmatprep.mubr.bf16.mxu0 %v16509_v3  ;;  %11721 = vmatprep.mubr.bf16.mxu1 %v16509_v3  ;;  %v10155_v22 = vld [vmem:[#allocation13 + $0x9d8] sm:$0xff] }
0x541b   :  { %11651 = vmatpush1.bf16.msra.mxu0 %v14950_v0  ;;  %11692 = vmatpush1.bf16.msra.mxu1 %v14952_v19 }
0x541c   :  { %11930 = vmatprep.subr.bf16.mxu0 %v14963_v7  ;;  %11970 = vmatprep.subr.bf16.mxu1 %v14965_v12  ;;  %v14983_v7 = vcombine.high %v10146_v45, %v10154_v4  ;;  %v14985_v12 = vcombine.high %v10147_v21, %v10155_v22 }
0x541e   :  { %14960 = vmatmul.mubr.msk.bf16.vlgmr.msra.gmra.mrb[232].mxu0 %vm170_vm1, %v17938_v54  ;;  %14961 = vmatmul.mubr.msk.bf16.vlgmr.msra.gmra.mrb[236].mxu1 %vm170_vm1, %v17938_v54  ;;  %v14967_v54 = vcombine.high %v10130_v38, %v10138_v10 }
0x5424   :  { %11931 = vmatpush1.bf16.xpose.msra.mxu0 %v14962_v42  ;;  %11971 = vmatpush1.bf16.xpose.msra.mxu1 %v14964_v11 }
0x5425   :  { %11932 = vmatprep.subr.bf16.mxu0 %v14979_v33  ;;  %11972 = vmatprep.subr.bf16.mxu1 %v14981_v14  ;;  %v11186_v14 = vrot.slane %v17968_v43, %v17048_v63 }
0x542c   :  { %11933 = vmatpush1.bf16.xpose.msra.mxu0 %v14978_v1  ;;  %11973 = vmatpush1.bf16.xpose.msra.mxu1 %v14980_v15  ;;  %v11178_v15 = vrot.slane %v17968_v43, %v17045_v62  ;;  %v11206_v43 = vrot.slane %v17986_v44, %v17020_v34 }
0x542d   :  { %12010 = vmatprep.subr.bf16.mxu0 %v14967_v54  ;;  %12050 = vmatprep.subr.bf16.mxu1 %v14969_v36  ;;  %v10132_v54 = vld [vmem:[#allocation13 + $0x920] sm:$0xff] }
0x54d9   :  { %v11436_v57 = vpop.f32.mrb[220].mxu0  ;;  %v11477_v2 = vpop.f32.mrb[224].mxu1 }
0x54da   :  { %v11437_v59 = vadd.f32 %v11436_v57, %v11162_v28  ;;  %v11478_v23 = vadd.f32 %v11477_v2, %v11170_v17  ;;  %v11438_v58 = vpop.f32.mrb[221].mxu0  ;;  %v11479_v40 = vpop.f32.mrb[225].mxu1  ;;  %v10140_v28 = vld [vmem:[#allocation13 + $0x960] sm:$0xff]  ;;  %v14982_v17 = vcombine.low %v10146_v45, %v10154_v4  ;;  %v11198_v2 = vrot.slane %v17986_v44, %v16930_v31 }
0x54db   :  { %v11439_v61 = vadd.f32 %v11438_v58, %v11166_v48  ;;  %v11480_v25 = vadd.f32 %v11479_v40, %v11174_v49  ;;  %v11440_v55 = vpop.f32.mrb[222].mxu0  ;;  %v11481_v51 = vpop.f32.mrb[226].mxu1  ;;  %v14984_v48 = vcombine.low %v10147_v21, %v10155_v22  ;;  %v14971_v58 = vcombine.high %v10132_v54, %v10140_v28 }
0x54dc   :  { %v11730_v46 = vmax.f32 %v11437_v59, 0.0  ;;  %v11732_v60 = vmax.f32 %v11478_v23, 0.0  ;;  %v11441_v47 = vpop.f32.mrb[223].mxu0  ;;  %v11482_v56 = vpop.f32.mrb[227].mxu1 }
0x54dd   :  { %v11731_v6 = vmax.f32 %v11439_v61, 0.0  ;;  %v11733_v26 = vmax.f32 %v11480_v25, 0.0 }
0x54de   :  { %v11746_v0 = vpack.c.bf16 %v11730_v46, %v11730_v46  ;;  %v11748_v19 = vpack.c.bf16 %v11732_v60, %v11732_v60 }
0x54df   :  { %v11747_v13 = vpack.c.bf16 %v11731_v6, %v11731_v6  ;;  %v11749_v30 = vpack.c.bf16 %v11733_v26, %v11733_v26 }
0x54e1   :  { %v11518_v42 = vpop.f32.mrb[224].mxu0  ;;  %v11559_v11 = vpop.f32.mrb[228].mxu1  ;;  %11962 = vmatprep.mubr.bf16.mxu0 %v11747_v13  ;;  %12002 = vmatprep.mubr.bf16.mxu1 %v11749_v30  ;;  %v10148_v13 = vld [vmem:[#allocation13 + $0x9a0] sm:$0xff] }
0x54e2   :  { %v11520_v5 = vpop.f32.mrb[225].mxu0  ;;  %v11561_v18 = vpop.f32.mrb[229].mxu1  ;;  %11963 = vmatmul.mubr.bf16.vlgmr.msra.gmra.mrb[236].mxu0 %v11746_v0  ;;  %12003 = vmatmul.mubr.bf16.vlgmr.msra.gmra.mrb[240].mxu1 %v11748_v19  ;;  %v11519_v59 = vadd.f32 %v11518_v42, %v11178_v15  ;;  %v11560_v23 = vadd.f32 %v11559_v11, %v11186_v14  ;;  %v10156_v30 = vld [vmem:[#allocation13 + $0x9e0] sm:$0xff]  ;;  %v14970_v19 = vcombine.low %v10132_v54, %v10140_v28  ;;  %v10142_v28 = vld [vmem:[#allocation13 + $0x970] sm:$0xff] }
0x54e3   :  { %v11521_v35 = vadd.f32 %v11520_v5, %v11182_v8  ;;  %v11562_v33 = vadd.f32 %v11561_v18, %v11190_v9  ;;  %12011 = vmatpush1.bf16.xpose.msra.mxu0 %v14966_v39  ;;  %12051 = vmatpush1.bf16.xpose.msra.mxu1 %v14968_v32  ;;  %v11522_v41 = vpop.f32.mrb[226].mxu0  ;;  %v11563_v1 = vpop.f32.mrb[230].mxu1  ;;  %v10133_v39 = vld [vmem:[#allocation13 + $0x928] sm:$0xff] }
0x54e4   :  { %v11523_v38 = vpop.f32.mrb[227].mxu0  ;;  %v11564_v10 = vpop.f32.mrb[231].mxu1  ;;  %12012 = vmatprep.subr.bf16.mxu0 %v14983_v7  ;;  %12052 = vmatprep.subr.bf16.mxu1 %v14985_v12  ;;  %v10141_v32 = vld [vmem:[#allocation13 + $0x968] sm:$0xff]  ;;  %v11734_v45 = vmax.f32 %v11519_v59, 0.0  ;;  %v11736_v6 = vmax.f32 %v11560_v23, 0.0 }
0x54e5   :  { %v11735_v37 = vmax.f32 %v11521_v35, 0.0  ;;  %v11737_v36 = vmax.f32 %v11562_v33, 0.0  ;;  %v14973_v40 = vcombine.high %v10133_v39, %v10141_v32  ;;  %v10149_v8 = vld [vmem:[#allocation13 + $0x9a8] sm:$0xff]  ;;  %v14972_v11 = vcombine.low %v10133_v39, %v10141_v32  ;;  %v10135_v32 = vld [vmem:[#allocation13 + $0x938] sm:$0xff] }
0x54e6   :  { %v10157_v9 = vld [vmem:[#allocation13 + $0x9e8] sm:$0xff]  ;;  %v11750_v7 = vpack.c.bf16 %v11734_v45, %v11734_v45  ;;  %v11752_v12 = vpack.c.bf16 %v11736_v6, %v11736_v6  ;;  %v14987_v35 = vcombine.high %v10148_v13, %v10156_v30  ;;  %v11194_v38 = vrot.slane %v17986_v44, %v16848_v27  ;;  %v10151_v6 = vld [vmem:[#allocation13 + $0x9b8] sm:$0xff] }
0x54e7   :  { %v11751_v49 = vpack.c.bf16 %v11735_v37, %v11735_v37  ;;  %v11753_v57 = vpack.c.bf16 %v11737_v36, %v11737_v36  ;;  %v14989_v33 = vcombine.high %v10149_v8, %v10157_v9  ;;  %v11202_v37 = vrot.slane %v17986_v44, %v16921_v29  ;;  %v10134_v36 = vld [vmem:[#allocation13 + $0x930] sm:$0xff] }
0x54e8   :  { %v11214_v39 = vrot.slane %v17986_v44, %v17039_v52  ;;  %v14974_v45 = vcombine.low %v10134_v36, %v10142_v28 }
0x54e9   :  { %v11600_v61 = vpop.f32.mrb[228].mxu0  ;;  %v11641_v25 = vpop.f32.mrb[232].mxu1  ;;  %12042 = vmatprep.mubr.bf16.mxu0 %v11751_v49  ;;  %12082 = vmatprep.mubr.bf16.mxu1 %v11753_v57  ;;  %v14986_v49 = vcombine.low %v10148_v13, %v10156_v30 }
0x54ea   :  { %v11602_v55 = vpop.f32.mrb[229].mxu0  ;;  %v11643_v51 = vpop.f32.mrb[233].mxu1  ;;  %v11601_v57 = vadd.f32 %v11600_v61, %v11194_v38  ;;  %v11642_v59 = vadd.f32 %v11641_v25, %v11202_v37 }
0x54eb   :  { %v11603_v46 = vadd.f32 %v11602_v55, %v11198_v2  ;;  %v11644_v60 = vadd.f32 %v11643_v51, %v11206_v43  ;;  %12013 = vmatpush1.bf16.xpose.msra.mxu0 %v14982_v17  ;;  %12053 = vmatpush1.bf16.xpose.msra.mxu1 %v14984_v48  ;;  %v11604_v47 = vpop.f32.mrb[230].mxu0  ;;  %v11645_v56 = vpop.f32.mrb[234].mxu1  ;;  %v10143_v17 = vld [vmem:[#allocation13 + $0x978] sm:$0xff]  ;;  %v11222_v48 = vrot.slane %v17986_v44, %v17042_v53 }
0x54ec   :  { %v11605_v26 = vpop.f32.mrb[231].mxu0  ;;  %v11646_v4 = vpop.f32.mrb[235].mxu1  ;;  %12090 = vmatprep.subr.bf16.mxu0 %v14971_v58  ;;  %12130 = vmatprep.subr.bf16.mxu1 %v14973_v40  ;;  %v14988_v2 = vcombine.low %v10149_v8, %v10157_v9  ;;  %v14975_v43 = vcombine.high %v10134_v36, %v10142_v28  ;;  %v14977_v23 = vcombine.high %v10135_v32, %v10143_v17  ;;  %v11738_v55 = vmax.f32 %v11601_v57, 0.0  ;;  %v10158_v47 = vld [vmem:[#allocation13 + $0x9f0] sm:$0xff] }
0x54ed   :  { %v11739_v21 = vmax.f32 %v11603_v46, 0.0  ;;  %v11741_v22 = vmax.f32 %v11644_v60, 0.0  ;;  %v11740_v51 = vmax.f32 %v11642_v59, 0.0  ;;  %v10150_v60 = vld [vmem:[#allocation13 + $0x9b0] sm:$0xff]  ;;  %v10159_v26 = vld [vmem:[#allocation13 + $0x9f8] sm:$0xff]  ;;  %v14976_v4 = vcombine.low %v10135_v32, %v10143_v17 }
0x54ee   :  { %v11754_v61 = vpack.c.bf16 %v11738_v55, %v11738_v55  ;;  %v14991_v25 = vcombine.high %v10150_v60, %v10158_v47  ;;  %v14993_v13 = vcombine.high %v10151_v6, %v10159_v26  ;;  %v11210_v8 = vrot.slane %v17986_v44, %v17045_v62 }
0x54ef   :  { %v11755_v0 = vpack.c.bf16 %v11739_v21, %v11739_v21  ;;  %v11757_v42 = vpack.c.bf16 %v11741_v22, %v11741_v22  ;;  %v11756_v21 = vpack.c.bf16 %v11740_v51, %v11740_v51  ;;  %v11218_v9 = vrot.slane %v17986_v44, %v17048_v63  ;;  %v11928_v44 = vpop.permute.xlu1 %11927 }
0x54f1   :  { %v17992_v5 = vpop.f32.mrb[232].mxu0  ;;  %v17994_v18 = vpop.f32.mrb[236].mxu1 }
0x54f2   :  { %12043 = vmatmul.mubr.bf16.vlgmr.msra.gmra.mrb[240].mxu0 %v11750_v7  ;;  %12083 = vmatmul.mubr.bf16.vlgmr.msra.gmra.mrb[244].mxu1 %v11752_v12  ;;  %v11684_v41 = vpop.f32.mrb[233].mxu0  ;;  %v11725_v1 = vpop.f32.mrb[237].mxu1  ;;  %v14992_v7 = vcombine.low %v10151_v6, %v10159_v26  ;;  %v11724_v12 = vadd.f32 %v17994_v18, %v11218_v9 }
0x54f3   :  { %12091 = vmatpush1.bf16.xpose.msra.mxu0 %v14970_v19  ;;  %12122 = vmatprep.mubr.bf16.mxu0 %v11755_v0  ;;  %v11686_v15 = vpop.f32.mrb[234].mxu0  ;;  %v11727_v14 = vpop.f32.mrb[238].mxu1  ;;  %v11685_v58 = vadd.f32 %v11684_v41, %v11214_v39  ;;  %v11726_v40 = vadd.f32 %v11725_v1, %v11222_v48  ;;  %v14990_v0 = vcombine.low %v10150_v60, %v10158_v47 }
0x54f4   :  { %12131 = vmatpush1.bf16.xpose.msra.mxu1 %v14972_v11  ;;  %12162 = vmatprep.mubr.bf16.mxu1 %v11757_v42  ;;  %v11687_v10 = vpop.f32.mrb[235].mxu0  ;;  %v11728_v54 = vpop.f32.mrb[239].mxu1  ;;  %v11683_v19 = vadd.f32 %v17992_v5, %v11210_v8  ;;  %v11744_v11 = vmax.f32 %v11724_v12, 0.0 }
0x54f5   :  { %12092 = vmatprep.subr.bf16.mxu0 %v14987_v35  ;;  %12132 = vmatprep.subr.bf16.mxu1 %v14989_v33  ;;  %v11743_v46 = vmax.f32 %v11685_v58, 0.0  ;;  %v11745_v56 = vmax.f32 %v11726_v40, 0.0 }
0x54f6   :  { %v11742_v42 = vmax.f32 %v11683_v19, 0.0  ;;  %v11760_v33 = vpack.c.bf16 %v11744_v11, %v11744_v11  ;;  %v16118_v11 = vld [vmem:[#allocation11 + $0xa0] sm:$0xff]  }
0x54f7   :  { %v11759_v22 = vpack.c.bf16 %v11743_v46, %v11743_v46  ;;  %v11761_v30 = vpack.c.bf16 %v11745_v56, %v11745_v56 }
0x54f8   :  { %v11758_v35 = vpack.c.bf16 %v11742_v42, %v11742_v42 }
0x54fb   :  { %12093 = vmatpush1.bf16.xpose.msra.mxu0 %v14986_v49 }
0x54fc   :  { %12133 = vmatpush1.bf16.xpose.msra.mxu1 %v14988_v2  ;;  %12170 = vmatprep.subr.bf16.mxu0 %v14975_v43 }
0x54fd   :  { %12210 = vmatprep.subr.bf16.mxu1 %v14977_v23 }
0x5502   :  { %12123 = vmatmul.mubr.bf16.vlgmr.msra.gmra.mrb[244].mxu0 %v11754_v61 }
0x5503   :  { %12163 = vmatmul.mubr.bf16.vlgmr.msra.gmra.mrb[248].mxu1 %v11756_v21  ;;  %12171 = vmatpush1.bf16.xpose.msra.mxu0 %v14974_v45 }
0x5504   :  { %12202 = vmatprep.mubr.bf16.mxu0 %v11759_v22  ;;  %12211 = vmatpush1.bf16.xpose.msra.mxu1 %v14976_v4 }
0x5505   :  { %12242 = vmatprep.mubr.bf16.mxu1 %v11761_v30  ;;  %12172 = vmatprep.subr.bf16.mxu0 %v14991_v25 }
0x5506   :  { %12212 = vmatprep.subr.bf16.mxu1 %v14993_v13 }
0x550b   :  { %12173 = vmatpush1.bf16.xpose.msra.mxu0 %v14990_v0 }
0x550c   :  { %12213 = vmatpush1.bf16.xpose.msra.mxu1 %v14992_v7  ;;  %15881 = vmatprep.subr.bf16.mxu0 %v16502_v50 }
0x550d   :  { %15889 = vmatprep.subr.mxu1 %v16502_v50 }
0x5512   :  { %12203 = vmatmul.mubr.bf16.vlgmr.msra.gmra.mrb[248].mxu0 %v11758_v35  ;;  %v18022_v35 = vld [vmem:[#allocation11 + $0xa8] sm:$0xff]  }
0x5513   :  { %12243 = vmatmul.mubr.bf16.vlgmr.msra.gmra.mrb[252].mxu1 %v11760_v33  ;;  %15885 = vmatprep.mubr.msk.bf16.mxu0 %vm16503_vm4, %v16502_v50 }
0x5514   :  { %15891 = vmatprep.mubr.msk.f32.mxu1 %vm16503_vm4, %v16502_v50  ;;  %15882 = vmatpush3.bf16.msra.mxu0 %v16118_v11 }
0x5515   :  { %15883 = vmatprep.subr.bf16.mxu0 %v16502_v50 }
0x5518   :  { %15884 = vmatpush3.bf16.msra.mxu0 %v18022_v35 }
0x5519   :  { %15894 = vmatprep.subr.mxu0 %v16502_v50 }
0x55b5   :  { %v12004_v5 = vpop.f32.mrb[240].mxu1  ;;  %v11964_v18 = vpop.f32.mrb[236].mxu0 }
0x55b6   :  { %v11965_v41 = vadd.f32 %v11964_v18, %v11928_v44  ;;  %v11966_v1 = vpop.f32.mrb[237].mxu0  ;;  %v12006_v15 = vpop.f32.mrb[241].mxu1 }
0x55b7   :  { %v11967_v14 = vpop.f32.mrb[238].mxu0  ;;  %v12007_v38 = vpop.f32.mrb[242].mxu1 }
0x55b8   :  { %v11968_v10 = vpop.f32.mrb[239].mxu0  ;;  %v12008_v54 = vpop.f32.mrb[243].mxu1  ;;  %v12005_v37 = vadd.f32 %v12004_v5, %v11965_v41  ;;  %v18034_v38 = vld [vmem:[#allocation14 + $0x14] sm:$0xf] }
0x55b9   :  { %v18038_v10 = vrot.slane %v18034_v38, %v16848_v27 }
0x55c5   :  { %v12044_v36 = vpop.f32.mrb[240].mxu0  ;;  %v12084_v28 = vpop.f32.mrb[244].mxu1 }
0x55c6   :  { %v12045_v39 = vadd.f32 %v12044_v36, %v12005_v37  ;;  %v12046_v32 = vpop.f32.mrb[241].mxu0  ;;  %v12086_v17 = vpop.f32.mrb[245].mxu1 }
0x55c7   :  { %v12047_v48 = vpop.f32.mrb[242].mxu0  ;;  %v12087_v49 = vpop.f32.mrb[246].mxu1 }
0x55c8   :  { %v12085_v57 = vadd.f32 %v12084_v28, %v12045_v39  ;;  %v12048_v2 = vpop.f32.mrb[243].mxu0  ;;  %v12088_v43 = vpop.f32.mrb[247].mxu1 }
0x55d5   :  { %v12124_v59 = vpop.f32.mrb[244].mxu0 }
0x55d6   :  { %v12125_v23 = vadd.f32 %v12124_v59, %v12085_v57  ;;  %v12164_v58 = vpop.f32.mrb[248].mxu1  ;;  %v12126_v40 = vpop.f32.mrb[245].mxu0 }
0x55d7   :  { %v12166_v55 = vpop.f32.mrb[249].mxu1  ;;  %v12127_v51 = vpop.f32.mrb[246].mxu0 }
0x55d8   :  { %v12165_v46 = vadd.f32 %v12164_v58, %v12125_v23  ;;  %v12167_v60 = vpop.f32.mrb[250].mxu1  ;;  %v12128_v47 = vpop.f32.mrb[247].mxu0 }
0x55d9   :  { %v12168_v56 = vpop.f32.mrb[251].mxu1 }
0x55e5   :  { %v12204_v45 = vpop.f32.mrb[248].mxu0 }
0x55e6   :  { %v12205_v6 = vadd.f32 %v12204_v45, %v12165_v46  ;;  %v12244_v26 = vpop.f32.mrb[252].mxu1  ;;  %v12206_v61 = vpop.f32.mrb[249].mxu0 }
0x55e7   :  { %v12246_v4 = vpop.f32.mrb[253].mxu1  ;;  %v12207_v21 = vpop.f32.mrb[250].mxu0 }
0x55e8   :  { %v12245_v25 = vadd.f32 %v12244_v26, %v12205_v6  ;;  %v12247_v22 = vpop.f32.mrb[254].mxu1  ;;  %v12208_v13 = vpop.f32.mrb[251].mxu0 }
0x55e9   :  { %v12248_v30 = vpop.f32.mrb[255].mxu1 }
0x55ea   :  { %v12250_v8 = vadd.f32 %v12245_v25, %v17934_v24 }
0x55ec   :  { %v12251_v9 = vsel %vm1861_vm10, %v12250_v8, 0.0 }
0x55ed   :  { %12252 = vadd.xlane.f32.xlu0 %v12251_v9 }
0x5603   :  { %12265 = vrot.lane.b32.xlu0 %v17964_v16, %s16504_s4 }
0x567a   :  { %v12253_v0 = vpop.xlane.xlu0 %12252 }
0x567b   :  { %v12254_v19 = vmul.f32 0.03125, %v12253_v0 }
0x567d   :  { %v12255_v7 = vsub.f32 %v12250_v8, %v12254_v19 }
0x567e   :  { %v12266_v41 = vpop.permute.xlu0 %12265 }
0x567f   :  { %v12256_v12 = vmul.f32 %v12255_v7, %v12255_v7 }
0x5681   :  { %v12257_v42 = vsel %vm1861_vm10, %v12256_v12, 0.0 }
0x5682   :  { %12258 = vadd.xlane.f32.xlu1 %v12257_v42 }
0x570f   :  { %v12259_v24 = vpop.xlane.xlu1 %12258 }
0x5710   :  { %v12260_v33 = vmul.f32 0.03125, %v12259_v24 }
0x5712   :  { %v12261_v44 = vadd.f32 1e-05, %v12260_v33 }
0x5714   :  { %16230 = vrsqrt.f32 %v12261_v44 }
0x571e   :  { %v16231_v5 = vpop.eup %16230 }
0x571f   :  { %v12263_v18 = vmul.f32 %v16231_v5, %v12255_v7 }
0x5721   :  { %v12264_v1 = vmul.f32 %v12263_v18, %v17964_v16 }
0x5723   :  { %v18027_v15 = vadd.f32 %v12266_v41, %v12264_v1 }
0x5725   :  { %v12350_v14 = vpack.c.bf16 %v18027_v15, %v18027_v15 }
0x5727   :  { %15886 = vmatmul.mubr.msk.bf16.vlgmr.msra.gmra.mrb[252].mxu0 %vm170_vm1, %v12350_v14 }
0x5728   :  { %15896 = vmatprep.mubr.msk.f32.mxu0 %vm16503_vm4, %v16502_v50 }
0x57fa   :  { %v12400_v54 = vpop.f32.mrb[252].mxu0 }
0x57fb   :  { %v12410_v37 = vadd.f32 %v18038_v10, %v12400_v54  ;;  %v15887_v16 = vpop.f32.mrb[253].mxu0  ;;  %v18088_v54 = vrot.slane %v18034_v38, %v16921_v29 }
0x57fc   :  { %v12403_v36 = vpop.f32.mrb[254].mxu0 }
0x57fd   :  { %12580 = vrot.lane.b32.xlu0 %v12410_v37, %s16505_s26  ;;  %12413 = vrot.lane.b32.xlu1 %v12410_v37, %s16504_s4  ;;  %v15888_v28 = vpop.f32.mrb[255].mxu0  ;;  %v12411_v39 = vmul.f32 0.25, %v12410_v37 }
0x5801   :  { %12578 = vrot.lane.b32.xlu1 %v12411_v39, %s16506_s15 }
0x586f   :  { %v12414_v32 = vpop.permute.xlu1 %12413  ;;  %v12581_v17 = vpop.permute.xlu0 %12580 }
0x5870   :  { %15890 = vmatpush3.xpose.msk.msra.mxu1 %vm1323_vm6, %v12414_v32  ;;  %v18109_v32 = vrot.slane %v18034_v38, %v16930_v31 }
0x5871   :  { %15899 = vmatprep.subr.mxu1 %v16502_v50 }
0x5873   :  { %15892 = vmatmul.mubr.msk.f32.vlgmr.msra.gmra.mrb[0].mxu1 %vm1323_vm6, %v12411_v39  ;;  %v12579_v48 = vpop.permute.xlu1 %12578 }
0x5874   :  { %15900 = vmatpush3.xpose.msk.msra.mxu1 %vm1323_vm6, %v12581_v17  ;;  %15901 = vmatprep.mubr.msk.f32.mxu1 %vm16503_vm4, %v16502_v50 }
0x5875   :  { %15909 = vmatprep.subr.bf16.mxu1 %v16502_v50 }
0x5877   :  { %15902 = vmatmul.mubr.msk.f32.vlgmr.msra.gmra.mrb[2].mxu1 %vm1323_vm6, %v12579_v48 }
0x5878   :  { %15913 = vmatprep.mubr.msk.bf16.mxu1 %vm16503_vm4, %v16502_v50 }
0x5946   :  { %v12486_v49 = vpop.f32.mrb[0].mxu1 }
0x5947   :  { %v15893_v57 = vpop.f32.mrb[1].mxu1  ;;  %v12490_v2 = vsel %vm1544_vm7, %v12486_v49, -inf }
0x5948   :  { %12491 = vmax.xlane.f32.xlu0 %v12490_v2 }
0x594a   :  { %v12652_v43 = vpop.f32.mrb[2].mxu1 }
0x594b   :  { %v15903_v59 = vpop.f32.mrb[3].mxu1  ;;  %v12656_v23 = vsel %vm1544_vm7, %v12652_v43, -inf }
0x594c   :  { %12657 = vmax.xlane.f32.xlu1 %v12656_v23 }
0x595d   :  { %12501 = vrot.lane.b32.xlu1 %v12410_v37, %s16491_s3 }
0x5961   :  { %12750 = vrot.lane.b32.xlu1 %v16118_v11, %s16508_s19 }
0x59d5   :  { %v12492_v58 = vpop.xlane.xlu0 %12491 }
0x59d6   :  { %v12493_v40 = vsub.f32 %v12486_v49, %v12492_v58 }
0x59d8   :  { %v12494_v55 = vmul.f32 1.442695, %v12493_v40 }
0x59d9   :  { %v12658_v51 = vpop.xlane.xlu1 %12657 }
0x59da   :  { %16232 = vpow2.f32 %v12494_v55  ;;  %v12659_v46 = vsub.f32 %v12652_v43, %v12658_v51 }
0x59dc   :  { %v12660_v60 = vmul.f32 1.442695, %v12659_v46 }
0x59dd   :  { %v12502_v47 = vpop.permute.xlu1 %12501 }
0x59de   :  { %16234 = vpow2.f32 %v12660_v60  ;;  %15895 = vmatpush3.msk.msra.mxu0 %vm1562_vm8, %v12502_v47 }
0x59df   :  { %15904 = vmatprep.subr.mxu0 %v16502_v50 }
0x59e1   :  { %v12751_v8 = vpop.permute.xlu1 %12750 }
0x59e2   :  { %15910 = vmatpush3.bf16.msra.mxu1 %v12751_v8 }
0x59e3   :  { %15911 = vmatprep.subr.bf16.mxu1 %v16502_v50 }
0x59e4   :  { %v16233_v56 = vpop.eup %16232 }
0x59e5   :  { %v12496_v45 = vsel %vm1544_vm7, %v16233_v56, 0.0 }
0x59e6   :  { %12497 = vadd.xlane.f32.xlu0 %v12496_v45 }
0x59e8   :  { %v16235_v6 = vpop.eup %16234 }
0x59e9   :  { %v12662_v26 = vsel %vm1544_vm7, %v16235_v6, 0.0 }
0x59ea   :  { %12663 = vadd.xlane.f32.xlu0 %v12662_v26 }
0x5a00   :  { %12667 = vrot.lane.b32.xlu0 %v12410_v37, %s16507_s14  ;;  %v18091_v37 = vld [vmem:[#allocation11 + $0xb8] sm:$0xff]  }
0x5a04   :  { %12752 = vrot.lane.b32.xlu0 %v18022_v35, %s16508_s19 }
0x5a73   :  { %v12498_v61 = vpop.xlane.xlu0 %12497 }
0x5a74   :  { %16236 = vrcp.f32 %v12498_v61 }
0x5a77   :  { %v12664_v4 = vpop.xlane.xlu0 %12663 }
0x5a78   :  { %16238 = vrcp.f32 %v12664_v4 }
0x5a7b   :  { %v12668_v22 = vpop.permute.xlu0 %12667 }
0x5a7e   :  { %v16237_v21 = vpop.eup %16236 }
0x5a7f   :  { %v12500_v25 = vmul.f32 %v16237_v21, %v16233_v56  ;;  %v12753_v9 = vpop.permute.xlu0 %12752 }
0x5a80   :  { %15912 = vmatpush3.bf16.msra.mxu1 %v12753_v9 }
0x5a81   :  { %15897 = vmatmul.mubr.msk.f32.vlgmr.msra.gmra.mrb[0].mxu0 %vm1558_vm9, %v12500_v25  ;;  %15925 = vmatprep.subr.bf16.mxu1 %v16502_v50 }
0x5a82   :  { %v16239_v13 = vpop.eup %16238  ;;  %15905 = vmatpush3.msk.msra.mxu0 %vm1562_vm8, %v12668_v22  ;;  %15906 = vmatprep.mubr.msk.f32.mxu0 %vm16503_vm4, %v16502_v50 }
0x5a83   :  { %v12666_v30 = vmul.f32 %v16239_v13, %v16235_v6  ;;  %15917 = vmatprep.subr.bf16.mxu0 %v16502_v50 }
0x5a85   :  { %15907 = vmatmul.mubr.msk.f32.vlgmr.msra.gmra.mrb[2].mxu0 %vm1558_vm9, %v12666_v30 }
0x5a86   :  { %15921 = vmatprep.mubr.msk.bf16.mxu0 %vm16503_vm4, %v16502_v50 }
0x5b54   :  { %v12574_v0 = vpop.f32.mrb[0].mxu0 }
0x5b55   :  { %v15898_v19 = vpop.f32.mrb[1].mxu0 }
0x5b58   :  { %v12740_v7 = vpop.f32.mrb[2].mxu0 }
0x5b59   :  { %12745 = vrot.lane.b32.xlu1 %v12740_v7, %s16501_s2  ;;  %v15908_v12 = vpop.f32.mrb[3].mxu0 }
0x5b5d   :  { %12757 = vrot.lane.b32.xlu1 %v18038_v10, %s16508_s19  ;;  %v18084_v10 = vld [vmem:[#allocation11 + $0xb0] sm:$0xff]  }
0x5b5e   :  { %15918 = vmatpush3.bf16.msra.mxu0 %v18084_v10 }
0x5b5f   :  { %15919 = vmatprep.subr.bf16.mxu0 %v16502_v50 }
0x5b62   :  { %15920 = vmatpush3.bf16.msra.mxu0 %v18091_v37 }
0x5b63   :  { %15933 = vmatprep.subr.mxu0 %v16502_v50 }
0x5b65   :  { %15922 = vmatmul.mubr.msk.bf16.vlgmr.msra.gmra.mrb[4].mxu0 %vm170_vm1, %v16913_v20 }
0x5b66   :  { %15935 = vmatprep.mubr.msk.f32.mxu0 %vm16503_vm4, %v16502_v50 }
0x5bcb   :  { %v12746_v42 = vpop.permute.xlu1 %12745 }
0x5bcc   :  { %v12748_v11 = vsel %vm1323_vm6, %v12574_v0, %v12746_v42 }
0x5bcd   :  { %v12749_v35 = vpack.c.bf16 %v12748_v11, %v12748_v11 }
0x5bcf   :  { %15914 = vmatmul.mubr.msk.bf16.vlgmr.msra.gmra.mrb[4].mxu1 %vm170_vm1, %v12749_v35  ;;  %v12758_v24 = vpop.permute.xlu1 %12757 }
0x5bd0   :  { %15929 = vmatprep.mubr.msk.bf16.mxu1 %vm16503_vm4, %v16502_v50  ;;  %15926 = vmatpush3.bf16.msra.mxu1 %v18084_v10 }
0x5bd1   :  { %15927 = vmatprep.subr.bf16.mxu1 %v16502_v50 }
0x5bd4   :  { %15928 = vmatpush3.bf16.msra.mxu1 %v18091_v37 }
0x5bd5   :  { %15943 = vmatprep.subr.mxu1 %v16502_v50 }
0x5c38   :  { %v12873_v17 = vpop.f32.mrb[4].mxu0 }
0x5c39   :  { %v12928_v48 = vadd.f32 %v18109_v32, %v12873_v17  ;;  %v15923_v49 = vpop.f32.mrb[5].mxu0 }
0x5c3a   :  { %v12876_v57 = vpop.f32.mrb[6].mxu0 }
0x5c3b   :  { %v15924_v20 = vpop.f32.mrb[7].mxu0 }
0x5ca2   :  { %v12797_v33 = vpop.f32.mrb[4].mxu1 }
0x5ca3   :  { %v12798_v44 = vadd.f32 %v12797_v33, %v12758_v24  ;;  %v15915_v5 = vpop.f32.mrb[5].mxu1 }
0x5ca4   :  { %v12800_v18 = vpop.f32.mrb[6].mxu1 }
0x5ca5   :  { %v12803_v41 = vadd.f32 %v12798_v44, %v18027_v15  ;;  %v15916_v1 = vpop.f32.mrb[7].mxu1 }
0x5ca7   :  { %v12804_v14 = vsel %vm1861_vm10, %v12803_v41, 0.0 }
0x5ca8   :  { %12805 = vadd.xlane.f32.xlu0 %v12804_v14 }
0x5cbe   :  { %12823 = vrot.lane.b32.xlu0 %v18088_v54, %s16504_s4 }
0x5cc2   :  { %13098 = vrot.lane.b32.xlu0 %v12928_v48, %s16505_s26 }
0x5d35   :  { %v12806_v15 = vpop.xlane.xlu0 %12805 }
0x5d36   :  { %v12807_v16 = vmul.f32 0.03125, %v12806_v15 }
0x5d38   :  { %v12808_v36 = vsub.f32 %v12803_v41, %v12807_v16 }
0x5d39   :  { %v12824_v40 = vpop.permute.xlu0 %12823 }
0x5d3a   :  { %v12809_v28 = vmul.f32 %v12808_v36, %v12808_v36 }
0x5d3c   :  { %v12810_v39 = vsel %vm1861_vm10, %v12809_v28, 0.0 }
0x5d3d   :  { %12811 = vadd.xlane.f32.xlu1 %v12810_v39  ;;  %v13099_v47 = vpop.permute.xlu0 %13098 }
0x5d4e   :  { %12931 = vrot.lane.b32.xlu1 %v12928_v48, %s16504_s4 }
0x5dca   :  { %v12812_v2 = vpop.xlane.xlu1 %12811 }
0x5dcb   :  { %v12813_v43 = vmul.f32 0.03125, %v12812_v2 }
0x5dcd   :  { %v12814_v59 = vadd.f32 1e-05, %v12813_v43 }
0x5dce   :  { %v12932_v60 = vpop.permute.xlu1 %12931 }
0x5dcf   :  { %16240 = vrsqrt.f32 %v12814_v59  ;;  %15934 = vmatpush3.xpose.msk.msra.mxu0 %vm1323_vm6, %v12932_v60 }
0x5dd0   :  { %15938 = vmatprep.subr.mxu0 %v16502_v50 }
0x5dd9   :  { %v16241_v23 = vpop.eup %16240 }
0x5dda   :  { %v12816_v58 = vmul.f32 %v16241_v23, %v12808_v36 }
0x5ddc   :  { %v12821_v55 = vmul.f32 %v18088_v54, %v12816_v58 }
0x5dde   :  { %v18115_v51 = vadd.f32 %v12824_v40, %v12821_v55 }
0x5de0   :  { %v12879_v46 = vpack.c.bf16 %v18115_v51, %v18115_v51 }
0x5de2   :  { %15930 = vmatmul.mubr.msk.bf16.vlgmr.msra.gmra.mrb[12].mxu1 %vm170_vm1, %v12879_v46 }
0x5de3   :  { %15945 = vmatprep.mubr.msk.f32.mxu1 %vm16503_vm4, %v16502_v50  ;;  %15944 = vmatpush3.xpose.msk.msra.mxu1 %vm1323_vm6, %v13099_v47 }
0x5de4   :  { %15953 = vmatprep.subr.bf16.mxu1 %v16502_v50 }
0x5eb5   :  { %v12917_v56 = vpop.f32.mrb[12].mxu1 }
0x5eb6   :  { %v12927_v45 = vadd.f32 %v18109_v32, %v12917_v56  ;;  %v15931_v6 = vpop.f32.mrb[13].mxu1 }
0x5eb7   :  { %v12920_v26 = vpop.f32.mrb[14].mxu1  ;;  %v12290_v6 = vld [vmem:[#allocation13 + $0xa40] sm:$0xff] }
0x5eb8   :  { %v12929_v61 = vmul.f32 0.25, %v12927_v45  ;;  %v15932_v4 = vpop.f32.mrb[15].mxu1  ;;  %v12282_v45 = vld [vmem:[#allocation13 + $0xa00] sm:$0xff] }
0x5eb9   :  { %v15019_v26 = vcombine.low %v12282_v45, %v12290_v6  ;;  %v12291_v4 = vld [vmem:[#allocation13 + $0xa48] sm:$0xff] }
0x5eba   :  { %13096 = vrot.lane.b32.xlu1 %v12929_v61, %s16506_s15  ;;  %15936 = vmatmul.mubr.msk.f32.vlgmr.msra.gmra.mrb[8].mxu0 %vm1323_vm6, %v12929_v61  ;;  %v15020_v61 = vcombine.high %v12282_v45, %v12290_v6 }
0x5ebb   :  { %15940 = vmatprep.mubr.msk.f32.mxu0 %vm16503_vm4, %v16502_v50 }
0x5f2c   :  { %v13097_v21 = vpop.permute.xlu1 %13096 }
0x5f2d   :  { %15946 = vmatmul.mubr.msk.f32.vlgmr.msra.gmra.mrb[8].mxu1 %vm1323_vm6, %v13097_v21 }
0x5f2e   :  { %15957 = vmatprep.mubr.msk.bf16.mxu1 %vm16503_vm4, %v16502_v50 }
0x5f8d   :  { %v13004_v25 = vpop.f32.mrb[8].mxu0 }
0x5f8e   :  { %v15937_v22 = vpop.f32.mrb[9].mxu0  ;;  %v13008_v13 = vsel %vm2070_vm11, %v13004_v25, -inf }
0x5f8f   :  { %13009 = vmax.xlane.f32.xlu0 %v13008_v13  ;;  %v12298_v22 = vld [vmem:[#allocation13 + $0xa80] sm:$0xff] }
0x5f90   :  { %v12306_v13 = vld [vmem:[#allocation13 + $0xac0] sm:$0xff] }
0x6000   :  { %v13170_v30 = vpop.f32.mrb[8].mxu1 }
0x6001   :  { %v15947_v8 = vpop.f32.mrb[9].mxu1  ;;  %v13174_v9 = vsel %vm2070_vm11, %v13170_v30, -inf }
0x6002   :  { %13175 = vmax.xlane.f32.xlu1 %v13174_v9  ;;  %v15036_v8 = vcombine.high %v12298_v22, %v12306_v13  ;;  %v12307_v9 = vld [vmem:[#allocation13 + $0xac8] sm:$0xff] }
0x6013   :  { %13019 = vrot.lane.b32.xlu1 %v12928_v48, %s16491_s3 }
0x6017   :  { %13268 = vrot.lane.b32.xlu1 %v18084_v10, %s16508_s19 }
0x601c   :  { %v13010_v0 = vpop.xlane.xlu0 %13009 }
0x601d   :  { %v13011_v19 = vsub.f32 %v13004_v25, %v13010_v0  ;;  %v15035_v0 = vcombine.low %v12298_v22, %v12306_v13 }
0x601f   :  { %v13012_v7 = vmul.f32 1.442695, %v13011_v19 }
0x6021   :  { %16242 = vpow2.f32 %v13012_v7  ;;  %v12284_v7 = vld [vmem:[#allocation13 + $0xa10] sm:$0xff] }
0x602b   :  { %v16243_v12 = vpop.eup %16242 }
0x602c   :  { %v13014_v42 = vsel %vm2070_vm11, %v16243_v12, 0.0 }
0x602d   :  { %13015 = vadd.xlane.f32.xlu0 %v13014_v42  ;;  %v12285_v42 = vld [vmem:[#allocation13 + $0xa18] sm:$0xff] }
0x608f   :  { %v13176_v11 = vpop.xlane.xlu1 %13175 }
0x6090   :  { %v13177_v35 = vsub.f32 %v13170_v30, %v13176_v11  ;;  %v12299_v30 = vld [vmem:[#allocation13 + $0xa88] sm:$0xff] }
0x6091   :  { %v15037_v19 = vcombine.low %v12299_v30, %v12307_v9 }
0x6092   :  { %v13178_v24 = vmul.f32 1.442695, %v13177_v35 }
0x6093   :  { %v13020_v33 = vpop.permute.xlu1 %13019 }
0x6094   :  { %16244 = vpow2.f32 %v13178_v24  ;;  %15939 = vmatpush3.msk.msra.mxu0 %vm2088_vm12, %v13020_v33  ;;  %v12293_v24 = vld [vmem:[#allocation13 + $0xa58] sm:$0xff] }
0x6095   :  { %15948 = vmatprep.subr.mxu0 %v16502_v50  ;;  %v15025_v33 = vcombine.low %v12285_v42, %v12293_v24 }
0x609e   :  { %v16245_v44 = vpop.eup %16244 }
0x609f   :  { %v13180_v5 = vsel %vm2070_vm11, %v16245_v44, 0.0 }
0x60a0   :  { %13181 = vadd.xlane.f32.xlu0 %v13180_v5 }
0x60b6   :  { %13185 = vrot.lane.b32.xlu0 %v12928_v48, %s16507_s14 }
0x60ba   :  { %v13016_v18 = vpop.xlane.xlu0 %13015  ;;  %13270 = vrot.lane.b32.xlu0 %v18091_v37, %s16508_s19  ;;  %v13269_v37 = vpop.permute.xlu1 %13268 }
0x60bb   :  { %16246 = vrcp.f32 %v13016_v18  ;;  %15954 = vmatpush3.bf16.msra.mxu1 %v13269_v37  ;;  %v12300_v37 = vld [vmem:[#allocation13 + $0xa90] sm:$0xff] }
0x60bc   :  { %15955 = vmatprep.subr.bf16.mxu1 %v16502_v50 }
0x60c5   :  { %v16247_v41 = vpop.eup %16246 }
0x60c6   :  { %v13018_v1 = vmul.f32 %v16247_v41, %v16243_v12  ;;  %v12292_v12 = vld [vmem:[#allocation13 + $0xa50] sm:$0xff] }
0x60c7   :  { %v15023_v11 = vcombine.low %v12284_v7, %v12292_v12  ;;  %v15024_v35 = vcombine.high %v12284_v7, %v12292_v12 }
0x60c8   :  { %15941 = vmatmul.mubr.msk.f32.vlgmr.msra.gmra.mrb[12].mxu0 %vm2084_vm13, %v13018_v1 }
0x60c9   :  { %15950 = vmatprep.mubr.msk.f32.mxu0 %vm16503_vm4, %v16502_v50 }
0x612d   :  { %v13182_v14 = vpop.xlane.xlu0 %13181 }
0x612e   :  { %16248 = vrcp.f32 %v13182_v14 }
0x6131   :  { %v13186_v10 = vpop.permute.xlu0 %13185 }
0x6132   :  { %15949 = vmatpush3.msk.msra.mxu0 %vm2088_vm12, %v13186_v10 }
0x6133   :  { %13589 = vmatprep.subr.bf16.mxu0 %v15020_v61  ;;  %v12289_v61 = vld [vmem:[#allocation13 + $0xa38] sm:$0xff] }
0x6135   :  { %v13271_v36 = vpop.permute.xlu0 %13270 }
0x6136   :  { %15956 = vmatpush3.bf16.msra.mxu1 %v13271_v36  ;;  %v12308_v36 = vld [vmem:[#allocation13 + $0xad0] sm:$0xff] }
0x6138   :  { %v16249_v15 = vpop.eup %16248 }
0x6139   :  { %v13184_v16 = vmul.f32 %v16249_v15, %v16245_v44  ;;  %v15026_v44 = vcombine.high %v12285_v42, %v12293_v24  ;;  %v12315_v42 = vld [vmem:[#allocation13 + $0xb00] sm:$0xff]  ;;  %v12324_v24 = vld [vmem:[#allocation13 + $0xb48] sm:$0xff] }
0x613b   :  { %15951 = vmatmul.mubr.msk.f32.vlgmr.msra.gmra.mrb[14].mxu0 %vm2084_vm13, %v13184_v16 }
0x613c   :  { %13621 = vmatprep.mubr.bf16.mxu0 %v16509_v3  ;;  %13590 = vmatpush1.bf16.msra.mxu0 %v15019_v26  ;;  %v12296_v26 = vld [vmem:[#allocation13 + $0xa70] sm:$0xff] }
0x613d   :  { %13591 = vmatprep.subr.bf16.mxu0 %v15036_v8  ;;  %v12312_v8 = vld [vmem:[#allocation13 + $0xaf0] sm:$0xff] }
0x6140   :  { %13592 = vmatpush1.bf16.msra.mxu0 %v15035_v0  ;;  %v12313_v0 = vld [vmem:[#allocation13 + $0xaf8] sm:$0xff] }
0x6141   :  { %13671 = vmatprep.subr.bf16.mxu0 %v15024_v35  ;;  %v12316_v35 = vld [vmem:[#allocation13 + $0xb08] sm:$0xff] }
0x619b   :  { %v13092_v28 = vpop.f32.mrb[12].mxu0 }
0x619c   :  { %v15942_v39 = vpop.f32.mrb[13].mxu0 }
0x619d   :  { %v12309_v39 = vld [vmem:[#allocation13 + $0xad8] sm:$0xff] }
0x620e   :  { %v13258_v17 = vpop.f32.mrb[14].mxu0 }
0x620f   :  { %13263 = vrot.lane.b32.xlu1 %v13258_v17, %s16501_s2  ;;  %v15952_v48 = vpop.f32.mrb[15].mxu0 }
0x6213   :  { %13275 = vrot.lane.b32.xlu1 %v18109_v32, %s16508_s19 }
0x6281   :  { %v13264_v49 = vpop.permute.xlu1 %13263 }
0x6282   :  { %v13266_v57 = vsel %vm1323_vm6, %v13092_v28, %v13264_v49  ;;  %v12301_v28 = vld [vmem:[#allocation13 + $0xa98] sm:$0xff]  ;;  %v15040_v49 = vcombine.high %v12300_v37, %v12308_v36 }
0x6283   :  { %v13267_v20 = vpack.c.bf16 %v13266_v57, %v13266_v57  ;;  %v15042_v57 = vcombine.high %v12301_v28, %v12309_v39 }
0x6285   :  { %15958 = vmatmul.mubr.msk.bf16.vlgmr.msra.gmra.mrb[16].mxu1 %vm170_vm1, %v13267_v20  ;;  %v13276_v50 = vpop.permute.xlu1 %13275  ;;  %v12286_v20 = vld [vmem:[#allocation13 + $0xa20] sm:$0xff] }
0x6286   :  { %13662 = vmatprep.mubr.bf16.mxu1 %v16509_v3 }
0x6358   :  { %v13315_v2 = vpop.f32.mrb[16].mxu1 }
0x6359   :  { %v13316_v43 = vadd.f32 %v13315_v2, %v13276_v50  ;;  %v15959_v59 = vpop.f32.mrb[17].mxu1  ;;  %v12294_v50 = vld [vmem:[#allocation13 + $0xa60] sm:$0xff]  ;;  %v12287_v2 = vld [vmem:[#allocation13 + $0xa28] sm:$0xff] }
0x635a   :  { %v13318_v23 = vpop.f32.mrb[18].mxu1  ;;  %v15039_v59 = vcombine.low %v12300_v37, %v12308_v36  ;;  %v12340_v37 = vld [vmem:[#allocation13 + $0xbc8] sm:$0xff] }
0x635b   :  { %v13321_v58 = vadd.f32 %v13316_v43, %v18115_v51  ;;  %v15960_v40 = vpop.f32.mrb[19].mxu1  ;;  %v12283_v51 = vld [vmem:[#allocation13 + $0xa08] sm:$0xff]  ;;  %v15041_v23 = vcombine.low %v12301_v28, %v12309_v39  ;;  %v12317_v39 = vld [vmem:[#allocation13 + $0xb10] sm:$0xff] }
0x635c   :  { %v15021_v21 = vcombine.low %v12283_v51, %v12291_v4  ;;  %v15022_v25 = vcombine.high %v12283_v51, %v12291_v4  ;;  %v12295_v43 = vld [vmem:[#allocation13 + $0xa68] sm:$0xff]  ;;  %v12288_v51 = vld [vmem:[#allocation13 + $0xa30] sm:$0xff]  ;;  %v12297_v4 = vld [vmem:[#allocation13 + $0xa78] sm:$0xff] }
0x635d   :  { %v13322_v55 = vsel %vm1861_vm10, %v13321_v58, 0.0  ;;  %v15030_v40 = vcombine.high %v12287_v2, %v12295_v43  ;;  %v15032_v22 = vcombine.high %v12288_v51, %v12296_v26  ;;  %v15034_v13 = vcombine.high %v12289_v61, %v12297_v4 }
0x635e   :  { %13323 = vadd.xlane.f32.xlu0 %v13322_v55  ;;  %13630 = vmatprep.subr.bf16.mxu1 %v15022_v25  ;;  %v12302_v55 = vld [vmem:[#allocation13 + $0xaa0] sm:$0xff] }
0x635f   :  { %13631 = vmatpush1.bf16.msra.mxu1 %v15021_v21 }
0x6374   :  { %13335 = vrot.lane.b32.xlu0 %v18088_v54, %s16491_s3 }
0x63eb   :  { %v13324_v32 = vpop.xlane.xlu0 %13323 }
0x63ec   :  { %v13325_v46 = vmul.f32 0.03125, %v13324_v32  ;;  %v12310_v32 = vld [vmem:[#allocation13 + $0xae0] sm:$0xff] }
0x63ed   :  { %v15044_v45 = vcombine.high %v12302_v55, %v12310_v32  ;;  %v15043_v21 = vcombine.low %v12302_v55, %v12310_v32 }
0x63ee   :  { %v13326_v60 = vsub.f32 %v13321_v58, %v13325_v46  ;;  %v15028_v58 = vcombine.high %v12286_v20, %v12294_v50  ;;  %v12303_v46 = vld [vmem:[#allocation13 + $0xaa8] sm:$0xff] }
0x63ef   :  { %v13336_v14 = vpop.permute.xlu0 %13335 }
0x63f0   :  { %v13327_v47 = vmul.f32 %v13326_v60, %v13326_v60 }
0x63f2   :  { %v13328_v56 = vsel %vm1861_vm10, %v13327_v47, 0.0  ;;  %v15027_v47 = vcombine.low %v12286_v20, %v12294_v50  ;;  %v12326_v20 = vld [vmem:[#allocation13 + $0xb58] sm:$0xff] }
0x63f3   :  { %13329 = vadd.xlane.f32.xlu1 %v13328_v56  ;;  %v15029_v56 = vcombine.low %v12287_v2, %v12295_v43 }
0x6404   :  { %13339 = vrot.lane.b32.xlu1 %v18088_v54, %s16508_s19  ;;  %v15038_v54 = vcombine.high %v12299_v30, %v12307_v9  ;;  %v12304_v30 = vld [vmem:[#allocation13 + $0xab0] sm:$0xff]  ;;  %v12305_v9 = vld [vmem:[#allocation13 + $0xab8] sm:$0xff] }
0x6405   :  { %v15048_v7 = vcombine.high %v12304_v30, %v12312_v8  ;;  %v15050_v12 = vcombine.high %v12305_v9, %v12313_v0 }
0x6406   :  { %13632 = vmatprep.subr.bf16.mxu1 %v15038_v54  ;;  %v15033_v54 = vcombine.low %v12289_v61, %v12297_v4 }
0x6407   :  { %13633 = vmatpush1.bf16.msra.mxu1 %v15037_v19  ;;  %v15031_v19 = vcombine.low %v12288_v51, %v12296_v26 }
0x6408   :  { %13712 = vmatprep.subr.bf16.mxu1 %v15026_v44  ;;  %v15049_v44 = vcombine.low %v12305_v9, %v12313_v0  ;;  %v12341_v9 = vld [vmem:[#allocation13 + $0xbd0] sm:$0xff]  ;;  %v12334_v0 = vld [vmem:[#allocation13 + $0xb98] sm:$0xff] }
0x6480   :  { %v13330_v5 = vpop.xlane.xlu1 %13329 }
0x6481   :  { %v13331_v18 = vmul.f32 0.03125, %v13330_v5 }
0x6483   :  { %v13332_v41 = vadd.f32 1e-05, %v13331_v18  ;;  %v15062_v18 = vcombine.high %v12316_v35, %v12324_v24 }
0x6484   :  { %v13340_v15 = vpop.permute.xlu1 %13339 }
0x6485   :  { %16250 = vrsqrt.f32 %v13332_v41 }
0x648f   :  { %v16251_v1 = vpop.eup %16250 }
0x6490   :  { %v13334_v10 = vmul.f32 %v16251_v1, %v13326_v60  ;;  %v12311_v60 = vld [vmem:[#allocation13 + $0xae8] sm:$0xff]  ;;  %v15061_v1 = vcombine.low %v12316_v35, %v12324_v24 }
0x6491   :  { %v15046_v6 = vcombine.high %v12303_v46, %v12311_v60  ;;  %v15045_v25 = vcombine.low %v12303_v46, %v12311_v60 }
0x6492   :  { %v13338_v16 = vmul.f32 %v13336_v14, %v13334_v10  ;;  %v12331_v14 = vld [vmem:[#allocation13 + $0xb80] sm:$0xff] }
0x6493   :  { %v12339_v10 = vld [vmem:[#allocation13 + $0xbc0] sm:$0xff] }
0x6494   :  { %v18166_v17 = vadd.f32 %v13340_v15, %v13338_v16  ;;  %v12332_v15 = vld [vmem:[#allocation13 + $0xb88] sm:$0xff]  ;;  %v15076_v16 = vcombine.high %v12331_v14, %v12339_v10 }
0x6495   :  { %v15077_v36 = vcombine.low %v12332_v15, %v12340_v37  ;;  %v15078_v28 = vcombine.high %v12332_v15, %v12340_v37 }
0x6496   :  { %v18170_v48 = vpack.c.bf16 %v18166_v17, %v18166_v17 }
0x6498   :  { %15051 = vmatmul.mubr.msk.bf16.vlgmr.msra.gmra.mrb[16].mxu0 %vm170_vm1, %v18170_v48  ;;  %15052 = vmatmul.mubr.msk.bf16.vlgmr.msra.gmra.mrb[20].mxu1 %vm170_vm1, %v18170_v48 }
0x6499   :  { %13672 = vmatpush1.bf16.msra.mxu0 %v15023_v11  ;;  %13713 = vmatpush1.bf16.msra.mxu1 %v15025_v33  ;;  %v12323_v11 = vld [vmem:[#allocation13 + $0xb40] sm:$0xff]  ;;  %v15047_v33 = vcombine.low %v12304_v30, %v12312_v8 }
0x649a   :  { %13673 = vmatprep.subr.bf16.mxu0 %v15040_v49  ;;  %13714 = vmatprep.subr.bf16.mxu1 %v15042_v57  ;;  %v15060_v5 = vcombine.high %v12315_v42, %v12323_v11  ;;  %v15059_v41 = vcombine.low %v12315_v42, %v12323_v11  ;;  %v12325_v49 = vld [vmem:[#allocation13 + $0xb50] sm:$0xff]  ;;  %v12318_v57 = vld [vmem:[#allocation13 + $0xb18] sm:$0xff] }
0x649b   :  { %13703 = vmatprep.mubr.bf16.mxu0 %v16509_v3  ;;  %13744 = vmatprep.mubr.bf16.mxu1 %v16509_v3  ;;  %v15063_v50 = vcombine.low %v12317_v39, %v12325_v49  ;;  %v15065_v2 = vcombine.low %v12318_v57, %v12326_v20  ;;  %v15066_v43 = vcombine.high %v12318_v57, %v12326_v20  ;;  %v12320_v20 = vld [vmem:[#allocation13 + $0xb28] sm:$0xff] }
0x649d   :  { %13674 = vmatpush1.bf16.msra.mxu0 %v15039_v59  ;;  %13715 = vmatpush1.bf16.msra.mxu1 %v15041_v23  ;;  %v18196_v59 = vrot.slane %v18034_v38, %v17020_v34  ;;  %v18200_v23 = vld [vmem:[#allocation16 + $0x50] sm:$0xff] }
0x649e   :  { %13753 = vmatprep.subr.bf16.mxu0 %v15028_v58  ;;  %13794 = vmatprep.subr.bf16.mxu1 %v15030_v40  ;;  %v13349_v58 = vrot.slane %v18200_v23, %v16848_v27  ;;  %v13357_v40 = vrot.slane %v18200_v23, %v16921_v29  ;;  %v13353_v55 = vrot.slane %v18200_v23, %v16930_v31 }
0x649f   :  { %14114 = vrot.lane.b32.xlu0 %v18196_v59, %s16491_s3  ;;  %v13361_v32 = vrot.slane %v18200_v23, %v17020_v34  ;;  %v13377_v42 = vrot.slane %v18200_v23, %v17042_v53  ;;  %v13373_v37 = vrot.slane %v18200_v23, %v17048_v63  ;;  %s16510_s3 = smov [#allocation17]  }
0x64a0   :  { %15053 = vmatmul.mubr.msk.bf16.vlgmr.msra.gmra.mrb[20].mxu0 %vm170_vm1, %v18170_v48  ;;  %15054 = vmatmul.mubr.msk.bf16.vlgmr.msra.gmra.mrb[24].mxu1 %vm170_vm1, %v18170_v48  ;;  %s14463_s2 = sshll.u32 %s16510_s3, 4  ;;  %s14464_s2 = int_to_ptr.vmem [resolvable:$true] %s14463_s2 }
0x64a1   :  { %13754 = vmatpush1.bf16.msra.mxu0 %v15027_v47  ;;  %13795 = vmatpush1.bf16.msra.mxu1 %v15029_v56  ;;  %s16452_s22 = scalar_lea.vmem %s14464_s2, 32  ;;  %p16457_p3 = scmp.lt.s32.totalorder %s14464_s2, %s14464_s2 }
0x64a2   :  { %13755 = vmatprep.subr.bf16.mxu0 %v15044_v45  ;;  %13796 = vmatprep.subr.bf16.mxu1 %v15046_v6  ;;  %p16453_p2 = scmp.ne.s32.totalorder %s14464_s2, %s16452_s22  ;;  %p16458_p4 = scmp.lt.s32.totalorder %s16452_s22, %s16452_s22 }
0x64a3   :  { %13785 = vmatprep.mubr.bf16.mxu0 %v16509_v3  ;;  %13826 = vmatprep.mubr.bf16.mxu1 %v16509_v3 }
0x64a4   :  { %p16459_p5 = por %p16458_p4, %p16457_p3 }
0x64a5   :  { %13756 = vmatpush1.bf16.msra.mxu0 %v15043_v21  ;;  %13797 = vmatpush1.bf16.msra.mxu1 %v15045_v25 }
0x64a6   :  { %13835 = vmatprep.subr.bf16.mxu0 %v15032_v22  ;;  %13876 = vmatprep.subr.bf16.mxu1 %v15034_v13  ;;  %v12333_v13 = vld [vmem:[#allocation13 + $0xb90] sm:$0xff]  ;;  %p16460_p6 = pnand %p16459_p5, %p16453_p2 }
0x64a7   :  { %v15080_v24 = vcombine.high %v12333_v13, %v12341_v9 }
0x64a8   :  { %15055 = vmatmul.mubr.msk.bf16.vlgmr.msra.gmra.mrb[24].mxu0 %vm170_vm1, %v18170_v48  ;;  %15056 = vmatmul.mubr.msk.bf16.vlgmr.msra.gmra.mrb[28].mxu1 %vm170_vm1, %v18170_v48 }
0x64a9   :  { %13836 = vmatpush1.bf16.msra.mxu0 %v15031_v19  ;;  %13877 = vmatpush1.bf16.msra.mxu1 %v15033_v54  ;;  %v12342_v19 = vld [vmem:[#allocation13 + $0xbd8] sm:$0xff] }
0x64aa   :  { %13837 = vmatprep.subr.bf16.mxu0 %v15048_v7  ;;  %13878 = vmatprep.subr.bf16.mxu1 %v15050_v12  ;;  %v13369_v12 = vrot.slane %v18200_v23, %v17039_v52 }
0x64ab   :  { %13867 = vmatprep.mubr.bf16.mxu0 %v16509_v3  ;;  %13908 = vmatprep.mubr.bf16.mxu1 %v16509_v3  ;;  %v15075_v3 = vcombine.low %v12331_v14, %v12339_v10 }
0x64ad   :  { %13838 = vmatpush1.bf16.msra.mxu0 %v15047_v33  ;;  %13879 = vmatpush1.bf16.msra.mxu1 %v15049_v44  ;;  %v15082_v33 = vcombine.high %v12334_v0, %v12342_v19 }
0x64ae   :  { %14117 = vmatprep.subr.bf16.mxu0 %v15060_v5  ;;  %14157 = vmatprep.subr.bf16.mxu1 %v15062_v18 }
0x64b0   :  { %15057 = vmatmul.mubr.msk.bf16.vlgmr.msra.gmra.mrb[28].mxu0 %vm170_vm1, %v18170_v48  ;;  %15058 = vmatmul.mubr.msk.bf16.vlgmr.msra.gmra.mrb[32].mxu1 %vm170_vm1, %v18170_v48  ;;  %v15064_v48 = vcombine.high %v12317_v39, %v12325_v49  ;;  %v12319_v39 = vld [vmem:[#allocation13 + $0xb20] sm:$0xff] }
0x64b6   :  { %14118 = vmatpush1.bf16.xpose.msra.mxu0 %v15059_v41  ;;  %14158 = vmatpush1.bf16.xpose.msra.mxu1 %v15061_v1 }
0x64b7   :  { %14119 = vmatprep.subr.bf16.mxu0 %v15076_v16  ;;  %14159 = vmatprep.subr.bf16.mxu1 %v15078_v28  ;;  %v13365_v16 = vrot.slane %v18200_v23, %v17045_v62  ;;  %v18218_v28 = vld [vmem:[#allocation16 + $0x58] sm:$0xff] }
0x64b8   :  { %v13393_v23 = vrot.slane %v18218_v28, %v17020_v34 }
0x64be   :  { %14120 = vmatpush1.bf16.xpose.msra.mxu0 %v15075_v3  ;;  %14160 = vmatpush1.bf16.xpose.msra.mxu1 %v15077_v36 }
0x64bf   :  { %14197 = vmatprep.subr.bf16.mxu0 %v15064_v48  ;;  %14237 = vmatprep.subr.bf16.mxu1 %v15066_v43  ;;  %v12327_v48 = vld [vmem:[#allocation13 + $0xb60] sm:$0xff]  ;;  %v15081_v43 = vcombine.low %v12334_v0, %v12342_v19  ;;  %v12344_v0 = vld [vmem:[#allocation13 + $0xbe8] sm:$0xff] }
0x656b   :  { %v13623_v46 = vpop.f32.mrb[16].mxu0  ;;  %v13664_v38 = vpop.f32.mrb[20].mxu1 }
0x656c   :  { %v13624_v60 = vadd.f32 %v13623_v46, %v13349_v58  ;;  %v13665_v47 = vadd.f32 %v13664_v38, %v13357_v40  ;;  %v13625_v56 = vpop.f32.mrb[17].mxu0  ;;  %v13666_v45 = vpop.f32.mrb[21].mxu1  ;;  %v15068_v38 = vcombine.high %v12319_v39, %v12327_v48 }
0x656d   :  { %v13626_v6 = vadd.f32 %v13625_v56, %v13353_v55  ;;  %v13667_v51 = vadd.f32 %v13666_v45, %v13361_v32  ;;  %v13627_v26 = vpop.f32.mrb[18].mxu0  ;;  %v13668_v61 = vpop.f32.mrb[22].mxu1  ;;  %v13385_v55 = vrot.slane %v18218_v28, %v16930_v31 }
0x656e   :  { %v13917_v4 = vmax.f32 %v13624_v60, 0.0  ;;  %v13919_v21 = vmax.f32 %v13665_v47, 0.0  ;;  %v13628_v25 = vpop.f32.mrb[19].mxu0  ;;  %v13669_v22 = vpop.f32.mrb[23].mxu1 }
0x656f   :  { %v13918_v30 = vmax.f32 %v13626_v6, 0.0  ;;  %v13920_v8 = vmax.f32 %v13667_v51, 0.0 }
0x6570   :  { %v13933_v11 = vpack.c.bf16 %v13917_v4, %v13917_v4  ;;  %v13935_v35 = vpack.c.bf16 %v13919_v21, %v13919_v21 }
0x6571   :  { %v13934_v54 = vpack.c.bf16 %v13918_v30, %v13918_v30  ;;  %v13936_v7 = vpack.c.bf16 %v13920_v8, %v13920_v8  ;;  %v12335_v30 = vld [vmem:[#allocation13 + $0xba0] sm:$0xff] }
0x6572   :  { %v12343_v8 = vld [vmem:[#allocation13 + $0xbe0] sm:$0xff] }
0x6573   :  { %v13705_v44 = vpop.f32.mrb[20].mxu0  ;;  %v13746_v5 = vpop.f32.mrb[24].mxu1  ;;  %14149 = vmatprep.mubr.bf16.mxu0 %v13934_v54  ;;  %14189 = vmatprep.mubr.bf16.mxu1 %v13936_v7  ;;  %v15067_v54 = vcombine.low %v12319_v39, %v12327_v48  ;;  %v12322_v39 = vld [vmem:[#allocation13 + $0xb38] sm:$0xff] }
0x6574   :  { %v13707_v18 = vpop.f32.mrb[21].mxu0  ;;  %v13748_v41 = vpop.f32.mrb[25].mxu1  ;;  %14150 = vmatmul.mubr.bf16.vlgmr.msra.gmra.mrb[32].mxu0 %v13933_v11  ;;  %14190 = vmatmul.mubr.bf16.vlgmr.msra.gmra.mrb[36].mxu1 %v13935_v35  ;;  %v13706_v32 = vadd.f32 %v13705_v44, %v13365_v16  ;;  %v13747_v46 = vadd.f32 %v13746_v5, %v13373_v37  ;;  %v13389_v16 = vrot.slane %v18218_v28, %v16921_v29  ;;  %v12321_v37 = vld [vmem:[#allocation13 + $0xb30] sm:$0xff] }
0x6575   :  { %v13708_v1 = vadd.f32 %v13707_v18, %v13369_v12  ;;  %v13749_v14 = vadd.f32 %v13748_v41, %v13377_v42  ;;  %14198 = vmatpush1.bf16.xpose.msra.mxu0 %v15063_v50  ;;  %14238 = vmatpush1.bf16.xpose.msra.mxu1 %v15065_v2  ;;  %v13709_v10 = vpop.f32.mrb[22].mxu0  ;;  %v13750_v15 = vpop.f32.mrb[26].mxu1  ;;  %v12328_v50 = vld [vmem:[#allocation13 + $0xb68] sm:$0xff]  ;;  %v15079_v2 = vcombine.low %v12333_v13, %v12341_v9 }
0x6576   :  { %v13710_v3 = vpop.f32.mrb[23].mxu0  ;;  %v13751_v36 = vpop.f32.mrb[27].mxu1  ;;  %14199 = vmatprep.subr.bf16.mxu0 %v15080_v24  ;;  %14239 = vmatprep.subr.bf16.mxu1 %v15082_v33  ;;  %v15070_v60 = vcombine.high %v12320_v20, %v12328_v50  ;;  %v13921_v31 = vmax.f32 %v13706_v32, 0.0  ;;  %v13923_v21 = vmax.f32 %v13747_v46, 0.0  ;;  %v12336_v9 = vld [vmem:[#allocation13 + $0xba8] sm:$0xff]  ;;  %v15069_v11 = vcombine.low %v12320_v20, %v12328_v50  ;;  %v12345_v32 = vld [vmem:[#allocation13 + $0xbf0] sm:$0xff] }
0x6577   :  { %v13922_v49 = vmax.f32 %v13708_v1, 0.0  ;;  %v13924_v57 = vmax.f32 %v13749_v14, 0.0  ;;  %v15084_v33 = vcombine.high %v12335_v30, %v12343_v8  ;;  %v15086_v44 = vcombine.high %v12336_v9, %v12344_v0  ;;  %v12329_v3 = vld [vmem:[#allocation13 + $0xb70] sm:$0xff] }
0x6578   :  { %v13937_v7 = vpack.c.bf16 %v13921_v31, %v13921_v31  ;;  %v13939_v12 = vpack.c.bf16 %v13923_v21, %v13923_v21  ;;  %v13381_v14 = vrot.slane %v18218_v28, %v16848_v27  ;;  %v13401_v36 = vrot.slane %v18218_v28, %v17039_v52 }
0x6579   :  { %v13938_v58 = vpack.c.bf16 %v13922_v49, %v13922_v49  ;;  %v13940_v40 = vpack.c.bf16 %v13924_v57, %v13924_v57  ;;  %v12330_v49 = vld [vmem:[#allocation13 + $0xb78] sm:$0xff]  ;;  %v13409_v57 = vrot.slane %v18218_v28, %v17042_v53  ;;  %v15083_v27 = vcombine.low %v12335_v30, %v12343_v8 }
0x657a   :  { %v15085_v20 = vcombine.low %v12336_v9, %v12344_v0  ;;  %v15072_v50 = vcombine.high %v12321_v37, %v12329_v3  ;;  %v12338_v53 = vld [vmem:[#allocation13 + $0xbb8] sm:$0xff]  ;;  %v13405_v31 = vrot.slane %v18218_v28, %v17048_v63  ;;  %v14115_v9 = vpop.permute.xlu0 %14114 }
0x657b   :  { %v13787_v47 = vpop.f32.mrb[24].mxu0  ;;  %v13828_v56 = vpop.f32.mrb[28].mxu1  ;;  %14229 = vmatprep.mubr.bf16.mxu0 %v13938_v58  ;;  %14269 = vmatprep.mubr.bf16.mxu1 %v13940_v40 }
0x657c   :  { %v13789_v45 = vpop.f32.mrb[25].mxu0  ;;  %v13830_v6 = vpop.f32.mrb[29].mxu1  ;;  %v13788_v48 = vadd.f32 %v13787_v47, %v13381_v14 }
0x657d   :  { %v13790_v51 = vadd.f32 %v13789_v45, %v13385_v55  ;;  %v13831_v26 = vadd.f32 %v13830_v6, %v13393_v23  ;;  %14200 = vmatpush1.bf16.xpose.msra.mxu0 %v15079_v2  ;;  %14240 = vmatpush1.bf16.xpose.msra.mxu1 %v15081_v43  ;;  %v13791_v61 = vpop.f32.mrb[26].mxu0  ;;  %v13832_v4 = vpop.f32.mrb[30].mxu1  ;;  %v13829_v2 = vadd.f32 %v13828_v56, %v13389_v16  ;;  %v12337_v23 = vld [vmem:[#allocation13 + $0xbb0] sm:$0xff] }
0x657e   :  { %v13792_v25 = vpop.f32.mrb[27].mxu0  ;;  %v13833_v34 = vpop.f32.mrb[31].mxu1  ;;  %14277 = vmatprep.subr.bf16.mxu0 %v15068_v38  ;;  %14317 = vmatprep.subr.bf16.mxu1 %v15070_v60  ;;  %v15074_v43 = vcombine.high %v12322_v39, %v12330_v49  ;;  %v13925_v40 = vmax.f32 %v13788_v48, 0.0  ;;  %v15071_v38 = vcombine.low %v12321_v37, %v12329_v3  ;;  %v12346_v60 = vld [vmem:[#allocation13 + $0xbf8] sm:$0xff]  ;;  %v15073_v45 = vcombine.low %v12322_v39, %v12330_v49 }
0x657f   :  { %v13926_v22 = vmax.f32 %v13790_v51, 0.0  ;;  %v13928_v13 = vmax.f32 %v13831_v26, 0.0  ;;  %v13927_v55 = vmax.f32 %v13829_v2, 0.0  ;;  %v15088_v56 = vcombine.high %v12337_v23, %v12345_v32 }
0x6580   :  { %v13941_v47 = vpack.c.bf16 %v13925_v40, %v13925_v40  ;;  %v15090_v26 = vcombine.high %v12338_v53, %v12346_v60  ;;  %v13397_v4 = vrot.slane %v18218_v28, %v17045_v62  ;;  %v15087_v21 = vcombine.low %v12337_v23, %v12345_v32 }
0x6581   :  { %v13942_v19 = vpack.c.bf16 %v13926_v22, %v13926_v22  ;;  %v13944_v42 = vpack.c.bf16 %v13928_v13, %v13928_v13  ;;  %v13943_v6 = vpack.c.bf16 %v13927_v55, %v13927_v55  ;;  %v15089_v34 = vcombine.low %v12338_v53, %v12346_v60 }
0x6583   :  { %v18224_v35 = vpop.f32.mrb[28].mxu0  ;;  %v18226_v24 = vpop.f32.mrb[32].mxu1 }
0x6584   :  { %14230 = vmatmul.mubr.bf16.vlgmr.msra.gmra.mrb[36].mxu0 %v13937_v7  ;;  %14270 = vmatmul.mubr.bf16.vlgmr.msra.gmra.mrb[40].mxu1 %v13939_v12  ;;  %v13871_v5 = vpop.f32.mrb[29].mxu0  ;;  %v13912_v18 = vpop.f32.mrb[33].mxu1  ;;  %v13870_v25 = vadd.f32 %v18224_v35, %v13397_v4  ;;  %v13911_v22 = vadd.f32 %v18226_v24, %v13405_v31 }
0x6585   :  { %14278 = vmatpush1.bf16.xpose.msra.mxu0 %v15067_v54  ;;  %14309 = vmatprep.mubr.bf16.mxu0 %v13942_v19  ;;  %v13873_v41 = vpop.f32.mrb[30].mxu0  ;;  %v13914_v1 = vpop.f32.mrb[34].mxu1  ;;  %v13872_v58 = vadd.f32 %v13871_v5, %v13401_v36  ;;  %v13913_v29 = vadd.f32 %v13912_v18, %v13409_v57 }
0x6586   :  { %14318 = vmatpush1.bf16.xpose.msra.mxu1 %v15069_v11  ;;  %14349 = vmatprep.mubr.bf16.mxu1 %v13944_v42  ;;  %v13874_v10 = vpop.f32.mrb[31].mxu0  ;;  %v13915_v15 = vpop.f32.mrb[35].mxu1  ;;  %v13929_v13 = vmax.f32 %v13870_v25, 0.0  ;;  %v13931_v30 = vmax.f32 %v13911_v22, 0.0 }
0x6587   :  { %14279 = vmatprep.subr.bf16.mxu0 %v15084_v33  ;;  %14319 = vmatprep.subr.bf16.mxu1 %v15086_v44  ;;  %v13930_v52 = vmax.f32 %v13872_v58, 0.0  ;;  %v13932_v46 = vmax.f32 %v13913_v29, 0.0 }
0x6588   :  { %v13945_v8 = vpack.c.bf16 %v13929_v13, %v13929_v13  ;;  %v13947_v62 = vpack.c.bf16 %v13931_v30, %v13931_v30 }
0x6589   :  { %v13946_v51 = vpack.c.bf16 %v13930_v52, %v13930_v52  ;;  %v13948_v61 = vpack.c.bf16 %v13932_v46, %v13932_v46 }
0x658d   :  { %14280 = vmatpush1.bf16.xpose.msra.mxu0 %v15083_v27 }
0x658e   :  { %14320 = vmatpush1.bf16.xpose.msra.mxu1 %v15085_v20  ;;  %14357 = vmatprep.subr.bf16.mxu0 %v15072_v50 }
0x658f   :  { %14397 = vmatprep.subr.bf16.mxu1 %v15074_v43 }
0x6594   :  { %14310 = vmatmul.mubr.bf16.vlgmr.msra.gmra.mrb[40].mxu0 %v13941_v47 }
0x6595   :  { %14350 = vmatmul.mubr.bf16.vlgmr.msra.gmra.mrb[44].mxu1 %v13943_v6  ;;  %14358 = vmatpush1.bf16.xpose.msra.mxu0 %v15071_v38 }
0x6596   :  { %14389 = vmatprep.mubr.bf16.mxu0 %v13946_v51  ;;  %14398 = vmatpush1.bf16.xpose.msra.mxu1 %v15073_v45 }
0x6597   :  { %14429 = vmatprep.mubr.bf16.mxu1 %v13948_v61  ;;  %14359 = vmatprep.subr.bf16.mxu0 %v15088_v56 }
0x6598   :  { %14399 = vmatprep.subr.bf16.mxu1 %v15090_v26 }
0x659d   :  { %14360 = vmatpush1.bf16.xpose.msra.mxu0 %v15087_v21 }
0x659e   :  { %14400 = vmatpush1.bf16.xpose.msra.mxu1 %v15089_v34 }
0x65a4   :  { %14390 = vmatmul.mubr.bf16.vlgmr.msra.gmra.mrb[44].mxu0 %v13945_v8 }
0x65a5   :  { %14430 = vmatmul.mubr.bf16.vlgmr.msra.gmra.mrb[48].mxu1 %v13947_v62 }
0x6647   :  { %v14191_v0 = vpop.f32.mrb[36].mxu1  ;;  %v14151_v63 = vpop.f32.mrb[32].mxu0 }
0x6648   :  { %v14152_v28 = vadd.f32 %v14151_v63, %v14115_v9  ;;  %v14153_v19 = vpop.f32.mrb[33].mxu0  ;;  %v14193_v54 = vpop.f32.mrb[37].mxu1 }
0x6649   :  { %v14154_v7 = vpop.f32.mrb[34].mxu0  ;;  %v14194_v12 = vpop.f32.mrb[38].mxu1 }
0x664a   :  { %v14155_v42 = vpop.f32.mrb[35].mxu0  ;;  %v14195_v11 = vpop.f32.mrb[39].mxu1  ;;  %v14192_v35 = vadd.f32 %v14191_v0, %v14152_v28 }
0x6657   :  { %v14231_v24 = vpop.f32.mrb[36].mxu0  ;;  %v14271_v33 = vpop.f32.mrb[40].mxu1 }
0x6658   :  { %v14232_v44 = vadd.f32 %v14231_v24, %v14192_v35  ;;  %v14233_v5 = vpop.f32.mrb[37].mxu0  ;;  %v14273_v18 = vpop.f32.mrb[41].mxu1 }
0x6659   :  { %v14234_v41 = vpop.f32.mrb[38].mxu0  ;;  %v14274_v1 = vpop.f32.mrb[42].mxu1 }
0x665a   :  { %v14272_v14 = vadd.f32 %v14271_v33, %v14232_v44  ;;  %v14235_v10 = vpop.f32.mrb[39].mxu0  ;;  %v14275_v15 = vpop.f32.mrb[43].mxu1 }
0x6667   :  { %v14311_v16 = vpop.f32.mrb[40].mxu0 }
0x6668   :  { %v14312_v37 = vadd.f32 %v14311_v16, %v14272_v14  ;;  %v14351_v3 = vpop.f32.mrb[44].mxu1  ;;  %v14313_v36 = vpop.f32.mrb[41].mxu0 }
0x6669   :  { %v14353_v39 = vpop.f32.mrb[45].mxu1  ;;  %v14314_v49 = vpop.f32.mrb[42].mxu0 }
0x666a   :  { %v14352_v57 = vadd.f32 %v14351_v3, %v14312_v37  ;;  %v14354_v27 = vpop.f32.mrb[46].mxu1  ;;  %v14315_v48 = vpop.f32.mrb[43].mxu0 }
0x666b   :  { %v14355_v20 = vpop.f32.mrb[47].mxu1 }
0x6677   :  { %v14391_v50 = vpop.f32.mrb[44].mxu0 }
0x6678   :  { %v14392_v2 = vadd.f32 %v14391_v50, %v14352_v57  ;;  %v14431_v43 = vpop.f32.mrb[48].mxu1  ;;  %v14393_v58 = vpop.f32.mrb[45].mxu0 }
0x6679   :  { %v14433_v29 = vpop.f32.mrb[49].mxu1  ;;  %v14394_v40 = vpop.f32.mrb[46].mxu0 }
0x667a   :  { %v14432_v55 = vadd.f32 %v14431_v43, %v14392_v2  ;;  %v14434_v52 = vpop.f32.mrb[50].mxu1  ;;  %v14395_v23 = vpop.f32.mrb[47].mxu0 }
0x667b   :  { %v14435_v32 = vpop.f32.mrb[51].mxu1 }
0x667c   :  { %v14437_v46 = vadd.f32 %v14432_v55, %v18166_v17 }
0x667e   :  { %v14438_v38 = vsel %vm1861_vm10, %v14437_v46, 0.0 }
0x667f   :  { %14439 = vadd.xlane.f32.xlu1 %v14438_v38 }
0x670c   :  { %v14440_v53 = vpop.xlane.xlu1 %14439 }
0x670d   :  { %v14441_v60 = vmul.f32 0.03125, %v14440_v53 }
0x670f   :  { %v14442_v47 = vsub.f32 %v14437_v46, %v14441_v60 }
0x6711   :  { %v14443_v45 = vmul.f32 %v14442_v47, %v14442_v47 }
0x6713   :  { %v14444_v6 = vsel %vm1861_vm10, %v14443_v45, 0.0 }
0x6714   :  { %14445 = vadd.xlane.f32.xlu0 %v14444_v6 }
0x672a   :  { %14452 = vrot.lane.b32.xlu0 %v18196_v59, %s16504_s4 }
0x67a1   :  { %v14446_v56 = vpop.xlane.xlu0 %14445 }
0x67a2   :  { %v14447_v51 = vmul.f32 0.03125, %v14446_v56 }
0x67a4   :  { %v14448_v26 = vadd.f32 1e-05, %v14447_v51 }
0x67a5   :  { %v14453_v17 = vpop.permute.xlu0 %14452 }
0x67a6   :  { %16252 = vrsqrt.f32 %v14448_v26 }
0x67b0   :  { %v16253_v61 = vpop.eup %16252 }
0x67b1   :  { %v14450_v4 = vmul.f32 %v16253_v61, %v14442_v47 }
0x67b3   :  { %v14451_v31 = vmul.f32 %v14450_v4, %v18196_v59 }
0x67b5   :  { %v14455_v21 = vadd.f32 %v14453_v17, %v14451_v31 }
0x67b7   :  { %14456 = vst.msk [vmem:[#allocation17] sm:$0x3] %vm1861_vm10, %v14455_v21 }
0x67b8   :  { %16463 = shalt.err (!%p16460_p6)
}
0x67b9   :  { %s16464_s6 = scalar_lea.hbm %s18271_s10, 32 }
0x67ba   :  { %p16465_p7 = scmp.ne.s32.totalorder %s18271_s10, %s16464_s6  ;;  %p16468_p8 = scmp.lt.u32.totalorder %s16464_s6, %s18271_s10 }
0x67bc   :  { %p16470_p9 = pnand %p16468_p8, %p16465_p7 }
0x67be   :  { %16473 = shalt.err (!%p16470_p9)
}
0x67bf   :  { %14466 = dma.vmem_to_hbm [thread:$0]  %s14464_s2, 32, %s18271_s10, [#allocation4]  }
0x67c0   :  { %16484 = dma.done.wait [#allocation4], 32  }
0x67c1   :  { %16485 = vsyncadd [#allocation4], 4294967264 }
0x67c2   :  { %14470 = vsyncpa [#allocation3], 1 }
0x67c3   :  { %14471 = vsyncpa [#allocation6], 1 }
0x67c4   :  { %14472 = vsyncpa [#allocation9], 1 }
0x67c5   :  { %14473 = vsyncpa [#allocation12], 1 }
0x67c6   :  { %14474 = vsyncpa [#allocation15], 1 }
0x67c7   :  { %14475 = vsyncpa [#allocation4], 1 }

</bundles_post_ra>
